<compile_context>
chip_gen: v7x
topology: tpu7x:2x2x1
jax: 0.10.0
libtpu: 0.0.40
codegen_flags: <defaults>
</compile_context>

<pallas_src>
import functools

import jax
import jax.numpy as jnp
from jax import lax
from jax.experimental import pallas as pl
from jax.experimental.pallas import tpu as pltpu

EPS = 1e-5
LANE = 128


def _round_up(n, m=LANE):
    return ((n + m - 1) // m) * m


def _pick_row_tile(m):
    # Prefer big tiles (better HBM roofline fraction) but keep >= 4 grid steps so the
    # BlockSpec pipeline has something to overlap.
    for t in (1024, 512, 256, 128, 64, 32, 16, 8):
        if m % t == 0 and m // t >= 4:
            return t
    for t in (1024, 512, 256, 128, 64, 32, 16, 8):
        if m % t == 0:
            return t
    return m


def _vmem_limit_bytes():
    # ~half of physical VMEM, capped at 64 MiB: ~64 MiB on v5e/v6e (128 MiB physical),
    # ~32 MiB on v7x (64 MiB physical).
    try:
        info = pltpu.get_tpu_info()
        cap = int(getattr(info, "vmem_capacity_bytes", 128 * 1024 * 1024))
    except Exception:
        cap = 128 * 1024 * 1024
    return max(min(cap // 2, 64 * 1024 * 1024), 16 * 1024 * 1024)


# --------------------------------------------------------------------------------------
# Kernels
# --------------------------------------------------------------------------------------

def _bn_scale_shift(sum_ref, ssq_ref, g_ref, b_ref, inv_m):
    """Fold global (sum, sumsq) stats + affine into per-channel scale/shift (f32)."""
    mean = sum_ref[...] * inv_m
    var = jnp.maximum(ssq_ref[...] * inv_m - mean * mean, 0.0)   # biased (train-mode BN)
    scale = lax.rsqrt(var + EPS) * g_ref[...]
    shift = b_ref[...] - mean * scale
    return scale, shift


def _conv1x1_stats_kernel(x_ref, w_ref, h_ref, sum_ref, ssq_ref):
    """h = x @ w (bf16 MXU, f32 acc); write bf16 h + per-tile f32 BN partial stats."""
    x = x_ref[...].astype(jnp.bfloat16)
    h = jnp.dot(x, w_ref[...], preferred_element_type=jnp.float32)
    hb = h.astype(jnp.bfloat16)
    h_ref[...] = hb
    hf = hb.astype(jnp.float32)                       # stats of the value consumers see
    sum_ref[0] = jnp.sum(hf, axis=0, keepdims=True)
    ssq_ref[0] = jnp.sum(hf * hf, axis=0, keepdims=True)


def _bnrelu_conv1x1_stats_kernel(h_in_ref, sum_in_ref, ssq_in_ref, g_ref, b_ref, w_ref,
                                 h_out_ref, sum_out_ref, ssq_out_ref, *, inv_m):
    """a = relu(bn(h_in)) in f32; h_out = a @ w on bf16 MXU; partial stats of h_out."""
    scale, shift = _bn_scale_shift(sum_in_ref, ssq_in_ref, g_ref, b_ref, inv_m)
    a = jnp.maximum(h_in_ref[...].astype(jnp.float32) * scale + shift, 0.0)
    h = jnp.dot(a.astype(jnp.bfloat16), w_ref[...], preferred_element_type=jnp.float32)
    hb = h.astype(jnp.bfloat16)
    h_out_ref[...] = hb
    hf = hb.astype(jnp.float32)
    sum_out_ref[0] = jnp.sum(hf, axis=0, keepdims=True)
    ssq_out_ref[0] = jnp.sum(hf * hf, axis=0, keepdims=True)


def _bnrelu_conv3x3_stats_kernel(h1_ref, sum1_ref, ssq1_ref, g_ref, b_ref, w2_ref, ww_ref,
                                 h2_ref, sum2_ref, ssq2_ref, acc_ref,
                                 *, inv_m, H, W):
    """One image per grid step: a = relu(bn1(h1)); conv3x3 via 3 grouped-K matmuls
    (taps shifted with pltpu.roll, wrap handled by the boundary masks), accumulated
    into a VMEM f32 scratch; bf16 h2 + partial BN2 stats out."""
    hw = H * W
    f32 = jnp.float32

    scale, shift = _bn_scale_shift(sum1_ref, ssq1_ref, g_ref, b_ref, inv_m)
    a = jnp.maximum(h1_ref[...].astype(f32) * scale + shift, 0.0)          # (HW, C) f32

    # Boundary masks.  Vertical validity only depends on the flat row index (iota);
    # horizontal validity needs the column index ww (streamed to avoid integer mod).
    idx = lax.broadcasted_iota(jnp.int32, (hw, 1), 0)
    ww = ww_ref[...]
    vm = {0: (idx >= W).astype(f32), 2: (idx < hw - W).astype(f32)}        # dy = -1, +1
    hm = {0: (ww >= 1).astype(f32), 2: (ww < W - 1).astype(f32)}           # dx = -1, +1

    def tap_mask(dy, dx):
        if dy == 1 and dx == 1:
            return None
        if dy == 1:
            return hm[dx]
        if dx == 1:
            return vm[dy]
        return vm[dy] * hm[dx]

    for dy in range(3):
        taps = []
        for dx in range(3):
            s = (dy - 1) * W + (dx - 1)                 # static flat-row shift per tap
            t = a if s == 0 else pltpu.roll(a, (-s) % hw, 0)
            m = tap_mask(dy, dx)                        # masks also zero wrapped rows
            taps.append(t if m is None else t * m)
        group = jnp.concatenate(taps, axis=1).astype(jnp.bfloat16)         # (HW, 3C)
        contrib = jnp.dot(group, w2_ref[dy], preferred_element_type=f32)   # K = 3C
        if dy == 0:
            acc_ref[...] = contrib
        else:
            acc_ref[...] += contrib

    h2 = acc_ref[...].astype(jnp.bfloat16)
    h2_ref[...] = h2
    hf = h2.astype(f32)
    sum2_ref[0] = jnp.sum(hf, axis=0, keepdims=True)
    ssq2_ref[0] = jnp.sum(hf * hf, axis=0, keepdims=True)


def _bn_add_relu_kernel(h3_ref, sum3_ref, ssq3_ref, g_ref, b_ref, res_ref, o_ref, *, inv_m):
    """out = relu(bn3(h3) + residual) per row tile (pure memory-bound, f32 math)."""
    scale, shift = _bn_scale_shift(sum3_ref, ssq3_ref, g_ref, b_ref, inv_m)
    o_ref[...] = jnp.maximum(
        h3_ref[...].astype(jnp.float32) * scale + shift + res_ref[...], 0.0)


# --------------------------------------------------------------------------------------
# Forward pass
# --------------------------------------------------------------------------------------

def bottleneck_forward(x_nchw, params, row_tile=None):
    N, Cin, H, W = x_nchw.shape
    width = params["w1"].shape[1]
    cout = params["w3"].shape[1]
    assert cout == Cin, "stride=1 / downsample=None requires inputchannel == outputchannel*4"

    M = N * H * W
    HW = H * W
    assert HW % 8 == 0, "per-image row block must be sublane aligned"  # TODO(synk): pad HW
    Cin_p, Wd_p, Cout_p = _round_up(Cin), _round_up(width), _round_up(cout)
    TM = row_tile if row_tile is not None else _pick_row_tile(M)
    assert M % TM == 0 and TM % 8 == 0
    grid_m = M // TM
    inv_m = 1.0 / float(M)
    f32, bf16 = jnp.float32, jnp.bfloat16
    vmem_limit = _vmem_limit_bytes()

    # ---------------- layout / padding glue (XLA side) ---------------------------------
    # NCHW -> (rows, channels).  TODO(synk): keep activations NHWC across blocks to drop
    # the boundary transposes entirely.
    x2d = jnp.transpose(x_nchw, (0, 2, 3, 1)).reshape(M, Cin)
    x2d_p = x2d if Cin_p == Cin else jnp.pad(x2d, ((0, 0), (0, Cin_p - Cin)))

    def padw(w, r, c):
        if w.shape == (r, c):
            return w
        return jnp.pad(w, ((0, r - w.shape[0]), (0, c - w.shape[1])))

    w1p = padw(params["w1"], Cin_p, Wd_p).astype(bf16)
    w2p = params["w2_hwio"]
    if Wd_p != width:
        w2p = jnp.pad(w2p, ((0, 0), (0, 0), (0, Wd_p - width), (0, Wd_p - width)))
    # Group the 3 taps of each kernel row along the contraction dim: (3, 3*C, C).
    w2g = w2p.reshape(3, 3 * Wd_p, Wd_p).astype(bf16)
    w3p = padw(params["w3"], Wd_p, Cout_p).astype(bf16)

    def pad_affine(g, b, c):
        if g.shape[1] == c:
            return g, b
        gp = jnp.pad(g, ((0, 0), (0, c - g.shape[1])), constant_values=1.0)
        bp = jnp.pad(b, ((0, 0), (0, c - b.shape[1])))
        return gp, bp

    g1p, b1p = pad_affine(params["g1"], params["b1"], Wd_p)
    g2p, b2p = pad_affine(params["g2"], params["b2"], Wd_p)
    g3p, b3p = pad_affine(params["g3"], params["b3"], Cout_p)

    # per-pixel column index, used for conv2 horizontal boundary masks
    ww = jnp.broadcast_to(jnp.arange(W, dtype=jnp.int32)[None, :], (H, W)).reshape(HW, 1)

    # ---------------- specs / compiler params ------------------------------------------
    def row_spec(c):
        return pl.BlockSpec((TM, c), lambda i: (i, 0))

    def vec_spec(c):
        return pl.BlockSpec((1, c), lambda i: (0, 0))

    def stat_spec(c):                       # per-grid-step partial stat row
        return pl.BlockSpec((1, 1, c), lambda i: (i, 0, 0))

    def stat_shape(g, c):
        return jax.ShapeDtypeStruct((g, 1, c), f32)

    par = pltpu.CompilerParams(dimension_semantics=("parallel",),
                               vmem_limit_bytes=vmem_limit)

    # ---------------- stage 1: conv1 (1x1) + bn1 partial stats --------------------------
    h1, s1p, q1p = pl.pallas_call(
        _conv1x1_stats_kernel,
        grid=(grid_m,),
        in_specs=[row_spec(Cin_p),
                  pl.BlockSpec((Cin_p, Wd_p), lambda i: (0, 0))],
        out_specs=[row_spec(Wd_p), stat_spec(Wd_p), stat_spec(Wd_p)],
        out_shape=[jax.ShapeDtypeStruct((M, Wd_p), bf16),
                   stat_shape(grid_m, Wd_p), stat_shape(grid_m, Wd_p)],
        compiler_params=par,
        cost_estimate=pl.CostEstimate(
            flops=2 * M * Cin_p * Wd_p, transcendentals=0,
            bytes_accessed=4 * M * Cin_p + 2 * (M * Wd_p + Cin_p * Wd_p)),
    )(x2d_p, w1p)
    s1 = jnp.sum(s1p, axis=0)          # (1, Wd_p) global BN1 stats (tiny XLA reduce)
    q1 = jnp.sum(q1p, axis=0)

    # ---------------- stage 2: bn1+relu fused with conv2 (3x3) + bn2 partial stats ------
    k2 = functools.partial(_bnrelu_conv3x3_stats_kernel, inv_m=inv_m, H=H, W=W)
    img_spec = pl.BlockSpec((HW, Wd_p), lambda n: (n, 0))
    h2, s2p, q2p = pl.pallas_call(
        k2,
        grid=(N,),
        in_specs=[img_spec,
                  vec_spec(Wd_p), vec_spec(Wd_p), vec_spec(Wd_p), vec_spec(Wd_p),
                  pl.BlockSpec((3, 3 * Wd_p, Wd_p), lambda n: (0, 0, 0)),
                  pl.BlockSpec((HW, 1), lambda n: (0, 0))],
        out_specs=[img_spec, stat_spec(Wd_p), stat_spec(Wd_p)],
        out_shape=[jax.ShapeDtypeStruct((M, Wd_p), bf16),
                   stat_shape(N, Wd_p), stat_shape(N, Wd_p)],
        scratch_shapes=[pltpu.VMEM((HW, Wd_p), f32)],
        compiler_params=par,
        cost_estimate=pl.CostEstimate(
            flops=2 * 9 * M * Wd_p * Wd_p, transcendentals=0,
            bytes_accessed=2 * (2 * M * Wd_p + 9 * Wd_p * Wd_p)),
    )(h1, s1, q1, g1p, b1p, w2g, ww)
    s2 = jnp.sum(s2p, axis=0)
    q2 = jnp.sum(q2p, axis=0)

    # ---------------- stage 3: bn2+relu fused with conv3 (1x1) + bn3 partial stats ------
    k3 = functools.partial(_bnrelu_conv1x1_stats_kernel, inv_m=inv_m)
    h3, s3p, q3p = pl.pallas_call(
        k3,
        grid=(grid_m,),
        in_specs=[row_spec(Wd_p),
                  vec_spec(Wd_p), vec_spec(Wd_p), vec_spec(Wd_p), vec_spec(Wd_p),
                  pl.BlockSpec((Wd_p, Cout_p), lambda i: (0, 0))],
        out_specs=[row_spec(Cout_p), stat_spec(Cout_p), stat_spec(Cout_p)],
        out_shape=[jax.ShapeDtypeStruct((M, Cout_p), bf16),
                   stat_shape(grid_m, Cout_p), stat_shape(grid_m, Cout_p)],
        compiler_params=par,
        cost_estimate=pl.CostEstimate(
            flops=2 * M * Wd_p * Cout_p, transcendentals=0,
            bytes_accessed=2 * (M * Wd_p + Wd_p * Cout_p + M * Cout_p)),
    )(h2, s2, q2, g2p, b2p, w3p)
    s3 = jnp.sum(s3p, axis=0)
    q3 = jnp.sum(q3p, axis=0)

    # ---------------- stage 4: bn3 apply + residual add + relu --------------------------
    k4 = functools.partial(_bn_add_relu_kernel, inv_m=inv_m)
    out2d = pl.pallas_call(
        k4,
        grid=(grid_m,),
        in_specs=[row_spec(Cout_p),
                  vec_spec(Cout_p), vec_spec(Cout_p), vec_spec(Cout_p), vec_spec(Cout_p),
                  row_spec(Cout_p)],
        out_specs=row_spec(Cout_p),
        out_shape=jax.ShapeDtypeStruct((M, Cout_p), f32),
        compiler_params=par,
        cost_estimate=pl.CostEstimate(
            flops=5 * M * Cout_p, transcendentals=0,
            bytes_accessed=2 * M * Cout_p + 4 * 2 * M * Cout_p),
    )(h3, s3, q3, g3p, b3p, x2d_p)

    out2d = out2d if Cout_p == cout else out2d[:, :cout]
    return out2d.reshape(N, H, W, cout).transpose(0, 3, 1, 2)


# --------------------------------------------------------------------------------------
# Pure-JAX reference (same math, f32 HIGHEST precision, no Pallas)
# --------------------------------------------------------------------------------------

def bottleneck_reference(x_nchw, p):
    N, Cin, H, W = x_nchw.shape
    hp = lax.Precision.HIGHEST
    x2d = jnp.transpose(x_nchw, (0, 2, 3, 1)).reshape(N * H * W, Cin)

    def bn(h, g, b):
        mean = jnp.mean(h, axis=0, keepdims=True)
        var = jnp.mean(jnp.square(h - mean), axis=0, keepdims=True)   # biased (train mode)
        return (h - mean) * lax.rsqrt(var + EPS) * g + b

    width = p["w1"].shape[1]
    cout = p["w3"].shape[1]
    h1 = jnp.dot(x2d, p["w1"], precision=hp)
    a1 = jnp.maximum(bn(h1, p["g1"], p["b1"]), 0.0).reshape(N, H, W, width)
    h2 = lax.conv_general_dilated(a1, p["w2_hwio"], window_strides=(1, 1), padding="SAME",
                                  dimension_numbers=("NHWC", "HWIO", "NHWC"), precision=hp)
    a2 = jnp.maximum(bn(h2.reshape(N * H * W, width), p["g2"], p["b2"]), 0.0)
    h3 = jnp.dot(a2, p["w3"], precision=hp)
    out = jnp.maximum(bn(h3, p["g3"], p["b3"]) + x2d, 0.0)
    return out.reshape(N, H, W, cout).transpose(0, 3, 1, 2)


# --------------------------------------------------------------------------------------
# Deterministic parameters
# --------------------------------------------------------------------------------------

def make_params(inputchannel, outputchannel, base_width=64, groups=1, expansion=4):
    width = int(outputchannel * (base_width / 64.0)) * groups
    cout = outputchannel * expansion
    k1, k2, k3 = jax.random.split(jax.random.PRNGKey(0), 3)
    w1 = 0.1 * jax.random.normal(k1, (inputchannel, width), jnp.float32)       # conv1 1x1
    w2_hwio = 0.1 * jax.random.normal(k2, (3, 3, width, width), jnp.float32)   # conv2 3x3
    w3 = 0.1 * jax.random.normal(k3, (width, cout), jnp.float32)               # conv3 1x1

    def affine(n, off):
        g = 1.0 + 0.1 * jnp.cos(jnp.arange(n, dtype=jnp.float32) + off)
        b = 0.05 * jnp.sin(jnp.arange(n, dtype=jnp.float32) + off)
        return g.reshape(1, n), b.reshape(1, n)

    g1, b1 = affine(width, 0.0)
    g2, b2 = affine(width, 1.0)
    g3, b3 = affine(cout, 2.0)
    return dict(w1=w1, w2_hwio=w2_hwio, w3=w3,
                g1=g1, b1=b1, g2=g2, b2=b2, g3=g3, b3=b3)


# --------------------------------------------------------------------------------------

if __name__ == "__main__":
    N, H, W = 2, 16, 16
    outputchannel = 4
    Cin = outputchannel * 4      # residual add (no downsample) requires Cin == Cout*expansion

    params = make_params(Cin, outputchannel)
    x = jax.random.normal(jax.random.PRNGKey(0), (N, Cin, H, W), jnp.float32)

    fwd = jax.jit(bottleneck_forward)        # default tile -> 128 rows, 4 grid steps here
    out = jax.block_until_ready(fwd(x, params))
    ref = jax.block_until_ready(bottleneck_reference(x, params))

    assert out.shape == (N, Cin, H, W), out.shape
    assert bool(jnp.all(jnp.isfinite(out)))
    max_err = float(jnp.max(jnp.abs(out - ref)))
    mean_err = float(jnp.mean(jnp.abs(out - ref)))
    # bf16 MXU operands + bf16 intermediates vs an f32 HIGHEST-precision reference:
    # tolerance sized for bf16 rounding, still catches any structural/indexing bug.
    assert max_err < 2e-1 and mean_err < 2.5e-2, (max_err, mean_err)
    print("KERNEL_OK")
</pallas_src>

<mosaic_0001>
module attributes {stable_mosaic.version = 11 : i64} {
  func.func @_conv1x1_stats_kernel(%arg0: i32, %arg1: memref<128x128xf32, #tpu.memory_space<vmem>>, %arg2: memref<128x128xbf16, #tpu.memory_space<vmem>>, %arg3: memref<128x128xbf16, #tpu.memory_space<vmem>>, %arg4: memref<1x1x128xf32, #tpu.memory_space<vmem>>, %arg5: memref<1x1x128xf32, #tpu.memory_space<vmem>>) attributes {dimension_semantics = [#tpu.dimension_semantics<parallel>], iteration_bounds = array<i64: 4>, scalar_prefetch = 0 : i64, scratch_operands = 0 : i64, tpu.core_type = #tpu.core_type<tc>, window_params = [{transform_indices = @transform_0, window_bounds = array<i64: 128, 128>}, {pipeline_mode = #tpu.pipeline_mode<synchronous>, transform_indices = @transform_1, window_bounds = array<i64: 128, 128>}, {transform_indices = @transform_2, window_bounds = array<i64: 128, 128>}, {transform_indices = @transform_3, window_bounds = array<i64: 1, 1, 128>}, {transform_indices = @transform_4, window_bounds = array<i64: 1, 1, 128>}]} {
    %c0 = arith.constant 0 : index
    %c0_0 = arith.constant 0 : index
    %0 = vector.load %arg1[%c0, %c0_0] : memref<128x128xf32, #tpu.memory_space<vmem>>, vector<128x128xf32>
    %1 = arith.truncf %0 : vector<128x128xf32> to vector<128x128xbf16>
    %c0_1 = arith.constant 0 : index
    %c0_2 = arith.constant 0 : index
    %2 = vector.load %arg2[%c0_1, %c0_2] : memref<128x128xbf16, #tpu.memory_space<vmem>>, vector<128x128xbf16>
    %cst = arith.constant dense<0.000000e+00> : vector<128x128xf32>
    %3 = tpu.matmul %1, %2, %cst {dimension_numbers = #tpu.dot_dimension_numbers<[1], [0], [0], [1], [0, 0, 1, 1], [], []>} : vector<128x128xbf16>, vector<128x128xbf16>, vector<128x128xf32> -> vector<128x128xf32>
    %4 = arith.truncf %3 : vector<128x128xf32> to vector<128x128xbf16>
    %c0_3 = arith.constant 0 : index
    %c0_4 = arith.constant 0 : index
    %5 = vector.load %arg3[%c0_3, %c0_4] : memref<128x128xbf16, #tpu.memory_space<vmem>>, vector<128x128xbf16>
    tpu.vector_store %arg3[%c0_3, %c0_4], %4 {strides = array<i32>} : memref<128x128xbf16, #tpu.memory_space<vmem>>, vector<128x128xbf16>,
    %6 = arith.extf %4 : vector<128x128xbf16> to vector<128x128xf32>
    %cst_5 = arith.constant dense<0.000000e+00> : vector<128xf32>
    %7 = vector.multi_reduction <add>, %6, %cst_5 [0] : vector<128x128xf32> to vector<128xf32>
    %8 = vector.shape_cast %7 : vector<128xf32> to vector<1x128xf32>
    %c0_6 = arith.constant 0 : index
    %c0_7 = arith.constant 0 : index
    %c0_8 = arith.constant 0 : index
    %9 = vector.load %arg4[%c0_6, %c0_7, %c0_8] : memref<1x1x128xf32, #tpu.memory_space<vmem>>, vector<1x1x128xf32>
    %10 = vector.shape_cast %9 : vector<1x1x128xf32> to vector<1x128xf32>
    %11 = vector.shape_cast %8 : vector<1x128xf32> to vector<1x1x128xf32>
    tpu.vector_store %arg4[%c0_6, %c0_7, %c0_8], %11 {strides = array<i32>} : memref<1x1x128xf32, #tpu.memory_space<vmem>>, vector<1x1x128xf32>,
    %12 = arith.mulf %6, %6 : vector<128x128xf32>
    %cst_9 = arith.constant dense<0.000000e+00> : vector<128xf32>
    %13 = vector.multi_reduction <add>, %12, %cst_9 [0] : vector<128x128xf32> to vector<128xf32>
    %14 = vector.shape_cast %13 : vector<128xf32> to vector<1x128xf32>
    %c0_10 = arith.constant 0 : index
    %c0_11 = arith.constant 0 : index
    %c0_12 = arith.constant 0 : index
    %15 = vector.load %arg5[%c0_10, %c0_11, %c0_12] : memref<1x1x128xf32, #tpu.memory_space<vmem>>, vector<1x1x128xf32>
    %16 = vector.shape_cast %15 : vector<1x1x128xf32> to vector<1x128xf32>
    %17 = vector.shape_cast %14 : vector<1x128xf32> to vector<1x1x128xf32>
    tpu.vector_store %arg5[%c0_10, %c0_11, %c0_12], %17 {strides = array<i32>} : memref<1x1x128xf32, #tpu.memory_space<vmem>>, vector<1x1x128xf32>,
    return
  }
  func.func @transform_0(%arg0: i32) -> (i32, i32) {
    %c0_i32 = arith.constant 0 : i32
    %c0_i32_0 = arith.constant 0 : i32
    return %arg0, %c0_i32 : i32, i32
  }
  func.func @transform_1(%arg0: i32) -> (i32, i32) {
    %c0_i32 = arith.constant 0 : i32
    %c0_i32_0 = arith.constant 0 : i32
    %c0_i32_1 = arith.constant 0 : i32
    return %c0_i32, %c0_i32_0 : i32, i32
  }
  func.func @transform_2(%arg0: i32) -> (i32, i32) {
    %c0_i32 = arith.constant 0 : i32
    %c0_i32_0 = arith.constant 0 : i32
    return %arg0, %c0_i32 : i32, i32
  }
  func.func @transform_3(%arg0: i32) -> (i32, i32, i32) {
    %c0_i32 = arith.constant 0 : i32
    %c0_i32_0 = arith.constant 0 : i32
    %c0_i32_1 = arith.constant 0 : i32
    return %arg0, %c0_i32, %c0_i32_0 : i32, i32, i32
  }
  func.func @transform_4(%arg0: i32) -> (i32, i32, i32) {
    %c0_i32 = arith.constant 0 : i32
    %c0_i32_0 = arith.constant 0 : i32
    %c0_i32_1 = arith.constant 0 : i32
    return %arg0, %c0_i32, %c0_i32_0 : i32, i32, i32
  }
}

module attributes {stable_mosaic.version = 11 : i64} {
  func.func @_bnrelu_conv3x3_stats_kernel(%arg0: i32, %arg1: memref<256x128xbf16, #tpu.memory_space<vmem>>, %arg2: memref<1x128xf32, #tpu.memory_space<vmem>>, %arg3: memref<1x128xf32, #tpu.memory_space<vmem>>, %arg4: memref<1x128xf32, #tpu.memory_space<vmem>>, %arg5: memref<1x128xf32, #tpu.memory_space<vmem>>, %arg6: memref<3x384x128xbf16, #tpu.memory_space<vmem>>, %arg7: memref<256x1xi32, #tpu.memory_space<vmem>>, %arg8: memref<256x128xbf16, #tpu.memory_space<vmem>>, %arg9: memref<1x1x128xf32, #tpu.memory_space<vmem>>, %arg10: memref<1x1x128xf32, #tpu.memory_space<vmem>>, %arg11: memref<256x128xf32, #tpu.memory_space<vmem>>) attributes {dimension_semantics = [#tpu.dimension_semantics<parallel>], iteration_bounds = array<i64: 2>, scalar_prefetch = 0 : i64, scratch_operands = 1 : i64, tpu.core_type = #tpu.core_type<tc>, window_params = [{transform_indices = @transform_0, window_bounds = array<i64: 256, 128>}, {pipeline_mode = #tpu.pipeline_mode<synchronous>, transform_indices = @transform_1, window_bounds = array<i64: 1, 128>}, {pipeline_mode = #tpu.pipeline_mode<synchronous>, transform_indices = @transform_2, window_bounds = array<i64: 1, 128>}, {pipeline_mode = #tpu.pipeline_mode<synchronous>, transform_indices = @transform_3, window_bounds = array<i64: 1, 128>}, {pipeline_mode = #tpu.pipeline_mode<synchronous>, transform_indices = @transform_4, window_bounds = array<i64: 1, 128>}, {pipeline_mode = #tpu.pipeline_mode<synchronous>, transform_indices = @transform_5, window_bounds = array<i64: 3, 384, 128>}, {pipeline_mode = #tpu.pipeline_mode<synchronous>, transform_indices = @transform_6, window_bounds = array<i64: 256, 1>}, {transform_indices = @transform_7, window_bounds = array<i64: 256, 128>}, {transform_indices = @transform_8, window_bounds = array<i64: 1, 1, 128>}, {transform_indices = @transform_9, window_bounds = array<i64: 1, 1, 128>}]} {
    %c0 = arith.constant 0 : index
    %c0_0 = arith.constant 0 : index
    %0 = vector.load %arg2[%c0, %c0_0] : memref<1x128xf32, #tpu.memory_space<vmem>>, vector<1x128xf32>
    %cst = arith.constant 0.001953125 : f32
    %1 = vector.broadcast %cst : f32 to vector<1x128xf32>
    %2 = arith.mulf %0, %1 : vector<1x128xf32>
    %c0_1 = arith.constant 0 : index
    %c0_2 = arith.constant 0 : index
    %3 = vector.load %arg3[%c0_1, %c0_2] : memref<1x128xf32, #tpu.memory_space<vmem>>, vector<1x128xf32>
    %cst_3 = arith.constant 0.001953125 : f32
    %4 = vector.broadcast %cst_3 : f32 to vector<1x128xf32>
    %5 = arith.mulf %3, %4 : vector<1x128xf32>
    %6 = arith.mulf %2, %2 : vector<1x128xf32>
    %7 = arith.subf %5, %6 : vector<1x128xf32>
    %cst_4 = arith.constant 0.000000e+00 : f32
    %8 = vector.broadcast %cst_4 : f32 to vector<1x128xf32>
    %9 = arith.maximumf %7, %8 : vector<1x128xf32>
    %cst_5 = arith.constant 9.99999974E-6 : f32
    %10 = vector.broadcast %cst_5 : f32 to vector<1x128xf32>
    %11 = arith.addf %9, %10 : vector<1x128xf32>
    %12 = math.rsqrt %11 : vector<1x128xf32>
    %c0_6 = arith.constant 0 : index
    %c0_7 = arith.constant 0 : index
    %13 = vector.load %arg4[%c0_6, %c0_7] : memref<1x128xf32, #tpu.memory_space<vmem>>, vector<1x128xf32>
    %14 = arith.mulf %12, %13 : vector<1x128xf32>
    %c0_8 = arith.constant 0 : index
    %c0_9 = arith.constant 0 : index
    %15 = vector.load %arg5[%c0_8, %c0_9] : memref<1x128xf32, #tpu.memory_space<vmem>>, vector<1x128xf32>
    %16 = arith.mulf %2, %14 : vector<1x128xf32>
    %17 = arith.subf %15, %16 : vector<1x128xf32>
    %c0_10 = arith.constant 0 : index
    %c0_11 = arith.constant 0 : index
    %18 = vector.load %arg1[%c0_10, %c0_11] : memref<256x128xbf16, #tpu.memory_space<vmem>>, vector<256x128xbf16>
    %19 = arith.extf %18 : vector<256x128xbf16> to vector<256x128xf32>
    %20 = vector.broadcast %14 : vector<1x128xf32> to vector<256x128xf32>
    %21 = arith.mulf %19, %20 : vector<256x128xf32>
    %22 = vector.broadcast %17 : vector<1x128xf32> to vector<256x128xf32>
    %23 = arith.addf %21, %22 : vector<256x128xf32>
    %cst_12 = arith.constant 0.000000e+00 : f32
    %24 = vector.broadcast %cst_12 : f32 to vector<256x128xf32>
    %25 = arith.maximumf %23, %24 : vector<256x128xf32>
    %26 = tpu.iota {dimensions = array<i32: 0>} : vector<256x1xi32>
    %c0_13 = arith.constant 0 : index
    %c0_14 = arith.constant 0 : index
    %27 = vector.load %arg7[%c0_13, %c0_14] : memref<256x1xi32, #tpu.memory_space<vmem>>, vector<256x1xi32>
    %c16_i32 = arith.constant 16 : i32
    %28 = vector.broadcast %c16_i32 : i32 to vector<256x1xi32>
    %29 = arith.cmpi sge, %26, %28 : vector<256x1xi32>
    %30 = arith.extui %29 : vector<256x1xi1> to vector<256x1xi32>
    %31 = arith.sitofp %30 : vector<256x1xi32> to vector<256x1xf32>
    %c240_i32 = arith.constant 240 : i32
    %32 = vector.broadcast %c240_i32 : i32 to vector<256x1xi32>
    %33 = arith.cmpi slt, %26, %32 : vector<256x1xi32>
    %34 = arith.extui %33 : vector<256x1xi1> to vector<256x1xi32>
    %35 = arith.sitofp %34 : vector<256x1xi32> to vector<256x1xf32>
    %c1_i32 = arith.constant 1 : i32
    %36 = vector.broadcast %c1_i32 : i32 to vector<256x1xi32>
    %37 = arith.cmpi sge, %27, %36 : vector<256x1xi32>
    %38 = arith.extui %37 : vector<256x1xi1> to vector<256x1xi32>
    %39 = arith.sitofp %38 : vector<256x1xi32> to vector<256x1xf32>
    %c15_i32 = arith.constant 15 : i32
    %40 = vector.broadcast %c15_i32 : i32 to vector<256x1xi32>
    %41 = arith.cmpi slt, %27, %40 : vector<256x1xi32>
    %42 = arith.extui %41 : vector<256x1xi1> to vector<256x1xi32>
    %43 = arith.sitofp %42 : vector<256x1xi32> to vector<256x1xf32>
    %c17_i32 = arith.constant 17 : i32
    %44 = tpu.dynamic_rotate %25 by %c17_i32 dim 0 : vector<256x128xf32>, i32 -> vector<256x128xf32>
    %45 = arith.mulf %31, %39 : vector<256x1xf32>
    %46 = vector.broadcast %45 : vector<256x1xf32> to vector<256x128xf32>
    %47 = arith.mulf %44, %46 : vector<256x128xf32>
    %c16_i32_15 = arith.constant 16 : i32
    %48 = tpu.dynamic_rotate %25 by %c16_i32_15 dim 0 : vector<256x128xf32>, i32 -> vector<256x128xf32>
    %49 = vector.broadcast %31 : vector<256x1xf32> to vector<256x128xf32>
    %50 = arith.mulf %48, %49 : vector<256x128xf32>
    %c15_i32_16 = arith.constant 15 : i32
    %51 = tpu.dynamic_rotate %25 by %c15_i32_16 dim 0 : vector<256x128xf32>, i32 -> vector<256x128xf32>
    %52 = arith.mulf %31, %43 : vector<256x1xf32>
    %53 = vector.broadcast %52 : vector<256x1xf32> to vector<256x128xf32>
    %54 = arith.mulf %51, %53 : vector<256x128xf32>
    %55 = tpu.concatenate %47, %50, %54 in 1 : vector<256x128xf32>, vector<256x128xf32>, vector<256x128xf32> -> vector<256x384xf32>
    %56 = arith.truncf %55 : vector<256x384xf32> to vector<256x384xbf16>
    %c0_17 = arith.constant 0 : index
    %c0_18 = arith.constant 0 : index
    %c0_19 = arith.constant 0 : index
    %57 = vector.load %arg6[%c0_17, %c0_18, %c0_19] : memref<3x384x128xbf16, #tpu.memory_space<vmem>>, vector<1x384x128xbf16>
    %58 = vector.shape_cast %57 : vector<1x384x128xbf16> to vector<384x128xbf16>
    %cst_20 = arith.constant dense<0.000000e+00> : vector<256x128xf32>
    %59 = tpu.matmul %56, %58, %cst_20 {dimension_numbers = #tpu.dot_dimension_numbers<[1], [0], [0], [1], [0, 0, 1, 1], [], []>} : vector<256x384xbf16>, vector<384x128xbf16>, vector<256x128xf32> -> vector<256x128xf32>
    %c0_21 = arith.constant 0 : index
    %c0_22 = arith.constant 0 : index
    %60 = vector.load %arg11[%c0_21, %c0_22] : memref<256x128xf32, #tpu.memory_space<vmem>>, vector<256x128xf32>
    tpu.vector_store %arg11[%c0_21, %c0_22], %59 {strides = array<i32>} : memref<256x128xf32, #tpu.memory_space<vmem>>, vector<256x128xf32>,
    %c1_i32_23 = arith.constant 1 : i32
    %61 = tpu.dynamic_rotate %25 by %c1_i32_23 dim 0 : vector<256x128xf32>, i32 -> vector<256x128xf32>
    %62 = vector.broadcast %39 : vector<256x1xf32> to vector<256x128xf32>
    %63 = arith.mulf %61, %62 : vector<256x128xf32>
    %c255_i32 = arith.constant 255 : i32
    %64 = tpu.dynamic_rotate %25 by %c255_i32 dim 0 : vector<256x128xf32>, i32 -> vector<256x128xf32>
    %65 = vector.broadcast %43 : vector<256x1xf32> to vector<256x128xf32>
    %66 = arith.mulf %64, %65 : vector<256x128xf32>
    %67 = tpu.concatenate %63, %25, %66 in 1 : vector<256x128xf32>, vector<256x128xf32>, vector<256x128xf32> -> vector<256x384xf32>
    %68 = arith.truncf %67 : vector<256x384xf32> to vector<256x384xbf16>
    %c1 = arith.constant 1 : index
    %c0_24 = arith.constant 0 : index
    %c0_25 = arith.constant 0 : index
    %69 = vector.load %arg6[%c1, %c0_24, %c0_25] : memref<3x384x128xbf16, #tpu.memory_space<vmem>>, vector<1x384x128xbf16>
    %70 = vector.shape_cast %69 : vector<1x384x128xbf16> to vector<384x128xbf16>
    %cst_26 = arith.constant dense<0.000000e+00> : vector<256x128xf32>
    %71 = tpu.matmul %68, %70, %cst_26 {dimension_numbers = #tpu.dot_dimension_numbers<[1], [0], [0], [1], [0, 0, 1, 1], [], []>} : vector<256x384xbf16>, vector<384x128xbf16>, vector<256x128xf32> -> vector<256x128xf32>
    %c0_27 = arith.constant 0 : index
    %c0_28 = arith.constant 0 : index
    %72 = vector.load %arg11[%c0_27, %c0_28] : memref<256x128xf32, #tpu.memory_space<vmem>>, vector<256x128xf32>
    %73 = arith.addf %72, %71 : vector<256x128xf32>
    %c0_29 = arith.constant 0 : index
    %c0_30 = arith.constant 0 : index
    %74 = vector.load %arg11[%c0_29, %c0_30] : memref<256x128xf32, #tpu.memory_space<vmem>>, vector<256x128xf32>
    tpu.vector_store %arg11[%c0_29, %c0_30], %73 {strides = array<i32>} : memref<256x128xf32, #tpu.memory_space<vmem>>, vector<256x128xf32>,
    %c241_i32 = arith.constant 241 : i32
    %75 = tpu.dynamic_rotate %25 by %c241_i32 dim 0 : vector<256x128xf32>, i32 -> vector<256x128xf32>
    %76 = arith.mulf %35, %39 : vector<256x1xf32>
    %77 = vector.broadcast %76 : vector<256x1xf32> to vector<256x128xf32>
    %78 = arith.mulf %75, %77 : vector<256x128xf32>
    %c240_i32_31 = arith.constant 240 : i32
    %79 = tpu.dynamic_rotate %25 by %c240_i32_31 dim 0 : vector<256x128xf32>, i32 -> vector<256x128xf32>
    %80 = vector.broadcast %35 : vector<256x1xf32> to vector<256x128xf32>
    %81 = arith.mulf %79, %80 : vector<256x128xf32>
    %c239_i32 = arith.constant 239 : i32
    %82 = tpu.dynamic_rotate %25 by %c239_i32 dim 0 : vector<256x128xf32>, i32 -> vector<256x128xf32>
    %83 = arith.mulf %35, %43 : vector<256x1xf32>
    %84 = vector.broadcast %83 : vector<256x1xf32> to vector<256x128xf32>
    %85 = arith.mulf %82, %84 : vector<256x128xf32>
    %86 = tpu.concatenate %78, %81, %85 in 1 : vector<256x128xf32>, vector<256x128xf32>, vector<256x128xf32> -> vector<256x384xf32>
    %87 = arith.truncf %86 : vector<256x384xf32> to vector<256x384xbf16>
    %c2 = arith.constant 2 : index
    %c0_32 = arith.constant 0 : index
    %c0_33 = arith.constant 0 : index
    %88 = vector.load %arg6[%c2, %c0_32, %c0_33] : memref<3x384x128xbf16, #tpu.memory_space<vmem>>, vector<1x384x128xbf16>
    %89 = vector.shape_cast %88 : vector<1x384x128xbf16> to vector<384x128xbf16>
    %cst_34 = arith.constant dense<0.000000e+00> : vector<256x128xf32>
    %90 = tpu.matmul %87, %89, %cst_34 {dimension_numbers = #tpu.dot_dimension_numbers<[1], [0], [0], [1], [0, 0, 1, 1], [], []>} : vector<256x384xbf16>, vector<384x128xbf16>, vector<256x128xf32> -> vector<256x128xf32>
    %c0_35 = arith.constant 0 : index
    %c0_36 = arith.constant 0 : index
    %91 = vector.load %arg11[%c0_35, %c0_36] : memref<256x128xf32, #tpu.memory_space<vmem>>, vector<256x128xf32>
    %92 = arith.addf %91, %90 : vector<256x128xf32>
    %c0_37 = arith.constant 0 : index
    %c0_38 = arith.constant 0 : index
    %93 = vector.load %arg11[%c0_37, %c0_38] : memref<256x128xf32, #tpu.memory_space<vmem>>, vector<256x128xf32>
    tpu.vector_store %arg11[%c0_37, %c0_38], %92 {strides = array<i32>} : memref<256x128xf32, #tpu.memory_space<vmem>>, vector<256x128xf32>,
    %c0_39 = arith.constant 0 : index
    %c0_40 = arith.constant 0 : index
    %94 = vector.load %arg11[%c0_39, %c0_40] : memref<256x128xf32, #tpu.memory_space<vmem>>, vector<256x128xf32>
    %95 = arith.truncf %94 : vector<256x128xf32> to vector<256x128xbf16>
    %c0_41 = arith.constant 0 : index
    %c0_42 = arith.constant 0 : index
    %96 = vector.load %arg8[%c0_41, %c0_42] : memref<256x128xbf16, #tpu.memory_space<vmem>>, vector<256x128xbf16>
    tpu.vector_store %arg8[%c0_41, %c0_42], %95 {strides = array<i32>} : memref<256x128xbf16, #tpu.memory_space<vmem>>, vector<256x128xbf16>,
    %97 = arith.extf %95 : vector<256x128xbf16> to vector<256x128xf32>
    %cst_43 = arith.constant dense<0.000000e+00> : vector<128xf32>
    %98 = vector.multi_reduction <add>, %97, %cst_43 [0] : vector<256x128xf32> to vector<128xf32>
    %99 = vector.shape_cast %98 : vector<128xf32> to vector<1x128xf32>
    %c0_44 = arith.constant 0 : index
    %c0_45 = arith.constant 0 : index
    %c0_46 = arith.constant 0 : index
    %100 = vector.load %arg9[%c0_44, %c0_45, %c0_46] : memref<1x1x128xf32, #tpu.memory_space<vmem>>, vector<1x1x128xf32>
    %101 = vector.shape_cast %100 : vector<1x1x128xf32> to vector<1x128xf32>
    %102 = vector.shape_cast %99 : vector<1x128xf32> to vector<1x1x128xf32>
    tpu.vector_store %arg9[%c0_44, %c0_45, %c0_46], %102 {strides = array<i32>} : memref<1x1x128xf32, #tpu.memory_space<vmem>>, vector<1x1x128xf32>,
    %103 = arith.mulf %97, %97 : vector<256x128xf32>
    %cst_47 = arith.constant dense<0.000000e+00> : vector<128xf32>
    %104 = vector.multi_reduction <add>, %103, %cst_47 [0] : vector<256x128xf32> to vector<128xf32>
    %105 = vector.shape_cast %104 : vector<128xf32> to vector<1x128xf32>
    %c0_48 = arith.constant 0 : index
    %c0_49 = arith.constant 0 : index
    %c0_50 = arith.constant 0 : index
    %106 = vector.load %arg10[%c0_48, %c0_49, %c0_50] : memref<1x1x128xf32, #tpu.memory_space<vmem>>, vector<1x1x128xf32>
    %107 = vector.shape_cast %106 : vector<1x1x128xf32> to vector<1x128xf32>
    %108 = vector.shape_cast %105 : vector<1x128xf32> to vector<1x1x128xf32>
    tpu.vector_store %arg10[%c0_48, %c0_49, %c0_50], %108 {strides = array<i32>} : memref<1x1x128xf32, #tpu.memory_space<vmem>>, vector<1x1x128xf32>,
    return
  }
  func.func @transform_0(%arg0: i32) -> (i32, i32) {
    %c0_i32 = arith.constant 0 : i32
    %c0_i32_0 = arith.constant 0 : i32
    return %arg0, %c0_i32 : i32, i32
  }
  func.func @transform_1(%arg0: i32) -> (i32, i32) {
    %c0_i32 = arith.constant 0 : i32
    %c0_i32_0 = arith.constant 0 : i32
    %c0_i32_1 = arith.constant 0 : i32
    return %c0_i32, %c0_i32_0 : i32, i32
  }
  func.func @transform_2(%arg0: i32) -> (i32, i32) {
    %c0_i32 = arith.constant 0 : i32
    %c0_i32_0 = arith.constant 0 : i32
    %c0_i32_1 = arith.constant 0 : i32
    return %c0_i32, %c0_i32_0 : i32, i32
  }
  func.func @transform_3(%arg0: i32) -> (i32, i32) {
    %c0_i32 = arith.constant 0 : i32
    %c0_i32_0 = arith.constant 0 : i32
    %c0_i32_1 = arith.constant 0 : i32
    return %c0_i32, %c0_i32_0 : i32, i32
  }
  func.func @transform_4(%arg0: i32) -> (i32, i32) {
    %c0_i32 = arith.constant 0 : i32
    %c0_i32_0 = arith.constant 0 : i32
    %c0_i32_1 = arith.constant 0 : i32
    return %c0_i32, %c0_i32_0 : i32, i32
  }
  func.func @transform_5(%arg0: i32) -> (i32, i32, i32) {
    %c0_i32 = arith.constant 0 : i32
    %c0_i32_0 = arith.constant 0 : i32
    %c0_i32_1 = arith.constant 0 : i32
    %c0_i32_2 = arith.constant 0 : i32
    return %c0_i32, %c0_i32_0, %c0_i32_1 : i32, i32, i32
  }
  func.func @transform_6(%arg0: i32) -> (i32, i32) {
    %c0_i32 = arith.constant 0 : i32
    %c0_i32_0 = arith.constant 0 : i32
    %c0_i32_1 = arith.constant 0 : i32
    return %c0_i32, %c0_i32_0 : i32, i32
  }
  func.func @transform_7(%arg0: i32) -> (i32, i32) {
    %c0_i32 = arith.constant 0 : i32
    %c0_i32_0 = arith.constant 0 : i32
    return %arg0, %c0_i32 : i32, i32
  }
  func.func @transform_8(%arg0: i32) -> (i32, i32, i32) {
    %c0_i32 = arith.constant 0 : i32
    %c0_i32_0 = arith.constant 0 : i32
    %c0_i32_1 = arith.constant 0 : i32
    return %arg0, %c0_i32, %c0_i32_0 : i32, i32, i32
  }
  func.func @transform_9(%arg0: i32) -> (i32, i32, i32) {
    %c0_i32 = arith.constant 0 : i32
    %c0_i32_0 = arith.constant 0 : i32
    %c0_i32_1 = arith.constant 0 : i32
    return %arg0, %c0_i32, %c0_i32_0 : i32, i32, i32
  }
}

module attributes {stable_mosaic.version = 11 : i64} {
  func.func @_bnrelu_conv1x1_stats_kernel(%arg0: i32, %arg1: memref<128x128xbf16, #tpu.memory_space<vmem>>, %arg2: memref<1x128xf32, #tpu.memory_space<vmem>>, %arg3: memref<1x128xf32, #tpu.memory_space<vmem>>, %arg4: memref<1x128xf32, #tpu.memory_space<vmem>>, %arg5: memref<1x128xf32, #tpu.memory_space<vmem>>, %arg6: memref<128x128xbf16, #tpu.memory_space<vmem>>, %arg7: memref<128x128xbf16, #tpu.memory_space<vmem>>, %arg8: memref<1x1x128xf32, #tpu.memory_space<vmem>>, %arg9: memref<1x1x128xf32, #tpu.memory_space<vmem>>) attributes {dimension_semantics = [#tpu.dimension_semantics<parallel>], iteration_bounds = array<i64: 4>, scalar_prefetch = 0 : i64, scratch_operands = 0 : i64, tpu.core_type = #tpu.core_type<tc>, window_params = [{transform_indices = @transform_0, window_bounds = array<i64: 128, 128>}, {pipeline_mode = #tpu.pipeline_mode<synchronous>, transform_indices = @transform_1, window_bounds = array<i64: 1, 128>}, {pipeline_mode = #tpu.pipeline_mode<synchronous>, transform_indices = @transform_2, window_bounds = array<i64: 1, 128>}, {pipeline_mode = #tpu.pipeline_mode<synchronous>, transform_indices = @transform_3, window_bounds = array<i64: 1, 128>}, {pipeline_mode = #tpu.pipeline_mode<synchronous>, transform_indices = @transform_4, window_bounds = array<i64: 1, 128>}, {pipeline_mode = #tpu.pipeline_mode<synchronous>, transform_indices = @transform_5, window_bounds = array<i64: 128, 128>}, {transform_indices = @transform_6, window_bounds = array<i64: 128, 128>}, {transform_indices = @transform_7, window_bounds = array<i64: 1, 1, 128>}, {transform_indices = @transform_8, window_bounds = array<i64: 1, 1, 128>}]} {
    %c0 = arith.constant 0 : index
    %c0_0 = arith.constant 0 : index
    %0 = vector.load %arg2[%c0, %c0_0] : memref<1x128xf32, #tpu.memory_space<vmem>>, vector<1x128xf32>
    %cst = arith.constant 0.001953125 : f32
    %1 = vector.broadcast %cst : f32 to vector<1x128xf32>
    %2 = arith.mulf %0, %1 : vector<1x128xf32>
    %c0_1 = arith.constant 0 : index
    %c0_2 = arith.constant 0 : index
    %3 = vector.load %arg3[%c0_1, %c0_2] : memref<1x128xf32, #tpu.memory_space<vmem>>, vector<1x128xf32>
    %cst_3 = arith.constant 0.001953125 : f32
    %4 = vector.broadcast %cst_3 : f32 to vector<1x128xf32>
    %5 = arith.mulf %3, %4 : vector<1x128xf32>
    %6 = arith.mulf %2, %2 : vector<1x128xf32>
    %7 = arith.subf %5, %6 : vector<1x128xf32>
    %cst_4 = arith.constant 0.000000e+00 : f32
    %8 = vector.broadcast %cst_4 : f32 to vector<1x128xf32>
    %9 = arith.maximumf %7, %8 : vector<1x128xf32>
    %cst_5 = arith.constant 9.99999974E-6 : f32
    %10 = vector.broadcast %cst_5 : f32 to vector<1x128xf32>
    %11 = arith.addf %9, %10 : vector<1x128xf32>
    %12 = math.rsqrt %11 : vector<1x128xf32>
    %c0_6 = arith.constant 0 : index
    %c0_7 = arith.constant 0 : index
    %13 = vector.load %arg4[%c0_6, %c0_7] : memref<1x128xf32, #tpu.memory_space<vmem>>, vector<1x128xf32>
    %14 = arith.mulf %12, %13 : vector<1x128xf32>
    %c0_8 = arith.constant 0 : index
    %c0_9 = arith.constant 0 : index
    %15 = vector.load %arg5[%c0_8, %c0_9] : memref<1x128xf32, #tpu.memory_space<vmem>>, vector<1x128xf32>
    %16 = arith.mulf %2, %14 : vector<1x128xf32>
    %17 = arith.subf %15, %16 : vector<1x128xf32>
    %c0_10 = arith.constant 0 : index
    %c0_11 = arith.constant 0 : index
    %18 = vector.load %arg1[%c0_10, %c0_11] : memref<128x128xbf16, #tpu.memory_space<vmem>>, vector<128x128xbf16>
    %19 = arith.extf %18 : vector<128x128xbf16> to vector<128x128xf32>
    %20 = vector.broadcast %14 : vector<1x128xf32> to vector<128x128xf32>
    %21 = arith.mulf %19, %20 : vector<128x128xf32>
    %22 = vector.broadcast %17 : vector<1x128xf32> to vector<128x128xf32>
    %23 = arith.addf %21, %22 : vector<128x128xf32>
    %cst_12 = arith.constant 0.000000e+00 : f32
    %24 = vector.broadcast %cst_12 : f32 to vector<128x128xf32>
    %25 = arith.maximumf %23, %24 : vector<128x128xf32>
    %26 = arith.truncf %25 : vector<128x128xf32> to vector<128x128xbf16>
    %c0_13 = arith.constant 0 : index
    %c0_14 = arith.constant 0 : index
    %27 = vector.load %arg6[%c0_13, %c0_14] : memref<128x128xbf16, #tpu.memory_space<vmem>>, vector<128x128xbf16>
    %cst_15 = arith.constant dense<0.000000e+00> : vector<128x128xf32>
    %28 = tpu.matmul %26, %27, %cst_15 {dimension_numbers = #tpu.dot_dimension_numbers<[1], [0], [0], [1], [0, 0, 1, 1], [], []>} : vector<128x128xbf16>, vector<128x128xbf16>, vector<128x128xf32> -> vector<128x128xf32>
    %29 = arith.truncf %28 : vector<128x128xf32> to vector<128x128xbf16>
    %c0_16 = arith.constant 0 : index
    %c0_17 = arith.constant 0 : index
    %30 = vector.load %arg7[%c0_16, %c0_17] : memref<128x128xbf16, #tpu.memory_space<vmem>>, vector<128x128xbf16>
    tpu.vector_store %arg7[%c0_16, %c0_17], %29 {strides = array<i32>} : memref<128x128xbf16, #tpu.memory_space<vmem>>, vector<128x128xbf16>,
    %31 = arith.extf %29 : vector<128x128xbf16> to vector<128x128xf32>
    %cst_18 = arith.constant dense<0.000000e+00> : vector<128xf32>
    %32 = vector.multi_reduction <add>, %31, %cst_18 [0] : vector<128x128xf32> to vector<128xf32>
    %33 = vector.shape_cast %32 : vector<128xf32> to vector<1x128xf32>
    %c0_19 = arith.constant 0 : index
    %c0_20 = arith.constant 0 : index
    %c0_21 = arith.constant 0 : index
    %34 = vector.load %arg8[%c0_19, %c0_20, %c0_21] : memref<1x1x128xf32, #tpu.memory_space<vmem>>, vector<1x1x128xf32>
    %35 = vector.shape_cast %34 : vector<1x1x128xf32> to vector<1x128xf32>
    %36 = vector.shape_cast %33 : vector<1x128xf32> to vector<1x1x128xf32>
    tpu.vector_store %arg8[%c0_19, %c0_20, %c0_21], %36 {strides = array<i32>} : memref<1x1x128xf32, #tpu.memory_space<vmem>>, vector<1x1x128xf32>,
    %37 = arith.mulf %31, %31 : vector<128x128xf32>
    %cst_22 = arith.constant dense<0.000000e+00> : vector<128xf32>
    %38 = vector.multi_reduction <add>, %37, %cst_22 [0] : vector<128x128xf32> to vector<128xf32>
    %39 = vector.shape_cast %38 : vector<128xf32> to vector<1x128xf32>
    %c0_23 = arith.constant 0 : index
    %c0_24 = arith.constant 0 : index
    %c0_25 = arith.constant 0 : index
    %40 = vector.load %arg9[%c0_23, %c0_24, %c0_25] : memref<1x1x128xf32, #tpu.memory_space<vmem>>, vector<1x1x128xf32>
    %41 = vector.shape_cast %40 : vector<1x1x128xf32> to vector<1x128xf32>
    %42 = vector.shape_cast %39 : vector<1x128xf32> to vector<1x1x128xf32>
    tpu.vector_store %arg9[%c0_23, %c0_24, %c0_25], %42 {strides = array<i32>} : memref<1x1x128xf32, #tpu.memory_space<vmem>>, vector<1x1x128xf32>,
    return
  }
  func.func @transform_0(%arg0: i32) -> (i32, i32) {
    %c0_i32 = arith.constant 0 : i32
    %c0_i32_0 = arith.constant 0 : i32
    return %arg0, %c0_i32 : i32, i32
  }
  func.func @transform_1(%arg0: i32) -> (i32, i32) {
    %c0_i32 = arith.constant 0 : i32
    %c0_i32_0 = arith.constant 0 : i32
    %c0_i32_1 = arith.constant 0 : i32
    return %c0_i32, %c0_i32_0 : i32, i32
  }
  func.func @transform_2(%arg0: i32) -> (i32, i32) {
    %c0_i32 = arith.constant 0 : i32
    %c0_i32_0 = arith.constant 0 : i32
    %c0_i32_1 = arith.constant 0 : i32
    return %c0_i32, %c0_i32_0 : i32, i32
  }
  func.func @transform_3(%arg0: i32) -> (i32, i32) {
    %c0_i32 = arith.constant 0 : i32
    %c0_i32_0 = arith.constant 0 : i32
    %c0_i32_1 = arith.constant 0 : i32
    return %c0_i32, %c0_i32_0 : i32, i32
  }
  func.func @transform_4(%arg0: i32) -> (i32, i32) {
    %c0_i32 = arith.constant 0 : i32
    %c0_i32_0 = arith.constant 0 : i32
    %c0_i32_1 = arith.constant 0 : i32
    return %c0_i32, %c0_i32_0 : i32, i32
  }
  func.func @transform_5(%arg0: i32) -> (i32, i32) {
    %c0_i32 = arith.constant 0 : i32
    %c0_i32_0 = arith.constant 0 : i32
    %c0_i32_1 = arith.constant 0 : i32
    return %c0_i32, %c0_i32_0 : i32, i32
  }
  func.func @transform_6(%arg0: i32) -> (i32, i32) {
    %c0_i32 = arith.constant 0 : i32
    %c0_i32_0 = arith.constant 0 : i32
    return %arg0, %c0_i32 : i32, i32
  }
  func.func @transform_7(%arg0: i32) -> (i32, i32, i32) {
    %c0_i32 = arith.constant 0 : i32
    %c0_i32_0 = arith.constant 0 : i32
    %c0_i32_1 = arith.constant 0 : i32
    return %arg0, %c0_i32, %c0_i32_0 : i32, i32, i32
  }
  func.func @transform_8(%arg0: i32) -> (i32, i32, i32) {
    %c0_i32 = arith.constant 0 : i32
    %c0_i32_0 = arith.constant 0 : i32
    %c0_i32_1 = arith.constant 0 : i32
    return %arg0, %c0_i32, %c0_i32_0 : i32, i32, i32
  }
}

module attributes {stable_mosaic.version = 11 : i64} {
  func.func @_bn_add_relu_kernel(%arg0: i32, %arg1: memref<128x128xbf16, #tpu.memory_space<vmem>>, %arg2: memref<1x128xf32, #tpu.memory_space<vmem>>, %arg3: memref<1x128xf32, #tpu.memory_space<vmem>>, %arg4: memref<1x128xf32, #tpu.memory_space<vmem>>, %arg5: memref<1x128xf32, #tpu.memory_space<vmem>>, %arg6: memref<128x128xf32, #tpu.memory_space<vmem>>, %arg7: memref<128x128xf32, #tpu.memory_space<vmem>>) attributes {dimension_semantics = [#tpu.dimension_semantics<parallel>], iteration_bounds = array<i64: 4>, scalar_prefetch = 0 : i64, scratch_operands = 0 : i64, tpu.core_type = #tpu.core_type<tc>, window_params = [{transform_indices = @transform_0, window_bounds = array<i64: 128, 128>}, {pipeline_mode = #tpu.pipeline_mode<synchronous>, transform_indices = @transform_1, window_bounds = array<i64: 1, 128>}, {pipeline_mode = #tpu.pipeline_mode<synchronous>, transform_indices = @transform_2, window_bounds = array<i64: 1, 128>}, {pipeline_mode = #tpu.pipeline_mode<synchronous>, transform_indices = @transform_3, window_bounds = array<i64: 1, 128>}, {pipeline_mode = #tpu.pipeline_mode<synchronous>, transform_indices = @transform_4, window_bounds = array<i64: 1, 128>}, {transform_indices = @transform_5, window_bounds = array<i64: 128, 128>}, {transform_indices = @transform_6, window_bounds = array<i64: 128, 128>}]} {
    %c0 = arith.constant 0 : index
    %c0_0 = arith.constant 0 : index
    %0 = vector.load %arg2[%c0, %c0_0] : memref<1x128xf32, #tpu.memory_space<vmem>>, vector<1x128xf32>
    %cst = arith.constant 0.001953125 : f32
    %1 = vector.broadcast %cst : f32 to vector<1x128xf32>
    %2 = arith.mulf %0, %1 : vector<1x128xf32>
    %c0_1 = arith.constant 0 : index
    %c0_2 = arith.constant 0 : index
    %3 = vector.load %arg3[%c0_1, %c0_2] : memref<1x128xf32, #tpu.memory_space<vmem>>, vector<1x128xf32>
    %cst_3 = arith.constant 0.001953125 : f32
    %4 = vector.broadcast %cst_3 : f32 to vector<1x128xf32>
    %5 = arith.mulf %3, %4 : vector<1x128xf32>
    %6 = arith.mulf %2, %2 : vector<1x128xf32>
    %7 = arith.subf %5, %6 : vector<1x128xf32>
    %cst_4 = arith.constant 0.000000e+00 : f32
    %8 = vector.broadcast %cst_4 : f32 to vector<1x128xf32>
    %9 = arith.maximumf %7, %8 : vector<1x128xf32>
    %cst_5 = arith.constant 9.99999974E-6 : f32
    %10 = vector.broadcast %cst_5 : f32 to vector<1x128xf32>
    %11 = arith.addf %9, %10 : vector<1x128xf32>
    %12 = math.rsqrt %11 : vector<1x128xf32>
    %c0_6 = arith.constant 0 : index
    %c0_7 = arith.constant 0 : index
    %13 = vector.load %arg4[%c0_6, %c0_7] : memref<1x128xf32, #tpu.memory_space<vmem>>, vector<1x128xf32>
    %14 = arith.mulf %12, %13 : vector<1x128xf32>
    %c0_8 = arith.constant 0 : index
    %c0_9 = arith.constant 0 : index
    %15 = vector.load %arg5[%c0_8, %c0_9] : memref<1x128xf32, #tpu.memory_space<vmem>>, vector<1x128xf32>
    %16 = arith.mulf %2, %14 : vector<1x128xf32>
    %17 = arith.subf %15, %16 : vector<1x128xf32>
    %c0_10 = arith.constant 0 : index
    %c0_11 = arith.constant 0 : index
    %18 = vector.load %arg1[%c0_10, %c0_11] : memref<128x128xbf16, #tpu.memory_space<vmem>>, vector<128x128xbf16>
    %19 = arith.extf %18 : vector<128x128xbf16> to vector<128x128xf32>
    %20 = vector.broadcast %14 : vector<1x128xf32> to vector<128x128xf32>
    %21 = arith.mulf %19, %20 : vector<128x128xf32>
    %22 = vector.broadcast %17 : vector<1x128xf32> to vector<128x128xf32>
    %23 = arith.addf %21, %22 : vector<128x128xf32>
    %c0_12 = arith.constant 0 : index
    %c0_13 = arith.constant 0 : index
    %24 = vector.load %arg6[%c0_12, %c0_13] : memref<128x128xf32, #tpu.memory_space<vmem>>, vector<128x128xf32>
    %25 = arith.addf %23, %24 : vector<128x128xf32>
    %cst_14 = arith.constant 0.000000e+00 : f32
    %26 = vector.broadcast %cst_14 : f32 to vector<128x128xf32>
    %27 = arith.maximumf %25, %26 : vector<128x128xf32>
    %c0_15 = arith.constant 0 : index
    %c0_16 = arith.constant 0 : index
    %28 = vector.load %arg7[%c0_15, %c0_16] : memref<128x128xf32, #tpu.memory_space<vmem>>, vector<128x128xf32>
    tpu.vector_store %arg7[%c0_15, %c0_16], %27 {strides = array<i32>} : memref<128x128xf32, #tpu.memory_space<vmem>>, vector<128x128xf32>,
    return
  }
  func.func @transform_0(%arg0: i32) -> (i32, i32) {
    %c0_i32 = arith.constant 0 : i32
    %c0_i32_0 = arith.constant 0 : i32
    return %arg0, %c0_i32 : i32, i32
  }
  func.func @transform_1(%arg0: i32) -> (i32, i32) {
    %c0_i32 = arith.constant 0 : i32
    %c0_i32_0 = arith.constant 0 : i32
    %c0_i32_1 = arith.constant 0 : i32
    return %c0_i32, %c0_i32_0 : i32, i32
  }
  func.func @transform_2(%arg0: i32) -> (i32, i32) {
    %c0_i32 = arith.constant 0 : i32
    %c0_i32_0 = arith.constant 0 : i32
    %c0_i32_1 = arith.constant 0 : i32
    return %c0_i32, %c0_i32_0 : i32, i32
  }
  func.func @transform_3(%arg0: i32) -> (i32, i32) {
    %c0_i32 = arith.constant 0 : i32
    %c0_i32_0 = arith.constant 0 : i32
    %c0_i32_1 = arith.constant 0 : i32
    return %c0_i32, %c0_i32_0 : i32, i32
  }
  func.func @transform_4(%arg0: i32) -> (i32, i32) {
    %c0_i32 = arith.constant 0 : i32
    %c0_i32_0 = arith.constant 0 : i32
    %c0_i32_1 = arith.constant 0 : i32
    return %c0_i32, %c0_i32_0 : i32, i32
  }
  func.func @transform_5(%arg0: i32) -> (i32, i32) {
    %c0_i32 = arith.constant 0 : i32
    %c0_i32_0 = arith.constant 0 : i32
    return %arg0, %c0_i32 : i32, i32
  }
  func.func @transform_6(%arg0: i32) -> (i32, i32) {
    %c0_i32 = arith.constant 0 : i32
    %c0_i32_0 = arith.constant 0 : i32
    return %arg0, %c0_i32 : i32, i32
  }
}

</mosaic_0001>

<bundles_post_ra>
// kernel: bottleneck_forward.4
= control target key start
LH: loop header
LB: loop body
LE: loop exit
PB: predicated region body
PF: predicated region fallthrough
CT: control target
= control target key end

     0   :  { %10 = vsyncpa [#allocation3], 0  ;;  %s1567_s0 = inlined_call_operand.hbm [shape: f32[512,128], index: 0, kind: input, shape index: {}]   ;;  %s1568_s1 = inlined_call_operand.hbm [shape: bf16[128,128], index: 1, kind: input, shape index: {}]   ;;  %s1569_s2 = inlined_call_operand.hbm [shape: bf16[512,128], index: 2, kind: output, shape index: {0}]   ;;  %s1570_s3 = inlined_call_operand.hbm [shape: f32[4,1,128], index: 3, kind: output, shape index: {1}]   ;;  %s1571_s4 = inlined_call_operand.hbm [shape: f32[4,1,128], index: 4, kind: output, shape index: {2}]  }
   0x1   :  { %12 = vsyncpa [#allocation3 + $0x1], 0 }
   0x2   :  { %13 = vsyncpa [#allocation6], 0 }
   0x3   :  { %14 = vsyncpa [#allocation4], 0 }
   0x4   :  { %16 = vsyncpa [#allocation4 + $0x1], 0 }
   0x5   :  { %17 = vsyncpa [#allocation9], 0 }
   0x6   :  { %19 = vsyncpa [#allocation9 + $0x1], 0  ;;  %s1253_s15 = smov 0   ;;  %s1255_s16 = smov 0  }
   0x7   :  { %s1257_s17 = smov 0   ;;  %s1259_s18 = smov 0  }
   0x8 LB: > { %s1274_s19 = sadd.s32 4294967295, %s1215_s18   ;;  %s775_s20 = sadd.s32 4294967294, %s1215_s18   ;;  %s1215_s18 = sphi %s1259_s18, %s1590_s18   ;;  %s1211_s17 = sphi %s1257_s17, %s1589_s17   ;;  %s1207_s16 = sphi %s1255_s16, %s1588_s16   ;;  %s1203_s15 = sphi %s1253_s15, %s1587_s15  }
   0x9   : > { %p45_p0 = scmp.ne.s32.totalorder %s1207_s16, %s1203_s15  ;;  %p1572_p1 = scmp.eq.s32.totalorder %s1274_s19, 0 }
   0xa   : > { %p96_p3 = scmp.eq.s32.totalorder %s775_s20, 3  ;;  %p776_p5 = scmp.ge.s32.totalorder %s1215_s18, 1 }
   0xb   : > { %p1285_p4 = por %p1572_p1, %p45_p0  ;;  %p155_p7 = scmp.lt.s32.totalorder %s1215_s18, 5 }
   0xc   : > { %p1290_p6 = por %p96_p3, %p45_p0  ;;  %s1217_s24 = smov [#allocation5]  }
   0xd   : > { %s1575_s21 = scalar_select %p1285_p4, 1, 0 }
   0xe   : > { %s1576_s22 = scalar_select %p1290_p6, 1, 0 }
   0xf   : > { %p1295_p8 = pnand %p776_p5, %p155_p7  ;;  %s167_s25 = sshll.u32 %s1217_s24, 4  ;;  %s168_s25 = int_to_ptr.vmem [resolvable:$true] %s167_s25 }
  0x10   : > { %s1308_s27 = sadd.s32 1, %s1215_s18   ;;  %s32_s28 = sadd.s32 1, %s1211_s17 }
  0x11   : > { %s1577_s23 = scalar_select %p1295_p8, 1, 0 }
  0x12   : > { %p958_p9 = pneg %p1295_p8  ;;  %s29_s29 = ssub.s32 %s1215_s18, %s1308_s27 }
  0x13   : > { %s1027_s6 = scalar_lea.hbm %s1568_s1, 1024 }
  0x14   : > { %p1303_p10 = pnand %p958_p9, %p1572_p1  ;;  %p1028_p11 = scmp.ne.s32.totalorder %s1568_s1, %s1027_s6 }
  0x15   : > { %p1034_p3 = scmp.lt.u32.totalorder %s1027_s6, %s1568_s1 }
  0x16   : > { %p1029_p12 = pneg %p1303_p10 }
  0x18   : > { %p1030_p13 = pnand %p1029_p12, %p1028_p11 }
  0x1a   : > { %p1031_p0 = pneg %p1030_p13 }
  0x1c   : > { %p1036_p5 = pnand %p1034_p3, %p1031_p0 }
  0x1e   : > { %1039 = shalt.err (!%p1036_p5)
}
  0x1f   : > { %s1040_s11 = scalar_lea.vmem %s168_s25, 1024  ;;  %p1048_p2 = scmp.lt.s32.totalorder %s168_s25, %s168_s25 }
  0x20   : > { %p1041_p7 = scmp.ne.s32.totalorder %s168_s25, %s1040_s11  ;;  %p1049_p6 = scmp.lt.s32.totalorder %s1040_s11, %s1040_s11 }
  0x22   : > { %p1043_p9 = pnand %p1041_p7, %p1029_p12  ;;  %p1050_p4 = por %p1049_p6, %p1048_p2 }
  0x24   : > { %p1044_p1 = pneg %p1043_p9 }
  0x26   : > { %p1051_p8 = pnand %p1050_p4, %p1044_p1 }
  0x28   : > { %1054 = shalt.err (!%p1051_p8)
}
  0x29   : > { %s1218_s12 = smov 64   ;;  %s1219_s13 = smov 4  }
  0x2a   : > { %961 = dma.hbm_to_vmem [thread:$0]  (!%p1303_p10), %s1568_s1, 1024, %s168_s25, [#allocation6], %s1218_s12, %s1218_s12, %s1219_s13  }
  0x2b   : > { %p30_p11 = scmp.eq.s32.totalorder %s29_s29, 0  ;;  %p39_p2 = scmp.ne.s32.totalorder %s1211_s17, %s1207_s16 }
  0x2c   : > { %p40_p1 = scmp.eq.s32.totalorder %s1215_s18, 0  ;;  %p977_p4 = scmp.lt.s32.totalorder %s1215_s18, 4 }
  0x2d   : > { %s1334_s30 = scalar_select %p30_p11, %s1211_s17, %s32_s28  }
  0x2e   : > { %p41_p6 = por %p40_p1, %p39_p2  ;;  %p1579_p8 = scmp.eq.s32.totalorder %s1274_s19, 3 }
  0x2f   : > { %s181_s6 = sand.u32 1, %s1211_s17   ;;  %s817_s7 = sshll.u32 %s1215_s18, 11 }
  0x30   : > { %p1338_p12 = por %p1579_p8, %p39_p2  ;;  %s779_s8 = sshll.u32 %s181_s6, 7 }
  0x31   : > { %s1347_s10 = scalar_lea.hbm %s1567_s0, %s817_s7  ;;  %s185_s25 = scalar_lea.vmem [#allocation2], %s779_s8 }
  0x32   : > { %s192_s28 = sshll.u32 %s185_s25, 4  ;;  %p1349_p10 = pnand %p977_p4, %p41_p6  ;;  %s1353_s28 = int_to_ptr.vmem [resolvable:$true] %s192_s28 }
  0x33   : > { %s1355_s11 = scalar_lea.sflag [#allocation3], %s181_s6  ;;  %s1055_s12 = scalar_lea.hbm %s1347_s10, 2048 }
  0x34   : > { %p1056_p13 = scmp.ne.s32.totalorder %s1347_s10, %s1055_s12  ;;  %p1057_p0 = pneg %p1349_p10 }
  0x35   : > { %s1060_s24 = scalar_lea.hbm %s1567_s0, 8192  ;;  %p1061_p7 = scmp.lt.u32.totalorder %s1347_s10, %s1567_s0 }
  0x36   : > { %p1058_p3 = pnand %p1057_p0, %p1056_p13  ;;  %p1062_p9 = scmp.lt.u32.totalorder %s1060_s24, %s1055_s12 }
  0x37   : > { %p1064_p2 = scmp.lt.u32.totalorder %s1055_s12, %s1347_s10 }
  0x38   : > { %p1059_p5 = pneg %p1058_p3  ;;  %p1063_p11 = por %p1062_p9, %p1061_p7 }
  0x3a   : > { %p1065_p1 = por %p1064_p2, %p1063_p11 }
  0x3c   : > { %p1066_p4 = pnand %p1065_p1, %p1059_p5 }
  0x3e   : > { %1069 = shalt.err (!%p1066_p4)
}
  0x3f   : > { %s1070_s6 = scalar_lea.vmem %s1353_s28, 2048  ;;  %s1220_s26 = smov [#allocation2]  }
  0x40   : > { %p1071_p6 = scmp.ne.s32.totalorder %s1353_s28, %s1070_s6  ;;  %s1075_s9 = sshll.u32 %s1220_s26, 4  ;;  %s1076_s9 = int_to_ptr.vmem [resolvable:$false] %s1075_s9 }
  0x41   : > { %s1077_s25 = scalar_lea.vmem %s1076_s9, 4096  ;;  %p1078_p3 = scmp.lt.s32.totalorder %s1353_s28, %s1076_s9 }
  0x42   : > { %p1073_p8 = pnand %p1071_p6, %p1057_p0  ;;  %p1079_p7 = scmp.lt.s32.totalorder %s1077_s25, %s1070_s6 }
  0x44   : > { %p1074_p13 = pneg %p1073_p8  ;;  %p1080_p9 = por %p1079_p7, %p1078_p3 }
  0x46   : > { %p1081_p11 = pnand %p1080_p9, %p1074_p13 }
  0x48   : > { %1084 = shalt.err (!%p1081_p11)
}
  0x49   : > { %s1221_s12 = smov 128   ;;  %s1222_s13 = smov 8  }
  0x4a   : > { %965 = dma.hbm_to_vmem [thread:$0]  (!%p1349_p10), %s1347_s10, 2048, %s1353_s28, %s1355_s11, %s1221_s12, %s1221_s12, %s1222_s13  }
  0x4b   : > { %p1582_p0 = scmp.ne.s32.totalorder %s1577_s23, 0 }
  0x4c   : > { %s1386_s14 = sand.u32 (!%p1582_p0), 1, %s1207_s16   ;;  %p1583_p5 = scmp.ne.s32.totalorder (!%p1582_p0), %s1575_s21, 0 }
  0x4d   : > { %204 = sbr.rel (%p1582_p0) target bundleno = 431 (0x1af), region = 28  ;;  %s783_s24 = sshll.u32 (!%p1582_p0), %s1386_s14, 7 }
  0x4e   : > { %s207_s7 = scalar_lea.sflag (!%p1582_p0), [#allocation3], %s1386_s14  ;;  %s1390_s8 = scalar_lea.vmem (!%p1582_p0), [#allocation2], %s783_s24 }
  0x54   : > { %1186 = dma.done.wait (%p1583_p5), %s207_s7, 2048  }
  0x55   : > { %1188 = vsyncadd (%p1583_p5), %s207_s7, 4294965248  ;;  %p1584_p10 = scmp.eq.s32.totalorder %s1274_s19, 0 }
  0x57   : > { %1190 = dma.done.wait (%p1584_p10), [#allocation6], 1024   ;;  %p1585_p2 = pmov %p1584_p10 }
  0x58   : > { %v1019_v0 = vld [vmem:[#allocation5] sm:$0xff]   ;;  %v1020_v1 = vld [vmem:[#allocation5 + $0x8] sm:$0xff]   ;;  %v1021_v2 = vld [vmem:[#allocation5 + $0x10] sm:$0xff]   ;;  %s785_s21 = sshll.u32 %s1386_s14, 6  ;;  %s834_s28 = sshll.u32 %s1274_s19, 10 }
  0x59   : > { %1192 = vsyncadd (%p1585_p2), [#allocation6], 4294966272  ;;  %898 = vmatprep.subr.bf16.mxu0 %v1019_v0  ;;  %930 = vmatprep.subr.bf16.mxu1 %v1019_v0  ;;  %v1022_v3 = vld [vmem:[#allocation5 + $0x18] sm:$0xff]   ;;  %v250_v4 = vld [vmem:[%s1390_s8] sm:$0xff]  ;;  %s1421_s23 = scalar_lea.vmem [#allocation7], %s785_s21  ;;  %s1440_s6 = scalar_lea.hbm %s1569_s2, %s834_s28 }
  0x5a   : > { %899 = vmatpush3.bf16.msra.mxu0 %v1019_v0  ;;  %938 = vmatpush3.bf16.msra.mxu1 %v1019_v0  ;;  %v251_v5 = vld [vmem:[%s1390_s8 + $0x8] sm:$0xff]  ;;  %v258_v7 = vld [vmem:[%s1390_s8 + $0x40] sm:$0xff]  ;;  %v1025_v12 = vld [vmem:[#allocation5 + $0x30] sm:$0xff]   ;;  %s613_s10 = sshll.u32 %s1421_s23, 4  ;;  %s592_s26 = scalar_lea.sflag [#allocation4], %s1386_s14  ;;  %s1431_s10 = int_to_ptr.vmem [resolvable:$true] %s613_s10 }
  0x5b   : > { %900 = vmatprep.subr.bf16.mxu0 %v1020_v1  ;;  %931 = vmatprep.subr.bf16.mxu1 %v1020_v1  ;;  %v266_v6 = vpack.c.bf16 %v251_v5, %v250_v4  ;;  %v259_v8 = vld [vmem:[%s1390_s8 + $0x48] sm:$0xff]  ;;  %v1023_v9 = vld [vmem:[#allocation5 + $0x20] sm:$0xff]   ;;  %v1026_v13 = vld [vmem:[#allocation5 + $0x38] sm:$0xff]   ;;  %s1085_s9 = scalar_lea.vmem %s1431_s10, 1024  ;;  %s1223_s25 = smov [#allocation7]  }
  0x5c   : > { %v270_v10 = vpack.c.bf16 %v259_v8, %v258_v7  ;;  %v1024_v11 = vld [vmem:[#allocation5 + $0x28] sm:$0xff]   ;;  %v252_v14 = vld [vmem:[%s1390_s8 + $0x10] sm:$0xff]  ;;  %v253_v15 = vld [vmem:[%s1390_s8 + $0x18] sm:$0xff]  ;;  %p1086_p1 = scmp.ne.s32.totalorder %s1431_s10, %s1085_s9  ;;  %s1089_s12 = sshll.u32 %s1223_s25, 4  ;;  %s1090_s12 = int_to_ptr.vmem [resolvable:$false] %s1089_s12 }
  0x5d   : > { %914 = vmatprep.mubr.bf16.mxu0 %v266_v6  ;;  %v254_v16 = vld [vmem:[%s1390_s8 + $0x20] sm:$0xff]  ;;  %v260_v17 = vld [vmem:[%s1390_s8 + $0x50] sm:$0xff]  ;;  %v261_v18 = vld [vmem:[%s1390_s8 + $0x58] sm:$0xff]  ;;  %v267_v22 = vpack.c.bf16 %v253_v15, %v252_v14  ;;  %s1091_s13 = scalar_lea.vmem %s1090_s12, 2048  ;;  %p1092_p8 = scmp.lt.s32.totalorder %s1431_s10, %s1090_s12 }
  0x5e   : > { %901 = vmatpush3.bf16.msra.mxu0 %v1020_v1  ;;  %939 = vmatpush3.bf16.msra.mxu1 %v1020_v1  ;;  %v255_v19 = vld [vmem:[%s1390_s8 + $0x28] sm:$0xff]  ;;  %v262_v20 = vld [vmem:[%s1390_s8 + $0x60] sm:$0xff]  ;;  %v271_v23 = vpack.c.bf16 %v261_v18, %v260_v17  ;;  %v256_v26 = vld [vmem:[%s1390_s8 + $0x30] sm:$0xff]  ;;  %p1087_p4 = pnand %p1086_p1, %p1338_p12  ;;  %p1093_p13 = scmp.lt.s32.totalorder %s1091_s13, %s1085_s9 }
  0x5f   : > { %902 = vmatprep.subr.bf16.mxu0 %v1021_v2  ;;  %932 = vmatprep.subr.bf16.mxu1 %v1021_v2  ;;  %v263_v21 = vld [vmem:[%s1390_s8 + $0x68] sm:$0xff]  ;;  %v268_v24 = vpack.c.bf16 %v255_v19, %v254_v16  ;;  %v257_v27 = vld [vmem:[%s1390_s8 + $0x38] sm:$0xff]  ;;  %v264_v28 = vld [vmem:[%s1390_s8 + $0x70] sm:$0xff] }
  0x60   : > { %922 = vmatprep.mubr.bf16.mxu1 %v270_v10  ;;  %v272_v25 = vpack.c.bf16 %v263_v21, %v262_v20  ;;  %v265_v29 = vld [vmem:[%s1390_s8 + $0x78] sm:$0xff]  ;;  %v269_v30 = vpack.c.bf16 %v257_v27, %v256_v26  ;;  %p1088_p6 = pneg %p1087_p4  ;;  %p1094_p3 = por %p1093_p13, %p1092_p8 }
  0x61   : > { %v273_v31 = vpack.c.bf16 %v265_v29, %v264_v28 }
  0x62   : > { %903 = vmatpush3.bf16.msra.mxu0 %v1021_v2  ;;  %940 = vmatpush3.bf16.msra.mxu1 %v1021_v2  ;;  %p1095_p7 = pnand %p1094_p3, %p1088_p6 }
  0x63   : > { %904 = vmatprep.subr.bf16.mxu0 %v1022_v3  ;;  %933 = vmatprep.subr.bf16.mxu1 %v1022_v3 }
  0x66   : > { %905 = vmatpush3.bf16.msra.mxu0 %v1022_v3  ;;  %941 = vmatpush3.bf16.msra.mxu1 %v1022_v3 }
  0x67   : > { %906 = vmatprep.subr.bf16.mxu0 %v1023_v9  ;;  %934 = vmatprep.subr.bf16.mxu1 %v1023_v9 }
  0x6a   : > { %907 = vmatpush3.bf16.msra.mxu0 %v1023_v9  ;;  %942 = vmatpush3.bf16.msra.mxu1 %v1023_v9 }
  0x6b   : > { %908 = vmatprep.subr.bf16.mxu0 %v1024_v11  ;;  %935 = vmatprep.subr.bf16.mxu1 %v1024_v11 }
  0x6e   : > { %909 = vmatpush3.bf16.msra.mxu0 %v1024_v11  ;;  %943 = vmatpush3.bf16.msra.mxu1 %v1024_v11 }
  0x6f   : > { %910 = vmatprep.subr.bf16.mxu0 %v1025_v12  ;;  %936 = vmatprep.subr.bf16.mxu1 %v1025_v12 }
  0x72   : > { %911 = vmatpush3.bf16.msra.mxu0 %v1025_v12  ;;  %944 = vmatpush3.bf16.msra.mxu1 %v1025_v12 }
  0x73   : > { %912 = vmatprep.subr.bf16.mxu0 %v1026_v13  ;;  %937 = vmatprep.subr.bf16.mxu1 %v1026_v13 }
  0x76   : > { %913 = vmatpush3.bf16.msra.mxu0 %v1026_v13  ;;  %945 = vmatpush3.bf16.msra.mxu1 %v1026_v13 }
  0x79   : > { %915 = vmatmul.mubr.bf16.vlgmr.msra.gmra.mrb[0].mxu0 %v267_v22  ;;  %923 = vmatmul.mubr.bf16.vlgmr.msra.gmra.mrb[0].mxu1 %v271_v23 }
  0x7a   : > { %918 = vmatprep.mubr.bf16.mxu0 %v268_v24  ;;  %926 = vmatprep.mubr.bf16.mxu1 %v272_v25 }
  0x81   : > { %919 = vmatmul.mubr.bf16.gmra.mrb[4].mxu0 %v269_v30  ;;  %927 = vmatmul.mubr.bf16.gmra.mrb[4].mxu1 %v273_v31 }
 0x14c   : > { %v916_v32 = vpop.f32.mrb[0].mxu0  ;;  %v924_v33 = vpop.f32.mrb[0].mxu1 }
 0x14d   : > { %v372_v34 = vpop.f32.mrb[1].mxu0  ;;  %v404_v35 = vpop.f32.mrb[1].mxu1 }
 0x14e   : > { %v917_v36 = vpop.f32.mrb[2].mxu0  ;;  %v925_v37 = vpop.f32.mrb[2].mxu1 }
 0x14f   : > { %v436_v38 = vpack.c.bf16 %v917_v36, %v916_v32  ;;  %v375_v39 = vpop.f32.mrb[3].mxu0  ;;  %v1417_v40 = vpack.c.bf16 %v925_v37, %v924_v33  ;;  %v407_v41 = vpop.f32.mrb[3].mxu1 }
 0x150   : > { %v435_v42 = vpack.c.bf16 %v375_v39, %v372_v34  ;;  %v1419_v43 = vpack.c.bf16 %v407_v41, %v404_v35 }
 0x151   : > { %875 = vst [vmem:[%s1421_s23 + $0x8] sm:$0xff] %v436_v38   ;;  %879 = vst [vmem:[%s1421_s23 + $0x28] sm:$0xff] %v1417_v40   ;;  %v517_v44 = vunpack.c.l.bf16 %v436_v38  ;;  %v518_v47 = vunpack.c.h.bf16 %v436_v38 }
 0x152   : > { %839 = vst [vmem:[%s1421_s23] sm:$0xff] %v435_v42   ;;  %v515_v45 = vunpack.c.l.bf16 %v435_v42  ;;  %v516_v46 = vunpack.c.h.bf16 %v435_v42  ;;  %878 = vst [vmem:[%s1421_s23 + $0x20] sm:$0xff] %v1419_v43  }
 0x153   : > { %v555_v55 = vmul.f32 %v517_v44, %v517_v44  ;;  %v556_v60 = vmul.f32 %v518_v47, %v518_v47 }
 0x154   : > { %v531_v48 = vadd.f32 %v516_v46, %v515_v45  ;;  %v553_v49 = vmul.f32 %v515_v45, %v515_v45  ;;  %v554_v50 = vmul.f32 %v516_v46, %v516_v46  ;;  %v920_v51 = vpop.f32.mrb[4].mxu0  ;;  %v928_v52 = vpop.f32.mrb[4].mxu1 }
 0x155   : > { %v388_v53 = vpop.f32.mrb[5].mxu0  ;;  %v420_v54 = vpop.f32.mrb[5].mxu1 }
 0x156   : > { %v532_v56 = vadd.f32 %v531_v48, %v517_v44  ;;  %v569_v57 = vadd.f32 %v554_v50, %v553_v49  ;;  %v921_v58 = vpop.f32.mrb[6].mxu0  ;;  %v929_v59 = vpop.f32.mrb[6].mxu1 }
 0x157   : > { %v438_v61 = vpack.c.bf16 %v921_v58, %v920_v51  ;;  %v391_v62 = vpop.f32.mrb[7].mxu0  ;;  %v1433_v63 = vpack.c.bf16 %v929_v59, %v928_v52  ;;  %v423_v0 = vpop.f32.mrb[7].mxu1 }
 0x158   : > { %v570_v1 = vadd.f32 %v569_v57, %v555_v55  ;;  %v437_v2 = vpack.c.bf16 %v391_v62, %v388_v53  ;;  %v533_v3 = vadd.f32 %v532_v56, %v518_v47  ;;  %v1435_v4 = vpack.c.bf16 %v423_v0, %v420_v54 }
 0x159   : > { %877 = vst [vmem:[%s1421_s23 + $0x18] sm:$0xff] %v438_v61   ;;  %881 = vst [vmem:[%s1421_s23 + $0x38] sm:$0xff] %v1433_v63  }
 0x15a   : > { %876 = vst [vmem:[%s1421_s23 + $0x10] sm:$0xff] %v437_v2   ;;  %v519_v5 = vunpack.c.l.bf16 %v437_v2  ;;  %v520_v6 = vunpack.c.h.bf16 %v437_v2  ;;  %v571_v7 = vadd.f32 %v570_v1, %v556_v60  ;;  %880 = vst [vmem:[%s1421_s23 + $0x30] sm:$0xff] %v1435_v4  }
 0x15b   : > { %1098 = shalt.err (!%p1095_p7)
}
 0x15c   : > { %s1099_s24 = scalar_lea.hbm %s1440_s6, 1024  ;;  %s1103_s21 = scalar_lea.hbm %s1569_s2, 4096 }
 0x15d   : > { %p1100_p9 = scmp.ne.s32.totalorder %s1440_s6, %s1099_s24  ;;  %p1104_p5 = scmp.lt.u32.totalorder %s1440_s6, %s1569_s2 }
 0x15e   : > { %p1105_p10 = scmp.lt.u32.totalorder %s1103_s21, %s1099_s24  ;;  %p1107_p1 = scmp.lt.u32.totalorder %s1099_s24, %s1440_s6 }
 0x15f   : > { %p1101_p11 = pnand %p1100_p9, %p1338_p12 }
 0x160   : > { %p1106_p2 = por %p1105_p10, %p1104_p5 }
 0x161   : > { %p1102_p0 = pneg %p1101_p11 }
 0x162   : > { %p1108_p4 = por %p1107_p1, %p1106_p2 }
 0x164   : > { %p1109_p6 = pnand %p1108_p4, %p1102_p0 }
 0x166   : > { %1112 = shalt.err (!%p1109_p6)
}
 0x167   : > { %s1224_s29 = smov 64   ;;  %s1225_s11 = smov 4   ;;  %v521_v8 = vunpack.c.l.bf16 %v438_v61  ;;  %v534_v9 = vadd.f32 %v533_v3, %v519_v5  ;;  %v557_v10 = vmul.f32 %v519_v5, %v519_v5  ;;  %v522_v11 = vunpack.c.h.bf16 %v438_v61 }
 0x168   : > { %952 = dma.vmem_to_hbm [thread:$0]  (%p1338_p12), %s1431_s10, 1024, %s1440_s6, %s592_s26, %s1224_s29, %s1224_s29, %s1225_s11   ;;  %v558_v13 = vmul.f32 %v520_v6, %v520_v6  ;;  %v523_v18 = vunpack.c.l.bf16 %v1419_v43  ;;  %v524_v21 = vunpack.c.h.bf16 %v1419_v43  ;;  %v525_v23 = vunpack.c.l.bf16 %v1417_v40 }
 0x169   : > { %v535_v12 = vadd.f32 %v534_v9, %v520_v6  ;;  %v572_v14 = vadd.f32 %v571_v7, %v557_v10  ;;  %v559_v15 = vmul.f32 %v521_v8, %v521_v8  ;;  %v560_v19 = vmul.f32 %v522_v11, %v522_v11  ;;  %s596_s10 = sand.u32 1, %s1274_s19   ;;  %s813_s6 = sshll.u32 %s1274_s19, 4 }
 0x16a   : > { %v561_v25 = vmul.f32 %v523_v18, %v523_v18  ;;  %v526_v27 = vunpack.c.h.bf16 %v1417_v40  ;;  %v562_v29 = vmul.f32 %v524_v21, %v524_v21  ;;  %v563_v31 = vmul.f32 %v525_v23, %v525_v23  ;;  %s240_s26 = scalar_lea.vmem [#allocation8], %s1386_s14  ;;  %s246_s25 = scalar_lea.vmem [#allocation10], %s1386_s14 }
 0x16b   : > { %v536_v16 = vadd.f32 %v535_v12, %v521_v8  ;;  %v573_v17 = vadd.f32 %v572_v14, %v558_v13  ;;  %v527_v34 = vunpack.c.l.bf16 %v1435_v4  ;;  %v528_v37 = vunpack.c.h.bf16 %v1435_v4  ;;  %s629_s9 = sshll.u32 %s240_s26, 4  ;;  %s642_s12 = sshll.u32 %s246_s25, 4  ;;  %s1491_s9 = int_to_ptr.vmem [resolvable:$true] %s629_s9  ;;  %s1498_s12 = int_to_ptr.vmem [resolvable:$true] %s642_s12 }
 0x16c   : > { %v564_v35 = vmul.f32 %v526_v27, %v526_v27  ;;  %v529_v39 = vunpack.c.l.bf16 %v1433_v63  ;;  %v530_v40 = vunpack.c.h.bf16 %v1433_v63  ;;  %s1489_s7 = scalar_lea.hbm %s1570_s3, %s813_s6  ;;  %s1496_s21 = scalar_lea.hbm %s1571_s4, %s813_s6 }
 0x16d   : > { %v574_v20 = vadd.f32 %v573_v17, %v559_v15  ;;  %v537_v22 = vadd.f32 %v536_v16, %v522_v11  ;;  %v565_v42 = vmul.f32 %v527_v34, %v527_v34  ;;  %v566_v45 = vmul.f32 %v528_v37, %v528_v37  ;;  %s1500_s23 = scalar_lea.sflag [#allocation9], %s596_s10  ;;  %s1113_s28 = scalar_lea.vmem %s1491_s9, 16 }
 0x16e   : > { %v567_v47 = vmul.f32 %v529_v39, %v529_v39  ;;  %v568_v50 = vmul.f32 %v530_v40, %v530_v40  ;;  %p1114_p8 = scmp.ne.s32.totalorder %s1491_s9, %s1113_s28  ;;  %s1226_s29 = smov [#allocation8]  }
 0x16f   : > { %v538_v24 = vadd.f32 %v537_v22, %v523_v18  ;;  %v575_v26 = vadd.f32 %v574_v20, %v560_v19  ;;  %s1117_s11 = sshll.u32 %s1226_s29, 4  ;;  %s1118_s11 = int_to_ptr.vmem [resolvable:$false] %s1117_s11 }
 0x170   : > { %p1115_p13 = pnand %p1114_p8, %p1338_p12  ;;  %s1119_s13 = scalar_lea.vmem %s1118_s11, 32 }
 0x171   : > { %v539_v28 = vadd.f32 %v538_v24, %v524_v21  ;;  %v576_v30 = vadd.f32 %v575_v26, %v561_v25  ;;  %p1120_p7 = scmp.lt.s32.totalorder %s1491_s9, %s1118_s11  ;;  %p1121_p9 = scmp.lt.s32.totalorder %s1119_s13, %s1113_s28 }
 0x172   : > { %p1116_p3 = pneg %p1115_p13 }
 0x173   : > { %v540_v32 = vadd.f32 %v539_v28, %v525_v23  ;;  %v577_v33 = vadd.f32 %v576_v30, %v562_v29  ;;  %p1122_p11 = por %p1121_p9, %p1120_p7 }
 0x175   : > { %v578_v36 = vadd.f32 %v577_v33, %v563_v31  ;;  %v541_v38 = vadd.f32 %v540_v32, %v526_v27  ;;  %p1123_p0 = pnand %p1122_p11, %p1116_p3 }
 0x177   : > { %v542_v41 = vadd.f32 %v541_v38, %v527_v34  ;;  %v579_v43 = vadd.f32 %v578_v36, %v564_v35 }
 0x179   : > { %v543_v44 = vadd.f32 %v542_v41, %v528_v37  ;;  %v580_v46 = vadd.f32 %v579_v43, %v565_v42 }
 0x17b   : > { %v544_v48 = vadd.f32 %v543_v44, %v529_v39  ;;  %v581_v49 = vadd.f32 %v580_v46, %v566_v45 }
 0x17d   : > { %v545_v51 = vadd.f32 %v544_v48, %v530_v40  ;;  %v582_v52 = vadd.f32 %v581_v49, %v567_v47 }
 0x17f   : > { %v546_v53 = vrot.slane %v545_v51, 4  ;;  %v583_v54 = vadd.f32 %v582_v52, %v568_v50 }
 0x181   : > { %v547_v55 = vadd.f32 %v546_v53, %v545_v51  ;;  %v584_v56 = vrot.slane %v583_v54, 4 }
 0x183   : > { %v585_v57 = vadd.f32 %v584_v56, %v583_v54  ;;  %v548_v58 = vrot.slane %v547_v55, 2 }
 0x185   : > { %v549_v59 = vadd.f32 %v548_v58, %v547_v55  ;;  %v586_v60 = vrot.slane %v585_v57, 2 }
 0x187   : > { %v550_v61 = vrot.slane %v549_v59, 1  ;;  %v587_v62 = vadd.f32 %v586_v60, %v585_v57 }
 0x189   : > { %v551_v63 = vadd.f32 %v550_v61, %v549_v59  ;;  %v588_v0 = vrot.slane %v587_v62, 1 }
 0x18b   : > { %552 = vst [vmem:[%s240_s26] sm:$0x1] %v551_v63  ;;  %v589_v1 = vadd.f32 %v588_v0, %v587_v62 }
 0x18c   : > { %1126 = shalt.err (!%p1123_p0)
}
 0x18d   : > { %s1127_s10 = scalar_lea.hbm %s1489_s7, 16  ;;  %s1131_s24 = scalar_lea.hbm %s1570_s3, 64 }
 0x18e   : > { %p1128_p5 = scmp.ne.s32.totalorder %s1489_s7, %s1127_s10  ;;  %p1132_p1 = scmp.lt.u32.totalorder %s1489_s7, %s1570_s3 }
 0x18f   : > { %p1133_p4 = scmp.lt.u32.totalorder %s1131_s24, %s1127_s10  ;;  %p1135_p8 = scmp.lt.u32.totalorder %s1127_s10, %s1489_s7 }
 0x190   : > { %p1129_p10 = pnand %p1128_p5, %p1338_p12 }
 0x191   : > { %p1134_p6 = por %p1133_p4, %p1132_p1 }
 0x192   : > { %p1130_p2 = pneg %p1129_p10 }
 0x193   : > { %p1136_p13 = por %p1135_p8, %p1134_p6 }
 0x195   : > { %p1137_p3 = pnand %p1136_p13, %p1130_p2 }
 0x197   : > { %1140 = shalt.err (!%p1137_p3)
}
 0x198   : > { %953 = dma.vmem_to_hbm [thread:$0]  (%p1338_p12), %s1491_s9, 16, %s1489_s7, %s1500_s23   ;;  %590 = vst [vmem:[%s246_s25] sm:$0x1] %v589_v1 }
 0x199   : > { %s1141_s28 = scalar_lea.vmem %s1498_s12, 16  ;;  %s1227_s29 = smov [#allocation10]  }
 0x19a   : > { %p1142_p7 = scmp.ne.s32.totalorder %s1498_s12, %s1141_s28  ;;  %s1145_s11 = sshll.u32 %s1227_s29, 4  ;;  %s1146_s11 = int_to_ptr.vmem [resolvable:$false] %s1145_s11 }
 0x19b   : > { %s1147_s13 = scalar_lea.vmem %s1146_s11, 32  ;;  %p1148_p0 = scmp.lt.s32.totalorder %s1498_s12, %s1146_s11 }
 0x19c   : > { %p1143_p9 = pnand %p1142_p7, %p1338_p12  ;;  %p1149_p5 = scmp.lt.s32.totalorder %s1147_s13, %s1141_s28 }
 0x19e   : > { %p1144_p11 = pneg %p1143_p9  ;;  %p1150_p10 = por %p1149_p5, %p1148_p0 }
 0x1a0   : > { %p1151_p2 = pnand %p1150_p10, %p1144_p11 }
 0x1a2   : > { %1154 = shalt.err (!%p1151_p2)
}
 0x1a3   : > { %s1155_s14 = scalar_lea.hbm %s1496_s21, 16  ;;  %s1159_s7 = scalar_lea.hbm %s1571_s4, 64 }
 0x1a4   : > { %p1156_p1 = scmp.ne.s32.totalorder %s1496_s21, %s1155_s14  ;;  %p1160_p8 = scmp.lt.u32.totalorder %s1496_s21, %s1571_s4 }
 0x1a5   : > { %p1161_p13 = scmp.lt.u32.totalorder %s1159_s7, %s1155_s14  ;;  %p1163_p7 = scmp.lt.u32.totalorder %s1155_s14, %s1496_s21 }
 0x1a6   : > { %p1157_p4 = pnand %p1156_p1, %p1338_p12 }
 0x1a7   : > { %p1162_p3 = por %p1161_p13, %p1160_p8 }
 0x1a8   : > { %p1158_p6 = pneg %p1157_p4 }
 0x1a9   : > { %p1164_p9 = por %p1163_p7, %p1162_p3 }
 0x1ab   : > { %p1165_p11 = pnand %p1164_p9, %p1158_p6 }
 0x1ad   : > { %1168 = shalt.err (!%p1165_p11)
}
 0x1ae   : > { %954 = dma.vmem_to_hbm [thread:$0]  (%p1338_p12), %s1498_s12, 16, %s1496_s21, %s1500_s23  }
 0x1af PF: > { %p979_p0 = scmp.ge.s32.totalorder %s1215_s18, 2  ;;  %s654_s26 = sand.u32 1, %s1203_s15  }
 0x1b0   : > { %p1586_p5 = scmp.ne.s32.totalorder %s1576_s22, 0  ;;  %s655_s24 = scalar_lea.sflag [#allocation4], %s654_s26 }
 0x1b2   : > { %p967_p10 = pnand %p979_p0, %p1586_p5 }
 0x1b4   : > { %1194 = dma.done.wait (!%p967_p10), %s655_s24, 1024  }
 0x1b5   : > { %1196 = vsyncadd (!%p967_p10), %s655_s24, 4294966272  ;;  %s663_s19 = sand.u32 1, %s775_s20  }
 0x1b6   : > { %s664_s8 = scalar_lea.sflag [#allocation9], %s663_s19 }
 0x1b7   : > { %1198 = dma.done.wait (!%p967_p10), %s664_s8, 32  }
 0x1b8   : > { %1200 = vsyncadd (!%p967_p10), %s664_s8, 4294967264  ;;  %p22_p12 = scmp.ge.s32.totalorder %s1308_s27, 6   ;;  %s1587_s15 = smov %s1207_s16 }
 0x1b9   : > { %s1588_s16 = smov %s1211_s17  ;;  %s1589_s17 = smov %s1334_s30 }
 0x1ba   : > { %s1590_s18 = smov %s1308_s27  ;;  %24 = sbr.rel (!%p22_p12) target bundleno = 8 (0x8), region = 109 }
 0x1c1   :  { %676 = vsyncpa [#allocation3], 1 }
 0x1c2   :  { %678 = vsyncpa [#allocation3 + $0x1], 1 }
 0x1c3   :  { %679 = vsyncpa [#allocation6], 1 }
 0x1c4   :  { %680 = vsyncpa [#allocation4], 1 }
 0x1c5   :  { %682 = vsyncpa [#allocation4 + $0x1], 1 }
 0x1c6   :  { %683 = vsyncpa [#allocation9], 1 }
 0x1c7   :  { %685 = vsyncpa [#allocation9 + $0x1], 1 }

// kernel: bottleneck_forward.7
= control target key start
LH: loop header
LB: loop body
LE: loop exit
PB: predicated region body
PF: predicated region fallthrough
CT: control target
= control target key end

     0   :  { %s1546_s0 = inlined_call_operand.hbm [shape: bf16[512,128], index: 0, kind: input, shape index: {}]   ;;  %s1547_s1 = inlined_call_operand.hbm [shape: f32[1,128], index: 1, kind: input, shape index: {}]   ;;  %s1548_s2 = inlined_call_operand.hbm [shape: f32[1,128], index: 2, kind: input, shape index: {}]   ;;  %s1549_s3 = inlined_call_operand.hbm [shape: f32[1,128], index: 3, kind: input, shape index: {}]   ;;  %s1550_s4 = inlined_call_operand.hbm [shape: f32[1,128], index: 4, kind: input, shape index: {}]   ;;  %s1551_s5 = inlined_call_operand.hbm [shape: f32[512,128], index: 5, kind: input, shape index: {}]   ;;  %s1552_s6 = inlined_call_operand.hbm [shape: f32[512,128], index: 6, kind: output, shape index: {}]  }
   0x1   :  { %1556 = sst [smem:[#allocation19_spill]] %s1546_s0 }
   0x2   :  { %1557 = sst [smem:[#allocation20_spill]] %s1547_s1 }
   0x3   :  { %1558 = sst [smem:[#allocation21_spill]] %s1548_s2 }
   0x4   :  { %11 = vsyncpa [#allocation3], 0 }
   0x5   :  { %13 = vsyncpa [#allocation3 + $0x1], 0 }
   0x6   :  { %14 = vsyncpa [#allocation6], 0 }
   0x7   :  { %15 = vsyncpa [#allocation9], 0 }
   0x8   :  { %16 = vsyncpa [#allocation12], 0 }
   0x9   :  { %18 = vsyncpa [#allocation12 + $0x1], 0 }
   0xa   :  { %19 = vsyncpa [#allocation4], 0 }
   0xb   :  { %21 = vsyncpa [#allocation4 + $0x1], 0  ;;  %s1133_s21 = smov 0   ;;  %s1135_s22 = smov 0  }
   0xc   :  { %s1137_s23 = smov 0   ;;  %s1139_s24 = smov 0  }
   0xd LB: > { %s1154_s25 = sadd.s32 4294967295, %s1083_s24   ;;  %s665_s26 = sadd.s32 4294967294, %s1083_s24   ;;  %s1083_s24 = sphi %s1139_s24, %s1580_s24   ;;  %s1079_s23 = sphi %s1137_s23, %s1579_s23   ;;  %s1075_s22 = sphi %s1135_s22, %s1578_s22   ;;  %s1071_s21 = sphi %s1133_s21, %s1577_s21  }
   0xe   : > { %p47_p0 = scmp.ne.s32.totalorder %s1075_s22, %s1071_s21  ;;  %p1553_p1 = scmp.eq.s32.totalorder %s1154_s25, 0 }
   0xf   : > { %p187_p3 = scmp.eq.s32.totalorder %s665_s26, 3  ;;  %p666_p5 = scmp.ge.s32.totalorder %s1083_s24, 1 }
  0x10   : > { %p1163_p4 = por %p1553_p1, %p47_p0  ;;  %p194_p7 = scmp.lt.s32.totalorder %s1083_s24, 5 }
  0x11   : > { %p1168_p6 = por %p187_p3, %p47_p0  ;;  %s1085_s30 = smov [#allocation5]  }
  0x12   : > { %s1559_s27 = scalar_select %p1163_p4, 1, 0 }
  0x13   : > { %s1560_s28 = scalar_select %p1168_p6, 1, 0 }
  0x14   : > { %p1173_p8 = pnand %p666_p5, %p194_p7  ;;  %s207_s7 = sshll.u32 %s1085_s30, 4  ;;  %s208_s7 = int_to_ptr.vmem [resolvable:$true] %s207_s7 }
  0x15   : > { %s1086_s8 = smov [#allocation8]   ;;  %s1087_s11 = smov [#allocation7]  }
  0x16   : > { %s1561_s29 = scalar_select %p1173_p8, 1, 0 }
  0x17   : > { %p755_p9 = pneg %p1173_p8  ;;  %s229_s9 = sshll.u32 %s1086_s8, 4  ;;  %s1185_s9 = int_to_ptr.vmem [resolvable:$true] %s229_s9 }
  0x18   : > { %s218_s12 = sshll.u32 %s1087_s11, 4  ;;  %s1563_s1 = sld [smem:[#allocation20_spill]]  ;;  %s1187_s12 = int_to_ptr.vmem [resolvable:$true] %s218_s12 }
  0x19   : > { %p1181_p10 = pnand %p755_p9, %p1553_p1 }
  0x1b   : > { %p1197_p12 = pneg %p1181_p10 }
  0x1e   : > { %s833_s15 = scalar_lea.hbm %s1563_s1, 16 }
  0x1f   : > { %p834_p11 = scmp.ne.s32.totalorder %s1563_s1, %s833_s15  ;;  %p840_p3 = scmp.lt.u32.totalorder %s833_s15, %s1563_s1 }
  0x21   : > { %p836_p13 = pnand %p1197_p12, %p834_p11 }
  0x23   : > { %p837_p0 = pneg %p836_p13 }
  0x25   : > { %p842_p5 = pnand %p840_p3, %p837_p0 }
  0x27   : > { %845 = shalt.err (!%p842_p5)
}
  0x28   : > { %s846_s26 = scalar_lea.vmem %s208_s7, 16  ;;  %s853_s30 = scalar_lea.vmem %s208_s7, 32 }
  0x29   : > { %p847_p7 = scmp.ne.s32.totalorder %s208_s7, %s846_s26  ;;  %p854_p2 = scmp.lt.s32.totalorder %s208_s7, %s208_s7 }
  0x2a   : > { %p855_p6 = scmp.lt.s32.totalorder %s853_s30, %s846_s26 }
  0x2b   : > { %p849_p9 = pnand %p847_p7, %p1197_p12 }
  0x2c   : > { %p856_p4 = por %p855_p6, %p854_p2 }
  0x2d   : > { %p850_p1 = pneg %p849_p9 }
  0x2f   : > { %p857_p8 = pnand %p856_p4, %p850_p1 }
  0x31   : > { %860 = shalt.err (!%p857_p8)
}
  0x32   : > { %758 = dma.hbm_to_vmem [thread:$0]  (!%p1181_p10), %s1563_s1, 16, %s208_s7, [#allocation6]  }
  0x33   : > { %s861_s15 = scalar_lea.hbm %s1549_s3, 16 }
  0x34   : > { %p862_p11 = scmp.ne.s32.totalorder %s1549_s3, %s861_s15  ;;  %p868_p1 = scmp.lt.u32.totalorder %s861_s15, %s1549_s3 }
  0x36   : > { %p864_p13 = pnand %p862_p11, %p1197_p12 }
  0x38   : > { %p865_p2 = pneg %p864_p13 }
  0x3a   : > { %p870_p4 = pnand %p868_p1, %p865_p2 }
  0x3c   : > { %873 = shalt.err (!%p870_p4)
}
  0x3d   : > { %s874_s7 = scalar_lea.vmem %s1185_s9, 16  ;;  %s881_s26 = scalar_lea.vmem %s1185_s9, 32 }
  0x3e   : > { %p875_p6 = scmp.ne.s32.totalorder %s1185_s9, %s874_s7  ;;  %p882_p3 = scmp.lt.s32.totalorder %s1185_s9, %s1185_s9 }
  0x3f   : > { %p883_p5 = scmp.lt.s32.totalorder %s881_s26, %s874_s7 }
  0x40   : > { %p877_p8 = pnand %p875_p6, %p1197_p12 }
  0x41   : > { %p884_p7 = por %p883_p5, %p882_p3 }
  0x42   : > { %p878_p0 = pneg %p877_p8 }
  0x44   : > { %p885_p9 = pnand %p884_p7, %p878_p0 }
  0x46   : > { %888 = shalt.err (!%p885_p9)
}
  0x47   : > { %764 = dma.hbm_to_vmem [thread:$0]  (!%p1181_p10), %s1549_s3, 16, %s1185_s9, [#allocation9]  }
  0x48   : > { %s1565_s2 = sld [smem:[#allocation21_spill]] }
  0x4e   : > { %s889_s14 = scalar_lea.hbm %s1565_s2, 16 }
  0x4f   : > { %p890_p11 = scmp.ne.s32.totalorder %s1565_s2, %s889_s14  ;;  %p896_p1 = scmp.lt.u32.totalorder %s889_s14, %s1565_s2 }
  0x51   : > { %p892_p13 = pnand %p890_p11, %p1197_p12 }
  0x53   : > { %p893_p2 = pneg %p892_p13 }
  0x55   : > { %p898_p4 = pnand %p896_p1, %p893_p2 }
  0x57   : > { %901 = shalt.err (!%p898_p4)
}
  0x58   : > { %s902_s9 = scalar_lea.vmem %s1187_s12, 16  ;;  %s909_s20 = scalar_lea.vmem %s1187_s12, 32 }
  0x59   : > { %p903_p6 = scmp.ne.s32.totalorder %s1187_s12, %s902_s9  ;;  %p910_p3 = scmp.lt.s32.totalorder %s1187_s12, %s1187_s12 }
  0x5a   : > { %p911_p5 = scmp.lt.s32.totalorder %s909_s20, %s902_s9 }
  0x5b   : > { %p905_p8 = pnand %p903_p6, %p1197_p12 }
  0x5c   : > { %p912_p7 = por %p911_p5, %p910_p3 }
  0x5d   : > { %p906_p0 = pneg %p905_p8 }
  0x5f   : > { %p913_p9 = pnand %p912_p7, %p906_p0 }
  0x61   : > { %916 = shalt.err (!%p913_p9)
}
  0x62   : > { %761 = dma.hbm_to_vmem [thread:$0]  (!%p1181_p10), %s1565_s2, 16, %s1187_s12, [#allocation6]  }
  0x63   : > { %s1088_s30 = smov [#allocation10]   ;;  %s917_s14 = scalar_lea.hbm %s1550_s4, 16 }
  0x64   : > { %s240_s8 = sshll.u32 %s1088_s30, 4  ;;  %p918_p11 = scmp.ne.s32.totalorder %s1550_s4, %s917_s14  ;;  %s241_s8 = int_to_ptr.vmem [resolvable:$true] %s240_s8 }
  0x65   : > { %p924_p1 = scmp.lt.u32.totalorder %s917_s14, %s1550_s4 }
  0x66   : > { %p920_p13 = pnand %p918_p11, %p1197_p12 }
  0x68   : > { %p921_p2 = pneg %p920_p13 }
  0x6a   : > { %p926_p4 = pnand %p924_p1, %p921_p2 }
  0x6c   : > { %929 = shalt.err (!%p926_p4)
}
  0x6d   : > { %s930_s12 = scalar_lea.vmem %s241_s8, 16  ;;  %s937_s9 = scalar_lea.vmem %s241_s8, 32 }
  0x6e   : > { %p931_p6 = scmp.ne.s32.totalorder %s241_s8, %s930_s12  ;;  %p938_p3 = scmp.lt.s32.totalorder %s241_s8, %s241_s8 }
  0x6f   : > { %p939_p5 = scmp.lt.s32.totalorder %s937_s9, %s930_s12 }
  0x70   : > { %p933_p8 = pnand %p931_p6, %p1197_p12 }
  0x71   : > { %p940_p7 = por %p939_p5, %p938_p3 }
  0x72   : > { %p934_p0 = pneg %p933_p8 }
  0x74   : > { %p941_p9 = pnand %p940_p7, %p934_p0 }
  0x76   : > { %944 = shalt.err (!%p941_p9)
}
  0x77   : > { %767 = dma.hbm_to_vmem [thread:$0]  (!%p1181_p10), %s1550_s4, 16, %s241_s8, [#allocation9]  }
  0x78   : > { %s1280_s18 = sadd.s32 1, %s1083_s24   ;;  %s34_s26 = sadd.s32 1, %s1079_s23 }
  0x79   : > { %s31_s10 = ssub.s32 %s1083_s24, %s1280_s18  ;;  %p41_p12 = scmp.ne.s32.totalorder %s1079_s23, %s1075_s22 }
  0x7a   : > { %p32_p11 = scmp.eq.s32.totalorder %s31_s10, 0  ;;  %p42_p13 = scmp.eq.s32.totalorder %s1083_s24, 0 }
  0x7b   : > { %p1566_p2 = scmp.eq.s32.totalorder %s1154_s25, 3  ;;  %p783_p4 = scmp.lt.s32.totalorder %s1083_s24, 4 }
  0x7c   : > { %s1296_s11 = scalar_select %p32_p11, %s1079_s23, %s34_s26  }
  0x7d   : > { %p1290_p1 = por %p1566_p2, %p41_p12  ;;  %p43_p6 = por %p42_p13, %p41_p12 }
  0x7e   : > { %s1299_s13 = sand.u32 1, %s1079_s23   ;;  %s691_s14 = sshll.u32 %s1083_s24, 10 }
  0x7f   : > { %s672_s8 = sshll.u32 %s1299_s13, 6  ;;  %s1568_s0 = sld [smem:[#allocation19_spill]] }
  0x80   : > { %s255_s19 = scalar_lea.vmem [#allocation2], %s672_s8  ;;  %p1310_p10 = pnand %p783_p4, %p43_p6 }
  0x81   : > { %s262_s12 = sshll.u32 %s255_s19, 4  ;;  %s252_s20 = scalar_lea.sflag [#allocation3], %s1299_s13  ;;  %s1308_s12 = int_to_ptr.vmem [resolvable:$true] %s262_s12 }
  0x82   : > { %p947_p0 = pneg %p1310_p10 }
  0x85   : > { %s1306_s17 = scalar_lea.hbm %s1568_s0, %s691_s14  ;;  %s950_s8 = scalar_lea.hbm %s1568_s0, 4096 }
  0x86   : > { %s945_s7 = scalar_lea.hbm %s1306_s17, 1024  ;;  %p951_p7 = scmp.lt.u32.totalorder %s1306_s17, %s1568_s0 }
  0x87   : > { %p946_p8 = scmp.ne.s32.totalorder %s1306_s17, %s945_s7  ;;  %p952_p9 = scmp.lt.u32.totalorder %s950_s8, %s945_s7 }
  0x88   : > { %p954_p11 = scmp.lt.u32.totalorder %s945_s7, %s1306_s17 }
  0x89   : > { %p948_p3 = pnand %p947_p0, %p946_p8  ;;  %p953_p12 = por %p952_p9, %p951_p7 }
  0x8b   : > { %p949_p5 = pneg %p948_p3  ;;  %p955_p13 = por %p954_p11, %p953_p12 }
  0x8d   : > { %p956_p2 = pnand %p955_p13, %p949_p5 }
  0x8f   : > { %959 = shalt.err (!%p956_p2)
}
  0x90   : > { %s960_s16 = scalar_lea.vmem %s1308_s12, 1024  ;;  %s1089_s19 = smov [#allocation2]  }
  0x91   : > { %p961_p4 = scmp.ne.s32.totalorder %s1308_s12, %s960_s16  ;;  %s965_s26 = sshll.u32 %s1089_s19, 4  ;;  %s966_s26 = int_to_ptr.vmem [resolvable:$false] %s965_s26 }
  0x92   : > { %s967_s10 = scalar_lea.vmem %s966_s26, 2048  ;;  %p968_p3 = scmp.lt.s32.totalorder %s1308_s12, %s966_s26 }
  0x93   : > { %p963_p6 = pnand %p961_p4, %p947_p0  ;;  %p969_p7 = scmp.lt.s32.totalorder %s967_s10, %s960_s16 }
  0x95   : > { %p964_p8 = pneg %p963_p6  ;;  %p970_p9 = por %p969_p7, %p968_p3 }
  0x97   : > { %p971_p12 = pnand %p970_p9, %p964_p8 }
  0x99   : > { %974 = shalt.err (!%p971_p12)
}
  0x9a   : > { %s1090_s7 = smov 64   ;;  %s1091_s8 = smov 4  }
  0x9b   : > { %771 = dma.hbm_to_vmem [thread:$0]  (!%p1310_p10), %s1306_s17, 1024, %s1308_s12, %s252_s20, %s1090_s7, %s1090_s7, %s1091_s8  }
  0x9c   : > { %s675_s14 = sshll.u32 %s1299_s13, 7  ;;  %s692_s15 = sshll.u32 %s1083_s24, 11 }
  0x9d   : > { %s1347_s26 = scalar_lea.hbm %s1551_s5, %s692_s15  ;;  %s276_s10 = scalar_lea.vmem [#allocation11], %s675_s14 }
  0x9e   : > { %s283_s0 = sshll.u32 %s276_s10, 4  ;;  %s273_s1 = scalar_lea.sflag [#allocation12], %s1299_s13  ;;  %s1349_s0 = int_to_ptr.vmem [resolvable:$true] %s283_s0 }
  0x9f   : > { %s975_s2 = scalar_lea.hbm %s1347_s26, 2048  ;;  %s980_s20 = scalar_lea.hbm %s1551_s5, 8192 }
  0xa0   : > { %p976_p5 = scmp.ne.s32.totalorder %s1347_s26, %s975_s2  ;;  %p981_p2 = scmp.lt.u32.totalorder %s1347_s26, %s1551_s5 }
  0xa1   : > { %p982_p4 = scmp.lt.u32.totalorder %s980_s20, %s975_s2  ;;  %p984_p8 = scmp.lt.u32.totalorder %s975_s2, %s1347_s26 }
  0xa2   : > { %p978_p11 = pnand %p976_p5, %p947_p0 }
  0xa3   : > { %p983_p6 = por %p982_p4, %p981_p2 }
  0xa4   : > { %p979_p13 = pneg %p978_p11 }
  0xa5   : > { %p985_p3 = por %p984_p8, %p983_p6 }
  0xa7   : > { %p986_p7 = pnand %p985_p3, %p979_p13 }
  0xa9   : > { %989 = shalt.err (!%p986_p7)
}
  0xaa   : > { %s990_s14 = scalar_lea.vmem %s1349_s0, 2048  ;;  %s1092_s15 = smov [#allocation11]  }
  0xab   : > { %p991_p9 = scmp.ne.s32.totalorder %s1349_s0, %s990_s14  ;;  %s995_s19 = sshll.u32 %s1092_s15, 4  ;;  %s996_s19 = int_to_ptr.vmem [resolvable:$false] %s995_s19 }
  0xac   : > { %s997_s16 = scalar_lea.vmem %s996_s19, 4096  ;;  %p998_p11 = scmp.lt.s32.totalorder %s1349_s0, %s996_s19 }
  0xad   : > { %p993_p12 = pnand %p991_p9, %p947_p0  ;;  %p999_p2 = scmp.lt.s32.totalorder %s997_s16, %s990_s14 }
  0xaf   : > { %p994_p5 = pneg %p993_p12  ;;  %p1000_p4 = por %p999_p2, %p998_p11 }
  0xb1   : > { %p1001_p6 = pnand %p1000_p4, %p994_p5 }
  0xb3   : > { %1004 = shalt.err (!%p1001_p6)
}
  0xb4   : > { %s1093_s2 = smov 128   ;;  %s1094_s10 = smov 8  }
  0xb5   : > { %774 = dma.hbm_to_vmem [thread:$0]  (!%p1310_p10), %s1347_s26, 2048, %s1349_s0, %s273_s1, %s1093_s2, %s1093_s2, %s1094_s10  }
  0xb6   : > { %p1570_p0 = scmp.ne.s32.totalorder %s1561_s29, 0 }
  0xb7   : > { %s1380_s17 = sand.u32 (!%p1570_p0), 1, %s1075_s22   ;;  %p1571_p13 = scmp.ne.s32.totalorder (!%p1570_p0), %s1559_s27, 0 }
  0xb8   : > { %295 = sbr.rel (%p1570_p0) target bundleno = 263 (0x107), region = 44  ;;  %s679_s12 = sshll.u32 (!%p1570_p0), %s1380_s17, 6 }
  0xb9   : > { %s298_s20 = scalar_lea.sflag (!%p1570_p0), [#allocation3], %s1380_s17  ;;  %s1384_s7 = scalar_lea.vmem (!%p1570_p0), [#allocation2], %s679_s12 }
  0xbf   : > { %1050 = dma.done.wait (%p1571_p13), %s298_s20, 1024  }
  0xc0   : > { %1052 = vsyncadd (%p1571_p13), %s298_s20, 4294966272  ;;  %p1572_p10 = scmp.eq.s32.totalorder %s1154_s25, 0 }
  0xc2   : > { %1054 = dma.done.wait (%p1572_p10), [#allocation6], 32   ;;  %p1573_p8 = pmov %p1572_p10 }
  0xc4   : > { %1056 = vsyncadd (%p1573_p8), [#allocation6], 4294967264  ;;  %p1574_p3 = pmov %p1573_p8 }
  0xc6   : > { %1058 = dma.done.wait (%p1574_p3), [#allocation9], 32   ;;  %p1575_p7 = pmov %p1574_p3 }
  0xc7   : > { %s684_s0 = sshll.u32 %s1380_s17, 7  ;;  %s323_s1 = scalar_lea.sflag [#allocation12], %s1380_s17 }
  0xc8   : > { %1060 = vsyncadd (%p1575_p7), [#allocation9], 4294967264  ;;  %s1402_s29 = scalar_lea.vmem [#allocation11], %s684_s0 }
  0xc9   : > { %1062 = dma.done.wait (%p1571_p13), %s323_s1, 2048  }
  0xca   : > { %1064 = vsyncadd (%p1571_p13), %s323_s1, 4294965248  ;;  %v363_v0 = vld [vmem:[#allocation5] sm:$0x1]  ;;  %v365_v1 = vld [vmem:[#allocation7] sm:$0x1]  ;;  %v410_v8 = vlaneseq  ;;  %s1460_s27 = scalar_lea.vmem [#allocation13], %s684_s0 }
  0xcb   : > { %v364_v2 = vmul.f32 0.001953125, %v363_v0  ;;  %v366_v3 = vmul.f32 0.001953125, %v365_v1  ;;  %v695_v10 = vld [vmem:[%s1384_s7] sm:$0xff]   ;;  %v726_v11 = vld [vmem:[%s1384_s7 + $0x8] sm:$0xff]   ;;  %v727_v13 = vld [vmem:[%s1384_s7 + $0x10] sm:$0xff]   ;;  %s693_s13 = sshll.u32 %s1154_s25, 11 }
  0xcc   : > { %v411_v9 = vshrl.u32 %v410_v8, 7  ;;  %v372_v12 = vld [vmem:[#allocation8] sm:$0x1]  ;;  %v728_v15 = vld [vmem:[%s1384_s7 + $0x18] sm:$0xff]   ;;  %v696_v18 = vunpack.c.l.bf16 %v695_v10  ;;  %v697_v19 = vunpack.c.h.bf16 %v695_v10  ;;  %v700_v20 = vunpack.c.l.bf16 %v726_v11  ;;  %v730_v21 = vld [vmem:[%s1384_s7 + $0x28] sm:$0xff]   ;;  %s531_s9 = sshll.u32 %s1460_s27, 4  ;;  %s1497_s8 = scalar_lea.hbm %s1552_s6, %s693_s13  ;;  %s1499_s9 = int_to_ptr.vmem [resolvable:$true] %s531_s9 }
  0xcd   : > { %v367_v4 = vmul.f32 %v364_v2, %v364_v2  ;;  %v729_v16 = vld [vmem:[%s1384_s7 + $0x20] sm:$0xff]   ;;  %v701_v23 = vunpack.c.h.bf16 %v726_v11  ;;  %v704_v24 = vunpack.c.l.bf16 %v727_v13  ;;  %v705_v25 = vunpack.c.h.bf16 %v727_v13  ;;  %v731_v26 = vld [vmem:[%s1384_s7 + $0x30] sm:$0xff]   ;;  %v1416_v27 = vld [vmem:[%s1384_s7 + $0x38] sm:$0xff]   ;;  %s518_s14 = scalar_lea.sflag [#allocation4], %s1380_s17  ;;  %s1005_s15 = scalar_lea.vmem %s1499_s9, 2048 }
  0xce   : > { %v412_v14 = vsub.s32 0, %v411_v9  ;;  %v374_v28 = vld [vmem:[#allocation10] sm:$0x1]  ;;  %v708_v29 = vunpack.c.l.bf16 %v728_v15  ;;  %v709_v30 = vunpack.c.h.bf16 %v728_v15  ;;  %v712_v31 = vunpack.c.l.bf16 %v729_v16  ;;  %v453_v50 = vld [vmem:[%s1402_s29] sm:$0xff]  ;;  %v454_v51 = vld [vmem:[%s1402_s29 + $0x8] sm:$0xff]  ;;  %p1006_p9 = scmp.ne.s32.totalorder %s1499_s9, %s1005_s15  ;;  %s1095_s19 = smov [#allocation13]  }
  0xcf   : > { %v368_v5 = vsub.f32 %v366_v3, %v367_v4  ;;  %v713_v32 = vunpack.c.h.bf16 %v729_v16  ;;  %v716_v35 = vunpack.c.l.bf16 %v730_v21  ;;  %v717_v36 = vunpack.c.h.bf16 %v730_v21  ;;  %v455_v55 = vld [vmem:[%s1402_s29 + $0x10] sm:$0xff]  ;;  %v456_v56 = vld [vmem:[%s1402_s29 + $0x18] sm:$0xff]  ;;  %v457_v57 = vld [vmem:[%s1402_s29 + $0x20] sm:$0xff]  ;;  %s1009_s16 = sshll.u32 %s1095_s19, 4  ;;  %s1010_s16 = int_to_ptr.vmem [resolvable:$false] %s1009_s16 }
  0xd0   : > { %v720_v37 = vunpack.c.l.bf16 %v731_v26  ;;  %v721_v38 = vunpack.c.h.bf16 %v731_v26  ;;  %v724_v39 = vunpack.c.l.bf16 %v1416_v27  ;;  %v725_v40 = vunpack.c.h.bf16 %v1416_v27  ;;  %v459_v3 = vld [vmem:[%s1402_s29 + $0x30] sm:$0xff]  ;;  %v460_v4 = vld [vmem:[%s1402_s29 + $0x38] sm:$0xff]  ;;  %v461_v21 = vld [vmem:[%s1402_s29 + $0x40] sm:$0xff]  ;;  %p1007_p12 = pnand %p1006_p9, %p1290_p1  ;;  %s1011_s2 = scalar_lea.vmem %s1010_s16, 4096 }
  0xd1   : > { %v369_v6 = vmax.f32 %v368_v5, 0.0  ;;  %p1012_p11 = scmp.lt.s32.totalorder %s1499_s9, %s1010_s16  ;;  %p1013_p2 = scmp.lt.s32.totalorder %s1011_s2, %s1005_s15 }
  0xd2   : > { %p1008_p5 = pneg %p1007_p12 }
  0xd3   : > { %v370_v7 = vadd.f32 1e-05, %v369_v6  ;;  %p1014_p4 = por %p1013_p2, %p1012_p11 }
  0xd5   : > { %831 = vrsqrt.f32 %v370_v7  ;;  %p1015_p6 = pnand %p1014_p4, %p1008_p5 }
  0xdf   : > { %v832_v17 = vpop.eup %831 }
  0xe0   : > { %v373_v22 = vmul.f32 %v832_v17, %v372_v12 }
  0xe2   : > { %v375_v33 = vmul.f32 %v373_v22, %v364_v2  ;;  %v1418_v34 = vrot.slane %v373_v22, %v412_v14  ;;  %v458_v2 = vld [vmem:[%s1402_s29 + $0x28] sm:$0xff] }
  0xe3   : > { %v462_v22 = vld [vmem:[%s1402_s29 + $0x48] sm:$0xff] }
  0xe4   : > { %v376_v41 = vsub.f32 %v374_v28, %v375_v33  ;;  %v415_v42 = vmul.f32 %v696_v18, %v1418_v34  ;;  %v416_v43 = vmul.f32 %v697_v19, %v1418_v34  ;;  %v417_v44 = vmul.f32 %v700_v20, %v1418_v34  ;;  %v463_v28 = vld [vmem:[%s1402_s29 + $0x50] sm:$0xff] }
  0xe5   : > { %v418_v45 = vmul.f32 %v701_v23, %v1418_v34  ;;  %v419_v46 = vmul.f32 %v704_v24, %v1418_v34  ;;  %v420_v47 = vmul.f32 %v705_v25, %v1418_v34  ;;  %v421_v48 = vmul.f32 %v708_v29, %v1418_v34  ;;  %v464_v29 = vld [vmem:[%s1402_s29 + $0x58] sm:$0xff] }
  0xe6   : > { %v1429_v49 = vrot.slane %v376_v41, %v412_v14  ;;  %v422_v52 = vmul.f32 %v709_v30, %v1418_v34  ;;  %v423_v53 = vmul.f32 %v712_v31, %v1418_v34  ;;  %v424_v54 = vmul.f32 %v713_v32, %v1418_v34 }
  0xe7   : > { %v425_v58 = vmul.f32 %v716_v35, %v1418_v34  ;;  %v426_v59 = vmul.f32 %v717_v36, %v1418_v34  ;;  %v427_v60 = vmul.f32 %v720_v37, %v1418_v34  ;;  %v428_v61 = vmul.f32 %v721_v38, %v1418_v34  ;;  %v465_v35 = vld [vmem:[%s1402_s29 + $0x60] sm:$0xff]  ;;  %v466_v36 = vld [vmem:[%s1402_s29 + $0x68] sm:$0xff] }
  0xe8   : > { %v437_v62 = vadd.f32 %v1429_v49, %v415_v42  ;;  %v438_v63 = vadd.f32 %v1429_v49, %v416_v43  ;;  %v439_v0 = vadd.f32 %v1429_v49, %v417_v44  ;;  %v440_v1 = vadd.f32 %v1429_v49, %v418_v45 }
  0xe9   : > { %v441_v5 = vadd.f32 %v1429_v49, %v419_v46  ;;  %v442_v6 = vadd.f32 %v1429_v49, %v420_v47  ;;  %v443_v7 = vadd.f32 %v1429_v49, %v421_v48  ;;  %v444_v8 = vadd.f32 %v1429_v49, %v422_v52  ;;  %v467_v47 = vld [vmem:[%s1402_s29 + $0x70] sm:$0xff]  ;;  %v468_v48 = vld [vmem:[%s1402_s29 + $0x78] sm:$0xff] }
  0xea   : > { %v469_v9 = vadd.f32 %v453_v50, %v437_v62  ;;  %v470_v10 = vadd.f32 %v454_v51, %v438_v63  ;;  %v471_v11 = vadd.f32 %v455_v55, %v439_v0  ;;  %v472_v12 = vadd.f32 %v456_v56, %v440_v1 }
  0xeb   : > { %v473_v13 = vadd.f32 %v457_v57, %v441_v5  ;;  %v474_v14 = vadd.f32 %v458_v2, %v442_v6  ;;  %v475_v15 = vadd.f32 %v459_v3, %v443_v7  ;;  %v476_v16 = vadd.f32 %v460_v4, %v444_v8 }
  0xec   : > { %v485_v17 = vmax.f32 %v469_v9, 0.0  ;;  %v486_v18 = vmax.f32 %v470_v10, 0.0  ;;  %v487_v19 = vmax.f32 %v471_v11, 0.0  ;;  %v488_v20 = vmax.f32 %v472_v12, 0.0 }
  0xed   : > { %v489_v23 = vmax.f32 %v473_v13, 0.0  ;;  %v490_v24 = vmax.f32 %v474_v14, 0.0  ;;  %v491_v25 = vmax.f32 %v475_v15, 0.0  ;;  %v492_v26 = vmax.f32 %v476_v16, 0.0 }
  0xee   : > { %501 = vst [vmem:[%s1460_s27] sm:$0xff] %v485_v17  ;;  %502 = vst [vmem:[%s1460_s27 + $0x8] sm:$0xff] %v486_v18  ;;  %v445_v30 = vadd.f32 %v1429_v49, %v423_v53  ;;  %v446_v31 = vadd.f32 %v1429_v49, %v424_v54  ;;  %v447_v32 = vadd.f32 %v1429_v49, %v425_v58 }
  0xef   : > { %503 = vst [vmem:[%s1460_s27 + $0x10] sm:$0xff] %v487_v19  ;;  %504 = vst [vmem:[%s1460_s27 + $0x18] sm:$0xff] %v488_v20  ;;  %v448_v33 = vadd.f32 %v1429_v49, %v426_v59  ;;  %v449_v37 = vadd.f32 %v1429_v49, %v427_v60  ;;  %v450_v38 = vadd.f32 %v1429_v49, %v428_v61 }
  0xf0   : > { %505 = vst [vmem:[%s1460_s27 + $0x20] sm:$0xff] %v489_v23  ;;  %506 = vst [vmem:[%s1460_s27 + $0x28] sm:$0xff] %v490_v24  ;;  %v429_v41 = vmul.f32 %v724_v39, %v1418_v34  ;;  %v430_v42 = vmul.f32 %v725_v40, %v1418_v34  ;;  %v477_v43 = vadd.f32 %v461_v21, %v445_v30 }
  0xf1   : > { %507 = vst [vmem:[%s1460_s27 + $0x30] sm:$0xff] %v491_v25  ;;  %508 = vst [vmem:[%s1460_s27 + $0x38] sm:$0xff] %v492_v26  ;;  %v478_v44 = vadd.f32 %v462_v22, %v446_v31  ;;  %v479_v45 = vadd.f32 %v463_v28, %v447_v32  ;;  %v480_v46 = vadd.f32 %v464_v29, %v448_v33 }
  0xf2   : > { %v481_v50 = vadd.f32 %v465_v35, %v449_v37  ;;  %v482_v51 = vadd.f32 %v466_v36, %v450_v38  ;;  %v451_v52 = vadd.f32 %v1429_v49, %v429_v41  ;;  %v452_v39 = vadd.f32 %v1429_v49, %v430_v42 }
  0xf3   : > { %v493_v27 = vmax.f32 %v477_v43, 0.0  ;;  %v494_v34 = vmax.f32 %v478_v44, 0.0  ;;  %v495_v40 = vmax.f32 %v479_v45, 0.0  ;;  %v496_v53 = vmax.f32 %v480_v46, 0.0 }
  0xf4   : > { %v497_v54 = vmax.f32 %v481_v50, 0.0  ;;  %v498_v55 = vmax.f32 %v482_v51, 0.0  ;;  %v483_v56 = vadd.f32 %v467_v47, %v451_v52  ;;  %v484_v57 = vadd.f32 %v468_v48, %v452_v39 }
  0xf5   : > { %509 = vst [vmem:[%s1460_s27 + $0x40] sm:$0xff] %v493_v27  ;;  %510 = vst [vmem:[%s1460_s27 + $0x48] sm:$0xff] %v494_v34 }
  0xf6   : > { %511 = vst [vmem:[%s1460_s27 + $0x50] sm:$0xff] %v495_v40  ;;  %512 = vst [vmem:[%s1460_s27 + $0x58] sm:$0xff] %v496_v53  ;;  %v499_v49 = vmax.f32 %v483_v56, 0.0  ;;  %v500_v58 = vmax.f32 %v484_v57, 0.0 }
  0xf7   : > { %513 = vst [vmem:[%s1460_s27 + $0x60] sm:$0xff] %v497_v54  ;;  %514 = vst [vmem:[%s1460_s27 + $0x68] sm:$0xff] %v498_v55 }
  0xf8   : > { %515 = vst [vmem:[%s1460_s27 + $0x70] sm:$0xff] %v499_v49  ;;  %516 = vst [vmem:[%s1460_s27 + $0x78] sm:$0xff] %v500_v58 }
  0xf9   : > { %1018 = shalt.err (!%p1015_p6)
}
  0xfa   : > { %s1019_s10 = scalar_lea.hbm %s1497_s8, 2048  ;;  %s1023_s7 = scalar_lea.hbm %s1552_s6, 8192 }
  0xfb   : > { %p1020_p0 = scmp.ne.s32.totalorder %s1497_s8, %s1019_s10  ;;  %p1024_p8 = scmp.lt.u32.totalorder %s1497_s8, %s1552_s6 }
  0xfc   : > { %p1025_p3 = scmp.lt.u32.totalorder %s1023_s7, %s1019_s10  ;;  %p1027_p9 = scmp.lt.u32.totalorder %s1019_s10, %s1497_s8 }
  0xfd   : > { %p1021_p13 = pnand %p1020_p0, %p1290_p1 }
  0xfe   : > { %p1026_p7 = por %p1025_p3, %p1024_p8 }
  0xff   : > { %p1022_p10 = pneg %p1021_p13 }
 0x100   : > { %p1028_p12 = por %p1027_p9, %p1026_p7 }
 0x102   : > { %p1029_p5 = pnand %p1028_p12, %p1022_p10 }
 0x104   : > { %1032 = shalt.err (!%p1029_p5)
}
 0x105   : > { %s1096_s29 = smov 128   ;;  %s1097_s27 = smov 8  }
 0x106   : > { %753 = dma.vmem_to_hbm [thread:$0]  (%p1290_p1), %s1499_s9, 2048, %s1497_s8, %s518_s14, %s1096_s29, %s1096_s29, %s1097_s27  }
 0x107 PF: > { %p788_p11 = scmp.ge.s32.totalorder %s1083_s24, 2  ;;  %s546_s13 = sand.u32 1, %s1071_s21  }
 0x108   : > { %p1576_p2 = scmp.ne.s32.totalorder %s1560_s28, 0  ;;  %s547_s25 = scalar_lea.sflag [#allocation4], %s546_s13 }
 0x10a   : > { %p776_p4 = pnand %p788_p11, %p1576_p2 }
 0x10c   : > { %1066 = dma.done.wait (!%p776_p4), %s547_s25, 2048  }
 0x10d   : > { %1068 = vsyncadd (!%p776_p4), %s547_s25, 4294965248  ;;  %p24_p6 = scmp.ge.s32.totalorder %s1280_s18, 6   ;;  %s1577_s21 = smov %s1075_s22 }
 0x10e   : > { %s1578_s22 = smov %s1079_s23  ;;  %s1579_s23 = smov %s1296_s11 }
 0x10f   : > { %s1580_s24 = smov %s1280_s18  ;;  %26 = sbr.rel (!%p24_p6) target bundleno = 13 (0xd), region = 118 }
 0x116   :  { %552 = vsyncpa [#allocation3], 1 }
 0x117   :  { %554 = vsyncpa [#allocation3 + $0x1], 1 }
 0x118   :  { %555 = vsyncpa [#allocation6], 1 }
 0x119   :  { %556 = vsyncpa [#allocation9], 1 }
 0x11a   :  { %557 = vsyncpa [#allocation12], 1 }
 0x11b   :  { %559 = vsyncpa [#allocation12 + $0x1], 1 }
 0x11c   :  { %560 = vsyncpa [#allocation4], 1 }
 0x11d   :  { %562 = vsyncpa [#allocation4 + $0x1], 1 }

// kernel: bottleneck_forward.6
= control target key start
LH: loop header
LB: loop body
LE: loop exit
PB: predicated region body
PF: predicated region fallthrough
CT: control target
= control target key end

     0   :  { %s2195_s0 = inlined_call_operand.hbm [shape: bf16[512,128], index: 0, kind: input, shape index: {}]   ;;  %s2196_s1 = inlined_call_operand.hbm [shape: f32[1,128], index: 1, kind: input, shape index: {}]   ;;  %s2197_s2 = inlined_call_operand.hbm [shape: f32[1,128], index: 2, kind: input, shape index: {}]   ;;  %s2198_s3 = inlined_call_operand.hbm [shape: f32[1,128], index: 3, kind: input, shape index: {}]   ;;  %s2199_s4 = inlined_call_operand.hbm [shape: f32[1,128], index: 4, kind: input, shape index: {}]   ;;  %s2200_s5 = inlined_call_operand.hbm [shape: bf16[128,128], index: 5, kind: input, shape index: {}]   ;;  %s2201_s6 = inlined_call_operand.hbm [shape: bf16[512,128], index: 6, kind: output, shape index: {0}]   ;;  %s2202_s7 = inlined_call_operand.hbm [shape: f32[4,1,128], index: 7, kind: output, shape index: {1}]   ;;  %s2203_s8 = inlined_call_operand.hbm [shape: f32[4,1,128], index: 8, kind: output, shape index: {2}]  }
   0x1   :  { %2211 = sst [smem:[#allocation23_spill]] %s2195_s0 }
   0x2   :  { %14 = vsyncpa [#allocation3], 0 }
   0x3   :  { %16 = vsyncpa [#allocation3 + $0x1], 0 }
   0x4   :  { %17 = vsyncpa [#allocation6], 0 }
   0x5   :  { %18 = vsyncpa [#allocation9], 0 }
   0x6   :  { %19 = vsyncpa [#allocation12], 0 }
   0x7   :  { %20 = vsyncpa [#allocation4], 0 }
   0x8   :  { %22 = vsyncpa [#allocation4 + $0x1], 0 }
   0x9   :  { %23 = vsyncpa [#allocation15], 0 }
   0xa   :  { %25 = vsyncpa [#allocation15 + $0x1], 0  ;;  %s1768_s27 = smov 0   ;;  %s1770_s28 = smov 0  }
   0xb   :  { %s1772_s29 = smov 0   ;;  %s1774_s30 = smov 0  }
   0xc LB: > { %s1710_s9 = smov [#allocation5]   ;;  %s1789_s11 = sadd.s32 4294967295, %s1708_s30   ;;  %s1708_s30 = sphi %s1774_s30, %s2237_s30   ;;  %s1704_s29 = sphi %s1772_s29, %s2236_s29   ;;  %s1700_s28 = sphi %s1770_s28, %s2235_s28   ;;  %s1696_s27 = sphi %s1768_s27, %s2234_s27  }
   0xd   : > { %s258_s10 = sshll.u32 %s1710_s9, 4  ;;  %p1062_p0 = scmp.ge.s32.totalorder %s1708_s30, 1  ;;  %s1794_s10 = int_to_ptr.vmem [resolvable:$true] %s258_s10 }
   0xe   : > { %p2204_p1 = scmp.eq.s32.totalorder %s1789_s11, 0  ;;  %p245_p2 = scmp.lt.s32.totalorder %s1708_s30, 5 }
   0xf   : > { %s1711_s13 = smov [#allocation8]   ;;  %s1712_s15 = smov [#allocation7]  }
  0x10   : > { %p1796_p3 = pnand %p1062_p0, %p245_p2  ;;  %s280_s14 = sshll.u32 %s1711_s13, 4  ;;  %s1802_s14 = int_to_ptr.vmem [resolvable:$true] %s280_s14 }
  0x11   : > { %s269_s16 = sshll.u32 %s1712_s15, 4  ;;  %s1713_s18 = smov [#allocation10]   ;;  %s1810_s16 = int_to_ptr.vmem [resolvable:$true] %s269_s16 }
  0x12   : > { %s2212_s12 = scalar_select %p1796_p3, 1, 0 }
  0x13   : > { %p1307_p4 = pneg %p1796_p3  ;;  %s1812_s19 = sshll.u32 %s1713_s18, 4  ;;  %s292_s19 = int_to_ptr.vmem [resolvable:$true] %s1812_s19 }
  0x14   : > { %s1400_s22 = scalar_lea.hbm %s2196_s1, 16 }
  0x15   : > { %p1806_p5 = pnand %p1307_p4, %p2204_p1  ;;  %p1401_p6 = scmp.ne.s32.totalorder %s2196_s1, %s1400_s22 }
  0x16   : > { %p1407_p10 = scmp.lt.u32.totalorder %s1400_s22, %s2196_s1 }
  0x17   : > { %p1822_p7 = pneg %p1806_p5 }
  0x19   : > { %p1403_p8 = pnand %p1822_p7, %p1401_p6 }
  0x1b   : > { %p1404_p9 = pneg %p1403_p8 }
  0x1d   : > { %p1409_p11 = pnand %p1407_p10, %p1404_p9 }
  0x1f   : > { %1412 = shalt.err (!%p1409_p11)
}
  0x20   : > { %s1413_s13 = scalar_lea.vmem %s1794_s10, 16  ;;  %s1420_s15 = scalar_lea.vmem %s1794_s10, 32 }
  0x21   : > { %p1414_p12 = scmp.ne.s32.totalorder %s1794_s10, %s1413_s13  ;;  %p1421_p2 = scmp.lt.s32.totalorder %s1794_s10, %s1794_s10 }
  0x22   : > { %p1422_p4 = scmp.lt.s32.totalorder %s1420_s15, %s1413_s13 }
  0x23   : > { %p1416_p13 = pnand %p1414_p12, %p1822_p7 }
  0x24   : > { %p1423_p6 = por %p1422_p4, %p1421_p2 }
  0x25   : > { %p1417_p0 = pneg %p1416_p13 }
  0x27   : > { %p1424_p8 = pnand %p1423_p6, %p1417_p0 }
  0x29   : > { %1427 = shalt.err (!%p1424_p8)
}
  0x2a   : > { %1310 = dma.hbm_to_vmem [thread:$0]  (!%p1806_p5), %s2196_s1, 16, %s1794_s10, [#allocation6]  }
  0x2b   : > { %s1428_s23 = scalar_lea.hbm %s2198_s3, 16 }
  0x2c   : > { %p1429_p9 = scmp.ne.s32.totalorder %s2198_s3, %s1428_s23  ;;  %p1435_p12 = scmp.lt.u32.totalorder %s1428_s23, %s2198_s3 }
  0x2e   : > { %p1431_p10 = pnand %p1429_p9, %p1822_p7 }
  0x30   : > { %p1432_p11 = pneg %p1431_p10 }
  0x32   : > { %p1437_p13 = pnand %p1435_p12, %p1432_p11 }
  0x34   : > { %1440 = shalt.err (!%p1437_p13)
}
  0x35   : > { %s1441_s10 = scalar_lea.vmem %s1802_s14, 16  ;;  %s1448_s15 = scalar_lea.vmem %s1802_s14, 32 }
  0x36   : > { %p1442_p0 = scmp.ne.s32.totalorder %s1802_s14, %s1441_s10  ;;  %p1449_p6 = scmp.lt.s32.totalorder %s1802_s14, %s1802_s14 }
  0x37   : > { %p1450_p8 = scmp.lt.s32.totalorder %s1448_s15, %s1441_s10 }
  0x38   : > { %p1444_p2 = pnand %p1442_p0, %p1822_p7 }
  0x39   : > { %p1451_p9 = por %p1450_p8, %p1449_p6 }
  0x3a   : > { %p1445_p4 = pneg %p1444_p2 }
  0x3c   : > { %p1452_p10 = pnand %p1451_p9, %p1445_p4 }
  0x3e   : > { %1455 = shalt.err (!%p1452_p10)
}
  0x3f   : > { %1316 = dma.hbm_to_vmem [thread:$0]  (!%p1806_p5), %s2198_s3, 16, %s1802_s14, [#allocation9]  }
  0x40   : > { %s1456_s23 = scalar_lea.hbm %s2197_s2, 16 }
  0x41   : > { %p1457_p11 = scmp.ne.s32.totalorder %s2197_s2, %s1456_s23  ;;  %p1463_p0 = scmp.lt.u32.totalorder %s1456_s23, %s2197_s2 }
  0x43   : > { %p1459_p12 = pnand %p1457_p11, %p1822_p7 }
  0x45   : > { %p1460_p13 = pneg %p1459_p12 }
  0x47   : > { %p1465_p2 = pnand %p1463_p0, %p1460_p13 }
  0x49   : > { %1468 = shalt.err (!%p1465_p2)
}
  0x4a   : > { %s1469_s14 = scalar_lea.vmem %s1810_s16, 16  ;;  %s1476_s10 = scalar_lea.vmem %s1810_s16, 32 }
  0x4b   : > { %p1470_p4 = scmp.ne.s32.totalorder %s1810_s16, %s1469_s14  ;;  %p1477_p9 = scmp.lt.s32.totalorder %s1810_s16, %s1810_s16 }
  0x4c   : > { %p1478_p10 = scmp.lt.s32.totalorder %s1476_s10, %s1469_s14 }
  0x4d   : > { %p1472_p6 = pnand %p1470_p4, %p1822_p7 }
  0x4e   : > { %p1479_p11 = por %p1478_p10, %p1477_p9 }
  0x4f   : > { %p1473_p8 = pneg %p1472_p6 }
  0x51   : > { %p1480_p12 = pnand %p1479_p11, %p1473_p8 }
  0x53   : > { %1483 = shalt.err (!%p1480_p12)
}
  0x54   : > { %1313 = dma.hbm_to_vmem [thread:$0]  (!%p1806_p5), %s2197_s2, 16, %s1810_s16, [#allocation6]  }
  0x55   : > { %s1714_s20 = smov [#allocation11]   ;;  %s1484_s24 = scalar_lea.hbm %s2199_s4, 16 }
  0x56   : > { %s301_s21 = sshll.u32 %s1714_s20, 4  ;;  %p1485_p13 = scmp.ne.s32.totalorder %s2199_s4, %s1484_s24  ;;  %s302_s21 = int_to_ptr.vmem [resolvable:$true] %s301_s21 }
  0x57   : > { %p1491_p4 = scmp.lt.u32.totalorder %s1484_s24, %s2199_s4 }
  0x58   : > { %p1487_p0 = pnand %p1485_p13, %p1822_p7 }
  0x5a   : > { %p1488_p2 = pneg %p1487_p0 }
  0x5c   : > { %p1493_p6 = pnand %p1491_p4, %p1488_p2 }
  0x5e   : > { %1496 = shalt.err (!%p1493_p6)
}
  0x5f   : > { %s1497_s16 = scalar_lea.vmem %s292_s19, 16  ;;  %s1504_s10 = scalar_lea.vmem %s292_s19, 32 }
  0x60   : > { %p1498_p8 = scmp.ne.s32.totalorder %s292_s19, %s1497_s16  ;;  %p1505_p11 = scmp.lt.s32.totalorder %s292_s19, %s292_s19 }
  0x61   : > { %p1506_p12 = scmp.lt.s32.totalorder %s1504_s10, %s1497_s16 }
  0x62   : > { %p1500_p9 = pnand %p1498_p8, %p1822_p7 }
  0x63   : > { %p1507_p1 = por %p1506_p12, %p1505_p11 }
  0x64   : > { %p1501_p10 = pneg %p1500_p9 }
  0x66   : > { %p1508_p3 = pnand %p1507_p1, %p1501_p10 }
  0x68   : > { %1511 = shalt.err (!%p1508_p3)
}
  0x69   : > { %1319 = dma.hbm_to_vmem [thread:$0]  (!%p1806_p5), %s2199_s4, 16, %s292_s19, [#allocation9]  }
  0x6a   : > { %s1512_s23 = scalar_lea.hbm %s2200_s5, 1024 }
  0x6b   : > { %p1513_p13 = scmp.ne.s32.totalorder %s2200_s5, %s1512_s23  ;;  %p1519_p3 = scmp.lt.u32.totalorder %s1512_s23, %s2200_s5 }
  0x6d   : > { %p1515_p0 = pnand %p1513_p13, %p1822_p7 }
  0x6f   : > { %p1516_p1 = pneg %p1515_p0 }
  0x71   : > { %p1521_p2 = pnand %p1519_p3, %p1516_p1 }
  0x73   : > { %1524 = shalt.err (!%p1521_p2)
}
  0x74   : > { %s1525_s14 = scalar_lea.vmem %s302_s21, 1024  ;;  %p1533_p9 = scmp.lt.s32.totalorder %s302_s21, %s302_s21 }
  0x75   : > { %p1526_p4 = scmp.ne.s32.totalorder %s302_s21, %s1525_s14  ;;  %p1534_p10 = scmp.lt.s32.totalorder %s1525_s14, %s1525_s14 }
  0x77   : > { %p1528_p6 = pnand %p1526_p4, %p1822_p7  ;;  %p1535_p11 = por %p1534_p10, %p1533_p9 }
  0x79   : > { %p1529_p8 = pneg %p1528_p6 }
  0x7b   : > { %p1536_p12 = pnand %p1535_p11, %p1529_p8 }
  0x7d   : > { %1539 = shalt.err (!%p1536_p12)
}
  0x7e   : > { %s2207_s19 = smov 64   ;;  %s2208_s25 = smov 4  }
  0x7f   : > { %1322 = dma.hbm_to_vmem [thread:$0]  (!%p1806_p5), %s2200_s5, 1024, %s302_s21, [#allocation12], %s2207_s19, %s2207_s19, %s2208_s25  }
  0x80   : > { %s2206_s15 = sadd.s32 4294967294, %s1708_s30   ;;  %s1934_s18 = sadd.s32 1, %s1708_s30  }
  0x81   : > { %s38_s20 = sadd.s32 1, %s1704_s29  ;;  %s35_s22 = ssub.s32 %s1708_s30, %s1934_s18 }
  0x82   : > { %p45_p7 = scmp.ne.s32.totalorder %s1704_s29, %s1700_s28  ;;  %p36_p13 = scmp.eq.s32.totalorder %s35_s22, 0 }
  0x83   : > { %p46_p0 = scmp.eq.s32.totalorder %s1708_s30, 0  ;;  %p51_p1 = scmp.ne.s32.totalorder %s1700_s28, %s1696_s27 }
  0x84   : > { %p180_p3 = scmp.eq.s32.totalorder %s1789_s11, 3  ;;  %p2215_p4 = scmp.eq.s32.totalorder %s1789_s11, 0 }
  0x85   : > { %s1946_s17 = scalar_select %p36_p13, %s1704_s29, %s38_s20  }
  0x86   : > { %p47_p2 = por %p46_p0, %p45_p7  ;;  %p1950_p6 = por %p2215_p4, %p51_p1 }
  0x87   : > { %p1954_p5 = por %p180_p3, %p45_p7  ;;  %p186_p8 = scmp.eq.s32.totalorder %s2206_s15, 3 }
  0x88   : > { %p1342_p9 = scmp.lt.s32.totalorder %s1708_s30, 4  ;;  %s315_s24 = sand.u32 1, %s1704_s29  }
  0x89   : > { %s2217_s21 = scalar_select %p1954_p5, 1, 0 }
  0x8a   : > { %p1962_p10 = por %p186_p8, %p51_p1  ;;  %s1069_s9 = sshll.u32 %s315_s24, 6 }
  0x8b   : > { %s1111_s13 = sshll.u32 %s1708_s30, 10  ;;  %s2219_s0 = sld [smem:[#allocation23_spill]] }
  0x8c   : > { %s2218_s26 = scalar_select %p1962_p10, 1, 0 }
  0x8d   : > { %s319_s20 = scalar_lea.vmem [#allocation2], %s1069_s9  ;;  %p1972_p11 = pnand %p1342_p9, %p47_p2 }
  0x8e   : > { %s326_s22 = sshll.u32 %s319_s20, 4  ;;  %s1978_s19 = scalar_lea.sflag [#allocation3], %s315_s24  ;;  %s1976_s22 = int_to_ptr.vmem [resolvable:$true] %s326_s22 }
  0x8f   : > { %p1542_p7 = pneg %p1972_p11 }
  0x91   : > { %s1970_s10 = scalar_lea.hbm %s2219_s0, %s1111_s13  ;;  %s1545_s14 = scalar_lea.hbm %s2219_s0, 4096 }
  0x92   : > { %s1540_s25 = scalar_lea.hbm %s1970_s10, 1024  ;;  %p1546_p1 = scmp.lt.u32.totalorder %s1970_s10, %s2219_s0 }
  0x93   : > { %p1541_p12 = scmp.ne.s32.totalorder %s1970_s10, %s1540_s25  ;;  %p1547_p3 = scmp.lt.u32.totalorder %s1545_s14, %s1540_s25 }
  0x94   : > { %p1549_p4 = scmp.lt.u32.totalorder %s1540_s25, %s1970_s10 }
  0x95   : > { %p1543_p13 = pnand %p1542_p7, %p1541_p12  ;;  %p1548_p2 = por %p1547_p3, %p1546_p1 }
  0x97   : > { %p1544_p0 = pneg %p1543_p13  ;;  %p1550_p8 = por %p1549_p4, %p1548_p2 }
  0x99   : > { %p1551_p9 = pnand %p1550_p8, %p1544_p0 }
  0x9b   : > { %1554 = shalt.err (!%p1551_p9)
}
  0x9c   : > { %s1555_s24 = scalar_lea.vmem %s1976_s22, 1024  ;;  %s1717_s9 = smov [#allocation2]  }
  0x9d   : > { %p1556_p12 = scmp.ne.s32.totalorder %s1976_s22, %s1555_s24  ;;  %s1560_s13 = sshll.u32 %s1717_s9, 4  ;;  %s1561_s13 = int_to_ptr.vmem [resolvable:$false] %s1560_s13 }
  0x9e   : > { %s1562_s16 = scalar_lea.vmem %s1561_s13, 2048  ;;  %p1563_p5 = scmp.lt.s32.totalorder %s1976_s22, %s1561_s13 }
  0x9f   : > { %p1558_p13 = pnand %p1556_p12, %p1542_p7  ;;  %p1564_p1 = scmp.lt.s32.totalorder %s1562_s16, %s1555_s24 }
  0xa1   : > { %p1559_p10 = pneg %p1558_p13  ;;  %p1565_p3 = por %p1564_p1, %p1563_p5 }
  0xa3   : > { %p1566_p2 = pnand %p1565_p3, %p1559_p10 }
  0xa5   : > { %1569 = shalt.err (!%p1566_p2)
}
  0xa6   : > { %s2221_s25 = smov 4   ;;  %s2222_s14 = smov 64  }
  0xa7   : > { %1326 = dma.hbm_to_vmem [thread:$0]  (!%p1972_p11), %s1970_s10, 1024, %s1976_s22, %s1978_s19, %s2222_s14, %s2222_s14, %s2221_s25  }
  0xa8   : > { %p2223_p7 = scmp.ne.s32.totalorder %s2212_s12, 0 }
  0xa9   : > { %s2012_s20 = sand.u32 (!%p2223_p7), 1, %s1700_s28  }
  0xaa   : > { %338 = sbr.rel (%p2223_p7) target bundleno = 538 (0x21a), region = 44  ;;  %s1073_s24 = sshll.u32 (!%p2223_p7), %s2012_s20, 6 }
  0xab   : > { %s341_s9 = scalar_lea.sflag (!%p2223_p7), [#allocation3], %s2012_s20  ;;  %s2018_s15 = scalar_lea.vmem (!%p2223_p7), [#allocation2], %s1073_s24 }
  0xb1   : > { %1671 = dma.done.wait (%p1950_p6), %s341_s9, 1024  }
  0xb2   : > { %1673 = vsyncadd (%p1950_p6), %s341_s9, 4294966272  ;;  %p2224_p5 = scmp.eq.s32.totalorder %s1789_s11, 0 }
  0xb4   : > { %1675 = dma.done.wait (%p2224_p5), [#allocation6], 32   ;;  %p2225_p10 = pmov %p2224_p5 }
  0xb5   : > { %p2226_p11 = pmov %p2224_p5 }
  0xb6   : > { %1677 = vsyncadd (%p2225_p10), [#allocation6], 4294967264 }
  0xb7   : > { %1679 = dma.done.wait (%p2226_p11), [#allocation9], 32   ;;  %p2227_p0 = pmov %p2224_p5 }
  0xb9   : > { %1681 = vsyncadd (%p2227_p0), [#allocation9], 4294967264  ;;  %p2228_p4 = pmov %p2227_p0 }
  0xba   : > { %p2229_p8 = pmov %p2227_p0 }
  0xbb   : > { %1683 = dma.done.wait (%p2228_p4), [#allocation12], 1024  }
  0xbc   : > { %1685 = vsyncadd (%p2229_p8), [#allocation12], 4294966272  ;;  %v1390_v0 = vld [vmem:[#allocation11] sm:$0xff]   ;;  %v1391_v1 = vld [vmem:[#allocation11 + $0x8] sm:$0xff]   ;;  %v455_v15 = vlaneseq  ;;  %s2050_s12 = scalar_lea.vmem [#allocation13], %s1073_s24  ;;  %s1128_s23 = sshll.u32 %s1789_s11, 10 }
  0xbd   : > { %1231 = vmatprep.subr.bf16.mxu0 %v1390_v0  ;;  %1263 = vmatprep.subr.bf16.mxu1 %v1390_v0  ;;  %v1392_v2 = vld [vmem:[#allocation11 + $0x10] sm:$0xff]   ;;  %v1393_v3 = vld [vmem:[#allocation11 + $0x18] sm:$0xff]   ;;  %v1394_v9 = vld [vmem:[#allocation11 + $0x20] sm:$0xff]   ;;  %s861_s19 = sshll.u32 %s2050_s12, 4  ;;  %s2073_s13 = scalar_lea.hbm %s2201_s6, %s1128_s23  ;;  %s2065_s19 = int_to_ptr.vmem [resolvable:$true] %s861_s19 }
  0xbe   : > { %1232 = vmatpush3.bf16.msra.mxu0 %v1390_v0  ;;  %1271 = vmatpush3.bf16.msra.mxu1 %v1390_v0  ;;  %v408_v4 = vld [vmem:[#allocation5] sm:$0x1]  ;;  %v410_v5 = vld [vmem:[#allocation7] sm:$0x1]  ;;  %v1395_v12 = vld [vmem:[#allocation11 + $0x28] sm:$0xff]   ;;  %v456_v17 = vshrl.u32 %v455_v15, 7 }
  0xbf   : > { %1233 = vmatprep.subr.bf16.mxu0 %v1391_v1  ;;  %1264 = vmatprep.subr.bf16.mxu1 %v1391_v1  ;;  %v409_v6 = vmul.f32 0.001953125, %v408_v4  ;;  %v411_v7 = vmul.f32 0.001953125, %v410_v5  ;;  %v1396_v14 = vld [vmem:[#allocation11 + $0x30] sm:$0xff]   ;;  %v1397_v16 = vld [vmem:[#allocation11 + $0x38] sm:$0xff]   ;;  %v1201_v20 = vld [vmem:[%s2018_s15 + $0x8] sm:$0xff]   ;;  %s840_s16 = scalar_lea.sflag [#allocation4], %s2012_s20 }
  0xc0   : > { %v1130_v18 = vld [vmem:[%s2018_s15] sm:$0xff]   ;;  %v1202_v21 = vld [vmem:[%s2018_s15 + $0x10] sm:$0xff]   ;;  %v457_v22 = vsub.s32 0, %v456_v17  ;;  %v1203_v23 = vld [vmem:[%s2018_s15 + $0x18] sm:$0xff]   ;;  %v1135_v30 = vunpack.c.l.bf16 %v1201_v20  ;;  %v1136_v31 = vunpack.c.h.bf16 %v1201_v20  ;;  %s1570_s25 = scalar_lea.vmem %s2065_s19, 1024  ;;  %p2230_p9 = scmp.ne.s32.totalorder %s2217_s21, 0 }
  0xc1   : > { %v412_v8 = vmul.f32 %v409_v6, %v409_v6  ;;  %v417_v19 = vld [vmem:[#allocation8] sm:$0x1]  ;;  %v1131_v26 = vunpack.c.l.bf16 %v1130_v18  ;;  %v1132_v27 = vunpack.c.h.bf16 %v1130_v18  ;;  %v1205_v28 = vld [vmem:[%s2018_s15 + $0x28] sm:$0xff]   ;;  %v1139_v32 = vunpack.c.l.bf16 %v1202_v21  ;;  %v1206_v33 = vld [vmem:[%s2018_s15 + $0x30] sm:$0xff]   ;;  %p1571_p6 = scmp.ne.s32.totalorder %s2065_s19, %s1570_s25  ;;  %s1718_s14 = smov [#allocation13]  }
  0xc2   : > { %1234 = vmatpush3.bf16.msra.mxu0 %v1391_v1  ;;  %1272 = vmatpush3.bf16.msra.mxu1 %v1391_v1  ;;  %v1204_v24 = vld [vmem:[%s2018_s15 + $0x20] sm:$0xff]   ;;  %v2044_v34 = vld [vmem:[%s2018_s15 + $0x38] sm:$0xff]   ;;  %v1140_v36 = vunpack.c.h.bf16 %v1202_v21  ;;  %v1143_v37 = vunpack.c.l.bf16 %v1203_v23  ;;  %v1144_v38 = vunpack.c.h.bf16 %v1203_v23  ;;  %v1151_v43 = vunpack.c.l.bf16 %v1205_v28  ;;  %s1574_s24 = sshll.u32 %s1718_s14, 4  ;;  %s1575_s24 = int_to_ptr.vmem [resolvable:$false] %s1574_s24 }
  0xc3   : > { %1235 = vmatprep.subr.bf16.mxu0 %v1392_v2  ;;  %1265 = vmatprep.subr.bf16.mxu1 %v1392_v2  ;;  %v413_v10 = vsub.f32 %v411_v7, %v412_v8  ;;  %v419_v35 = vld [vmem:[#allocation10] sm:$0x1]  ;;  %v1147_v39 = vunpack.c.l.bf16 %v1204_v24  ;;  %v1148_v42 = vunpack.c.h.bf16 %v1204_v24  ;;  %v1152_v44 = vunpack.c.h.bf16 %v1205_v28  ;;  %p1572_p12 = pnand %p1571_p6, %p2230_p9  ;;  %s1576_s9 = scalar_lea.vmem %s1575_s24, 2048 }
  0xc4   : > { %v1155_v45 = vunpack.c.l.bf16 %v1206_v33  ;;  %v1156_v46 = vunpack.c.h.bf16 %v1206_v33  ;;  %v1159_v47 = vunpack.c.l.bf16 %v2044_v34  ;;  %v1160_v15 = vunpack.c.h.bf16 %v2044_v34  ;;  %p1577_p1 = scmp.lt.s32.totalorder %s2065_s19, %s1575_s24  ;;  %p1578_p3 = scmp.lt.s32.totalorder %s1576_s9, %s1570_s25 }
  0xc5   : > { %v414_v11 = vmax.f32 %v413_v10, 0.0  ;;  %p1573_p13 = pneg %p1572_p12 }
  0xc6   : > { %1236 = vmatpush3.bf16.msra.mxu0 %v1392_v2  ;;  %1273 = vmatpush3.bf16.msra.mxu1 %v1392_v2  ;;  %p1579_p2 = por %p1578_p3, %p1577_p1 }
  0xc7   : > { %1237 = vmatprep.subr.bf16.mxu0 %v1393_v3  ;;  %1266 = vmatprep.subr.bf16.mxu1 %v1393_v3  ;;  %v415_v13 = vadd.f32 1e-05, %v414_v11 }
  0xc8   : > { %p1580_p7 = pnand %p1579_p2, %p1573_p13 }
  0xc9   : > { %1398 = vrsqrt.f32 %v415_v13 }
  0xca   : > { %1238 = vmatpush3.bf16.msra.mxu0 %v1393_v3  ;;  %1274 = vmatpush3.bf16.msra.mxu1 %v1393_v3 }
  0xcb   : > { %1239 = vmatprep.subr.bf16.mxu0 %v1394_v9  ;;  %1267 = vmatprep.subr.bf16.mxu1 %v1394_v9 }
  0xce   : > { %1240 = vmatpush3.bf16.msra.mxu0 %v1394_v9  ;;  %1275 = vmatpush3.bf16.msra.mxu1 %v1394_v9 }
  0xcf   : > { %1241 = vmatprep.subr.bf16.mxu0 %v1395_v12  ;;  %1268 = vmatprep.subr.bf16.mxu1 %v1395_v12 }
  0xd2   : > { %1242 = vmatpush3.bf16.msra.mxu0 %v1395_v12  ;;  %1276 = vmatpush3.bf16.msra.mxu1 %v1395_v12 }
  0xd3   : > { %1243 = vmatprep.subr.bf16.mxu0 %v1396_v14  ;;  %1269 = vmatprep.subr.bf16.mxu1 %v1396_v14  ;;  %v1399_v25 = vpop.eup %1398 }
  0xd4   : > { %v418_v29 = vmul.f32 %v1399_v25, %v417_v19 }
  0xd6   : > { %1244 = vmatpush3.bf16.msra.mxu0 %v1396_v14  ;;  %1277 = vmatpush3.bf16.msra.mxu1 %v1396_v14  ;;  %v420_v40 = vmul.f32 %v418_v29, %v409_v6  ;;  %v458_v41 = vrot.slane %v418_v29, %v457_v22 }
  0xd7   : > { %1245 = vmatprep.subr.bf16.mxu0 %v1397_v16  ;;  %1270 = vmatprep.subr.bf16.mxu1 %v1397_v16 }
  0xd8   : > { %v421_v48 = vsub.f32 %v419_v35, %v420_v40  ;;  %v460_v49 = vmul.f32 %v1131_v26, %v458_v41  ;;  %v461_v50 = vmul.f32 %v1132_v27, %v458_v41  ;;  %v462_v51 = vmul.f32 %v1135_v30, %v458_v41 }
  0xd9   : > { %v463_v52 = vmul.f32 %v1136_v31, %v458_v41  ;;  %v464_v53 = vmul.f32 %v1139_v32, %v458_v41  ;;  %v465_v54 = vmul.f32 %v1140_v36, %v458_v41  ;;  %v466_v55 = vmul.f32 %v1143_v37, %v458_v41 }
  0xda   : > { %1246 = vmatpush3.bf16.msra.mxu0 %v1397_v16  ;;  %1278 = vmatpush3.bf16.msra.mxu1 %v1397_v16  ;;  %v480_v56 = vrot.slane %v421_v48, %v457_v22  ;;  %v467_v57 = vmul.f32 %v1144_v38, %v458_v41  ;;  %v468_v58 = vmul.f32 %v1147_v39, %v458_v41 }
  0xdb   : > { %v469_v59 = vmul.f32 %v1148_v42, %v458_v41  ;;  %v470_v60 = vmul.f32 %v1151_v43, %v458_v41  ;;  %v471_v61 = vmul.f32 %v1152_v44, %v458_v41  ;;  %v472_v62 = vmul.f32 %v1155_v45, %v458_v41 }
  0xdc   : > { %v473_v63 = vmul.f32 %v1156_v46, %v458_v41  ;;  %v482_v0 = vadd.f32 %v480_v56, %v460_v49  ;;  %v483_v1 = vadd.f32 %v480_v56, %v461_v50  ;;  %v484_v2 = vadd.f32 %v480_v56, %v462_v51 }
  0xdd   : > { %v485_v3 = vadd.f32 %v480_v56, %v463_v52  ;;  %v486_v4 = vadd.f32 %v480_v56, %v464_v53  ;;  %v487_v5 = vadd.f32 %v480_v56, %v465_v54  ;;  %v488_v6 = vadd.f32 %v480_v56, %v466_v55 }
  0xde   : > { %v489_v7 = vadd.f32 %v480_v56, %v467_v57  ;;  %v498_v8 = vmax.f32 %v482_v0, 0.0  ;;  %v499_v9 = vmax.f32 %v483_v1, 0.0  ;;  %v500_v10 = vmax.f32 %v484_v2, 0.0 }
  0xdf   : > { %v501_v11 = vmax.f32 %v485_v3, 0.0  ;;  %v502_v12 = vmax.f32 %v486_v4, 0.0  ;;  %v503_v13 = vmax.f32 %v487_v5, 0.0  ;;  %v504_v14 = vmax.f32 %v488_v6, 0.0 }
  0xe0   : > { %v514_v16 = vpack.c.bf16 %v499_v9, %v498_v8  ;;  %v490_v18 = vadd.f32 %v480_v56, %v468_v58  ;;  %v491_v19 = vadd.f32 %v480_v56, %v469_v59  ;;  %v505_v21 = vmax.f32 %v489_v7, 0.0 }
  0xe1   : > { %v515_v17 = vpack.c.bf16 %v501_v11, %v500_v10  ;;  %v516_v20 = vpack.c.bf16 %v503_v13, %v502_v12  ;;  %v492_v22 = vadd.f32 %v480_v56, %v470_v60  ;;  %v493_v23 = vadd.f32 %v480_v56, %v471_v61 }
  0xe2   : > { %1247 = vmatprep.mubr.bf16.mxu0 %v514_v16  ;;  %v506_v24 = vmax.f32 %v490_v18, 0.0  ;;  %v507_v25 = vmax.f32 %v491_v19, 0.0  ;;  %v494_v26 = vadd.f32 %v480_v56, %v472_v62  ;;  %v495_v27 = vadd.f32 %v480_v56, %v473_v63 }
  0xe3   : > { %1248 = vmatmul.mubr.bf16.vlgmr.msra.gmra.mrb[0].mxu0 %v515_v17  ;;  %v508_v28 = vmax.f32 %v492_v22, 0.0  ;;  %v509_v29 = vmax.f32 %v493_v23, 0.0  ;;  %v474_v30 = vmul.f32 %v1159_v47, %v458_v41  ;;  %v475_v31 = vmul.f32 %v1160_v15, %v458_v41 }
  0xe4   : > { %1251 = vmatprep.mubr.bf16.mxu0 %v516_v20  ;;  %v518_v32 = vpack.c.bf16 %v507_v25, %v506_v24  ;;  %v510_v33 = vmax.f32 %v494_v26, 0.0  ;;  %v511_v34 = vmax.f32 %v495_v27, 0.0  ;;  %v517_v39 = vpack.c.bf16 %v505_v21, %v504_v14 }
  0xe5   : > { %v519_v35 = vpack.c.bf16 %v509_v29, %v508_v28  ;;  %v496_v36 = vadd.f32 %v480_v56, %v474_v30  ;;  %v497_v37 = vadd.f32 %v480_v56, %v475_v31 }
  0xe6   : > { %1255 = vmatprep.mubr.bf16.mxu1 %v518_v32  ;;  %v520_v38 = vpack.c.bf16 %v511_v34, %v510_v33 }
  0xe7   : > { %1256 = vmatmul.mubr.bf16.vlgmr.msra.gmra.mrb[0].mxu1 %v519_v35  ;;  %v512_v40 = vmax.f32 %v496_v36, 0.0  ;;  %v513_v42 = vmax.f32 %v497_v37, 0.0 }
  0xe8   : > { %1259 = vmatprep.mubr.bf16.mxu1 %v520_v38 }
  0xe9   : > { %v521_v43 = vpack.c.bf16 %v513_v42, %v512_v40 }
  0xeb   : > { %1252 = vmatmul.mubr.bf16.gmra.mrb[4].mxu0 %v517_v39 }
  0xef   : > { %1260 = vmatmul.mubr.bf16.gmra.mrb[4].mxu1 %v521_v43 }
 0x1b6   : > { %v1249_v44 = vpop.f32.mrb[0].mxu0 }
 0x1b7   : > { %v620_v41 = vpop.f32.mrb[1].mxu0 }
 0x1b8   : > { %v1250_v45 = vpop.f32.mrb[2].mxu0 }
 0x1b9   : > { %v684_v46 = vpack.c.bf16 %v1250_v45, %v1249_v44  ;;  %v623_v47 = vpop.f32.mrb[3].mxu0 }
 0x1ba   : > { %v683_v48 = vpack.c.bf16 %v623_v47, %v620_v41  ;;  %v1257_v49 = vpop.f32.mrb[0].mxu1 }
 0x1bb   : > { %1208 = vst [vmem:[%s2050_s12 + $0x8] sm:$0xff] %v684_v46   ;;  %v652_v50 = vpop.f32.mrb[1].mxu1  ;;  %v765_v51 = vunpack.c.l.bf16 %v684_v46  ;;  %v766_v55 = vunpack.c.h.bf16 %v684_v46 }
 0x1bc   : > { %1165 = vst [vmem:[%s2050_s12] sm:$0xff] %v683_v48   ;;  %v763_v52 = vunpack.c.l.bf16 %v683_v48  ;;  %v764_v53 = vunpack.c.h.bf16 %v683_v48  ;;  %v1258_v54 = vpop.f32.mrb[2].mxu1 }
 0x1bd   : > { %v2054_v56 = vpack.c.bf16 %v1258_v54, %v1257_v49  ;;  %v655_v57 = vpop.f32.mrb[3].mxu1  ;;  %v803_v0 = vmul.f32 %v765_v51, %v765_v51  ;;  %v804_v6 = vmul.f32 %v766_v55, %v766_v55 }
 0x1be   : > { %v779_v58 = vadd.f32 %v764_v53, %v763_v52  ;;  %v801_v59 = vmul.f32 %v763_v52, %v763_v52  ;;  %v802_v60 = vmul.f32 %v764_v53, %v764_v53  ;;  %v1253_v61 = vpop.f32.mrb[4].mxu0  ;;  %v2056_v62 = vpack.c.bf16 %v655_v57, %v652_v50 }
 0x1bf   : > { %v636_v63 = vpop.f32.mrb[5].mxu0  ;;  %1212 = vst [vmem:[%s2050_s12 + $0x28] sm:$0xff] %v2054_v56  }
 0x1c0   : > { %v780_v1 = vadd.f32 %v779_v58, %v765_v51  ;;  %v817_v2 = vadd.f32 %v802_v60, %v801_v59  ;;  %v1254_v3 = vpop.f32.mrb[6].mxu0  ;;  %1211 = vst [vmem:[%s2050_s12 + $0x20] sm:$0xff] %v2056_v62  }
 0x1c1   : > { %v686_v4 = vpack.c.bf16 %v1254_v3, %v1253_v61  ;;  %v639_v5 = vpop.f32.mrb[7].mxu0 }
 0x1c2   : > { %v818_v7 = vadd.f32 %v817_v2, %v803_v0  ;;  %v685_v8 = vpack.c.bf16 %v639_v5, %v636_v63  ;;  %v781_v9 = vadd.f32 %v780_v1, %v766_v55  ;;  %v1261_v10 = vpop.f32.mrb[4].mxu1 }
 0x1c3   : > { %1210 = vst [vmem:[%s2050_s12 + $0x18] sm:$0xff] %v686_v4   ;;  %v668_v11 = vpop.f32.mrb[5].mxu1  ;;  %v769_v18 = vunpack.c.l.bf16 %v686_v4  ;;  %v770_v22 = vunpack.c.h.bf16 %v686_v4 }
 0x1c4   : > { %1209 = vst [vmem:[%s2050_s12 + $0x10] sm:$0xff] %v685_v8   ;;  %v767_v12 = vunpack.c.l.bf16 %v685_v8  ;;  %v768_v13 = vunpack.c.h.bf16 %v685_v8  ;;  %v819_v14 = vadd.f32 %v818_v7, %v804_v6  ;;  %v1262_v15 = vpop.f32.mrb[6].mxu1 }
 0x1c5   : > { %v2068_v16 = vpack.c.bf16 %v1262_v15, %v1261_v10  ;;  %v671_v17 = vpop.f32.mrb[7].mxu1 }
 0x1c6   : > { %v782_v19 = vadd.f32 %v781_v9, %v767_v12  ;;  %v805_v20 = vmul.f32 %v767_v12, %v767_v12  ;;  %v689_v21 = vpack.c.bf16 %v671_v17, %v668_v11  ;;  %v806_v24 = vmul.f32 %v768_v13, %v768_v13 }
 0x1c7   : > { %1214 = vst [vmem:[%s2050_s12 + $0x38] sm:$0xff] %v2068_v16  }
 0x1c8   : > { %v783_v23 = vadd.f32 %v782_v19, %v768_v13  ;;  %v820_v25 = vadd.f32 %v819_v14, %v805_v20  ;;  %1213 = vst [vmem:[%s2050_s12 + $0x30] sm:$0xff] %v689_v21  }
 0x1c9   : > { %1583 = shalt.err (!%p1580_p7)
}
 0x1ca   : > { %s1584_s15 = scalar_lea.hbm %s2073_s13, 1024  ;;  %s1588_s10 = scalar_lea.hbm %s2201_s6, 4096 }
 0x1cb   : > { %p1585_p5 = scmp.ne.s32.totalorder %s2073_s13, %s1584_s15  ;;  %p1589_p0 = scmp.lt.u32.totalorder %s2073_s13, %s2201_s6 }
 0x1cc   : > { %p1590_p4 = scmp.lt.u32.totalorder %s1588_s10, %s1584_s15  ;;  %p1592_p6 = scmp.lt.u32.totalorder %s1584_s15, %s2073_s13 }
 0x1cd   : > { %p1586_p10 = pnand %p1585_p5, %p2230_p9 }
 0x1ce   : > { %p1591_p8 = por %p1590_p4, %p1589_p0 }
 0x1cf   : > { %p1587_p11 = pneg %p1586_p10 }
 0x1d0   : > { %p1593_p12 = por %p1592_p6, %p1591_p8 }
 0x1d2   : > { %p1594_p13 = pnand %p1593_p12, %p1587_p11 }
 0x1d4   : > { %1597 = shalt.err (!%p1594_p13)
}
 0x1d5   : > { %s1719_s25 = smov 64   ;;  %s1720_s24 = smov 4   ;;  %v807_v26 = vmul.f32 %v769_v18, %v769_v18  ;;  %v784_v27 = vadd.f32 %v783_v23, %v769_v18  ;;  %v821_v28 = vadd.f32 %v820_v25, %v806_v24  ;;  %v771_v29 = vunpack.c.l.bf16 %v2056_v62 }
 0x1d6   : > { %1301 = dma.vmem_to_hbm [thread:$0]  (%p2230_p9), %s2065_s19, 1024, %s2073_s13, %s840_s16, %s1719_s25, %s1719_s25, %s1720_s24   ;;  %v808_v30 = vmul.f32 %v770_v22, %v770_v22  ;;  %v772_v32 = vunpack.c.h.bf16 %v2056_v62  ;;  %v773_v34 = vunpack.c.l.bf16 %v2054_v56  ;;  %v774_v38 = vunpack.c.h.bf16 %v2054_v56 }
 0x1d7   : > { %v822_v31 = vadd.f32 %v821_v28, %v807_v26  ;;  %v785_v33 = vadd.f32 %v784_v27, %v770_v22  ;;  %v809_v36 = vmul.f32 %v771_v29, %v771_v29  ;;  %v775_v45 = vunpack.c.l.bf16 %v689_v21  ;;  %s844_s19 = sand.u32 1, %s1789_s11   ;;  %s1107_s13 = sshll.u32 %s1789_s11, 4 }
 0x1d8   : > { %v810_v40 = vmul.f32 %v772_v32, %v772_v32  ;;  %v811_v43 = vmul.f32 %v773_v34, %v773_v34  ;;  %v812_v46 = vmul.f32 %v774_v38, %v774_v38  ;;  %v776_v48 = vunpack.c.h.bf16 %v689_v21  ;;  %s398_s16 = scalar_lea.vmem [#allocation14], %s2012_s20  ;;  %s2210_s15 = scalar_lea.vmem [#allocation16], %s2012_s20 }
 0x1d9   : > { %v786_v35 = vadd.f32 %v785_v33, %v771_v29  ;;  %v823_v37 = vadd.f32 %v822_v31, %v808_v30  ;;  %v777_v50 = vunpack.c.l.bf16 %v2068_v16  ;;  %v813_v52 = vmul.f32 %v775_v45, %v775_v45  ;;  %s877_s9 = sshll.u32 %s398_s16, 4  ;;  %s890_s12 = sshll.u32 %s2210_s15, 4  ;;  %s2119_s9 = int_to_ptr.vmem [resolvable:$true] %s877_s9  ;;  %s2126_s12 = int_to_ptr.vmem [resolvable:$true] %s890_s12 }
 0x1da   : > { %v778_v54 = vunpack.c.h.bf16 %v2068_v16  ;;  %v814_v56 = vmul.f32 %v776_v48, %v776_v48  ;;  %s2117_s22 = scalar_lea.hbm %s2202_s7, %s1107_s13  ;;  %s2124_s25 = scalar_lea.hbm %s2203_s8, %s1107_s13 }
 0x1db   : > { %v787_v39 = vadd.f32 %v786_v35, %v772_v32  ;;  %v824_v42 = vadd.f32 %v823_v37, %v809_v36  ;;  %v815_v58 = vmul.f32 %v777_v50, %v777_v50  ;;  %s2128_s24 = scalar_lea.sflag [#allocation15], %s844_s19  ;;  %s1598_s23 = scalar_lea.vmem %s2119_s9, 16 }
 0x1dc   : > { %v816_v61 = vmul.f32 %v778_v54, %v778_v54  ;;  %p1599_p1 = scmp.ne.s32.totalorder %s2119_s9, %s1598_s23  ;;  %s1721_s10 = smov [#allocation14]  }
 0x1dd   : > { %v788_v44 = vadd.f32 %v787_v39, %v773_v34  ;;  %v825_v41 = vadd.f32 %v824_v42, %v810_v40  ;;  %s1602_s15 = sshll.u32 %s1721_s10, 4  ;;  %s1603_s15 = int_to_ptr.vmem [resolvable:$false] %s1602_s15 }
 0x1de   : > { %p1600_p3 = pnand %p1599_p1, %p2230_p9  ;;  %s1604_s0 = scalar_lea.vmem %s1603_s15, 32 }
 0x1df   : > { %v826_v47 = vadd.f32 %v825_v41, %v811_v43  ;;  %v789_v49 = vadd.f32 %v788_v44, %v774_v38  ;;  %p1605_p7 = scmp.lt.s32.totalorder %s2119_s9, %s1603_s15  ;;  %p1606_p5 = scmp.lt.s32.totalorder %s1604_s0, %s1598_s23 }
 0x1e0   : > { %p1601_p2 = pneg %p1600_p3 }
 0x1e1   : > { %v790_v51 = vadd.f32 %v789_v49, %v775_v45  ;;  %v827_v53 = vadd.f32 %v826_v47, %v812_v46  ;;  %p1607_p10 = por %p1606_p5, %p1605_p7 }
 0x1e3   : > { %v791_v55 = vadd.f32 %v790_v51, %v776_v48  ;;  %v828_v57 = vadd.f32 %v827_v53, %v813_v52  ;;  %p1608_p11 = pnand %p1607_p10, %p1601_p2 }
 0x1e5   : > { %v792_v59 = vadd.f32 %v791_v55, %v777_v50  ;;  %v829_v60 = vadd.f32 %v828_v57, %v814_v56 }
 0x1e7   : > { %v793_v62 = vadd.f32 %v792_v59, %v778_v54  ;;  %v830_v63 = vadd.f32 %v829_v60, %v815_v58 }
 0x1e9   : > { %v794_v0 = vrot.slane %v793_v62, 4  ;;  %v831_v1 = vadd.f32 %v830_v63, %v816_v61 }
 0x1eb   : > { %v795_v2 = vadd.f32 %v794_v0, %v793_v62  ;;  %v832_v3 = vrot.slane %v831_v1, 4 }
 0x1ed   : > { %v833_v4 = vadd.f32 %v832_v3, %v831_v1  ;;  %v796_v5 = vrot.slane %v795_v2, 2 }
 0x1ef   : > { %v797_v6 = vadd.f32 %v796_v5, %v795_v2  ;;  %v834_v7 = vrot.slane %v833_v4, 2 }
 0x1f1   : > { %v798_v8 = vrot.slane %v797_v6, 1  ;;  %v835_v9 = vadd.f32 %v834_v7, %v833_v4 }
 0x1f3   : > { %v799_v10 = vadd.f32 %v798_v8, %v797_v6  ;;  %v836_v11 = vrot.slane %v835_v9, 1 }
 0x1f5   : > { %800 = vst [vmem:[%s398_s16] sm:$0x1] %v799_v10  ;;  %v837_v12 = vadd.f32 %v836_v11, %v835_v9 }
 0x1f6   : > { %1611 = shalt.err (!%p1608_p11)
}
 0x1f7   : > { %s1612_s19 = scalar_lea.hbm %s2117_s22, 16  ;;  %s1616_s11 = scalar_lea.hbm %s2202_s7, 64 }
 0x1f8   : > { %p1613_p0 = scmp.ne.s32.totalorder %s2117_s22, %s1612_s19  ;;  %p1617_p6 = scmp.lt.u32.totalorder %s2117_s22, %s2202_s7 }
 0x1f9   : > { %p1618_p12 = scmp.lt.u32.totalorder %s1616_s11, %s1612_s19  ;;  %p1620_p1 = scmp.lt.u32.totalorder %s1612_s19, %s2117_s22 }
 0x1fa   : > { %p1614_p4 = pnand %p1613_p0, %p2230_p9 }
 0x1fb   : > { %p1619_p13 = por %p1618_p12, %p1617_p6 }
 0x1fc   : > { %p1615_p8 = pneg %p1614_p4 }
 0x1fd   : > { %p1621_p3 = por %p1620_p1, %p1619_p13 }
 0x1ff   : > { %p1622_p2 = pnand %p1621_p3, %p1615_p8 }
 0x201   : > { %1625 = shalt.err (!%p1622_p2)
}
 0x202   : > { %1302 = dma.vmem_to_hbm [thread:$0]  (%p2230_p9), %s2119_s9, 16, %s2117_s22, %s2128_s24  }
 0x203   : > { %s2231_s0 = scalar_lea.vmem [#allocation16], %s2012_s20  ;;  %s1626_s23 = scalar_lea.vmem %s2126_s12, 16 }
 0x204   : > { %838 = vst [vmem:[%s2231_s0] sm:$0x1] %v837_v12  ;;  %p1627_p7 = scmp.ne.s32.totalorder %s2126_s12, %s1626_s23  ;;  %s1722_s10 = smov [#allocation16]  }
 0x205   : > { %s1630_s19 = sshll.u32 %s1722_s10, 4  ;;  %s1631_s19 = int_to_ptr.vmem [resolvable:$false] %s1630_s19 }
 0x206   : > { %p1628_p5 = pnand %p1627_p7, %p2230_p9  ;;  %s1632_s13 = scalar_lea.vmem %s1631_s19, 32 }
 0x207   : > { %p1633_p11 = scmp.lt.s32.totalorder %s2126_s12, %s1631_s19  ;;  %p1634_p0 = scmp.lt.s32.totalorder %s1632_s13, %s1626_s23 }
 0x208   : > { %p1629_p10 = pneg %p1628_p5 }
 0x209   : > { %p1635_p4 = por %p1634_p0, %p1633_p11 }
 0x20b   : > { %p1636_p8 = pnand %p1635_p4, %p1629_p10 }
 0x20d   : > { %1639 = shalt.err (!%p1636_p8)
}
 0x20e   : > { %s1640_s20 = scalar_lea.hbm %s2124_s25, 16  ;;  %s1644_s16 = scalar_lea.hbm %s2203_s8, 64 }
 0x20f   : > { %p1641_p6 = scmp.ne.s32.totalorder %s2124_s25, %s1640_s20  ;;  %p1645_p1 = scmp.lt.u32.totalorder %s2124_s25, %s2203_s8 }
 0x210   : > { %p1646_p3 = scmp.lt.u32.totalorder %s1644_s16, %s1640_s20  ;;  %p1648_p7 = scmp.lt.u32.totalorder %s1640_s20, %s2124_s25 }
 0x211   : > { %p1642_p12 = pnand %p1641_p6, %p2230_p9 }
 0x212   : > { %p1647_p2 = por %p1646_p3, %p1645_p1 }
 0x213   : > { %p1643_p13 = pneg %p1642_p12 }
 0x214   : > { %p1649_p5 = por %p1648_p7, %p1647_p2 }
 0x216   : > { %p1650_p10 = pnand %p1649_p5, %p1643_p13 }
 0x218   : > { %1653 = shalt.err (!%p1650_p10)
}
 0x219   : > { %1303 = dma.vmem_to_hbm [thread:$0]  (%p2230_p9), %s2126_s12, 16, %s2124_s25, %s2128_s24  }
 0x21a PF: > { %p1348_p11 = scmp.ge.s32.totalorder %s1708_s30, 2  ;;  %s902_s15 = sand.u32 1, %s1696_s27  }
 0x21b   : > { %p2232_p0 = scmp.ne.s32.totalorder %s2218_s26, 0  ;;  %s903_s0 = scalar_lea.sflag [#allocation4], %s902_s15 }
 0x21d   : > { %p1328_p4 = pnand %p1348_p11, %p2232_p0 }
 0x21f   : > { %1687 = dma.done.wait (!%p1328_p4), %s903_s0, 1024  }
 0x220   : > { %1689 = vsyncadd (!%p1328_p4), %s903_s0, 4294966272  ;;  %s2233_s23 = sadd.s32 4294967294, %s1708_s30  }
 0x221   : > { %s911_s10 = sand.u32 1, %s2233_s23  }
 0x222   : > { %s912_s19 = scalar_lea.sflag [#allocation15], %s911_s10 }
 0x223   : > { %1691 = dma.done.wait (!%p1328_p4), %s912_s19, 32  }
 0x224   : > { %1693 = vsyncadd (!%p1328_p4), %s912_s19, 4294967264  ;;  %p28_p9 = scmp.ge.s32.totalorder %s1934_s18, 6   ;;  %s2234_s27 = smov %s1700_s28 }
 0x225   : > { %s2235_s28 = smov %s1704_s29  ;;  %s2236_s29 = smov %s1946_s17 }
 0x226   : > { %s2237_s30 = smov %s1934_s18  ;;  %30 = sbr.rel (!%p28_p9) target bundleno = 12 (0xc), region = 141 }
 0x22d   :  { %924 = vsyncpa [#allocation3], 1 }
 0x22e   :  { %926 = vsyncpa [#allocation3 + $0x1], 1 }
 0x22f   :  { %927 = vsyncpa [#allocation6], 1 }
 0x230   :  { %928 = vsyncpa [#allocation9], 1 }
 0x231   :  { %929 = vsyncpa [#allocation12], 1 }
 0x232   :  { %930 = vsyncpa [#allocation4], 1 }
 0x233   :  { %932 = vsyncpa [#allocation4 + $0x1], 1 }
 0x234   :  { %933 = vsyncpa [#allocation15], 1 }
 0x235   :  { %935 = vsyncpa [#allocation15 + $0x1], 1 }

// kernel: bottleneck_forward.5
= control target key start
LH: loop header
LB: loop body
LE: loop exit
PB: predicated region body
PF: predicated region fallthrough
CT: control target
= control target key end

     0   :  { %s9608_s0 = inlined_call_operand.hbm [shape: bf16[512,128], index: 0, kind: input, shape index: {}]   ;;  %s9609_s1 = inlined_call_operand.hbm [shape: f32[1,128], index: 1, kind: input, shape index: {}]   ;;  %s9610_s2 = inlined_call_operand.hbm [shape: f32[1,128], index: 2, kind: input, shape index: {}]   ;;  %s9611_s3 = inlined_call_operand.hbm [shape: f32[1,128], index: 3, kind: input, shape index: {}]   ;;  %s9612_s4 = inlined_call_operand.hbm [shape: f32[1,128], index: 4, kind: input, shape index: {}]   ;;  %s9613_s5 = inlined_call_operand.hbm [shape: bf16[3,384,128], index: 5, kind: input, shape index: {}]   ;;  %s9614_s6 = inlined_call_operand.hbm [shape: s32[256,1], index: 6, kind: input, shape index: {}]   ;;  %s9615_s7 = inlined_call_operand.hbm [shape: bf16[512,128], index: 7, kind: output, shape index: {0}]   ;;  %s9616_s8 = inlined_call_operand.hbm [shape: f32[2,1,128], index: 8, kind: output, shape index: {1}]   ;;  %s9617_s9 = inlined_call_operand.hbm [shape: f32[2,1,128], index: 9, kind: output, shape index: {2}]  }
   0x1   :  { %9766 = sst [smem:[#allocation113_spill]] %s9609_s1 }
   0x2   :  { %9767 = sst [smem:[#allocation114_spill]] %s9611_s3 }
   0x3   :  { %9768 = sst [smem:[#allocation115_spill]] %s9617_s9 }
   0x4   :  { %15 = vsyncpa [#allocation4], 0 }
   0x5   :  { %17 = vsyncpa [#allocation4 + $0x1], 0 }
   0x6   :  { %18 = vsyncpa [#allocation7], 0 }
   0x7   :  { %19 = vsyncpa [#allocation10], 0 }
   0x8   :  { %20 = vsyncpa [#allocation13], 0 }
   0x9   :  { %21 = vsyncpa [#allocation5], 0 }
   0xa   :  { %23 = vsyncpa [#allocation5 + $0x1], 0 }
   0xb   :  { %24 = vsyncpa [#allocation17], 0 }
   0xc   :  { %26 = vsyncpa [#allocation17 + $0x1], 0  ;;  %s7239_s30 = smov 0   ;;  %s7241_s10 = smov 0  }
   0xd   :  { %s7243_s11 = smov 0   ;;  %s7245_s12 = smov 0  }
   0xe LB: > { %s7171_s13 = smov [#allocation6]   ;;  %s7260_s15 = sadd.s32 4294967295, %s7169_s12   ;;  %s7169_s12 = sphi %s7245_s12, %s10085_s12   ;;  %s7165_s11 = sphi %s7243_s11, %s10084_s11   ;;  %s7161_s10 = sphi %s7241_s10, %s10083_s10   ;;  %s7157_s30 = sphi %s7239_s30, %s10082_s30  }
   0xf   : > { %s280_s14 = sshll.u32 %s7171_s13, 4  ;;  %p5034_p0 = scmp.ge.s32.totalorder %s7169_s12, 1  ;;  %s7265_s14 = int_to_ptr.vmem [resolvable:$true] %s280_s14 }
  0x10   : > { %p9619_p1 = scmp.eq.s32.totalorder %s7260_s15, 0  ;;  %p267_p2 = scmp.lt.s32.totalorder %s7169_s12, 3 }
  0x11   : > { %s7172_s17 = smov [#allocation9]   ;;  %s7173_s19 = smov [#allocation12]  }
  0x12   : > { %p7267_p3 = pnand %p5034_p0, %p267_p2  ;;  %s302_s18 = sshll.u32 %s7172_s17, 4  ;;  %s7274_s18 = int_to_ptr.vmem [resolvable:$true] %s302_s18 }
  0x13   : > { %s323_s20 = sshll.u32 %s7173_s19, 4  ;;  %s9771_s1 = sld [smem:[#allocation113_spill]]  ;;  %s7282_s20 = int_to_ptr.vmem [resolvable:$true] %s323_s20 }
  0x14   : > { %s9769_s16 = scalar_select %p7267_p3, 1, 0 }
  0x15   : > { %p6197_p5 = pneg %p7267_p3 }
  0x17   : > { %p7278_p6 = pnand %p6197_p5, %p9619_p1 }
  0x19   : > { %s6833_s24 = scalar_lea.hbm %s9771_s1, 16  ;;  %p7292_p8 = pneg %p7278_p6 }
  0x1a   : > { %p6834_p7 = scmp.ne.s32.totalorder %s9771_s1, %s6833_s24  ;;  %p6840_p11 = scmp.lt.u32.totalorder %s6833_s24, %s9771_s1 }
  0x1c   : > { %p6836_p9 = pnand %p7292_p8, %p6834_p7 }
  0x1e   : > { %p6837_p10 = pneg %p6836_p9 }
  0x20   : > { %p6842_p12 = pnand %p6840_p11, %p6837_p10 }
  0x22   : > { %6845 = shalt.err (!%p6842_p12)
}
  0x23   : > { %s6846_s13 = scalar_lea.vmem %s7265_s14, 16  ;;  %s6853_s17 = scalar_lea.vmem %s7265_s14, 32 }
  0x24   : > { %p6847_p13 = scmp.ne.s32.totalorder %s7265_s14, %s6846_s13  ;;  %p6854_p5 = scmp.lt.s32.totalorder %s7265_s14, %s7265_s14 }
  0x25   : > { %p6855_p7 = scmp.lt.s32.totalorder %s6853_s17, %s6846_s13 }
  0x26   : > { %p6849_p0 = pnand %p6847_p13, %p7292_p8 }
  0x27   : > { %p6856_p9 = por %p6855_p7, %p6854_p5 }
  0x28   : > { %p6850_p2 = pneg %p6849_p0 }
  0x2a   : > { %p6857_p4 = pnand %p6856_p9, %p6850_p2 }
  0x2c   : > { %6860 = shalt.err (!%p6857_p4)
}
  0x2d   : > { %6200 = dma.hbm_to_vmem [thread:$0]  (!%p7278_p6), %s9771_s1, 16, %s7265_s14, [#allocation7]  }
  0x2e   : > { %s9773_s3 = sld [smem:[#allocation114_spill]] }
  0x34   : > { %s6861_s25 = scalar_lea.hbm %s9773_s3, 16 }
  0x35   : > { %p6862_p10 = scmp.ne.s32.totalorder %s9773_s3, %s6861_s25  ;;  %p6868_p4 = scmp.lt.u32.totalorder %s6861_s25, %s9773_s3 }
  0x37   : > { %p6864_p11 = pnand %p6862_p10, %p7292_p8 }
  0x39   : > { %p6865_p12 = pneg %p6864_p11 }
  0x3b   : > { %p6870_p13 = pnand %p6868_p4, %p6865_p12 }
  0x3d   : > { %6873 = shalt.err (!%p6870_p13)
}
  0x3e   : > { %s6874_s14 = scalar_lea.vmem %s7274_s18, 16  ;;  %s6881_s17 = scalar_lea.vmem %s7274_s18, 32 }
  0x3f   : > { %p6875_p0 = scmp.ne.s32.totalorder %s7274_s18, %s6874_s14  ;;  %p6882_p7 = scmp.lt.s32.totalorder %s7274_s18, %s7274_s18 }
  0x40   : > { %p6883_p9 = scmp.lt.s32.totalorder %s6881_s17, %s6874_s14 }
  0x41   : > { %p6877_p2 = pnand %p6875_p0, %p7292_p8 }
  0x42   : > { %p6884_p10 = por %p6883_p9, %p6882_p7 }
  0x43   : > { %p6878_p5 = pneg %p6877_p2 }
  0x45   : > { %p6885_p11 = pnand %p6884_p10, %p6878_p5 }
  0x47   : > { %6888 = shalt.err (!%p6885_p11)
}
  0x48   : > { %6206 = dma.hbm_to_vmem [thread:$0]  (!%p7278_p6), %s9773_s3, 16, %s7274_s18, [#allocation10]  }
  0x49   : > { %s6889_s25 = scalar_lea.hbm %s9613_s5, 9216 }
  0x4a   : > { %p6890_p12 = scmp.ne.s32.totalorder %s9613_s5, %s6889_s25  ;;  %p6896_p0 = scmp.lt.u32.totalorder %s6889_s25, %s9613_s5 }
  0x4c   : > { %p6892_p4 = pnand %p6890_p12, %p7292_p8 }
  0x4e   : > { %p6893_p13 = pneg %p6892_p4 }
  0x50   : > { %p6898_p2 = pnand %p6896_p0, %p6893_p13 }
  0x52   : > { %6901 = shalt.err (!%p6898_p2)
}
  0x53   : > { %s6902_s18 = scalar_lea.vmem %s7282_s20, 9216  ;;  %p6910_p10 = scmp.lt.s32.totalorder %s7282_s20, %s7282_s20 }
  0x54   : > { %p6903_p5 = scmp.ne.s32.totalorder %s7282_s20, %s6902_s18  ;;  %p6911_p11 = scmp.lt.s32.totalorder %s6902_s18, %s6902_s18 }
  0x56   : > { %p6905_p7 = pnand %p6903_p5, %p7292_p8  ;;  %p6912_p12 = por %p6911_p11, %p6910_p10 }
  0x58   : > { %p6906_p9 = pneg %p6905_p7 }
  0x5a   : > { %p6913_p4 = pnand %p6912_p12, %p6906_p9 }
  0x5c   : > { %6916 = shalt.err (!%p6913_p4)
}
  0x5d   : > { %s7174_s14 = smov 64   ;;  %s7175_s17 = smov 4  }
  0x5e   : > { %6212 = dma.hbm_to_vmem [thread:$0]  (!%p7278_p6), %s9613_s5, 9216, %s7282_s20, [#allocation13], %s7174_s14, %s7174_s14, %s7175_s17  }
  0x5f   : > { %s7176_s23 = smov [#allocation8]   ;;  %s7177_s25 = smov [#allocation11]  }
  0x60   : > { %s291_s24 = sshll.u32 %s7176_s23, 4  ;;  %s313_s26 = sshll.u32 %s7177_s25, 4  ;;  %s292_s24 = int_to_ptr.vmem [resolvable:$true] %s291_s24  ;;  %s314_s26 = int_to_ptr.vmem [resolvable:$true] %s313_s26 }
  0x61   : > { %s6917_s13 = scalar_lea.hbm %s9610_s2, 16 }
  0x62   : > { %p6918_p13 = scmp.ne.s32.totalorder %s9610_s2, %s6917_s13  ;;  %p6924_p5 = scmp.lt.u32.totalorder %s6917_s13, %s9610_s2 }
  0x64   : > { %p6920_p0 = pnand %p6918_p13, %p7292_p8 }
  0x66   : > { %p6921_p2 = pneg %p6920_p0 }
  0x68   : > { %p6926_p7 = pnand %p6924_p5, %p6921_p2 }
  0x6a   : > { %6929 = shalt.err (!%p6926_p7)
}
  0x6b   : > { %s6930_s20 = scalar_lea.vmem %s292_s24, 16  ;;  %s6937_s19 = scalar_lea.vmem %s292_s24, 32 }
  0x6c   : > { %p6931_p9 = scmp.ne.s32.totalorder %s292_s24, %s6930_s20  ;;  %p6938_p12 = scmp.lt.s32.totalorder %s292_s24, %s292_s24 }
  0x6d   : > { %p6939_p4 = scmp.lt.s32.totalorder %s6937_s19, %s6930_s20 }
  0x6e   : > { %p6933_p10 = pnand %p6931_p9, %p7292_p8 }
  0x6f   : > { %p6940_p1 = por %p6939_p4, %p6938_p12 }
  0x70   : > { %p6934_p11 = pneg %p6933_p10 }
  0x72   : > { %p6941_p3 = pnand %p6940_p1, %p6934_p11 }
  0x74   : > { %6944 = shalt.err (!%p6941_p3)
}
  0x75   : > { %6203 = dma.hbm_to_vmem [thread:$0]  (!%p7278_p6), %s9610_s2, 16, %s292_s24, [#allocation7]  }
  0x76   : > { %s6945_s23 = scalar_lea.hbm %s9612_s4, 16 }
  0x77   : > { %p6946_p13 = scmp.ne.s32.totalorder %s9612_s4, %s6945_s23  ;;  %p6952_p3 = scmp.lt.u32.totalorder %s6945_s23, %s9612_s4 }
  0x79   : > { %p6948_p0 = pnand %p6946_p13, %p7292_p8 }
  0x7b   : > { %p6949_p1 = pneg %p6948_p0 }
  0x7d   : > { %p6954_p2 = pnand %p6952_p3, %p6949_p1 }
  0x7f   : > { %6957 = shalt.err (!%p6954_p2)
}
  0x80   : > { %s6958_s18 = scalar_lea.vmem %s314_s26, 16  ;;  %s6965_s24 = scalar_lea.vmem %s314_s26, 32 }
  0x81   : > { %p6959_p5 = scmp.ne.s32.totalorder %s314_s26, %s6958_s18  ;;  %p6966_p10 = scmp.lt.s32.totalorder %s314_s26, %s314_s26 }
  0x82   : > { %p6967_p11 = scmp.lt.s32.totalorder %s6965_s24, %s6958_s18 }
  0x83   : > { %p6961_p7 = pnand %p6959_p5, %p7292_p8 }
  0x84   : > { %p6968_p12 = por %p6967_p11, %p6966_p10 }
  0x85   : > { %p6962_p9 = pneg %p6961_p7 }
  0x87   : > { %p6969_p4 = pnand %p6968_p12, %p6962_p9 }
  0x89   : > { %6972 = shalt.err (!%p6969_p4)
}
  0x8a   : > { %6209 = dma.hbm_to_vmem [thread:$0]  (!%p7278_p6), %s9612_s4, 16, %s314_s26, [#allocation10]  }
  0x8b   : > { %s7178_s1 = smov [#allocation14]   ;;  %s6973_s23 = scalar_lea.hbm %s9614_s6, 4096 }
  0x8c   : > { %s336_s22 = sshll.u32 %s7178_s1, 4  ;;  %p6974_p13 = scmp.ne.s32.totalorder %s9614_s6, %s6973_s23  ;;  %s337_s22 = int_to_ptr.vmem [resolvable:$true] %s336_s22 }
  0x8d   : > { %p6980_p3 = scmp.lt.u32.totalorder %s6973_s23, %s9614_s6 }
  0x8e   : > { %p6976_p0 = pnand %p6974_p13, %p7292_p8 }
  0x90   : > { %p6977_p1 = pneg %p6976_p0 }
  0x92   : > { %p6982_p2 = pnand %p6980_p3, %p6977_p1 }
  0x94   : > { %6985 = shalt.err (!%p6982_p2)
}
  0x95   : > { %s6986_s26 = scalar_lea.vmem %s337_s22, 4096  ;;  %p6994_p10 = scmp.lt.s32.totalorder %s337_s22, %s337_s22 }
  0x96   : > { %p6987_p5 = scmp.ne.s32.totalorder %s337_s22, %s6986_s26  ;;  %p6995_p11 = scmp.lt.s32.totalorder %s6986_s26, %s6986_s26 }
  0x98   : > { %p6989_p7 = pnand %p6987_p5, %p7292_p8  ;;  %p6996_p12 = por %p6995_p11, %p6994_p10 }
  0x9a   : > { %p6990_p9 = pneg %p6989_p7 }
  0x9c   : > { %p6997_p4 = pnand %p6996_p12, %p6990_p9 }
  0x9e   : > { %7000 = shalt.err (!%p6997_p4)
}
  0x9f   : > { %s7179_s18 = smov 128   ;;  %s7180_s27 = smov 8  }
  0xa0   : > { %6215 = dma.hbm_to_vmem [thread:$0]  (!%p7278_p6), %s9614_s6, 4096, %s337_s22, [#allocation13], %s7179_s18, %s7179_s18, %s7180_s27  }
  0xa1   : > { %s9621_s19 = sadd.s32 4294967294, %s7169_s12   ;;  %s7420_s1 = sadd.s32 1, %s7169_s12  }
  0xa2   : > { %s36_s3 = ssub.s32 %s7169_s12, %s7420_s1  ;;  %s39_s9 = sadd.s32 1, %s7165_s11 }
  0xa3   : > { %p37_p8 = scmp.eq.s32.totalorder %s36_s3, 0  ;;  %p46_p13 = scmp.ne.s32.totalorder %s7165_s11, %s7161_s10 }
  0xa4   : > { %p47_p0 = scmp.eq.s32.totalorder %s7169_s12, 0  ;;  %p52_p1 = scmp.ne.s32.totalorder %s7161_s10, %s7157_s30 }
  0xa5   : > { %s7431_s23 = scalar_select %p37_p8, %s7165_s11, %s39_s9  }
  0xa6   : > { %p7433_p3 = por %p47_p0, %p46_p13  ;;  %p9775_p2 = scmp.eq.s32.totalorder %s7260_s15, 0 }
  0xa7   : > { %p202_p5 = scmp.eq.s32.totalorder %s7260_s15, 1  ;;  %p208_p7 = scmp.eq.s32.totalorder %s9621_s19, 1 }
  0xa8   : > { %p7439_p6 = por %p9775_p2, %p52_p1  ;;  %p6236_p9 = scmp.lt.s32.totalorder %s7169_s12, 2 }
  0xa9   : > { %s350_s25 = sand.u32 1, %s7165_s11   ;;  %p7448_p10 = por %p202_p5, %p46_p13 }
  0xaa   : > { %p7452_p11 = por %p208_p7, %p52_p1  ;;  %s5042_s13 = sshll.u32 %s350_s25, 7 }
  0xab   : > { %s9777_s28 = scalar_select %p7448_p10, 1, 0 }
  0xac   : > { %s9778_s29 = scalar_select %p7452_p11, 1, 0 }
  0xad   : > { %s5229_s26 = sshll.u32 %s7169_s12, 11  ;;  %s354_s20 = scalar_lea.vmem [#allocation3], %s5042_s13 }
  0xae   : > { %s7460_s24 = scalar_lea.hbm %s9608_s0, %s5229_s26  ;;  %s361_s3 = sshll.u32 %s354_s20, 4  ;;  %s7462_s3 = int_to_ptr.vmem [resolvable:$true] %s361_s3 }
  0xaf   : > { %p7466_p12 = pnand %p6236_p9, %p7433_p3  ;;  %s7470_s19 = scalar_lea.sflag [#allocation4], %s350_s25 }
  0xb0   : > { %s7001_s18 = scalar_lea.hbm %s7460_s24, 2048  ;;  %s7006_s21 = scalar_lea.hbm %s9608_s0, 4096 }
  0xb1   : > { %p7002_p4 = scmp.ne.s32.totalorder %s7460_s24, %s7001_s18  ;;  %p7003_p8 = pneg %p7466_p12 }
  0xb2   : > { %p7007_p1 = scmp.lt.u32.totalorder %s7460_s24, %s9608_s0  ;;  %p7008_p3 = scmp.lt.u32.totalorder %s7006_s21, %s7001_s18 }
  0xb3   : > { %p7004_p13 = pnand %p7003_p8, %p7002_p4  ;;  %p7010_p5 = scmp.lt.u32.totalorder %s7001_s18, %s7460_s24 }
  0xb4   : > { %p7009_p2 = por %p7008_p3, %p7007_p1 }
  0xb5   : > { %p7005_p0 = pneg %p7004_p13 }
  0xb6   : > { %p7011_p7 = por %p7010_p5, %p7009_p2 }
  0xb8   : > { %p7012_p9 = pnand %p7011_p7, %p7005_p0 }
  0xba   : > { %7015 = shalt.err (!%p7012_p9)
}
  0xbb   : > { %s7016_s25 = scalar_lea.vmem %s7462_s3, 2048  ;;  %s7181_s13 = smov [#allocation3]  }
  0xbc   : > { %p7017_p4 = scmp.ne.s32.totalorder %s7462_s3, %s7016_s25  ;;  %s7021_s26 = sshll.u32 %s7181_s13, 4  ;;  %s7022_s26 = int_to_ptr.vmem [resolvable:$false] %s7021_s26 }
  0xbd   : > { %s7023_s27 = scalar_lea.vmem %s7022_s26, 4096  ;;  %p7024_p10 = scmp.lt.s32.totalorder %s7462_s3, %s7022_s26 }
  0xbe   : > { %p7019_p13 = pnand %p7017_p4, %p7003_p8  ;;  %p7025_p1 = scmp.lt.s32.totalorder %s7023_s27, %s7016_s25 }
  0xc0   : > { %p7020_p11 = pneg %p7019_p13  ;;  %p7026_p3 = por %p7025_p1, %p7024_p10 }
  0xc2   : > { %p7027_p2 = pnand %p7026_p3, %p7020_p11 }
  0xc4   : > { %7030 = shalt.err (!%p7027_p2)
}
  0xc5   : > { %6219 = dma.hbm_to_vmem [thread:$0]  (!%p7466_p12), %s7460_s24, 2048, %s7462_s3, %s7470_s19, %s7174_s14, %s7174_s14, %s7175_s17  }
  0xc6   : > { %p9780_p8 = scmp.ne.s32.totalorder %s9769_s16, 0 }
  0xc8   : > { %373 = sbr.rel (%p9780_p8) target bundleno = 979 (0x3d3), region = 48 }
  0xcf   : > { %s7504_s18 = sand.u32 1, %s7161_s10  }
  0xd0   : > { %s5046_s21 = sshll.u32 %s7504_s18, 7  ;;  %s376_s20 = scalar_lea.sflag [#allocation4], %s7504_s18 }
  0xd1   : > { %s7510_s9 = scalar_lea.vmem [#allocation3], %s5046_s21 }
  0xd2   : > { %7132 = dma.done.wait (%p7439_p6), %s376_s20, 2048  }
  0xd3   : > { %7134 = vsyncadd (%p7439_p6), %s376_s20, 4294965248  ;;  %p9781_p10 = scmp.eq.s32.totalorder %s7260_s15, 0 }
  0xd5   : > { %7136 = dma.done.wait (%p9781_p10), [#allocation7], 32   ;;  %p9782_p11 = pmov %p9781_p10 }
  0xd6   : > { %p9783_p12 = pmov %p9781_p10 }
  0xd7   : > { %7138 = vsyncadd (%p9782_p11), [#allocation7], 4294967264 }
  0xd8   : > { %7140 = dma.done.wait (%p9783_p12), [#allocation10], 32   ;;  %p9784_p0 = pmov %p9781_p10 }
  0xda   : > { %7142 = vsyncadd (%p9784_p0), [#allocation10], 4294967264  ;;  %p9785_p5 = pmov %p9784_p0 }
  0xdb   : > { %p9786_p7 = pmov %p9784_p0 }
  0xdc   : > { %7144 = dma.done.wait (%p9785_p5), [#allocation13], 13312  }
  0xdd   : > { %7146 = vsyncadd (%p9786_p7), [#allocation13], 4294953984  ;;  %v7182_v0 = vmov 0   ;;  %v7528_v1 = vld [vmem:[#allocation14 + $0x30] sm:$0xff]  ;;  %v7530_v2 = vld [vmem:[#allocation14 + $0x38] sm:$0xff]  ;;  %v7183_v6 = vmov 0.0   ;;  %v528_v47 = vlaneseq }
  0xde   : > { %6301 = vset.pattern.permute.xlu0 %v7182_v0  ;;  %6290 = vset.pattern.permute.xlu1 %v7182_v0  ;;  %v7532_v3 = vld [vmem:[#allocation14 + $0x10] sm:$0xff]  ;;  %vm898_vm0 = vcmp.ge.s32.totalorder %v7528_v1, 1  ;;  %vm899_vm1 = vcmp.ge.s32.totalorder %v7530_v2, 1  ;;  %v7536_v4 = vld [vmem:[#allocation14 + $0x18] sm:$0xff]  ;;  %v7546_v10 = vld [vmem:[#allocation14 + $0x20] sm:$0xff]  ;;  %s9426_s16 = scalar_lea.vmem [#allocation15], %s5046_s21 }
  0xdf   : > { %v7538_v5 = vld [vmem:[#allocation14 + $0x50] sm:$0xff]  ;;  %v5060_v7 = vsel %vm898_vm0, 1.0, %v7183_v6  ;;  %v5061_v8 = vsel %vm899_vm1, 1.0, %v7183_v6  ;;  %vm894_vm2 = vcmp.ge.s32.totalorder %v7532_v3, 1  ;;  %vm895_vm3 = vcmp.ge.s32.totalorder %v7536_v4, 1  ;;  %v7544_v9 = vld [vmem:[#allocation14 + $0x58] sm:$0xff] }
  0xe0   : > { %v7548_v11 = vpack.i.bf16 %v5061_v8, %v5060_v7  ;;  %v5056_v12 = vsel %vm894_vm2, 1.0, %v7183_v6  ;;  %v5057_v13 = vsel %vm895_vm3, 1.0, %v7183_v6  ;;  %v7552_v14 = vld [vmem:[#allocation14 + $0x28] sm:$0xff]  ;;  %v7554_v15 = vld [vmem:[#allocation14 + $0x40] sm:$0xff]  ;;  %vm902_vm4 = vcmp.ge.s32.totalorder %v7538_v5, 1  ;;  %v7596_v33 = vld [vmem:[#allocation14 + $0x70] sm:$0xff] }
  0xe1   : > { %v7556_v16 = vpack.i.bf16 %v5057_v13, %v5056_v12  ;;  %vm903_vm5 = vcmp.ge.s32.totalorder %v7544_v9, 1  ;;  %v7560_v17 = vld [vmem:[#allocation14 + $0x48] sm:$0xff]  ;;  %v7562_v18 = vld [vmem:[#allocation14] sm:$0xff]  ;;  %v5064_v19 = vsel %vm902_vm4, 1.0, %v7183_v6  ;;  %vm896_vm6 = vcmp.ge.s32.totalorder %v7546_v10, 1  ;;  %v7600_v35 = vld [vmem:[#allocation14 + $0x78] sm:$0xff] }
  0xe2   : > { %6303 = vperm.xlu0 %6301, %v7548_v11   ;;  %v5065_v20 = vsel %vm903_vm5, 1.0, %v7183_v6  ;;  %vm897_vm7 = vcmp.ge.s32.totalorder %v7552_v14, 1  ;;  %v7569_v21 = vld [vmem:[#allocation14 + $0x60] sm:$0xff]  ;;  %v7571_v22 = vld [vmem:[#allocation14 + $0x68] sm:$0xff]  ;;  %v5058_v24 = vsel %vm896_vm6, 1.0, %v7183_v6  ;;  %vm900_vm8 = vcmp.ge.s32.totalorder %v7554_v15, 1 }
  0xe3   : > { %6292 = vperm.xlu1 %6290, %v7556_v16   ;;  %v7574_v23 = vpack.i.bf16 %v5065_v20, %v5064_v19  ;;  %v5059_v25 = vsel %vm897_vm7, 1.0, %v7183_v6  ;;  %vm901_vm9 = vcmp.ge.s32.totalorder %v7560_v17, 1  ;;  %v5062_v27 = vsel %vm900_vm8, 1.0, %v7183_v6  ;;  %v7584_v28 = vld [vmem:[#allocation14 + $0x8] sm:$0xff]  ;;  %v7586_v29 = vld [vmem:[#allocation14 + $0x80] sm:$0xff]  ;;  %v7619_v42 = vld [vmem:[#allocation14 + $0x90] sm:$0xff] }
  0xe4   : > { %v7579_v26 = vpack.i.bf16 %v5059_v25, %v5058_v24  ;;  %vm892_vm10 = vcmp.ge.s32.totalorder %v7562_v18, 1  ;;  %v7588_v30 = vld [vmem:[#allocation14 + $0x88] sm:$0xff]  ;;  %v5063_v31 = vsel %vm901_vm9, 1.0, %v7183_v6  ;;  %vm904_vm11 = vcmp.ge.s32.totalorder %v7569_v21, 1  ;;  %v7614_v40 = vld [vmem:[#allocation14 + $0xa0] sm:$0xff]  ;;  %v7621_v43 = vld [vmem:[#allocation14 + $0x98] sm:$0xff] }
  0xe5   : > { %v7592_v32 = vsel %vm892_vm10, 1.0, %v7183_v6  ;;  %vm905_vm12 = vcmp.ge.s32.totalorder %v7571_v22, 1  ;;  %v7603_v36 = vpack.i.bf16 %v5063_v31, %v5062_v27  ;;  %vm893_vm13 = vcmp.ge.s32.totalorder %v7584_v28, 1  ;;  %v7616_v41 = vld [vmem:[#allocation14 + $0xa8] sm:$0xff]  ;;  %v7632_v51 = vld [vmem:[#allocation14 + $0xc0] sm:$0xff]  ;;  %v7634_v52 = vld [vmem:[#allocation14 + $0xb0] sm:$0xff] }
  0xe6   : > { %6313 = vperm.xlu0 %6301, %v7574_v23   ;;  %v1149_v34 = vmul.f32 0.0, %v7592_v32  ;;  %vm908_vm14 = vcmp.ge.s32.totalorder %v7586_v29, 1  ;;  %vm909_vm15 = vcmp.ge.s32.totalorder %v7588_v30, 1  ;;  %v5066_v37 = vsel %vm904_vm11, 1.0, %v7183_v6  ;;  %v7636_v53 = vld [vmem:[#allocation14 + $0xb8] sm:$0xff]  ;;  %v6752_v54 = vld [vmem:[#allocation12 + $0x40] sm:$0xff]  }
  0xe7   : > { %6297 = vperm.xlu1 %6290, %v7579_v26   ;;  %v5067_v38 = vsel %vm905_vm12, 1.0, %v7183_v6  ;;  %v7611_v39 = vsel %vm893_vm13, 1.0, %v7183_v6  ;;  %vm906_vm0 = vcmp.ge.s32.totalorder %v7596_v33, 1  ;;  %vm907_vm1 = vcmp.ge.s32.totalorder %v7600_v35, 1  ;;  %v7641_v55 = vld [vmem:[#allocation14 + $0xc8] sm:$0xff]  ;;  %v7643_v56 = vld [vmem:[#allocation14 + $0xe0] sm:$0xff]  ;;  %5437 = vmatprep.subr.bf16.mxu0 %v6752_v54 }
  0xe8   : > { %v1150_v44 = vmul.f32 0.0, %v7611_v39  ;;  %v5070_v45 = vsel %vm908_vm14, 1.0, %v7183_v6  ;;  %v5071_v46 = vsel %vm909_vm15, 1.0, %v7183_v6  ;;  %v7627_v48 = vpack.i.bf16 %v5067_v38, %v5066_v37  ;;  %v6753_v57 = vld [vmem:[#allocation12] sm:$0xff]   ;;  %v7645_v58 = vld [vmem:[#allocation14 + $0xe8] sm:$0xff]  ;;  %v7652_v62 = vld [vmem:[#allocation14 + $0xd0] sm:$0xff] }
  0xe9   : > { %v5068_v49 = vsel %vm906_vm0, 1.0, %v7183_v6  ;;  %v5069_v50 = vsel %vm907_vm1, 1.0, %v7183_v6  ;;  %vm912_vm2 = vcmp.ge.s32.totalorder %v7614_v40, 1  ;;  %vm913_vm3 = vcmp.ge.s32.totalorder %v7616_v41, 1  ;;  %v6754_v59 = vld [vmem:[#allocation12 + $0x48] sm:$0xff]   ;;  %v7654_v63 = vld [vmem:[#allocation14 + $0xd8] sm:$0xff]  ;;  %5438 = vmatpush3.bf16.msra.mxu0 %v6753_v57 }
  0xea   : > { %1183 = vperm.xlu0 %6301, %v1149_v34   ;;  %9787 = vst [vmem:[#allocation25_spill] sm:$0xff] %v7627_v48  ;;  %vm910_vm4 = vcmp.ge.s32.totalorder %v7619_v42, 1  ;;  %vm911_vm5 = vcmp.ge.s32.totalorder %v7621_v43, 1  ;;  %v7647_v60 = vpack.i.bf16 %v5069_v50, %v5068_v49  ;;  %v5074_v61 = vsel %vm912_vm2, 1.0, %v7183_v6  ;;  %5439 = vmatprep.subr.bf16.mxu0 %v6754_v59  ;;  %v6755_v19 = vld [vmem:[#allocation12 + $0x8] sm:$0xff]   ;;  %v6756_v20 = vld [vmem:[#allocation12 + $0x50] sm:$0xff]  }
  0xeb   : > { %6308 = vperm.xlu1 %6290, %v7603_v36   ;;  %v7656_v0 = vshrl.u32 %v528_v47, 7  ;;  %v7659_v7 = vpack.i.bf16 %v5071_v46, %v5070_v45  ;;  %v5075_v8 = vsel %vm913_vm3, 1.0, %v7183_v6  ;;  %v5072_v12 = vsel %vm910_vm4, 1.0, %v7183_v6  ;;  %v7675_v24 = vld [vmem:[#allocation14 + $0xf0] sm:$0xff]  ;;  %v7677_v25 = vld [vmem:[#allocation14 + $0xf8] sm:$0xff]  ;;  %s5262_s14 = sshll.u32 %s7260_s15, 11 }
  0xec   : > { %9788 = vst [vmem:[#allocation26_spill] sm:$0xff] %v7647_v60  ;;  %v5073_v13 = vsel %vm911_vm5, 1.0, %v7183_v6  ;;  %vm916_vm6 = vcmp.ge.s32.totalorder %v7632_v51, 1  ;;  %vm914_vm7 = vcmp.ge.s32.totalorder %v7634_v52, 1  ;;  %vm915_vm8 = vcmp.ge.s32.totalorder %v7636_v53, 1  ;;  %v6757_v31 = vld [vmem:[#allocation12 + $0x10] sm:$0xff]   ;;  %s9490_s24 = scalar_lea.hbm %s9615_s7, %s5262_s14 }
  0xed   : > { %9789 = vst [vmem:[#allocation27_spill] sm:$0xff] %v7659_v7  ;;  %vm917_vm9 = vcmp.ge.s32.totalorder %v7641_v55, 1  ;;  %vm920_vm10 = vcmp.ge.s32.totalorder %v7643_v56, 1  ;;  %v7680_v27 = vpack.i.bf16 %v5073_v13, %v5072_v12  ;;  %vm921_vm11 = vcmp.ge.s32.totalorder %v7645_v58, 1  ;;  %5440 = vmatpush3.bf16.msra.mxu0 %v6755_v19  ;;  %v6758_v45 = vld [vmem:[#allocation12 + $0x58] sm:$0xff]   ;;  %s4824_s17 = sshll.u32 %s9426_s16, 4  ;;  %s9492_s17 = int_to_ptr.vmem [resolvable:$true] %s4824_s17 }
  0xee   : > { %1188 = vperm.xlu0 %6301, %v1150_v44   ;;  %vm918_vm12 = vcmp.ge.s32.totalorder %v7652_v62, 1  ;;  %vm919_vm13 = vcmp.ge.s32.totalorder %v7654_v63, 1  ;;  %v7686_v34 = vpack.i.bf16 %v5075_v8, %v5074_v61  ;;  %v5078_v37 = vsel %vm916_vm6, 1.0, %v7183_v6  ;;  %5441 = vmatprep.subr.bf16.mxu0 %v6756_v20  ;;  %v6759_v59 = vld [vmem:[#allocation12 + $0x18] sm:$0xff]   ;;  %s4803_s3 = scalar_lea.sflag [#allocation5], %s7504_s18  ;;  %s7031_s25 = scalar_lea.vmem %s9492_s17, 2048 }
  0xef   : > { %6318 = vperm.xlu1 %6290, %v7627_v48   ;;  %9790 = vst [vmem:[#allocation28_spill] sm:$0xff] %v7680_v27  ;;  %v5076_v38 = vsel %vm914_vm7, 1.0, %v7183_v6  ;;  %v5077_v44 = vsel %vm915_vm8, 1.0, %v7183_v6  ;;  %v5079_v46 = vsel %vm917_vm9, 1.0, %v7183_v6  ;;  %vm988_vm14 = vcmp.lt.s32.totalorder %v7562_v18, 15  ;;  %p7032_p6 = scmp.ne.s32.totalorder %s9492_s17, %s7031_s25  ;;  %p10076_p9 = scmp.ne.s32.totalorder %s9777_s28, 0 }
  0xf0   : > { %9791 = vst [vmem:[#allocation29_spill] sm:$0xff] %v7686_v34  ;;  %vm922_vm15 = vcmp.ge.s32.totalorder %v7675_v24, 1  ;;  %vm923_vm0 = vcmp.ge.s32.totalorder %v7677_v25, 1  ;;  %v5082_v47 = vsel %vm920_vm10, 1.0, %v7183_v6  ;;  %v5083_v49 = vsel %vm921_vm11, 1.0, %v7183_v6  ;;  %s7184_s13 = smov [#allocation15]  }
  0xf1   : > { %v5080_v50 = vsel %vm918_vm12, 1.0, %v7183_v6  ;;  %v5081_v54 = vsel %vm919_vm13, 1.0, %v7183_v6  ;;  %vm994_vm1 = vcmp.lt.s32.totalorder %v7528_v1, 15  ;;  %vm990_vm2 = vcmp.lt.s32.totalorder %v7532_v3, 15  ;;  %5442 = vmatpush3.bf16.msra.mxu0 %v6757_v31  ;;  %p7033_p4 = pnand %p7032_p6, %p10076_p9  ;;  %s7035_s26 = sshll.u32 %s7184_s13, 4  ;;  %s7036_s26 = int_to_ptr.vmem [resolvable:$false] %s7035_s26 }
  0xf2   : > { %6323 = vperm.xlu0 %6301, %v7647_v60   ;;  %v7718_v57 = vpack.i.bf16 %v5077_v44, %v5076_v38  ;;  %vm989_vm3 = vcmp.lt.s32.totalorder %v7584_v28, 15  ;;  %v7722_v61 = vpack.i.bf16 %v5079_v46, %v5078_v37  ;;  %v7727_v8 = vsel %vm988_vm14, 1.0, %v7183_v6  ;;  %5443 = vmatprep.subr.bf16.mxu0 %v6758_v45  ;;  %v6760_v37 = vld [vmem:[#allocation12 + $0x60] sm:$0xff]   ;;  %s7037_s27 = scalar_lea.vmem %s7036_s26, 4096  ;;  %p7038_p1 = scmp.lt.s32.totalorder %s9492_s17, %s7036_s26 }
  0xf3   : > { %6328 = vperm.xlu1 %6290, %v7659_v7   ;;  %v7732_v12 = vsel %vm922_vm15, 1.0, %v7183_v6  ;;  %v7737_v28 = vsel %vm923_vm0, 1.0, %v7183_v6  ;;  %vm995_vm4 = vcmp.lt.s32.totalorder %v7530_v2, 15  ;;  %vm991_vm5 = vcmp.lt.s32.totalorder %v7536_v4, 15  ;;  %p7034_p13 = pneg %p7033_p4  ;;  %p7039_p3 = scmp.lt.s32.totalorder %s7037_s27, %s7031_s25 }
  0xf4   : > { %9792 = vst [vmem:[#allocation30_spill] sm:$0xff] %v7718_v57  ;;  %9793 = vst [vmem:[#allocation31_spill] sm:$0xff] %v7722_v61  ;;  %v7741_v13 = vpack.i.bf16 %v5083_v49, %v5082_v47  ;;  %v7743_v18 = vpack.i.bf16 %v5081_v54, %v5080_v50  ;;  %v7746_v19 = vsel %vm989_vm3, 1.0, %v7183_v6  ;;  %vm992_vm6 = vcmp.lt.s32.totalorder %v7546_v10, 15  ;;  %v6761_v47 = vld [vmem:[#allocation12 + $0x20] sm:$0xff]   ;;  %v6764_v49 = vld [vmem:[#allocation12 + $0x70] sm:$0xff]  }
  0xf5   : > { %9794 = vst [vmem:[#allocation32_spill] sm:$0xff] %v7732_v12  ;;  %9795 = vst [vmem:[#allocation33_spill] sm:$0xff] %v7737_v28  ;;  %vm993_vm7 = vcmp.lt.s32.totalorder %v7552_v14, 15  ;;  %vm998_vm8 = vcmp.lt.s32.totalorder %v7538_v5, 15  ;;  %v1470_v20 = vmul.f32 0.0, %v7727_v8  ;;  %v7755_v4 = vpack.i.bf16 %v7737_v28, %v7732_v12  ;;  %5444 = vmatpush3.bf16.msra.mxu0 %v6759_v59  ;;  %v6762_v5 = vld [vmem:[#allocation12 + $0x68] sm:$0xff]   ;;  %p7040_p2 = por %p7039_p3, %p7038_p1 }
  0xf6   : > { %6333 = vperm.xlu0 %6301, %v7680_v27   ;;  %9796 = vst [vmem:[#allocation34_spill] sm:$0xff] %v7741_v13  ;;  %9797 = vst [vmem:[#allocation35_spill] sm:$0xff] %v7743_v18  ;;  %v5088_v31 = vsel %vm990_vm2, 1.0, %v7183_v6  ;;  %vm999_vm9 = vcmp.lt.s32.totalorder %v7544_v9, 15  ;;  %v5089_v38 = vsel %vm991_vm5, 1.0, %v7183_v6  ;;  %v5092_v44 = vsel %vm994_vm1, 1.0, %v7183_v6  ;;  %5445 = vmatprep.subr.bf16.mxu0 %v6760_v37 }
  0xf7   : > { %6338 = vperm.xlu1 %6290, %v7686_v34   ;;  %v5093_v45 = vsel %vm995_vm4, 1.0, %v7183_v6  ;;  %vm996_vm10 = vcmp.lt.s32.totalorder %v7554_v15, 15  ;;  %v1471_v3 = vmul.f32 0.0, %v7746_v19  ;;  %v5090_v9 = vsel %vm992_vm6, 1.0, %v7183_v6  ;;  %v6765_v59 = vld [vmem:[#allocation12 + $0x30] sm:$0xff]   ;;  %v8001_v12 = vld [vmem:[%s7510_s9 + $0x60] sm:$0xff]   ;;  %p7041_p8 = pnand %p7040_p2, %p7034_p13 }
  0xf8   : > { %v5091_v46 = vsel %vm993_vm7, 1.0, %v7183_v6  ;;  %v5096_v1 = vsel %vm998_vm8, 1.0, %v7183_v6  ;;  %v5097_v2 = vsel %vm999_vm9, 1.0, %v7183_v6  ;;  %vm997_vm11 = vcmp.lt.s32.totalorder %v7560_v17, 15  ;;  %v8004_v28 = vld [vmem:[%s7510_s9 + $0x68] sm:$0xff]  }
  0xf9   : > { %vm1006_vm12 = vcmp.lt.s32.totalorder %v7619_v42, 15  ;;  %vm1007_vm13 = vcmp.lt.s32.totalorder %v7621_v43, 15  ;;  %v5094_v10 = vsel %vm996_vm10, 1.0, %v7183_v6  ;;  %vm1004_vm14 = vcmp.lt.s32.totalorder %v7586_v29, 15  ;;  %5446 = vmatpush3.bf16.msra.mxu0 %v6761_v47 }
  0xfa   : > { %6343 = vperm.xlu0 %6301, %v7718_v57   ;;  %vm1005_vm15 = vcmp.lt.s32.totalorder %v7588_v30, 15  ;;  %vm1010_vm0 = vcmp.lt.s32.totalorder %v7634_v52, 15  ;;  %vm1011_vm1 = vcmp.lt.s32.totalorder %v7636_v53, 15  ;;  %vm1008_vm2 = vcmp.lt.s32.totalorder %v7614_v40, 15  ;;  %5447 = vmatprep.subr.bf16.mxu0 %v6762_v5  ;;  %v6763_v40 = vld [vmem:[#allocation12 + $0x28] sm:$0xff]  }
  0xfb   : > { %6348 = vperm.xlu1 %6290, %v7722_v61   ;;  %vm1009_vm3 = vcmp.lt.s32.totalorder %v7616_v41, 15  ;;  %v5095_v14 = vsel %vm997_vm11, 1.0, %v7183_v6  ;;  %v5104_v15 = vsel %vm1006_vm12, 1.0, %v7183_v6  ;;  %v5105_v17 = vsel %vm1007_vm13, 1.0, %v7183_v6 }
  0xfc   : > { %vm1014_vm4 = vcmp.lt.s32.totalorder %v7652_v62, 15  ;;  %v5102_v29 = vsel %vm1004_vm14, 1.0, %v7183_v6  ;;  %v5103_v30 = vsel %vm1005_vm15, 1.0, %v7183_v6  ;;  %v7800_v42 = vsel %vm1010_vm0, 1.0, %v7183_v6 }
  0xfd   : > { %v7804_v41 = vsel %vm1011_vm1, 1.0, %v7183_v6  ;;  %v5106_v43 = vsel %vm1008_vm2, 1.0, %v7183_v6  ;;  %v5107_v52 = vsel %vm1009_vm3, 1.0, %v7183_v6  ;;  %vm1015_vm5 = vcmp.lt.s32.totalorder %v7654_v63, 15  ;;  %5448 = vmatpush3.bf16.msra.mxu0 %v6763_v40 }
  0xfe   : > { %6353 = vperm.xlu0 %6301, %v7743_v18   ;;  %v7809_v53 = vpack.i.bf16 %v5089_v38, %v5088_v31  ;;  %v7812_v62 = vsel %vm1014_vm4, 1.0, %v7183_v6  ;;  %vm1012_vm6 = vcmp.lt.s32.totalorder %v7632_v51, 15  ;;  %vm1013_vm7 = vcmp.lt.s32.totalorder %v7641_v55, 15  ;;  %5449 = vmatprep.subr.bf16.mxu0 %v6764_v49  ;;  %v6766_v31 = vld [vmem:[#allocation12 + $0x78] sm:$0xff]   ;;  %v6772_v49 = vld [vmem:[#allocation12 + $0xa0] sm:$0xff]  }
  0xff   : > { %6358 = vperm.xlu1 %6290, %v7741_v13   ;;  %v7816_v50 = vpack.i.bf16 %v5093_v45, %v5092_v44  ;;  %v5113_v54 = vsel %vm1015_vm5, 1.0, %v7183_v6  ;;  %v7819_v37 = vpack.i.bf16 %v5091_v46, %v5090_v9  ;;  %v7821_v63 = vpack.i.bf16 %v5097_v2, %v5096_v1  ;;  %v6767_v45 = vld [vmem:[#allocation12 + $0x38] sm:$0xff]   ;;  %v6768_v1 = vld [vmem:[#allocation12 + $0x80] sm:$0xff]   ;;  %v6769_v2 = vld [vmem:[#allocation12 + $0x88] sm:$0xff]  }
 0x100   : > { %vm1018_vm8 = vcmp.lt.s32.totalorder %v7675_v24, 15  ;;  %v7826_v51 = vpack.i.bf16 %v5095_v14, %v5094_v10  ;;  %v5111_v55 = vsel %vm1013_vm7, 1.0, %v7183_v6  ;;  %vm1000_vm9 = vcmp.lt.s32.totalorder %v7569_v21, 15  ;;  %v449_v9 = vld [vmem:[#allocation6] sm:$0x1]  ;;  %5989 = vmatprep.subr.bf16.mxu1 %v6768_v1  ;;  %v6770_v14 = vld [vmem:[#allocation12 + $0x90] sm:$0xff]  }
 0x101   : > { %9798 = vst [vmem:[#allocation36_spill] sm:$0xff] %v7821_v63  ;;  %vm1001_vm10 = vcmp.lt.s32.totalorder %v7571_v22, 15  ;;  %vm1019_vm11 = vcmp.lt.s32.totalorder %v7677_v25, 15  ;;  %v5098_v38 = vsel %vm1000_vm9, 1.0, %v7183_v6  ;;  %5450 = vmatpush3.bf16.msra.mxu0 %v6765_v59  ;;  %vm1002_vm12 = vcmp.lt.s32.totalorder %v7596_v33, 15  ;;  %5997 = vmatpush3.bf16.msra.mxu1 %v6768_v1  ;;  %v5408_v59 = vld [vmem:[%s7510_s9 + $0x10] sm:$0xff]  }
 0x102   : > { %6363 = vperm.xlu0 %6301, %v7755_v4   ;;  %v5099_v44 = vsel %vm1001_vm10, 1.0, %v7183_v6  ;;  %vm1003_vm13 = vcmp.lt.s32.totalorder %v7600_v35, 15  ;;  %5451 = vmatprep.subr.bf16.mxu0 %v6766_v31  ;;  %v5100_v21 = vsel %vm1002_vm12, 1.0, %v7183_v6  ;;  %v7843_v46 = vpack.i.bf16 %v7746_v19, %v7727_v8  ;;  %v451_v35 = vld [vmem:[#allocation8] sm:$0x1] }
 0x103   : > { %1504 = vperm.xlu1 %6290, %v1470_v20   ;;  %v5110_v20 = vsel %vm1012_vm6, 1.0, %v7183_v6  ;;  %v5101_v22 = vsel %vm1003_vm13, 1.0, %v7183_v6  ;;  %v7850_v33 = vpack.i.bf16 %v7611_v39, %v7592_v32  ;;  %v7852_v10 = vpack.i.bf16 %v5105_v17, %v5104_v15  ;;  %5990 = vmatprep.subr.bf16.mxu1 %v6769_v2  ;;  %v7907_v31 = vld [vmem:[%s7510_s9] sm:$0xff]  }
 0x104   : > { %v7846_v47 = vpack.i.bf16 %v5101_v22, %v5100_v21  ;;  %v7854_v5 = vpack.i.bf16 %v5103_v30, %v5102_v29  ;;  %vm1016_vm14 = vcmp.lt.s32.totalorder %v7643_v56, 15  ;;  %v7858_v8 = vmul.f32 0.001953125, %v449_v9  ;;  %v6771_v30 = vld [vmem:[#allocation12 + $0x98] sm:$0xff]  }
 0x105   : > { %5452 = vmatpush3.bf16.msra.mxu0 %v6767_v45  ;;  %v452_v19 = vmul.f32 0.001953125, %v451_v35  ;;  %v7864_v32 = vsel %vm1018_vm8, 1.0, %v7183_v6  ;;  %v7868_v15 = vpack.i.bf16 %v5107_v52, %v5106_v43  ;;  %v7873_v56 = vsel %vm1019_vm11, 1.0, %v7183_v6  ;;  %5998 = vmatpush3.bf16.msra.mxu1 %v6769_v2  ;;  %v5410_v45 = vld [vmem:[%s7510_s9 + $0x20] sm:$0xff]  }
 0x106   : > { %1509 = vperm.xlu0 %6301, %v1471_v3   ;;  %v7834_v3 = vpack.i.bf16 %v5099_v44, %v5098_v38  ;;  %9799 = vst [vmem:[#allocation37_spill] sm:$0xff] %v7864_v32  ;;  %v453_v39 = vmul.f32 %v7858_v8, %v7858_v8  ;;  %5845 = vmatprep.subr.bf16.mxu0 %v6768_v1  ;;  %9800 = vst [vmem:[#allocation38_spill] sm:$0xff] %v7873_v56  ;;  %vm1017_vm15 = vcmp.lt.s32.totalorder %v7645_v58, 15  ;;  %v7910_v38 = vld [vmem:[%s7510_s9 + $0x78] sm:$0xff]   ;;  %v460_v21 = vld [vmem:[#allocation11] sm:$0x1] }
 0x107   : > { %6368 = vperm.xlu1 %6290, %v7809_v53   ;;  %v5114_v17 = vsel %vm1016_vm14, 1.0, %v7183_v6  ;;  %v7880_v29 = vpack.i.bf16 %v7804_v41, %v7800_v42  ;;  %v7884_v40 = vpack.i.bf16 %v5113_v54, %v7812_v62  ;;  %5991 = vmatprep.subr.bf16.mxu1 %v6770_v14  ;;  %v5115_v25 = vsel %vm1017_vm15, 1.0, %v7183_v6  ;;  %v6773_v62 = vld [vmem:[#allocation12 + $0xa8] sm:$0xff]   ;;  %v6774_v54 = vld [vmem:[#allocation12 + $0xb0] sm:$0xff]   ;;  %v7917_v22 = vld [vmem:[#allocation12 + $0xb8] sm:$0xff]  }
 0x108   : > { %v454_v24 = vsub.f32 %v452_v19, %v453_v39  ;;  %v7887_v43 = vpack.i.bf16 %v5111_v55, %v5110_v20  ;;  %v7889_v52 = vpack.i.bf16 %v5115_v25, %v5114_v17  ;;  %v7895_v41 = vpack.i.bf16 %v7873_v56, %v7864_v32  ;;  %v458_v20 = vld [vmem:[#allocation9] sm:$0x1]  ;;  %v7904_v55 = vld [vmem:[%s7510_s9 + $0x8] sm:$0xff]   ;;  %v7913_v44 = vld [vmem:[%s7510_s9 + $0x18] sm:$0xff]   ;;  %9805 = vst [vmem:[#allocation43_spill] sm:$0xff] %v7917_v22 }
 0x109   : > { %9801 = vst [vmem:[#allocation39_spill] sm:$0xff] %v7884_v40  ;;  %5999 = vmatpush3.bf16.msra.mxu1 %v6770_v14  ;;  %v530_v6 = vsub.s32 0, %v7656_v0  ;;  %v5273_v35 = vunpack.c.l.bf16 %v5408_v59  ;;  %v5274_v2 = vunpack.c.h.bf16 %v5408_v59  ;;  %v7921_v19 = vld [vmem:[%s7510_s9 + $0x70] sm:$0xff]   ;;  %v5278_v14 = vunpack.c.h.bf16 %v7913_v44  ;;  %v7929_v25 = vld [vmem:[%s7510_s9 + $0x28] sm:$0xff]   ;;  %v7940_v59 = vld [vmem:[%s7510_s9 + $0x38] sm:$0xff]  }
 0x10a   : > { %6373 = vperm.xlu0 %6301, %v7819_v37   ;;  %v455_v58 = vmax.f32 %v454_v24, 0.0  ;;  %9802 = vst [vmem:[#allocation40_spill] sm:$0xff] %v7887_v43  ;;  %9803 = vst [vmem:[#allocation41_spill] sm:$0xff] %v7889_v52  ;;  %5992 = vmatprep.subr.bf16.mxu1 %v6771_v30  ;;  %vm1116_vm0 = vcmp.lt.s32.totalorder %v7656_v0, 1  ;;  %v7947_v17 = vld [vmem:[%s7510_s9 + $0x40] sm:$0xff]   ;;  %v5277_v56 = vunpack.c.l.bf16 %v7913_v44  ;;  %vm1437_vm1 = vcmp.lt.s32.totalorder %v7656_v0, 7 }
 0x10b   : > { %6378 = vperm.xlu1 %6290, %v7816_v50   ;;  %9804 = vst [vmem:[#allocation42_spill] sm:$0xff] %v7895_v41 }
 0x10c   : > { %v456_v42 = vadd.f32 1e-05, %v455_v58  ;;  %v7963_v58 = vld [vmem:[%s7510_s9 + $0x50] sm:$0xff]  }
 0x10d   : > { %6000 = vmatpush3.bf16.msra.mxu1 %v6771_v30  ;;  %v5281_v30 = vunpack.c.l.bf16 %v5410_v45 }
 0x10e   : > { %6383 = vperm.xlu0 %6301, %v7826_v51   ;;  %6824 = vrsqrt.f32 %v456_v42  ;;  %5993 = vmatprep.subr.bf16.mxu1 %v6772_v49  ;;  %v5326_v42 = vunpack.c.h.bf16 %v7910_v38 }
 0x10f   : > { %6388 = vperm.xlu1 %6290, %v7821_v63  }
 0x111   : > { %6001 = vmatpush3.bf16.msra.mxu1 %v6772_v49  ;;  %v7950_v49 = vld [vmem:[%s7510_s9 + $0x48] sm:$0xff]  }
 0x112   : > { %6393 = vperm.xlu0 %6301, %v7854_v5   ;;  %5994 = vmatprep.subr.bf16.mxu1 %v6773_v62 }
 0x113   : > { %6398 = vperm.xlu1 %6290, %v7852_v10  }
 0x115   : > { %6002 = vmatpush3.bf16.msra.mxu1 %v6773_v62  ;;  %v7937_v62 = vld [vmem:[%s7510_s9 + $0x30] sm:$0xff]  }
 0x116   : > { %6403 = vperm.xlu0 %6301, %v7868_v15   ;;  %5995 = vmatprep.subr.bf16.mxu1 %v6774_v54  ;;  %v5290_v32 = vunpack.c.h.bf16 %v7937_v62 }
 0x117   : > { %6408 = vperm.xlu1 %6290, %v7880_v29  }
 0x118   : > { %v6825_v9 = vpop.eup %6824 }
 0x119   : > { %v459_v1 = vmul.f32 %v6825_v9, %v458_v20  ;;  %6003 = vmatpush3.bf16.msra.mxu1 %v6774_v54  ;;  %v5286_v54 = vunpack.c.h.bf16 %v7929_v25 }
 0x11a   : > { %6413 = vperm.xlu0 %6301, %v7887_v43   ;;  %5996 = vmatprep.subr.bf16.mxu1 %v7917_v22 }
 0x11b   : > { %6418 = vperm.xlu1 %6290, %v7884_v40   ;;  %v461_v39 = vmul.f32 %v459_v1, %v7858_v8  ;;  %v7926_v24 = vrot.slane %v459_v1, %v530_v6  ;;  %v5282_v8 = vunpack.c.h.bf16 %v5410_v45 }
 0x11d   : > { %v462_v20 = vsub.f32 %v460_v21, %v461_v39  ;;  %v537_v9 = vmul.f32 %v5273_v35, %v7926_v24  ;;  %v538_v1 = vmul.f32 %v5274_v2, %v7926_v24  ;;  %v540_v45 = vmul.f32 %v5278_v14, %v7926_v24  ;;  %v6776_v14 = vld [vmem:[#allocation12 + $0x100] sm:$0xff]   ;;  %6004 = vmatpush3.bf16.msra.mxu1 %v7917_v22 }
 0x11e   : > { %6423 = vperm.xlu0 %6301, %v7889_v52   ;;  %v541_v35 = vmul.f32 %v5281_v30, %v7926_v24  ;;  %v5325_v2 = vunpack.c.l.bf16 %v7910_v38  ;;  %v5285_v39 = vunpack.c.l.bf16 %v7929_v25  ;;  %v542_v44 = vmul.f32 %v5282_v8, %v7926_v24  ;;  %5573 = vmatprep.subr.bf16.mxu1 %v6776_v14 }
 0x11f   : > { %6428 = vperm.xlu1 %6290, %v7895_v41   ;;  %v7957_v21 = vrot.slane %v462_v20, %v530_v6  ;;  %v5293_v6 = vunpack.c.l.bf16 %v7940_v59  ;;  %v7971_v20 = vld [vmem:[%s7510_s9 + $0x58] sm:$0xff]   ;;  %v539_v14 = vmul.f32 %v5277_v56, %v7926_v24  ;;  %v544_v52 = vmul.f32 %v5286_v54, %v7926_v24 }
 0x120   : > { %v543_v41 = vmul.f32 %v5285_v39, %v7926_v24  ;;  %v546_v54 = vmul.f32 %v5290_v32, %v7926_v24 }
 0x121   : > { %v575_v38 = vadd.f32 %v7957_v21, %v537_v9  ;;  %v576_v30 = vadd.f32 %v7957_v21, %v538_v1  ;;  %v578_v8 = vadd.f32 %v7957_v21, %v540_v45  ;;  %v579_v25 = vadd.f32 %v7957_v21, %v541_v35 }
 0x122   : > { %6433 = vperm.xlu0 %6301, %v7850_v33   ;;  %v580_v45 = vadd.f32 %v7957_v21, %v542_v44  ;;  %v564_v1 = vmul.f32 %v5326_v42, %v7926_v24  ;;  %v563_v42 = vmul.f32 %v5325_v2, %v7926_v24 }
 0x123   : > { %6438 = vperm.xlu1 %6290, %v7556_v16   ;;  %v7983_v40 = vmax.f32 %v575_v38, 0.0  ;;  %v7985_v9 = vmax.f32 %v576_v30, 0.0  ;;  %v7991_v35 = vmax.f32 %v578_v8, 0.0  ;;  %v8006_v44 = vmax.f32 %v579_v25, 0.0 }
 0x124   : > { %v8008_v8 = vmax.f32 %v580_v45, 0.0  ;;  %v602_v2 = vadd.f32 %v7957_v21, %v564_v1 }
 0x125   : > { %v9635_v38 = vrot.slane %v7983_v40, 7  ;;  %v1089_v30 = vrot.slane %v7985_v9, 7  ;;  %v1091_v56 = vrot.slane %v7991_v35, 7  ;;  %v1092_v25 = vrot.slane %v8006_v44, 7 }
 0x126   : > { %6443 = vperm.xlu0 %6301, %v7579_v26   ;;  %v1093_v39 = vrot.slane %v8008_v8, 7 }
 0x127   : > { %6448 = vperm.xlu1 %6290, %v7548_v11   ;;  %v8016_v22 = vsel %vm1116_vm0, %v9635_v38, %v1089_v30  ;;  %v9807_v38 = vunpack.c.h.bf16 %v7904_v55  ;;  %v8039_v45 = vsel %vm1116_vm0, %v1091_v56, %v1092_v25 }
 0x128   : > { %9806 = vst [vmem:[#allocation44_spill] sm:$0xff] %v8016_v22  ;;  %9809 = vst [vmem:[#allocation46_spill] sm:$0xff] %v8039_v45  ;;  %v8069_v45 = vmax.f32 %v602_v2, 0.0 }
 0x129   : > { %v536_v22 = vmul.f32 %v9807_v38, %v7926_v24  ;;  %v9810_v38 = vunpack.c.h.bf16 %v7907_v31 }
 0x12a   : > { %6453 = vperm.xlu0 %6301, %v7603_v36   ;;  %9813 = vst [vmem:[#allocation47_spill] sm:$0xff] %v8069_v45 }
 0x12b   : > { %6458 = vperm.xlu1 %6290, %v7574_v23   ;;  %v534_v1 = vmul.f32 %v9810_v38, %v7926_v24  ;;  %v8058_v38 = vadd.f32 %v7957_v21, %v536_v22  ;;  %v9814_v22 = vunpack.c.h.bf16 %v7940_v59 }
 0x12e   : > { %6463 = vperm.xlu0 %6301, %v7627_v48   ;;  %v8035_v48 = vsel %vm1116_vm0, %v1092_v25, %v1093_v39 }
 0x12f   : > { %6468 = vperm.xlu1 %6290, %v7647_v60   ;;  %v577_v60 = vadd.f32 %v7957_v21, %v539_v14  ;;  %9808 = vst [vmem:[#allocation45_spill] sm:$0xff] %v8035_v48  ;;  %v601_v14 = vadd.f32 %v7957_v21, %v563_v42  ;;  %v582_v48 = vadd.f32 %v7957_v21, %v544_v52  ;;  %v9812_v52 = vunpack.c.h.bf16 %v7921_v19 }
 0x131   : > { %v8046_v43 = vmax.f32 %v577_v60, 0.0  ;;  %v9811_v60 = vunpack.c.l.bf16 %v7904_v55  ;;  %v8071_v32 = vmax.f32 %v582_v48, 0.0  ;;  %v8089_v48 = vadd.f32 %v7957_v21, %v534_v1 }
 0x132   : > { %6473 = vperm.xlu0 %6301, %v7659_v7   ;;  %v9819_v1 = vunpack.c.l.bf16 %v7937_v62 }
 0x133   : > { %6478 = vperm.xlu1 %6290, %v7680_v27   ;;  %v581_v27 = vadd.f32 %v7957_v21, %v543_v41  ;;  %v547_v41 = vmul.f32 %v5293_v6, %v7926_v24  ;;  %v535_v42 = vmul.f32 %v9811_v60, %v7926_v24  ;;  %v1090_v7 = vrot.slane %v8046_v43, 7 }
 0x134   : > { %v1095_v59 = vrot.slane %v8071_v32, 7 }
 0x135   : > { %v8052_v25 = vmax.f32 %v581_v27, 0.0  ;;  %v8067_v27 = vmul.f32 %v9812_v52, %v7926_v24  ;;  %v8079_v55 = vsel %vm1116_vm0, %v1090_v7, %v1091_v56  ;;  %v8083_v60 = vsel %vm1116_vm0, %v1089_v30, %v1090_v7 }
 0x136   : > { %6483 = vperm.xlu0 %6301, %v7686_v34   ;;  %9815 = vst [vmem:[#allocation48_spill] sm:$0xff] %v8079_v55  ;;  %9816 = vst [vmem:[#allocation49_spill] sm:$0xff] %v8083_v60  ;;  %v584_v52 = vadd.f32 %v7957_v21, %v546_v54  ;;  %v585_v2 = vadd.f32 %v7957_v21, %v547_v41  ;;  %v8091_v34 = vmax.f32 %v601_v14, 0.0 }
 0x137   : > { %6488 = vperm.xlu1 %6290, %v7718_v57   ;;  %v1094_v6 = vrot.slane %v8052_v25, 7  ;;  %v548_v57 = vmul.f32 %v9814_v22, %v7926_v24  ;;  %v545_v41 = vmul.f32 %v9819_v1, %v7926_v24  ;;  %v9822_v1 = vunpack.c.l.bf16 %v7950_v49 }
 0x138   : > { %9817 = vst [vmem:[#allocation50_spill] sm:$0xff] %v8091_v34  ;;  %v8100_v30 = vmax.f32 %v584_v52, 0.0  ;;  %v8102_v54 = vmax.f32 %v585_v2, 0.0  ;;  %v1373_v22 = vmul.f32 0.0, %v8091_v34 }
 0x139   : > { %v8096_v56 = vsel %vm1116_vm0, %v1093_v39, %v1094_v6  ;;  %v586_v7 = vadd.f32 %v7957_v21, %v548_v57  ;;  %v8109_v14 = vsel %vm1116_vm0, %v1094_v6, %v1095_v59  ;;  %v1374_v39 = vmul.f32 0.0, %v8069_v45 }
 0x13a   : > { %6493 = vperm.xlu0 %6301, %v7722_v61   ;;  %9818 = vst [vmem:[#allocation51_spill] sm:$0xff] %v8096_v56  ;;  %9820 = vst [vmem:[#allocation52_spill] sm:$0xff] %v8109_v14  ;;  %v9821_v56 = vunpack.c.h.bf16 %v7947_v17  ;;  %v1097_v2 = vrot.slane %v8100_v30, 7  ;;  %v583_v62 = vadd.f32 %v7957_v21, %v545_v41  ;;  %v551_v14 = vmul.f32 %v9822_v1, %v7926_v24 }
 0x13b   : > { %6498 = vperm.xlu1 %6290, %v7743_v18   ;;  %v8116_v52 = vmax.f32 %v586_v7, 0.0  ;;  %v1098_v18 = vrot.slane %v8102_v54, 7  ;;  %v1695_v6 = vpack.c.bf16 %v1374_v39, %v1373_v22  ;;  %v9823_v61 = vunpack.c.h.bf16 %v7950_v49 }
 0x13c   : > { %v550_v57 = vmul.f32 %v9821_v56, %v7926_v24  ;;  %v9825_v22 = vunpack.c.l.bf16 %v7947_v17  ;;  %v589_v49 = vadd.f32 %v7957_v21, %v551_v14  ;;  %v9826_v1 = vunpack.c.h.bf16 %v7963_v58 }
 0x13d   : > { %v552_v55 = vmul.f32 %v9823_v61, %v7926_v24  ;;  %v1099_v7 = vrot.slane %v8116_v52, 7  ;;  %v8133_v41 = vsel %vm1116_vm0, %v1097_v2, %v1098_v18  ;;  %1966 = vmatprep.mubr.bf16.mxu0 %v1695_v6  ;;  %v9828_v6 = vunpack.c.l.bf16 %v7971_v20 }
 0x13e   : > { %6503 = vperm.xlu0 %6301, %v7741_v13   ;;  %v588_v56 = vadd.f32 %v7957_v21, %v550_v57  ;;  %9824 = vst [vmem:[#allocation53_spill] sm:$0xff] %v8133_v41  ;;  %v8135_v13 = vmax.f32 %v583_v62, 0.0  ;;  %v549_v39 = vmul.f32 %v9825_v22, %v7926_v24  ;;  %v554_v60 = vmul.f32 %v9826_v1, %v7926_v24 }
 0x13f   : > { %6508 = vperm.xlu1 %6290, %v7834_v3   ;;  %v590_v61 = vadd.f32 %v7957_v21, %v552_v55  ;;  %v8149_v41 = vsel %vm1116_vm0, %v1098_v18, %v1099_v7  ;;  %v555_v14 = vmul.f32 %v9828_v6, %v7926_v24  ;;  %v8157_v55 = vmax.f32 %v589_v49, 0.0 }
 0x140   : > { %v8142_v57 = vmax.f32 %v588_v56, 0.0  ;;  %9827 = vst [vmem:[#allocation54_spill] sm:$0xff] %v8149_v41  ;;  %v1096_v62 = vrot.slane %v8135_v13, 7  ;;  %v587_v17 = vadd.f32 %v7957_v21, %v549_v39  ;;  %v9829_v18 = vunpack.c.h.bf16 %v7971_v20 }
 0x141   : > { %v8159_v56 = vmax.f32 %v590_v61, 0.0  ;;  %v592_v61 = vadd.f32 %v7957_v21, %v554_v60  ;;  %v1102_v41 = vrot.slane %v8157_v55, 7  ;;  %v593_v20 = vadd.f32 %v7957_v21, %v555_v14 }
 0x142   : > { %6513 = vperm.xlu0 %6301, %v7846_v47   ;;  %v1101_v22 = vrot.slane %v8142_v57, 7  ;;  %v556_v1 = vmul.f32 %v9829_v18, %v7926_v24  ;;  %v8168_v39 = vsel %vm1116_vm0, %v1096_v62, %v1097_v2  ;;  %v8172_v6 = vsel %vm1116_vm0, %v1095_v59, %v1096_v62 }
 0x143   : > { %6518 = vperm.xlu1 %6290, %v7755_v4   ;;  %9830 = vst [vmem:[#allocation55_spill] sm:$0xff] %v8168_v39  ;;  %9831 = vst [vmem:[#allocation56_spill] sm:$0xff] %v8172_v6  ;;  %v8174_v49 = vmax.f32 %v587_v17, 0.0  ;;  %v1103_v45 = vrot.slane %v8159_v56, 7  ;;  %v573_v18 = vadd.f32 %v7957_v21, %v535_v42  ;;  %v8183_v39 = vmax.f32 %v592_v61, 0.0 }
 0x144   : > { %v594_v4 = vadd.f32 %v7957_v21, %v556_v1  ;;  %v9832_v59 = vunpack.c.l.bf16 %v7963_v58  ;;  %v8195_v17 = vsel %vm1116_vm0, %v1101_v22, %v1102_v41  ;;  %v8197_v14 = vmax.f32 %v593_v20, 0.0 }
 0x145   : > { %v1100_v2 = vrot.slane %v8174_v49, 7  ;;  %v8191_v60 = vsel %vm1116_vm0, %v1102_v41, %v1103_v45  ;;  %9834 = vst [vmem:[#allocation58_spill] sm:$0xff] %v8195_v17  ;;  %v1105_v61 = vrot.slane %v8183_v39, 7 }
 0x146   : > { %v553_v62 = vmul.f32 %v9832_v59, %v7926_v24  ;;  %6523 = vperm.xlu0 %6301, %v7843_v46   ;;  %9833 = vst [vmem:[#allocation57_spill] sm:$0xff] %v8191_v60  ;;  %v8199_v42 = vmax.f32 %v594_v4, 0.0  ;;  %v1106_v41 = vrot.slane %v8197_v14, 7  ;;  %v9837_v4 = vunpack.c.h.bf16 %v8001_v12 }
 0x147   : > { %6528 = vperm.xlu1 %6290, %v7809_v53   ;;  %v8204_v58 = vsel %vm1116_vm0, %v1100_v2, %v1101_v22  ;;  %v8208_v1 = vsel %vm1116_vm0, %v1099_v7, %v1100_v2  ;;  %v9838_v22 = vunpack.c.l.bf16 %v8004_v28  ;;  %v600_v7 = vadd.f32 %v7957_v21, %v8067_v27 }
 0x148   : > { %9835 = vst [vmem:[#allocation59_spill] sm:$0xff] %v8204_v58  ;;  %9836 = vst [vmem:[#allocation60_spill] sm:$0xff] %v8208_v1  ;;  %v591_v59 = vadd.f32 %v7957_v21, %v553_v62  ;;  %v1107_v20 = vrot.slane %v8199_v42, 7  ;;  %v558_v60 = vmul.f32 %v9837_v4, %v7926_v24  ;;  %v9839_v62 = vunpack.c.h.bf16 %v8004_v28 }
 0x149   : > { %v559_v17 = vmul.f32 %v9838_v22, %v7926_v24  ;;  %v9840_v1 = vunpack.c.l.bf16 %v8001_v12  ;;  %v8237_v22 = vsel %vm1116_vm0, %v1105_v61, %v1106_v41  ;;  %v8243_v28 = vmax.f32 %v8089_v48, 0.0 }
 0x14a   : > { %v8222_v2 = vmax.f32 %v591_v59, 0.0  ;;  %v560_v58 = vmul.f32 %v9839_v62, %v7926_v24  ;;  %6533 = vperm.xlu0 %6301, %v7850_v33   ;;  %v8233_v4 = vsel %vm1116_vm0, %v1106_v41, %v1107_v20  ;;  %9842 = vst [vmem:[#allocation62_spill] sm:$0xff] %v8237_v22  ;;  %v596_v27 = vadd.f32 %v7957_v21, %v558_v60 }
 0x14b   : > { %v557_v6 = vmul.f32 %v9840_v1, %v7926_v24  ;;  %9841 = vst [vmem:[#allocation61_spill] sm:$0xff] %v8233_v4  ;;  %v597_v59 = vadd.f32 %v7957_v21, %v559_v17  ;;  %6538 = vperm.xlu1 %6290, %v7819_v37   ;;  %9843 = vst [vmem:[#allocation63_spill] sm:$0xff] %v8243_v28  ;;  %v8248_v62 = vmax.f32 %v573_v18, 0.0  ;;  %v9844_v60 = vunpack.c.l.bf16 %v7921_v19 }
 0x14c   : > { %v1104_v12 = vrot.slane %v8222_v2, 7  ;;  %v598_v33 = vadd.f32 %v7957_v21, %v560_v58  ;;  %v8250_v4 = vmax.f32 %v596_v27, 0.0  ;;  %v8270_v18 = vmax.f32 %v600_v7, 0.0 }
 0x14d   : > { %v595_v1 = vadd.f32 %v7957_v21, %v557_v6  ;;  %v8252_v41 = vmax.f32 %v597_v59, 0.0  ;;  %v561_v17 = vmul.f32 %v9844_v60, %v7926_v24  ;;  %v1409_v60 = vrot.slane %v7983_v40, 1 }
 0x14e   : > { %v8259_v48 = vsel %vm1116_vm0, %v1104_v12, %v1105_v61  ;;  %v8263_v22 = vsel %vm1116_vm0, %v1103_v45, %v1104_v12  ;;  %v8265_v58 = vmax.f32 %v598_v33, 0.0  ;;  %6543 = vperm.xlu0 %6301, %v7816_v50   ;;  %v1109_v27 = vrot.slane %v8250_v4, 7 }
 0x14f   : > { %9845 = vst [vmem:[#allocation64_spill] sm:$0xff] %v8259_v48  ;;  %9846 = vst [vmem:[#allocation65_spill] sm:$0xff] %v8263_v22  ;;  %v8267_v6 = vmax.f32 %v595_v1, 0.0  ;;  %v1110_v19 = vrot.slane %v8252_v41, 7  ;;  %v599_v59 = vadd.f32 %v7957_v21, %v561_v17  ;;  %6548 = vperm.xlu1 %6290, %v7556_v16   ;;  %v1407_v1 = vrot.slane %v8248_v62, 1 }
 0x150   : > { %v1111_v61 = vrot.slane %v8265_v58, 7  ;;  %v8289_v16 = vmax.f32 %v8058_v38, 0.0  ;;  %v9851_v38 = vrot.slane %v8243_v28, 1  ;;  %v1414_v22 = vrot.slane %v8008_v8, 1 }
 0x151   : > { %v1108_v45 = vrot.slane %v8267_v6, 7  ;;  %v8282_v7 = vsel %vm1116_vm0, %v1109_v27, %v1110_v19  ;;  %v8284_v33 = vmax.f32 %v599_v59, 0.0  ;;  %v1413_v59 = vrot.slane %v8006_v44, 1 }
 0x152   : > { %9847 = vst [vmem:[#allocation66_spill] sm:$0xff] %v8282_v7  ;;  %v8293_v17 = vsel %vm1116_vm0, %v1110_v19, %v1111_v61  ;;  %6553 = vperm.xlu0 %6301, %v7826_v51   ;;  %v8310_v19 = vsel %vm1437_vm1, %v9851_v38, %v1407_v1 }
 0x153   : > { %9848 = vst [vmem:[#allocation67_spill] sm:$0xff] %v8293_v17  ;;  %v8297_v12 = vsel %vm1116_vm0, %v1108_v45, %v1109_v27  ;;  %v8301_v7 = vsel %vm1116_vm0, %v1107_v20, %v1108_v45  ;;  %v1112_v48 = vrot.slane %v8284_v33, 7  ;;  %9852 = vst [vmem:[#allocation70_spill] sm:$0xff] %v8310_v19  ;;  %v1410_v17 = vrot.slane %v7985_v9, 1  ;;  %6558 = vperm.xlu1 %6290, %v7821_v63  }
 0x154   : > { %9849 = vst [vmem:[#allocation68_spill] sm:$0xff] %v8297_v12  ;;  %9850 = vst [vmem:[#allocation69_spill] sm:$0xff] %v8301_v7  ;;  %v1411_v27 = vrot.slane %v8046_v43, 1  ;;  %v1408_v20 = vrot.slane %v8289_v16, 1  ;;  %v8318_v45 = vpack.c.bf16 %v7985_v9, %v7983_v40  ;;  %v9853_v12 = vrot.slane %v8270_v18, 7 }
 0x155   : > { %v8329_v19 = vsel %vm1116_vm0, %v1111_v61, %v1112_v48  ;;  %v8333_v7 = vsel %vm1437_vm1, %v1409_v60, %v1410_v17  ;;  %v8352_v61 = vsel %vm1437_vm1, %v1413_v59, %v1414_v22 }
 0x156   : > { %v8325_v38 = vsel %vm1116_vm0, %v1112_v48, %v9853_v12  ;;  %9855 = vst [vmem:[#allocation72_spill] sm:$0xff] %v8329_v19  ;;  %9856 = vst [vmem:[#allocation73_spill] sm:$0xff] %v8333_v7  ;;  %v8338_v9 = vsel %vm1437_vm1, %v1410_v17, %v1411_v27  ;;  %v8342_v63 = vsel %vm1437_vm1, %v1408_v20, %v1409_v60  ;;  %v1415_v48 = vrot.slane %v8052_v25, 1 }
 0x157   : > { %9854 = vst [vmem:[#allocation71_spill] sm:$0xff] %v8325_v38  ;;  %9857 = vst [vmem:[#allocation74_spill] sm:$0xff] %v8338_v9  ;;  %v8346_v12 = vsel %vm1437_vm1, %v1407_v1, %v1408_v20  ;;  %6563 = vperm.xlu0 %6301, %v7579_v26   ;;  %v1412_v7 = vrot.slane %v7991_v35, 1  ;;  %v1421_v17 = vrot.slane %v8174_v49, 1  ;;  %v1422_v9 = vrot.slane %v8142_v57, 1  ;;  %6568 = vperm.xlu1 %6290, %v7834_v3  }
 0x158   : > { %9858 = vst [vmem:[#allocation75_spill] sm:$0xff] %v8342_v63  ;;  %9859 = vst [vmem:[#allocation76_spill] sm:$0xff] %v8346_v12  ;;  %v8360_v1 = vsel %vm1437_vm1, %v1414_v22, %v1415_v48  ;;  %v1423_v60 = vrot.slane %v8157_v55, 1  ;;  %v8365_v26 = vpack.c.bf16 %v7991_v35, %v8046_v43  ;;  %v1425_v20 = vrot.slane %v8222_v2, 1 }
 0x159   : > { %9860 = vst [vmem:[#allocation77_spill] sm:$0xff] %v8352_v61  ;;  %9861 = vst [vmem:[#allocation78_spill] sm:$0xff] %v8360_v1  ;;  %v8370_v61 = vsel %vm1437_vm1, %v1412_v7, %v1413_v59  ;;  %v8374_v63 = vsel %vm1437_vm1, %v1411_v27, %v1412_v7  ;;  %v8378_v22 = vsel %vm1437_vm1, %v1421_v17, %v1422_v9  ;;  %v1426_v1 = vrot.slane %v8183_v39, 1 }
 0x15a   : > { %9862 = vst [vmem:[#allocation79_spill] sm:$0xff] %v8370_v61  ;;  %9863 = vst [vmem:[#allocation80_spill] sm:$0xff] %v8374_v63  ;;  %v8383_v43 = vsel %vm1437_vm1, %v1422_v9, %v1423_v60  ;;  %v1427_v35 = vrot.slane %v8197_v14, 1  ;;  %v1424_v12 = vrot.slane %v8159_v56, 1  ;;  %v1419_v59 = vrot.slane %v8102_v54, 1 }
 0x15b   : > { %9864 = vst [vmem:[#allocation81_spill] sm:$0xff] %v8378_v22  ;;  %9865 = vst [vmem:[#allocation82_spill] sm:$0xff] %v8383_v43  ;;  %6573 = vperm.xlu0 %6301, %v7846_v47   ;;  %v8391_v7 = vsel %vm1437_vm1, %v1425_v20, %v1426_v1  ;;  %v1420_v27 = vrot.slane %v8116_v52, 1  ;;  %v1429_v61 = vrot.slane %v8267_v6, 1  ;;  %v1430_v63 = vrot.slane %v8250_v4, 1  ;;  %6578 = vperm.xlu1 %6290, %v7548_v11  }
 0x15c   : > { %9866 = vst [vmem:[#allocation83_spill] sm:$0xff] %v8391_v7  ;;  %v8399_v9 = vsel %vm1437_vm1, %v1426_v1, %v1427_v35  ;;  %v8403_v38 = vsel %vm1437_vm1, %v1424_v12, %v1425_v20  ;;  %v8407_v19 = vsel %vm1437_vm1, %v1423_v60, %v1424_v12  ;;  %v1431_v7 = vrot.slane %v8252_v41, 1 }
 0x15d   : > { %9867 = vst [vmem:[#allocation84_spill] sm:$0xff] %v8399_v9  ;;  %9868 = vst [vmem:[#allocation85_spill] sm:$0xff] %v8403_v38  ;;  %v8412_v43 = vsel %vm1437_vm1, %v1420_v27, %v1421_v17  ;;  %v8416_v11 = vsel %vm1437_vm1, %v1419_v59, %v1420_v27  ;;  %v8420_v1 = vsel %vm1437_vm1, %v1429_v61, %v1430_v63  ;;  %v1428_v20 = vrot.slane %v8199_v42, 1 }
 0x15e   : > { %9869 = vst [vmem:[#allocation86_spill] sm:$0xff] %v8407_v19  ;;  %9870 = vst [vmem:[#allocation87_spill] sm:$0xff] %v8412_v43  ;;  %v8425_v12 = vsel %vm1437_vm1, %v1430_v63, %v1431_v7  ;;  %v8429_v60 = vpack.c.bf16 %v8008_v8, %v8006_v44  ;;  %v1433_v17 = vrot.slane %v8284_v33, 1  ;;  %v1432_v63 = vrot.slane %v8265_v58, 1 }
 0x15f   : > { %9871 = vst [vmem:[#allocation88_spill] sm:$0xff] %v8416_v11  ;;  %9872 = vst [vmem:[#allocation89_spill] sm:$0xff] %v8420_v1  ;;  %6583 = vperm.xlu0 %6301, %v7854_v5   ;;  %v8436_v27 = vsel %vm1437_vm1, %v1428_v20, %v1429_v61  ;;  %v8440_v1 = vsel %vm1437_vm1, %v1427_v35, %v1428_v20  ;;  %v8445_v44 = vpack.c.bf16 %v8071_v32, %v8052_v25 }
 0x160   : > { %9873 = vst [vmem:[#allocation90_spill] sm:$0xff] %v8425_v12  ;;  %9874 = vst [vmem:[#allocation91_spill] sm:$0xff] %v8436_v27  ;;  %6588 = vperm.xlu1 %6290, %v7852_v10   ;;  %v9877_v8 = vunpack.c.l.bf16 %v7907_v31  ;;  %v9878_v12 = vrot.slane %v8270_v18, 1  ;;  %v8459_v35 = vpack.c.bf16 %v8100_v30, %v8135_v13  ;;  %v8463_v25 = vpack.c.bf16 %v8116_v52, %v8102_v54 }
 0x161   : > { %9875 = vst [vmem:[#allocation92_spill] sm:$0xff] %v8440_v1  ;;  %9876 = vst [vmem:[#allocation93_spill] sm:$0xff] %v8445_v44  ;;  %v8467_v20 = vsel %vm1437_vm1, %v1432_v63, %v1433_v17  ;;  %v8471_v31 = vsel %vm1437_vm1, %v1431_v7, %v1432_v63  ;;  %v1418_v54 = vrot.slane %v8100_v30, 1  ;;  %v8484_v52 = vpack.c.bf16 %v8159_v56, %v8157_v55 }
 0x162   : > { %v533_v9 = vmul.f32 %v9877_v8, %v7926_v24  ;;  %v8455_v61 = vsel %vm1437_vm1, %v1433_v17, %v9878_v12  ;;  %9880 = vst [vmem:[#allocation95_spill] sm:$0xff] %v8459_v35  ;;  %9881 = vst [vmem:[#allocation96_spill] sm:$0xff] %v8463_v25  ;;  %v8475_v24 = vpack.c.bf16 %v8142_v57, %v8174_v49  ;;  %v1416_v12 = vrot.slane %v8071_v32, 1  ;;  %v8478_v8 = vpop.permute.xlu0 %6303  ;;  %v6293_v17 = vpop.permute.xlu1 %6292 }
 0x163   : > { %9879 = vst [vmem:[#allocation94_spill] sm:$0xff] %v8455_v61  ;;  %9882 = vst [vmem:[#allocation97_spill] sm:$0xff] %v8467_v20  ;;  %v1417_v61 = vrot.slane %v8135_v13, 1  ;;  %v8488_v7 = vpack.c.bf16 %v8183_v39, %v8222_v2  ;;  %6593 = vperm.xlu0 %6301, %v7603_v36   ;;  %v8497_v13 = vpack.c.bf16 %v8199_v42, %v8197_v14  ;;  %v1114_v42 = vrot.slane %v8091_v34, 7 }
 0x164   : > { %9883 = vst [vmem:[#allocation98_spill] sm:$0xff] %v8471_v31  ;;  %9884 = vst [vmem:[#allocation99_spill] sm:$0xff] %v8475_v24  ;;  %v8493_v32 = vsel %vm1437_vm1, %v1415_v48, %v1416_v12  ;;  %6598 = vperm.xlu1 %6290, %v7868_v15   ;;  %v8506_v57 = vsel %vm1437_vm1, %v1418_v54, %v1419_v59  ;;  %v8514_v55 = vpack.c.bf16 %v8250_v4, %v8267_v6  ;;  %v9895_v48 = vld [vmem:[#allocation47_spill] sm:$0xff] }
 0x165   : > { %9885 = vst [vmem:[#allocation100_spill] sm:$0xff] %v8484_v52  ;;  %9886 = vst [vmem:[#allocation101_spill] sm:$0xff] %v8488_v7  ;;  %v8502_v30 = vsel %vm1437_vm1, %v1416_v12, %v1417_v61  ;;  %v8510_v36 = vsel %vm1437_vm1, %v1417_v61, %v1418_v54  ;;  %v571_v56 = vadd.f32 %v7957_v21, %v533_v9  ;;  %v1115_v4 = vrot.slane %v9895_v48, 7  ;;  %v9900_v9 = vld [vmem:[#allocation39_spill] sm:$0xff] }
 0x166   : > { %9887 = vst [vmem:[#allocation102_spill] sm:$0xff] %v8493_v32  ;;  %9888 = vst [vmem:[#allocation103_spill] sm:$0xff] %v8497_v13  ;;  %v8517_v39 = vpop.permute.xlu0 %6313  ;;  %v8521_v49 = vpack.c.bf16 %v8265_v58, %v8252_v41  ;;  %v6298_v14 = vpop.permute.xlu1 %6297  ;;  %v8531_v21 = vpack.c.bf16 %v8270_v18, %v8284_v33  ;;  %v9897_v41 = vld [vmem:[#allocation40_spill] sm:$0xff]  ;;  %v9898_v58 = vrot.slane %v8270_v18, 7  ;;  %v1085_v33 = vrot.slane %v8243_v28, 7  ;;  %v6828_v52 = vld [vmem:[#allocation12 + $0x90] sm:$0xff]  }
 0x167   : > { %9889 = vst [vmem:[#allocation104_spill] sm:$0xff] %v8502_v30  ;;  %9890 = vst [vmem:[#allocation105_spill] sm:$0xff] %v8506_v57  ;;  %6603 = vperm.xlu0 %6301, %v7880_v29   ;;  %v8526_v2 = vmax.f32 %v571_v56, 0.0  ;;  %v8545_v63 = vsel %vm1116_vm0, %v1114_v42, %v1115_v4  ;;  %v6294_v32 = vunpack.i.l.bf16 %v6293_v17 }
 0x168   : > { %9891 = vst [vmem:[#allocation106_spill] sm:$0xff] %v8510_v36  ;;  %9892 = vst [vmem:[#allocation107_spill] sm:$0xff] %v8514_v55  ;;  %6608 = vperm.xlu1 %6290, %v7574_v23   ;;  %v8540_v23 = vsel %vm1116_vm0, %v9898_v58, %v1114_v42  ;;  %v9902_v36 = vld [vmem:[#allocation25_spill] sm:$0xff]  ;;  %v6295_v42 = vunpack.i.h.bf16 %v6293_v17 }
 0x169   : > { %9893 = vst [vmem:[#allocation108_spill] sm:$0xff] %v8521_v49  ;;  %9894 = vst [vmem:[#allocation109_spill] sm:$0xff] %v8526_v2  ;;  %v1084_v61 = vrot.slane %v8526_v2, 7  ;;  %v9903_v58 = vld [vmem:[#allocation41_spill] sm:$0xff]  ;;  %v8557_v30 = vpack.c.bf16 %v8243_v28, %v8526_v2 }
 0x16a   : > { %v1184_v6 = vpop.permute.xlu0 %1183  ;;  %9896 = vst [vmem:[#allocation110_spill] sm:$0xff] %v8531_v21  ;;  %v8533_v59 = vpop.permute.xlu1 %6308  ;;  %9899 = vst [vmem:[#allocation40_spill] sm:$0xff] %v8540_v23  ;;  %v6827_v28 = vld [vmem:[#allocation12 + $0x88] sm:$0xff]  }
 0x16b   : > { %6613 = vperm.xlu0 %6301, %v9897_v41   ;;  %9901 = vst [vmem:[#allocation39_spill] sm:$0xff] %v8545_v63  ;;  %v1341_v54 = vmul.f32 %v1184_v6, %v8540_v23  ;;  %v8561_v49 = vsel %vm1116_vm0, %v1084_v61, %v1085_v33  ;;  %v8565_v6 = vsel %vm1116_vm0, %v1115_v4, %v1084_v61  ;;  %v9907_v23 = vld [vmem:[#allocation26_spill] sm:$0xff]  ;;  %v1086_v4 = vrot.slane %v8248_v62, 7 }
 0x16c   : > { %6618 = vperm.xlu1 %6290, %v9900_v9   ;;  %9904 = vst [vmem:[#allocation25_spill] sm:$0xff] %v8561_v49  ;;  %9905 = vst [vmem:[#allocation41_spill] sm:$0xff] %v8565_v6  ;;  %v1343_v17 = vmul.f32 %v6294_v32, %v8565_v6  ;;  %v8586_v32 = vpack.c.bf16 %v8289_v16, %v8248_v62 }
 0x16d   : > { %v8594_v7 = vsel %vm1116_vm0, %v1085_v33, %v1086_v4 }
 0x16e   : > { %v1189_v12 = vpop.permute.xlu0 %1188  ;;  %v8550_v56 = vpop.permute.xlu1 %6318 }
 0x16f   : > { %v1342_v57 = vmul.f32 %v1189_v12, %v8545_v63  ;;  %6623 = vperm.xlu0 %6301, %v9902_v36   ;;  %v9906_v63 = vld [vmem:[#allocation42_spill] sm:$0xff] }
 0x170   : > { %6628 = vperm.xlu1 %6290, %v9903_v58  }
 0x171   : > { %v1694_v21 = vpack.c.bf16 %v1342_v57, %v1341_v54  ;;  %v1344_v57 = vmul.f32 %v6295_v42, %v8561_v49  ;;  %v6826_v54 = vld [vmem:[#allocation12 + $0x80] sm:$0xff]   ;;  %v6299_v42 = vunpack.i.l.bf16 %v6298_v14 }
 0x172   : > { %v8567_v12 = vpop.permute.xlu0 %6323  ;;  %v8569_v36 = vpop.permute.xlu1 %6328 }
 0x173   : > { %6633 = vperm.xlu0 %6301, %v9906_v63   ;;  %1967 = vmatmul.mubr.bf16.vlgmr.msra.gmra.mrb[0].mxu0 %v1694_v21  ;;  %v1087_v21 = vrot.slane %v8289_v16, 7  ;;  %v6300_v63 = vunpack.i.h.bf16 %v6298_v14  ;;  %v6829_v14 = vld [vmem:[#allocation12 + $0x98] sm:$0xff]  }
 0x174   : > { %6638 = vperm.xlu1 %6290, %v9907_v23   ;;  %1974 = vmatprep.mubr.bf16.mxu0 %v8557_v30  ;;  %v9908_v23 = vld [vmem:[#allocation27_spill] sm:$0xff] }
 0x175   : > { %5846 = vmatpush3.bf16.msra.mxu0 %v6826_v54  ;;  %v1697_v54 = vpack.c.bf16 %v1344_v57, %v1343_v17  ;;  %v8590_v13 = vsel %vm1116_vm0, %v1086_v4, %v1087_v21  ;;  %v9910_v17 = vld [vmem:[#allocation28_spill] sm:$0xff]  ;;  %v6306_v4 = vunpack.i.h.bf16 %v8478_v8  ;;  %v9913_v57 = vrot.slane %v8091_v34, 1 }
 0x176   : > { %v8577_v61 = vpop.permute.xlu0 %6333  ;;  %5847 = vmatprep.subr.bf16.mxu0 %v6827_v28  ;;  %v8579_v55 = vpop.permute.xlu1 %6338  ;;  %v1346_v62 = vmul.f32 %v6300_v63, %v8590_v13 }
 0x177   : > { %6643 = vperm.xlu0 %6301, %v7843_v46  }
 0x178   : > { %6648 = vperm.xlu1 %6290, %v9908_v23  }
 0x179   : > { %5848 = vmatpush3.bf16.msra.mxu0 %v6827_v28  ;;  %v1345_v28 = vmul.f32 %v6299_v42, %v8594_v7  ;;  %v9911_v42 = vrot.slane %v7983_v40, 7  ;;  %v9916_v40 = vrot.slane %v8526_v2, 1 }
 0x17a   : > { %v8596_v46 = vpop.permute.xlu0 %6343  ;;  %5849 = vmatprep.subr.bf16.mxu0 %v6828_v52  ;;  %v8598_v23 = vpop.permute.xlu1 %6348 }
 0x17b   : > { %6653 = vperm.xlu0 %6301, %v7809_v53   ;;  %1975 = vmatmul.mubr.bf16.gmra.mrb[4].mxu0 %v1697_v54  ;;  %v1700_v63 = vpack.c.bf16 %v1346_v62, %v1345_v28  ;;  %v8620_v54 = vsel %vm1116_vm0, %v1087_v21, %v9911_v42  ;;  %v9915_v28 = vld [vmem:[#allocation29_spill] sm:$0xff] }
 0x17c   : > { %6658 = vperm.xlu1 %6290, %v7819_v37   ;;  %1982 = vmatprep.mubr.bf16.mxu0 %v8586_v32  ;;  %v1436_v37 = vrot.slane %v9895_v48, 1  ;;  %v6831_v42 = vld [vmem:[#allocation12 + $0xa8] sm:$0xff]  }
 0x17d   : > { %5850 = vmatpush3.bf16.msra.mxu0 %v6828_v52  ;;  %v6305_v52 = vunpack.i.l.bf16 %v8478_v8 }
 0x17e   : > { %v8605_v16 = vpop.permute.xlu0 %6353  ;;  %5851 = vmatprep.subr.bf16.mxu0 %v6829_v14  ;;  %v8607_v33 = vpop.permute.xlu1 %6358  ;;  %v8629_v8 = vsel %vm1437_vm1, %v9913_v57, %v1436_v37  ;;  %v8636_v21 = vsel %vm1437_vm1, %v1436_v37, %v9916_v40  ;;  %v9922_v37 = vld [vmem:[#allocation36_spill] sm:$0xff] }
 0x17f   : > { %9909 = vst [vmem:[#allocation42_spill] sm:$0xff] %v8607_v33  ;;  %6663 = vperm.xlu0 %6301, %v9910_v17   ;;  %9914 = vst [vmem:[#allocation27_spill] sm:$0xff] %v8629_v8  ;;  %v1347_v62 = vmul.f32 %v6305_v52, %v8620_v54  ;;  %v6311_v52 = vunpack.i.h.bf16 %v8533_v59 }
 0x180   : > { %6668 = vperm.xlu1 %6290, %v7816_v50   ;;  %v6830_v50 = vld [vmem:[#allocation12 + $0xa0] sm:$0xff]   ;;  %9917 = vst [vmem:[#allocation28_spill] sm:$0xff] %v8636_v21 }
 0x181   : > { %5852 = vmatpush3.bf16.msra.mxu0 %v6829_v14 }
 0x182   : > { %v8622_v17 = vpop.permute.xlu0 %6363  ;;  %5853 = vmatprep.subr.bf16.mxu0 %v6830_v50  ;;  %v1505_v53 = vpop.permute.xlu1 %1504 }
 0x183   : > { %9912 = vst [vmem:[#allocation26_spill] sm:$0xff] %v8622_v17  ;;  %6673 = vperm.xlu0 %6301, %v7826_v51   ;;  %1983 = vmatmul.mubr.bf16.gmra.mrb[8].mxu0 %v1700_v63  ;;  %v9918_v51 = vld [vmem:[#allocation44_spill] sm:$0xff]  ;;  %v8642_v57 = vmul.f32 %v1505_v53, %v8629_v8  ;;  %v6832_v8 = vld [vmem:[#allocation12 + $0xb0] sm:$0xff]  }
 0x184   : > { %6678 = vperm.xlu1 %6290, %v9915_v28   ;;  %1990 = vmatprep.mubr.bf16.mxu0 %v8318_v45  ;;  %v1348_v14 = vmul.f32 %v6306_v4, %v9918_v51  ;;  %v6310_v4 = vunpack.i.l.bf16 %v8533_v59  ;;  %v6777_v17 = vld [vmem:[#allocation12 + $0xc0] sm:$0xff]  }
 0x185   : > { %5854 = vmatpush3.bf16.msra.mxu0 %v6830_v50  ;;  %9919 = vst [vmem:[#allocation29_spill] sm:$0xff] %v8642_v57 }
 0x186   : > { %v1510_v63 = vpop.permute.xlu0 %1509  ;;  %5855 = vmatprep.subr.bf16.mxu0 %v6831_v42  ;;  %v8644_v28 = vpop.permute.xlu1 %6368  ;;  %v1703_v40 = vpack.c.bf16 %v1348_v14, %v1347_v62  ;;  %v9929_v14 = vld [vmem:[#allocation43_spill] sm:$0xff] }
 0x187   : > { %9920 = vst [vmem:[#allocation44_spill] sm:$0xff] %v8644_v28  ;;  %v8647_v48 = vmul.f32 %v1510_v63, %v8636_v21  ;;  %6683 = vperm.xlu0 %6301, %v9922_v37   ;;  %v9925_v63 = vld [vmem:[#allocation30_spill] sm:$0xff]  ;;  %v9927_v37 = vld [vmem:[#allocation48_spill] sm:$0xff]  ;;  %v9935_v28 = vld [vmem:[#allocation35_spill] sm:$0xff] }
 0x188   : > { %6688 = vperm.xlu1 %6290, %v7834_v3   ;;  %v9926_v3 = vld [vmem:[#allocation49_spill] sm:$0xff]  ;;  %v1350_v21 = vmul.f32 %v6311_v52, %v9927_v37 }
 0x189   : > { %9921 = vst [vmem:[#allocation111_spill] sm:$0xff] %v8647_v48  ;;  %5856 = vmatpush3.bf16.msra.mxu0 %v6831_v42  ;;  %v1349_v59 = vmul.f32 %v6310_v4, %v9926_v3  ;;  %v6796_v42 = vld [vmem:[#allocation12 + $0x1c0] sm:$0xff]   ;;  %v6315_v4 = vunpack.i.l.bf16 %v8517_v39 }
 0x18a   : > { %v8655_v53 = vpop.permute.xlu0 %6373  ;;  %5857 = vmatprep.subr.bf16.mxu0 %v6832_v8  ;;  %v8657_v2 = vpop.permute.xlu1 %6378 }
 0x18b   : > { %9923 = vst [vmem:[#allocation36_spill] sm:$0xff] %v8655_v53  ;;  %9924 = vst [vmem:[#allocation112_spill] sm:$0xff] %v8657_v2  ;;  %6693 = vperm.xlu0 %6301, %v9925_v63   ;;  %1991 = vmatmul.mubr.bf16.gmra.mrb[12].mxu0 %v1703_v40  ;;  %v9931_v63 = vld [vmem:[#allocation31_spill] sm:$0xff]  ;;  %v1706_v40 = vpack.c.bf16 %v1350_v21, %v1349_v59  ;;  %v9932_v59 = vld [vmem:[#allocation46_spill] sm:$0xff] }
 0x18c   : > { %6698 = vperm.xlu1 %6290, %v7846_v47   ;;  %1998 = vmatprep.mubr.bf16.mxu0 %v8365_v26  ;;  %v6316_v47 = vunpack.i.h.bf16 %v8517_v39  ;;  %v1351_v39 = vmul.f32 %v6315_v4, %v9932_v59 }
 0x18d   : > { %5858 = vmatpush3.bf16.msra.mxu0 %v6832_v8 }
 0x18e   : > { %v8664_v62 = vpop.permute.xlu0 %6383  ;;  %5859 = vmatprep.subr.bf16.mxu0 %v9929_v14  ;;  %v8667_v50 = vpop.permute.xlu1 %6388 }
 0x18f   : > { %9928 = vst [vmem:[#allocation30_spill] sm:$0xff] %v8664_v62  ;;  %9930 = vst [vmem:[#allocation49_spill] sm:$0xff] %v8667_v50  ;;  %6703 = vperm.xlu0 %6301, %v7854_v5  }
 0x190   : > { %6708 = vperm.xlu1 %6290, %v9931_v63  }
 0x191   : > { %5860 = vmatpush3.bf16.msra.mxu0 %v9929_v14  ;;  %v9933_v14 = vld [vmem:[#allocation45_spill] sm:$0xff] }
 0x192   : > { %v6394_v52 = vpop.permute.xlu0 %6393  ;;  %5709 = vmatprep.subr.bf16.mxu0 %v6796_v42  ;;  %v6399_v8 = vpop.permute.xlu1 %6398  ;;  %v1352_v42 = vmul.f32 %v6316_v47, %v9933_v14 }
 0x193   : > { %v6396_v62 = vunpack.i.h.bf16 %v6394_v52  ;;  %v6395_v2 = vunpack.i.l.bf16 %v6394_v52  ;;  %6713 = vperm.xlu0 %6301, %v7852_v10   ;;  %1999 = vmatmul.mubr.bf16.gmra.mrb[16].mxu0 %v1706_v40  ;;  %v6401_v50 = vunpack.i.h.bf16 %v6399_v8  ;;  %v6400_v57 = vunpack.i.l.bf16 %v6399_v8  ;;  %v9934_v52 = vld [vmem:[#allocation82_spill] sm:$0xff] }
 0x194   : > { %6718 = vperm.xlu1 %6290, %v7868_v15   ;;  %2006 = vmatprep.mubr.bf16.mxu0 %v8429_v60 }
 0x195   : > { %v1678_v5 = vmul.f32 %v6395_v2, %v8416_v11  ;;  %v1679_v21 = vmul.f32 %v6396_v62, %v8412_v43  ;;  %v1680_v63 = vmul.f32 %v6400_v57, %v8378_v22  ;;  %v1681_v48 = vmul.f32 %v6401_v50, %v9934_v52  ;;  %v6778_v57 = vld [vmem:[#allocation12 + $0x108] sm:$0xff]  }
 0x196   : > { %v6404_v10 = vpop.permute.xlu0 %6403  ;;  %v6409_v40 = vpop.permute.xlu1 %6408  ;;  %v6321_v50 = vunpack.i.h.bf16 %v8550_v56  ;;  %v6320_v52 = vunpack.i.l.bf16 %v8550_v56  ;;  %v9939_v56 = vld [vmem:[#allocation51_spill] sm:$0xff]  ;;  %v9975_v43 = vld [vmem:[#allocation110_spill] sm:$0xff] }
 0x197   : > { %v6406_v53 = vunpack.i.h.bf16 %v6404_v10  ;;  %v6405_v8 = vunpack.i.l.bf16 %v6404_v10  ;;  %6723 = vperm.xlu0 %6301, %v9935_v28   ;;  %v1720_v15 = vpack.c.bf16 %v1679_v21, %v1678_v5  ;;  %v6411_v33 = vunpack.i.h.bf16 %v6409_v40 }
 0x198   : > { %v6410_v2 = vunpack.i.l.bf16 %v6409_v40  ;;  %6728 = vperm.xlu1 %6290, %v7880_v29   ;;  %v1723_v62 = vpack.c.bf16 %v1681_v48, %v1680_v63  ;;  %v1709_v28 = vpack.c.bf16 %v1352_v42, %v1351_v39  ;;  %v6779_v48 = vld [vmem:[#allocation12 + $0xc8] sm:$0xff]   ;;  %v9936_v63 = vld [vmem:[#allocation83_spill] sm:$0xff]  ;;  %v1353_v39 = vmul.f32 %v6320_v52, %v9939_v56  ;;  %v9940_v42 = vld [vmem:[#allocation52_spill] sm:$0xff] }
 0x199   : > { %v1682_v4 = vmul.f32 %v6405_v8, %v8407_v19  ;;  %v1683_v47 = vmul.f32 %v6406_v53, %v8403_v38  ;;  %5877 = vmatprep.mubr.bf16.mxu1 %v1720_v15  ;;  %v9937_v8 = vld [vmem:[#allocation84_spill] sm:$0xff]  ;;  %v9938_v15 = vld [vmem:[#allocation34_spill] sm:$0xff] }
 0x19a   : > { %v6414_v10 = vpop.permute.xlu0 %6413  ;;  %5878 = vmatmul.mubr.bf16.vlgmr.msra.gmra.mrb[0].mxu1 %v1723_v62  ;;  %v1684_v40 = vmul.f32 %v6410_v2, %v9936_v63  ;;  %v1685_v53 = vmul.f32 %v6411_v33, %v9937_v8  ;;  %v6780_v38 = vld [vmem:[#allocation12 + $0x110] sm:$0xff]   ;;  %v6419_v19 = vpop.permute.xlu1 %6418  ;;  %v1354_v62 = vmul.f32 %v6321_v50, %v9940_v42  ;;  %v6782_v8 = vld [vmem:[#allocation12 + $0x118] sm:$0xff]  }
 0x19b   : > { %v6416_v5 = vunpack.i.h.bf16 %v6414_v10  ;;  %v6415_v21 = vunpack.i.l.bf16 %v6414_v10  ;;  %5574 = vmatpush3.bf16.msra.mxu1 %v6777_v17  ;;  %6733 = vperm.xlu0 %6301, %v9897_v41   ;;  %v1726_v29 = vpack.c.bf16 %v1683_v47, %v1682_v4  ;;  %v6781_v33 = vld [vmem:[#allocation12 + $0xd0] sm:$0xff]   ;;  %v9941_v4 = vld [vmem:[#allocation32_spill] sm:$0xff]  ;;  %v6421_v10 = vunpack.i.h.bf16 %v6419_v19 }
 0x19c   : > { %6738 = vperm.xlu1 %6290, %v9938_v15   ;;  %2007 = vmatmul.mubr.bf16.gmra.mrb[20].mxu0 %v1709_v28  ;;  %v3361_v47 = vmul.f32 0.0, %v9941_v4  ;;  %v6420_v28 = vunpack.i.l.bf16 %v6419_v19  ;;  %v1729_v52 = vpack.c.bf16 %v1685_v53, %v1684_v40  ;;  %v6783_v4 = vld [vmem:[#allocation12 + $0xd8] sm:$0xff]   ;;  %v9943_v19 = vld [vmem:[#allocation37_spill] sm:$0xff]  ;;  %v9945_v40 = vld [vmem:[#allocation90_spill] sm:$0xff] }
 0x19d   : > { %5881 = vmatprep.mubr.bf16.mxu1 %v1726_v29  ;;  %5575 = vmatprep.subr.bf16.mxu1 %v6778_v57  ;;  %v1686_v41 = vmul.f32 %v6415_v21, %v8440_v1  ;;  %v1687_v2 = vmul.f32 %v6416_v5, %v8436_v27  ;;  %v9942_v57 = vld [vmem:[#allocation33_spill] sm:$0xff]  ;;  %v6326_v21 = vunpack.i.h.bf16 %v8567_v12  ;;  %v6325_v5 = vunpack.i.l.bf16 %v8567_v12 }
 0x19e   : > { %v6424_v17 = vpop.permute.xlu0 %6423  ;;  %2014 = vmatprep.mubr.bf16.mxu0 %v8445_v44  ;;  %v3362_v50 = vmul.f32 0.0, %v9942_v57  ;;  %v3617_v27 = vmul.f32 0.0, %v9943_v19  ;;  %v1689_v53 = vmul.f32 %v6421_v10, %v9945_v40  ;;  %v6784_v1 = vld [vmem:[#allocation12 + $0x120] sm:$0xff]   ;;  %v6429_v63 = vpop.permute.xlu1 %6428 }
 0x19f   : > { %5576 = vmatpush3.bf16.msra.mxu1 %v6779_v48  ;;  %6743 = vperm.xlu0 %6301, %v9900_v9   ;;  %v6426_v29 = vunpack.i.h.bf16 %v6424_v17  ;;  %v6425_v15 = vunpack.i.l.bf16 %v6424_v17  ;;  %v1712_v9 = vpack.c.bf16 %v1354_v62, %v1353_v39  ;;  %v1732_v48 = vpack.c.bf16 %v1687_v2, %v1686_v41  ;;  %v9946_v17 = vld [vmem:[#allocation38_spill] sm:$0xff]  ;;  %v9947_v62 = vld [vmem:[#allocation56_spill] sm:$0xff]  ;;  %v9948_v2 = vld [vmem:[#allocation55_spill] sm:$0xff] }
 0x1a0   : > { %6748 = vperm.xlu1 %6290, %v9903_v58   ;;  %5577 = vmatprep.subr.bf16.mxu1 %v6780_v38  ;;  %v9944_v58 = vld [vmem:[#allocation89_spill] sm:$0xff]  ;;  %v3618_v57 = vmul.f32 0.0, %v9946_v17  ;;  %v1355_v41 = vmul.f32 %v6325_v5, %v9947_v62  ;;  %v6431_v10 = vunpack.i.h.bf16 %v6429_v63  ;;  %v6331_v5 = vunpack.i.h.bf16 %v8569_v36  ;;  %v9954_v17 = vld [vmem:[#allocation54_spill] sm:$0xff] }
 0x1a1   : > { %v1688_v38 = vmul.f32 %v6420_v28, %v9944_v58  ;;  %v1690_v12 = vmul.f32 %v6425_v15, %v8471_v31  ;;  %v1691_v39 = vmul.f32 %v6426_v29, %v8467_v20  ;;  %v6430_v28 = vunpack.i.l.bf16 %v6429_v63  ;;  %v9952_v63 = vld [vmem:[#allocation94_spill] sm:$0xff] }
 0x1a2   : > { %5882 = vmatmul.mubr.bf16.gmra.mrb[4].mxu1 %v1729_v52  ;;  %v9949_v15 = vrot.slane %v8091_v34, 1  ;;  %v9950_v29 = vrot.slane %v8270_v18, 1  ;;  %v6788_v18 = vld [vmem:[#allocation12 + $0x130] sm:$0xff]   ;;  %v6434_v19 = vpop.permute.xlu0 %6433 }
 0x1a3   : > { %5578 = vmatpush3.bf16.msra.mxu1 %v6781_v33  ;;  %3515 = vperm.xlu0 %6301, %v3361_v47   ;;  %v1356_v33 = vmul.f32 %v6326_v21, %v9948_v2  ;;  %v6785_v47 = vld [vmem:[#allocation12 + $0xe0] sm:$0xff]   ;;  %v1735_v52 = vpack.c.bf16 %v1689_v53, %v1688_v38  ;;  %v1738_v21 = vpack.c.bf16 %v1691_v39, %v1690_v12  ;;  %v6436_v12 = vunpack.i.h.bf16 %v6434_v19  ;;  %v9974_v58 = vld [vmem:[#allocation26_spill] sm:$0xff] }
 0x1a4   : > { %3520 = vperm.xlu1 %6290, %v3362_v50   ;;  %2015 = vmatmul.mubr.bf16.gmra.mrb[24].mxu0 %v1712_v9  ;;  %v6786_v50 = vld [vmem:[#allocation12 + $0x128] sm:$0xff]   ;;  %v6435_v39 = vunpack.i.l.bf16 %v6434_v19  ;;  %v6340_v19 = vunpack.i.l.bf16 %v8579_v55  ;;  %v6366_v22 = vunpack.i.h.bf16 %v9974_v58 }
 0x1a5   : > { %5885 = vmatprep.mubr.bf16.mxu1 %v1732_v48  ;;  %5579 = vmatprep.subr.bf16.mxu1 %v6782_v8  ;;  %v8719_v8 = vsel %vm1437_vm1, %v9950_v29, %v9949_v15  ;;  %v1715_v9 = vpack.c.bf16 %v1356_v33, %v1355_v41  ;;  %v1692_v48 = vmul.f32 %v6430_v28, %v9952_v63  ;;  %v9953_v38 = vld [vmem:[#allocation53_spill] sm:$0xff]  ;;  %v6790_v33 = vld [vmem:[#allocation12 + $0x138] sm:$0xff]  }
 0x1a6   : > { %2022 = vmatprep.mubr.bf16.mxu0 %v8459_v35  ;;  %9951 = vst [vmem:[#allocation48_spill] sm:$0xff] %v8719_v8  ;;  %v2449_v15 = vmul.f32 %v6436_v12, %v8561_v49  ;;  %v6792_v29 = vld [vmem:[#allocation12 + $0x140] sm:$0xff]   ;;  %v6794_v12 = vld [vmem:[#allocation12 + $0x150] sm:$0xff]  }
 0x1a7   : > { %5580 = vmatpush3.bf16.msra.mxu1 %v6783_v4  ;;  %3771 = vperm.xlu0 %6301, %v3617_v27   ;;  %v6330_v27 = vunpack.i.l.bf16 %v8569_v36  ;;  %v1693_v4 = vmul.f32 %v6431_v10, %v8719_v8  ;;  %v6789_v36 = vld [vmem:[#allocation12 + $0xf0] sm:$0xff]   ;;  %v6335_v10 = vunpack.i.l.bf16 %v8577_v61 }
 0x1a8   : > { %3776 = vperm.xlu1 %6290, %v3618_v57   ;;  %5581 = vmatprep.subr.bf16.mxu1 %v6784_v1  ;;  %v6787_v1 = vld [vmem:[#allocation12 + $0xe8] sm:$0xff]   ;;  %v1358_v57 = vmul.f32 %v6331_v5, %v9954_v17  ;;  %v9955_v5 = vld [vmem:[#allocation60_spill] sm:$0xff] }
 0x1a9   : > { %v1357_v53 = vmul.f32 %v6330_v27, %v9953_v38  ;;  %v1741_v41 = vpack.c.bf16 %v1693_v4, %v1692_v48  ;;  %v1359_v27 = vmul.f32 %v6335_v10, %v9955_v5  ;;  %v9959_v10 = vld [vmem:[#allocation57_spill] sm:$0xff] }
 0x1aa   : > { %5886 = vmatmul.mubr.bf16.gmra.mrb[8].mxu1 %v1735_v52  ;;  %v6791_v52 = vld [vmem:[#allocation12 + $0xf8] sm:$0xff]  }
 0x1ab   : > { %5582 = vmatpush3.bf16.msra.mxu1 %v6785_v47  ;;  %5889 = vmatprep.mubr.bf16.mxu1 %v1738_v21  ;;  %v6336_v47 = vunpack.i.h.bf16 %v8577_v61  ;;  %v1718_v28 = vpack.c.bf16 %v1358_v57, %v1357_v53  ;;  %v6439_v21 = vpop.permute.xlu1 %6438 }
 0x1ac   : > { %2023 = vmatmul.mubr.bf16.gmra.mrb[28].mxu0 %v1715_v9  ;;  %5583 = vmatprep.subr.bf16.mxu1 %v6786_v50  ;;  %v2448_v50 = vmul.f32 %v6435_v39, %v8565_v6  ;;  %v9956_v9 = vld [vmem:[#allocation59_spill] sm:$0xff]  ;;  %v6440_v48 = vunpack.i.l.bf16 %v6439_v21  ;;  %v6444_v39 = vpop.permute.xlu0 %6443 }
 0x1ad   : > { %2030 = vmatprep.mubr.bf16.mxu0 %v8463_v25  ;;  %v1360_v61 = vmul.f32 %v6336_v47, %v9956_v9 }
 0x1ae   : > { %v2672_v4 = vpack.c.bf16 %v2449_v15, %v2448_v50  ;;  %v2450_v57 = vmul.f32 %v6440_v48, %v8594_v7  ;;  %v6795_v15 = vld [vmem:[#allocation12 + $0x158] sm:$0xff]   ;;  %v6800_v48 = vld [vmem:[#allocation12 + $0x160] sm:$0xff]  }
 0x1af   : > { %5584 = vmatpush3.bf16.msra.mxu1 %v6787_v1  ;;  %v6441_v1 = vunpack.i.h.bf16 %v6439_v21  ;;  %v1721_v53 = vpack.c.bf16 %v1360_v61, %v1359_v27  ;;  %v6345_v21 = vunpack.i.l.bf16 %v8596_v46 }
 0x1b0   : > { %5585 = vmatprep.subr.bf16.mxu1 %v6788_v18  ;;  %v6341_v18 = vunpack.i.h.bf16 %v8579_v55  ;;  %v6446_v55 = vunpack.i.h.bf16 %v6444_v39 }
 0x1b2   : > { %5890 = vmatmul.mubr.bf16.gmra.mrb[12].mxu1 %v1741_v41  ;;  %v9957_v41 = vld [vmem:[#allocation100_spill] sm:$0xff] }
 0x1b3   : > { %5586 = vmatpush3.bf16.msra.mxu1 %v6789_v36  ;;  %2945 = vmatprep.mubr.bf16.mxu1 %v8557_v30  ;;  %v6793_v30 = vld [vmem:[#allocation12 + $0x148] sm:$0xff]   ;;  %v2451_v36 = vmul.f32 %v6441_v1, %v8590_v13  ;;  %v2453_v1 = vmul.f32 %v6446_v55, %v9918_v51 }
 0x1b4   : > { %2031 = vmatmul.mubr.bf16.gmra.mrb[32].mxu0 %v1718_v28  ;;  %5587 = vmatprep.subr.bf16.mxu1 %v6790_v33  ;;  %v9958_v33 = vld [vmem:[#allocation58_spill] sm:$0xff]  ;;  %v1362_v28 = vmul.f32 %v6341_v18, %v9959_v10  ;;  %v9961_v18 = vld [vmem:[#allocation65_spill] sm:$0xff] }
 0x1b5   : > { %2038 = vmatprep.mubr.bf16.mxu0 %v8475_v24  ;;  %v1361_v47 = vmul.f32 %v6340_v19, %v9958_v33  ;;  %v2675_v50 = vpack.c.bf16 %v2451_v36, %v2450_v57  ;;  %v1363_v19 = vmul.f32 %v6345_v21, %v9961_v18  ;;  %v9963_v21 = vld [vmem:[#allocation103_spill] sm:$0xff] }
 0x1b7   : > { %5588 = vmatpush3.bf16.msra.mxu1 %v6791_v52  ;;  %v6445_v52 = vunpack.i.l.bf16 %v6444_v39  ;;  %v1724_v27 = vpack.c.bf16 %v1362_v28, %v1361_v47  ;;  %v6351_v47 = vunpack.i.h.bf16 %v8598_v23  ;;  %v6350_v28 = vunpack.i.l.bf16 %v8598_v23 }
 0x1b8   : > { %5893 = vmatprep.subr.bf16.mxu1 %v6792_v29 }
 0x1b9   : > { %v2452_v61 = vmul.f32 %v6445_v52, %v8620_v54 }
 0x1ba   : > { %2946 = vmatmul.mubr.bf16.vlgmr.msra.gmra.mrb[16].mxu1 %v2672_v4  ;;  %v6449_v4 = vpop.permute.xlu1 %6448 }
 0x1bb   : > { %5894 = vmatpush3.bf16.msra.mxu1 %v6792_v29  ;;  %2953 = vmatprep.mubr.bf16.mxu1 %v8586_v32  ;;  %v6346_v29 = vunpack.i.h.bf16 %v8596_v46  ;;  %v6451_v46 = vunpack.i.h.bf16 %v6449_v4  ;;  %v6450_v36 = vunpack.i.l.bf16 %v6449_v4  ;;  %v2678_v39 = vpack.c.bf16 %v2453_v1, %v2452_v61  ;;  %v9965_v1 = vld [vmem:[#allocation61_spill] sm:$0xff] }
 0x1bc   : > { %2039 = vmatmul.mubr.bf16.gmra.mrb[36].mxu0 %v1721_v53  ;;  %5895 = vmatprep.subr.bf16.mxu1 %v6793_v30  ;;  %v9962_v53 = vld [vmem:[#allocation64_spill] sm:$0xff]  ;;  %v1366_v4 = vmul.f32 %v6351_v47, %v9965_v1 }
 0x1bd   : > { %2046 = vmatprep.mubr.bf16.mxu0 %v9957_v41  ;;  %v1364_v57 = vmul.f32 %v6346_v29, %v9962_v53  ;;  %v2454_v52 = vmul.f32 %v6450_v36, %v9926_v3  ;;  %v6454_v29 = vpop.permute.xlu0 %6453  ;;  %v6356_v36 = vunpack.i.h.bf16 %v8605_v16 }
 0x1be   : > { %v6459_v23 = vpop.permute.xlu1 %6458 }
 0x1bf   : > { %5896 = vmatpush3.bf16.msra.mxu1 %v6793_v30  ;;  %v9960_v30 = vld [vmem:[#allocation101_spill] sm:$0xff]  ;;  %v1727_v55 = vpack.c.bf16 %v1364_v57, %v1363_v19  ;;  %v6456_v19 = vunpack.i.h.bf16 %v6454_v29  ;;  %v6455_v57 = vunpack.i.l.bf16 %v6454_v29 }
 0x1c0   : > { %5897 = vmatprep.subr.bf16.mxu1 %v6794_v12  ;;  %v9968_v29 = vld [vmem:[#allocation69_spill] sm:$0xff] }
 0x1c1   : > { %v6464_v6 = vpop.permute.xlu0 %6463  ;;  %v2457_v47 = vmul.f32 %v6456_v19, %v9933_v14  ;;  %v9970_v19 = vld [vmem:[#allocation42_spill] sm:$0xff]  ;;  %v9991_v14 = vld [vmem:[#allocation112_spill] sm:$0xff] }
 0x1c2   : > { %2954 = vmatmul.mubr.bf16.gmra.mrb[20].mxu1 %v2675_v50  ;;  %v2455_v50 = vmul.f32 %v6451_v46, %v9927_v37  ;;  %v6355_v46 = vunpack.i.l.bf16 %v8605_v16  ;;  %v9969_v16 = vld [vmem:[#allocation68_spill] sm:$0xff] }
 0x1c3   : > { %2961 = vmatprep.mubr.bf16.mxu1 %v8318_v45  ;;  %5898 = vmatpush3.bf16.msra.mxu1 %v6794_v12  ;;  %v6809_v12 = vld [vmem:[#allocation12 + $0x168] sm:$0xff]  }
 0x1c4   : > { %2047 = vmatmul.mubr.bf16.gmra.mrb[40].mxu0 %v1724_v27  ;;  %5899 = vmatprep.subr.bf16.mxu1 %v6795_v15  ;;  %v9964_v27 = vld [vmem:[#allocation62_spill] sm:$0xff]  ;;  %v1367_v49 = vmul.f32 %v6355_v46, %v9968_v29 }
 0x1c5   : > { %2054 = vmatprep.mubr.bf16.mxu0 %v9960_v30  ;;  %v1365_v61 = vmul.f32 %v6350_v28, %v9964_v27  ;;  %v2456_v28 = vmul.f32 %v6455_v57, %v9932_v59  ;;  %v6361_v57 = vunpack.i.h.bf16 %v9970_v19  ;;  %v9972_v46 = vld [vmem:[#allocation66_spill] sm:$0xff] }
 0x1c7   : > { %5900 = vmatpush3.bf16.msra.mxu1 %v6795_v15  ;;  %v6814_v15 = vld [vmem:[#allocation12 + $0x170] sm:$0xff]   ;;  %v2684_v8 = vpack.c.bf16 %v2457_v47, %v2456_v28 }
 0x1c8   : > { %5901 = vmatprep.subr.bf16.mxu1 %v6800_v48  ;;  %v9973_v47 = vld [vmem:[#allocation67_spill] sm:$0xff] }
 0x1c9   : > { %v1370_v31 = vmul.f32 %v6361_v57, %v9973_v47 }
 0x1ca   : > { %2962 = vmatmul.mubr.bf16.gmra.mrb[24].mxu1 %v2678_v39  ;;  %v2681_v39 = vpack.c.bf16 %v2455_v50, %v2454_v52  ;;  %v6469_v52 = vpop.permute.xlu1 %6468  ;;  %v9967_v50 = vld [vmem:[#allocation107_spill] sm:$0xff] }
 0x1cb   : > { %2969 = vmatprep.mubr.bf16.mxu1 %v8365_v26  ;;  %5902 = vmatpush3.bf16.msra.mxu1 %v6800_v48  ;;  %v6815_v48 = vld [vmem:[#allocation12 + $0x178] sm:$0xff]  }
 0x1cc   : > { %2055 = vmatmul.mubr.bf16.gmra.mrb[44].mxu0 %v1727_v55  ;;  %5903 = vmatprep.subr.bf16.mxu1 %v6809_v12  ;;  %v1730_v55 = vpack.c.bf16 %v1366_v4, %v1365_v61  ;;  %v6461_v61 = vunpack.i.h.bf16 %v6459_v23  ;;  %v6460_v4 = vunpack.i.l.bf16 %v6459_v23  ;;  %v9971_v23 = vld [vmem:[#allocation108_spill] sm:$0xff] }
 0x1cd   : > { %2062 = vmatprep.mubr.bf16.mxu0 %v9963_v21 }
 0x1ce   : > { %v8775_v20 = vpop.permute.xlu1 %6478 }
 0x1cf   : > { %5904 = vmatpush3.bf16.msra.mxu1 %v6809_v12  ;;  %v8765_v12 = vld [vmem:[#allocation12 + $0x200] sm:$0xff]  }
 0x1d0   : > { %5905 = vmatprep.subr.bf16.mxu1 %v6814_v15  ;;  %9966 = vst [vmem:[#allocation43_spill] sm:$0xff] %v8765_v12 }
 0x1d2   : > { %2970 = vmatmul.mubr.bf16.gmra.mrb[28].mxu1 %v2681_v39  ;;  %v1368_v39 = vmul.f32 %v6356_v36, %v9969_v16  ;;  %v2458_v36 = vmul.f32 %v6460_v4, %v9939_v56  ;;  %v6365_v4 = vunpack.i.l.bf16 %v9974_v58  ;;  %v6471_v58 = vunpack.i.h.bf16 %v6469_v52 }
 0x1d3   : > { %2977 = vmatprep.mubr.bf16.mxu1 %v8429_v60  ;;  %5906 = vmatpush3.bf16.msra.mxu1 %v6814_v15  ;;  %v8771_v15 = vpop.permute.xlu0 %6473 }
 0x1d4   : > { %2063 = vmatmul.mubr.bf16.gmra.mrb[48].mxu0 %v1730_v55  ;;  %5907 = vmatprep.subr.bf16.mxu1 %v6815_v48  ;;  %v6360_v55 = vunpack.i.l.bf16 %v9970_v19  ;;  %v1733_v63 = vpack.c.bf16 %v1368_v39, %v1367_v49  ;;  %v6466_v19 = vunpack.i.h.bf16 %v6464_v6  ;;  %v8785_v39 = vpop.permute.xlu1 %6488 }
 0x1d5   : > { %2070 = vmatprep.mubr.bf16.mxu0 %v9967_v50 }
 0x1d6   : > { %v1369_v28 = vmul.f32 %v6360_v55, %v9972_v46  ;;  %v2461_v55 = vmul.f32 %v6466_v19, %v9948_v2 }
 0x1d7   : > { %5908 = vmatpush3.bf16.msra.mxu1 %v6815_v48  ;;  %v2459_v48 = vmul.f32 %v6461_v61, %v9940_v42  ;;  %v8783_v40 = vpop.permute.xlu0 %6483 }
 0x1d8   : > { %5941 = vmatprep.subr.bf16.mxu1 %v8765_v12  ;;  %v1736_v61 = vpack.c.bf16 %v1370_v31, %v1369_v28  ;;  %v8797_v12 = vpop.permute.xlu1 %6498  ;;  %v9978_v28 = vld [vmem:[#allocation44_spill] sm:$0xff] }
 0x1d9   : > { %v2687_v49 = vpack.c.bf16 %v2459_v48, %v2458_v36  ;;  %v9977_v48 = vld [vmem:[#allocation71_spill] sm:$0xff] }
 0x1da   : > { %2978 = vmatmul.mubr.bf16.gmra.mrb[32].mxu1 %v2684_v8  ;;  %v6465_v8 = vunpack.i.l.bf16 %v6464_v6  ;;  %v9976_v6 = vld [vmem:[#allocation72_spill] sm:$0xff]  ;;  %v1372_v11 = vmul.f32 %v6366_v22, %v9977_v48 }
 0x1db   : > { %2985 = vmatprep.mubr.bf16.mxu1 %v8445_v44  ;;  %v8792_v57 = vpop.permute.xlu0 %6493  ;;  %v1371_v36 = vmul.f32 %v6365_v4, %v9976_v6  ;;  %v9984_v22 = vld [vmem:[#allocation36_spill] sm:$0xff] }
 0x1dc   : > { %2071 = vmatmul.mubr.bf16.gmra.mrb[52].mxu0 %v1733_v63  ;;  %v2460_v63 = vmul.f32 %v6465_v8, %v9947_v62  ;;  %v6370_v8 = vunpack.i.l.bf16 %v9978_v28  ;;  %v9981_v62 = vld [vmem:[#allocation109_spill] sm:$0xff]  ;;  %v6376_v56 = vunpack.i.h.bf16 %v9984_v22  ;;  %v6375_v44 = vunpack.i.l.bf16 %v9984_v22  ;;  %v9989_v22 = vld [vmem:[#allocation76_spill] sm:$0xff] }
 0x1dd   : > { %2078 = vmatprep.mubr.bf16.mxu0 %v9971_v23  ;;  %v1739_v19 = vpack.c.bf16 %v1372_v11, %v1371_v36  ;;  %v9982_v42 = vrot.slane %v9981_v62, 1  ;;  %v2463_v11 = vmul.f32 %v6471_v58, %v9954_v17  ;;  %v9985_v36 = vld [vmem:[#allocation111_spill] sm:$0xff]  ;;  %v6797_v17 = vld [vmem:[#allocation12 + $0x180] sm:$0xff]  }
 0x1de   : > { %v2690_v31 = vpack.c.bf16 %v2461_v55, %v2460_v63  ;;  %v8816_v55 = vpop.permute.xlu1 %6508  ;;  %v9990_v62 = vld [vmem:[#allocation75_spill] sm:$0xff] }
 0x1df   : > { %v1667_v34 = vmul.f32 %v6376_v56, %v9990_v62 }
 0x1e2   : > { %2986 = vmatmul.mubr.bf16.gmra.mrb[36].mxu1 %v2687_v49  ;;  %v6470_v49 = vunpack.i.l.bf16 %v6469_v52  ;;  %v8811_v52 = vpop.permute.xlu0 %6503  ;;  %v8833_v56 = vpop.permute.xlu1 %6518 }
 0x1e3   : > { %2993 = vmatprep.mubr.bf16.mxu1 %v8459_v35  ;;  %v6371_v35 = vunpack.i.h.bf16 %v9978_v28 }
 0x1e4   : > { %2079 = vmatmul.mubr.bf16.gmra.mrb[56].mxu0 %v1736_v61  ;;  %v9979_v61 = vld [vmem:[#allocation63_spill] sm:$0xff]  ;;  %v2462_v63 = vmul.f32 %v6470_v49, %v9953_v38  ;;  %v6475_v49 = vunpack.i.l.bf16 %v8771_v15 }
 0x1e5   : > { %2086 = vmatprep.mubr.bf16.mxu0 %v9975_v43  ;;  %v9980_v2 = vrot.slane %v9979_v61, 1  ;;  %v1666_v61 = vmul.f32 %v6375_v44, %v9989_v22  ;;  %v6801_v22 = vld [vmem:[#allocation12 + $0x1d0] sm:$0xff]  }
 0x1e6   : > { %v2693_v58 = vpack.c.bf16 %v2463_v11, %v2462_v63  ;;  %v6799_v11 = vld [vmem:[#allocation12 + $0x188] sm:$0xff]  }
 0x1e7   : > { %v8807_v4 = vsel %vm1437_vm1, %v9982_v42, %v9980_v2  ;;  %v9988_v2 = vld [vmem:[#allocation70_spill] sm:$0xff]  ;;  %v1702_v62 = vpack.c.bf16 %v1667_v34, %v1666_v61 }
 0x1e8   : > { %9983 = vst [vmem:[#allocation31_spill] sm:$0xff] %v8807_v4  ;;  %v1664_v42 = vmul.f32 %v6370_v8, %v8807_v4  ;;  %v1665_v28 = vmul.f32 %v6371_v35, %v9988_v2  ;;  %v6798_v8 = vld [vmem:[#allocation12 + $0x1c8] sm:$0xff]   ;;  %v9996_v4 = vld [vmem:[#allocation79_spill] sm:$0xff] }
 0x1e9   : > { %v9992_v35 = vld [vmem:[#allocation30_spill] sm:$0xff] }
 0x1ea   : > { %2994 = vmatmul.mubr.bf16.gmra.mrb[40].mxu1 %v2690_v31  ;;  %v9986_v31 = vld [vmem:[#allocation29_spill] sm:$0xff]  ;;  %v1699_v38 = vpack.c.bf16 %v1665_v28, %v1664_v42  ;;  %v6385_v44 = vunpack.i.l.bf16 %v9992_v35  ;;  %v9994_v28 = vld [vmem:[#allocation74_spill] sm:$0xff] }
 0x1eb   : > { %3001 = vmatprep.mubr.bf16.mxu1 %v8463_v25  ;;  %v9987_v0 = vpack.c.bf16 %v9985_v36, %v9986_v31  ;;  %v6476_v25 = vunpack.i.h.bf16 %v8771_v15  ;;  %v6381_v36 = vunpack.i.h.bf16 %v9991_v14  ;;  %v6380_v31 = vunpack.i.l.bf16 %v9991_v14  ;;  %v9993_v14 = vld [vmem:[#allocation73_spill] sm:$0xff] }
 0x1ec   : > { %2087 = vmatmul.mubr.bf16.gmra.mrb[60].mxu0 %v1739_v19  ;;  %v8827_v19 = vpop.permute.xlu0 %6513  ;;  %v2464_v15 = vmul.f32 %v6475_v49, %v9955_v5  ;;  %v6481_v49 = vunpack.i.h.bf16 %v8775_v20  ;;  %v6510_v5 = vunpack.i.l.bf16 %v8816_v55 }
 0x1ed   : > { %5861 = vmatprep.mubr.bf16.mxu0 %v9987_v0  ;;  %v6386_v0 = vunpack.i.h.bf16 %v9992_v35  ;;  %v2465_v63 = vmul.f32 %v6476_v25, %v9956_v9  ;;  %v1668_v42 = vmul.f32 %v6380_v31, %v9993_v14  ;;  %v9995_v35 = vld [vmem:[#allocation80_spill] sm:$0xff]  ;;  %v6480_v25 = vunpack.i.l.bf16 %v8775_v20  ;;  %v9997_v31 = vld [vmem:[#allocation49_spill] sm:$0xff] }
 0x1ee   : > { %v1670_v2 = vmul.f32 %v6385_v44, %v9995_v35  ;;  %v6391_v9 = vunpack.i.h.bf16 %v9997_v31  ;;  %v6803_v44 = vld [vmem:[#allocation12 + $0x1d8] sm:$0xff]  }
 0x1ef   : > { %v1671_v34 = vmul.f32 %v6386_v0, %v9996_v4  ;;  %v6511_v0 = vunpack.i.h.bf16 %v8816_v55  ;;  %v2466_v20 = vmul.f32 %v6480_v25, %v9958_v33  ;;  %v10000_v4 = vld [vmem:[#allocation102_spill] sm:$0xff]  ;;  %v6486_v25 = vunpack.i.h.bf16 %v8783_v40 }
 0x1f0   : > { %v8842_v61 = vpop.permute.xlu0 %6523  ;;  %v1674_v55 = vmul.f32 %v6510_v5, %v10000_v4 }
 0x1f2   : > { %3002 = vmatmul.mubr.bf16.gmra.mrb[44].mxu1 %v2693_v58  ;;  %v1669_v58 = vmul.f32 %v6381_v36, %v9994_v28  ;;  %v6390_v36 = vunpack.i.l.bf16 %v9997_v31  ;;  %v6805_v31 = vld [vmem:[#allocation12 + $0x1e0] sm:$0xff]  }
 0x1f3   : > { %3009 = vmatprep.mubr.bf16.mxu1 %v8475_v24  ;;  %v1708_v24 = vpack.c.bf16 %v1671_v34, %v1670_v2  ;;  %v10001_v2 = vld [vmem:[#allocation104_spill] sm:$0xff] }
 0x1f4   : > { %5862 = vmatmul.mubr.bf16.vlgmr.msra.gmra.mrb[64].mxu0 %v1699_v38  ;;  %v2696_v38 = vpack.c.bf16 %v2465_v63, %v2464_v15  ;;  %v2467_v15 = vmul.f32 %v6481_v49, %v9959_v10  ;;  %v6534_v63 = vpop.permute.xlu0 %6533  ;;  %v1675_v34 = vmul.f32 %v6511_v0, %v10001_v2  ;;  %v6485_v49 = vunpack.i.l.bf16 %v8783_v40 }
 0x1f5   : > { %5865 = vmatprep.mubr.bf16.mxu0 %v1702_v62  ;;  %5710 = vmatpush3.bf16.msra.mxu0 %v6797_v17  ;;  %v8846_v62 = vpop.permute.xlu1 %6528  ;;  %v6802_v17 = vld [vmem:[#allocation12 + $0x190] sm:$0xff]   ;;  %v2469_v40 = vmul.f32 %v6486_v25, %v9962_v53 }
 0x1f6   : > { %5711 = vmatprep.subr.bf16.mxu0 %v6798_v8  ;;  %v1705_v8 = vpack.c.bf16 %v1669_v58, %v1668_v42  ;;  %v1714_v0 = vpack.c.bf16 %v1675_v34, %v1674_v55  ;;  %v2468_v10 = vmul.f32 %v6485_v49, %v9961_v18  ;;  %v6490_v55 = vunpack.i.l.bf16 %v8785_v39  ;;  %v6811_v25 = vld [vmem:[#allocation12 + $0x1b0] sm:$0xff]  }
 0x1f7   : > { %v6536_v49 = vunpack.i.h.bf16 %v6534_v63 }
 0x1f8   : > { %v8865_v5 = vpop.permute.xlu0 %6543  ;;  %v2702_v34 = vpack.c.bf16 %v2469_v40, %v2468_v10  ;;  %v6813_v10 = vld [vmem:[#allocation12 + $0x1b8] sm:$0xff]  }
 0x1f9   : > { %5712 = vmatpush3.bf16.msra.mxu0 %v6799_v11  ;;  %v6804_v11 = vld [vmem:[#allocation12 + $0x198] sm:$0xff]  }
 0x1fa   : > { %3010 = vmatmul.mubr.bf16.gmra.mrb[48].mxu1 %v2696_v38  ;;  %5713 = vmatprep.subr.bf16.mxu0 %v6801_v22  ;;  %v9998_v38 = vld [vmem:[#allocation77_spill] sm:$0xff]  ;;  %v9999_v22 = vld [vmem:[#allocation78_spill] sm:$0xff] }
 0x1fb   : > { %3017 = vmatprep.mubr.bf16.mxu1 %v9957_v41  ;;  %v1672_v42 = vmul.f32 %v6390_v36, %v9998_v38  ;;  %v1673_v58 = vmul.f32 %v6391_v9, %v9999_v22  ;;  %v8859_v41 = vpop.permute.xlu1 %6538  ;;  %v6515_v36 = vunpack.i.l.bf16 %v8827_v19 }
 0x1fc   : > { %5866 = vmatmul.mubr.bf16.gmra.mrb[68].mxu0 %v1705_v8  ;;  %v2699_v8 = vpack.c.bf16 %v2467_v15, %v2466_v20  ;;  %v6808_v15 = vld [vmem:[#allocation12 + $0x1a8] sm:$0xff]  }
 0x1fd   : > { %5869 = vmatprep.mubr.bf16.mxu0 %v1708_v24  ;;  %5714 = vmatpush3.bf16.msra.mxu0 %v6802_v17  ;;  %v6806_v24 = vld [vmem:[#allocation12 + $0x1a0] sm:$0xff]   ;;  %v6516_v17 = vunpack.i.h.bf16 %v8827_v19  ;;  %v1711_v9 = vpack.c.bf16 %v1673_v58, %v1672_v42  ;;  %v6810_v58 = vld [vmem:[#allocation12 + $0x1f0] sm:$0xff]  }
 0x1fe   : > { %5715 = vmatprep.subr.bf16.mxu0 %v6803_v44  ;;  %v6807_v44 = vld [vmem:[#allocation12 + $0x1e8] sm:$0xff]  }
 0x1ff   : > { %v6549_v20 = vpop.permute.xlu1 %6548 }
 0x201   : > { %5716 = vmatpush3.bf16.msra.mxu0 %v6804_v11  ;;  %v10002_v11 = vld [vmem:[#allocation106_spill] sm:$0xff] }
 0x202   : > { %3018 = vmatmul.mubr.bf16.gmra.mrb[52].mxu1 %v2699_v8  ;;  %5717 = vmatprep.subr.bf16.mxu0 %v6805_v31  ;;  %v1676_v19 = vmul.f32 %v6515_v36, %v10002_v11  ;;  %v10003_v8 = vld [vmem:[#allocation105_spill] sm:$0xff]  ;;  %v6491_v31 = vunpack.i.h.bf16 %v8785_v39 }
 0x203   : > { %3025 = vmatprep.mubr.bf16.mxu1 %v9960_v30  ;;  %v1677_v42 = vmul.f32 %v6516_v17, %v10003_v8  ;;  %v8874_v30 = vpop.permute.xlu0 %6553  ;;  %v8876_v36 = vpop.permute.xlu1 %6558  ;;  %v2470_v17 = vmul.f32 %v6490_v55, %v9964_v27  ;;  %v6551_v55 = vunpack.i.h.bf16 %v6549_v20 }
 0x204   : > { %5870 = vmatmul.mubr.bf16.gmra.mrb[72].mxu0 %v1711_v9  ;;  %v6535_v9 = vunpack.i.l.bf16 %v6534_v63  ;;  %v3524_v63 = vmul.f32 %v6536_v49, %v8590_v13 }
 0x205   : > { %5873 = vmatprep.mubr.bf16.mxu0 %v1714_v0  ;;  %5718 = vmatpush3.bf16.msra.mxu0 %v6806_v24  ;;  %v1717_v24 = vpack.c.bf16 %v1677_v42, %v1676_v19  ;;  %v6812_v0 = vld [vmem:[#allocation12 + $0x1f8] sm:$0xff]   ;;  %v6495_v19 = vunpack.i.l.bf16 %v8792_v57 }
 0x206   : > { %5719 = vmatprep.subr.bf16.mxu0 %v6807_v44  ;;  %v2471_v44 = vmul.f32 %v6491_v31, %v9965_v1  ;;  %v3523_v39 = vmul.f32 %v6535_v9, %v8594_v7  ;;  %v6501_v9 = vunpack.i.h.bf16 %v8797_v12 }
 0x207   : > { %v6564_v40 = vpop.permute.xlu0 %6563  ;;  %v2472_v7 = vmul.f32 %v6495_v19, %v9968_v29 }
 0x208   : > { %v2705_v42 = vpack.c.bf16 %v2471_v44, %v2470_v17  ;;  %v3811_v31 = vpack.c.bf16 %v3524_v63, %v3523_v39  ;;  %v6565_v17 = vunpack.i.l.bf16 %v6564_v40  ;;  %v6506_v63 = vunpack.i.h.bf16 %v8811_v52 }
 0x209   : > { %5720 = vmatpush3.bf16.msra.mxu0 %v6808_v15  ;;  %v6496_v15 = vunpack.i.h.bf16 %v8792_v57 }
 0x20a   : > { %3026 = vmatmul.mubr.bf16.gmra.mrb[56].mxu1 %v2702_v34  ;;  %5721 = vmatprep.subr.bf16.mxu0 %v6810_v58  ;;  %v8886_v58 = vpop.permute.xlu1 %6568  ;;  %v6550_v34 = vunpack.i.l.bf16 %v6549_v20  ;;  %v6500_v20 = vunpack.i.l.bf16 %v8797_v12  ;;  %v3527_v12 = vmul.f32 %v6565_v17, %v9926_v3  ;;  %v2477_v3 = vmul.f32 %v6506_v63, %v9977_v48 }
 0x20b   : > { %3033 = vmatprep.mubr.bf16.mxu1 %v9963_v21  ;;  %v2473_v13 = vmul.f32 %v6496_v15, %v9969_v16  ;;  %v6525_v17 = vunpack.i.l.bf16 %v8842_v61 }
 0x20c   : > { %5874 = vmatmul.mubr.bf16.gmra.mrb[76].mxu0 %v1717_v24  ;;  %v3525_v57 = vmul.f32 %v6550_v34, %v8620_v54  ;;  %v2475_v54 = vmul.f32 %v6501_v9, %v9973_v47  ;;  %v6521_v9 = vunpack.i.h.bf16 %v8833_v56 }
 0x20d   : > { %5722 = vmatpush3.bf16.msra.mxu0 %v6811_v25  ;;  %4084 = vmatprep.mubr.bf16.mxu0 %v8586_v32  ;;  %v8891_v32 = vpop.permute.xlu0 %6573  ;;  %v3526_v25 = vmul.f32 %v6551_v55, %v9918_v51  ;;  %v2708_v24 = vpack.c.bf16 %v2473_v13, %v2472_v7 }
 0x20e   : > { %5723 = vmatprep.subr.bf16.mxu0 %v6812_v0  ;;  %v6579_v49 = vpop.permute.xlu1 %6578  ;;  %v6566_v0 = vunpack.i.h.bf16 %v6564_v40  ;;  %v6505_v40 = vunpack.i.l.bf16 %v8811_v52  ;;  %v10004_v52 = vld [vmem:[#allocation45_spill] sm:$0xff] }
 0x20f   : > { %v3814_v44 = vpack.c.bf16 %v3526_v25, %v3525_v57  ;;  %v10005_v57 = vld [vmem:[#allocation50_spill] sm:$0xff]  ;;  %v10006_v25 = vld [vmem:[#allocation47_spill] sm:$0xff] }
 0x210   : > { %v3528_v39 = vmul.f32 %v6566_v0, %v9927_v37  ;;  %v6526_v0 = vunpack.i.h.bf16 %v8842_v61  ;;  %v10012_v61 = vld [vmem:[#allocation51_spill] sm:$0xff] }
 0x211   : > { %5724 = vmatpush3.bf16.msra.mxu0 %v6813_v10  ;;  %v8898_v10 = vpop.permute.xlu0 %6583 }
 0x212   : > { %3034 = vmatmul.mubr.bf16.gmra.mrb[60].mxu1 %v2705_v42  ;;  %v8903_v51 = vpop.permute.xlu1 %6588  ;;  %v6581_v42 = vunpack.i.h.bf16 %v6579_v49  ;;  %v3817_v55 = vpack.c.bf16 %v3528_v39, %v3527_v12  ;;  %v10008_v39 = vld [vmem:[#allocation39_spill] sm:$0xff] }
 0x213   : > { %3041 = vmatprep.mubr.bf16.mxu1 %v9967_v50  ;;  %v2479_v63 = vmul.f32 %v6521_v9, %v10008_v39  ;;  %v6540_v9 = vunpack.i.l.bf16 %v8859_v41 }
 0x214   : > { %4085 = vmatmul.mubr.bf16.vlgmr.msra.gmra.mrb[80].mxu0 %v3811_v31  ;;  %v6580_v31 = vunpack.i.l.bf16 %v6579_v49  ;;  %v3530_v7 = vmul.f32 %v6581_v42, %v10004_v52  ;;  %v8922_v49 = vpack.c.bf16 %v10006_v25, %v10005_v57  ;;  %v6531_v52 = vunpack.i.h.bf16 %v8846_v62 }
 0x215   : > { %4092 = vmatprep.mubr.bf16.mxu0 %v8318_v45  ;;  %v2474_v45 = vmul.f32 %v6500_v20, %v9972_v46  ;;  %v6594_v19 = vpop.permute.xlu0 %6593  ;;  %v6520_v20 = vunpack.i.l.bf16 %v8833_v56  ;;  %v10010_v56 = vld [vmem:[#allocation70_spill] sm:$0xff]  ;;  %v6541_v25 = vunpack.i.h.bf16 %v8859_v41  ;;  %v10017_v41 = vld [vmem:[#allocation56_spill] sm:$0xff] }
 0x216   : > { %v8910_v34 = vpop.permute.xlu1 %6598  ;;  %v3529_v37 = vmul.f32 %v6580_v31, %v9932_v59  ;;  %v6595_v59 = vunpack.i.l.bf16 %v6594_v19  ;;  %v2641_v42 = vmul.f32 %v6526_v0, %v10010_v56 }
 0x217   : > { %v2711_v15 = vpack.c.bf16 %v2475_v54, %v2474_v45  ;;  %v10007_v54 = vld [vmem:[#allocation40_spill] sm:$0xff] }
 0x218   : > { %v3820_v45 = vpack.c.bf16 %v3530_v7, %v3529_v37  ;;  %v2478_v12 = vmul.f32 %v6520_v20, %v10007_v54  ;;  %v6530_v7 = vunpack.i.l.bf16 %v8846_v62  ;;  %v2645_v62 = vmul.f32 %v6541_v25, %v9994_v28  ;;  %v10032_v54 = vld [vmem:[#allocation82_spill] sm:$0xff] }
 0x219   : > { %v8918_v13 = vpop.permute.xlu0 %6603 }
 0x21a   : > { %3042 = vmatmul.mubr.bf16.gmra.mrb[64].mxu1 %v2708_v24  ;;  %v2717_v57 = vpack.c.bf16 %v2479_v63, %v2478_v12  ;;  %v10016_v63 = vld [vmem:[#allocation95_spill] sm:$0xff] }
 0x21b   : > { %3049 = vmatprep.mubr.bf16.mxu1 %v9971_v23 }
 0x21c   : > { %4093 = vmatmul.mubr.bf16.gmra.mrb[84].mxu0 %v3814_v44  ;;  %v6596_v44 = vunpack.i.h.bf16 %v6594_v19  ;;  %v10013_v19 = vld [vmem:[#allocation52_spill] sm:$0xff] }
 0x21d   : > { %4100 = vmatprep.mubr.bf16.mxu0 %v8365_v26  ;;  %v2476_v26 = vmul.f32 %v6505_v40, %v9976_v6  ;;  %v10009_v40 = vld [vmem:[#allocation31_spill] sm:$0xff]  ;;  %v8933_v31 = vpop.permute.xlu0 %6613 }
 0x21f   : > { %v2714_v24 = vpack.c.bf16 %v2477_v3, %v2476_v26  ;;  %v3531_v26 = vmul.f32 %v6595_v59, %v10012_v61  ;;  %v3532_v3 = vmul.f32 %v6596_v44, %v10013_v19  ;;  %v10014_v59 = vld [vmem:[#allocation76_spill] sm:$0xff]  ;;  %v2644_v19 = vmul.f32 %v6540_v9, %v9993_v14 }
 0x220   : > { %v2642_v44 = vmul.f32 %v6530_v7, %v10014_v59  ;;  %v6545_v7 = vunpack.i.l.bf16 %v8865_v5  ;;  %v6555_v9 = vunpack.i.l.bf16 %v8874_v30 }
 0x221   : > { %v2680_v25 = vpack.c.bf16 %v2645_v62, %v2644_v19  ;;  %v10021_v19 = vld [vmem:[#allocation96_spill] sm:$0xff] }
 0x222   : > { %3050 = vmatmul.mubr.bf16.gmra.mrb[68].mxu1 %v2711_v15  ;;  %v2640_v15 = vmul.f32 %v6525_v17, %v10009_v40  ;;  %v3823_v17 = vpack.c.bf16 %v3532_v3, %v3531_v26  ;;  %v6546_v3 = vunpack.i.h.bf16 %v8865_v5 }
 0x223   : > { %3057 = vmatprep.mubr.bf16.mxu1 %v9975_v43 }
 0x224   : > { %4101 = vmatmul.mubr.bf16.gmra.mrb[88].mxu0 %v3817_v55  ;;  %v10011_v55 = vld [vmem:[#allocation93_spill] sm:$0xff]  ;;  %v2674_v20 = vpack.c.bf16 %v2641_v42, %v2640_v15 }
 0x225   : > { %4108 = vmatprep.mubr.bf16.mxu0 %v8429_v60  ;;  %v6609_v60 = vpop.permute.xlu1 %6608 }
 0x226   : > { %v6610_v0 = vunpack.i.l.bf16 %v6609_v60 }
 0x228   : > { %v3533_v15 = vmul.f32 %v6610_v0, %v10017_v41  ;;  %v10019_v41 = vld [vmem:[#allocation43_spill] sm:$0xff] }
 0x229   : > { %v8938_v37 = vpop.permute.xlu1 %6618 }
 0x22a   : > { %3058 = vmatmul.mubr.bf16.gmra.mrb[72].mxu1 %v2714_v24  ;;  %v6611_v24 = vunpack.i.h.bf16 %v6609_v60  ;;  %v10018_v60 = vld [vmem:[#allocation55_spill] sm:$0xff] }
 0x22b   : > { %3065 = vmatprep.mubr.bf16.mxu1 %v8922_v49 }
 0x22c   : > { %4109 = vmatmul.mubr.bf16.gmra.mrb[92].mxu0 %v3820_v45  ;;  %v6624_v45 = vpop.permute.xlu0 %6623  ;;  %v3534_v42 = vmul.f32 %v6611_v24, %v10018_v60  ;;  %v2646_v24 = vmul.f32 %v6545_v7, %v9995_v35  ;;  %v6561_v7 = vunpack.i.h.bf16 %v8876_v36 }
 0x22d   : > { %4116 = vmatprep.mubr.bf16.mxu0 %v10011_v55  ;;  %v10015_v55 = vld [vmem:[#allocation75_spill] sm:$0xff]  ;;  %v8948_v12 = vpop.permute.xlu1 %6628  ;;  %v6625_v40 = vunpack.i.l.bf16 %v6624_v45 }
 0x22e   : > { %v2643_v61 = vmul.f32 %v6531_v52, %v10015_v55  ;;  %v6556_v52 = vunpack.i.h.bf16 %v8874_v30  ;;  %v2648_v30 = vmul.f32 %v6555_v9, %v9998_v38  ;;  %v6571_v9 = vunpack.i.h.bf16 %v8886_v58 }
 0x230   : > { %v2677_v26 = vpack.c.bf16 %v2643_v61, %v2642_v44  ;;  %v10020_v44 = vld [vmem:[#allocation79_spill] sm:$0xff]  ;;  %v2649_v60 = vmul.f32 %v6556_v52, %v9999_v22  ;;  %v6570_v52 = vunpack.i.l.bf16 %v8886_v58 }
 0x231   : > { %v6639_v0 = vpop.permute.xlu1 %6638  ;;  %v2647_v5 = vmul.f32 %v6546_v3, %v10020_v44  ;;  %v6818_v61 = vld [vmem:[#allocation12 + $0x210] sm:$0xff]   ;;  %v6560_v3 = vunpack.i.l.bf16 %v8876_v36  ;;  %v6820_v36 = vld [vmem:[#allocation12 + $0x220] sm:$0xff]  }
 0x232   : > { %3066 = vmatmul.mubr.bf16.gmra.mrb[76].mxu1 %v2717_v57  ;;  %v6817_v57 = vld [vmem:[#allocation12 + $0x208] sm:$0xff]   ;;  %v6641_v56 = vunpack.i.h.bf16 %v6639_v0 }
 0x233   : > { %5909 = vmatprep.mubr.bf16.mxu1 %v2674_v20  ;;  %v8957_v20 = vpop.permute.xlu0 %6633 }
 0x234   : > { %4117 = vmatmul.mubr.bf16.gmra.mrb[96].mxu0 %v3823_v17  ;;  %v6626_v17 = vunpack.i.h.bf16 %v6624_v45  ;;  %v10022_v45 = vld [vmem:[#allocation53_spill] sm:$0xff] }
 0x235   : > { %4124 = vmatprep.mubr.bf16.mxu0 %v10016_v63  ;;  %v3826_v63 = vpack.c.bf16 %v3534_v42, %v3533_v15  ;;  %v3535_v62 = vmul.f32 %v6625_v40, %v10022_v45  ;;  %v10023_v15 = vld [vmem:[#allocation54_spill] sm:$0xff]  ;;  %v6640_v40 = vunpack.i.l.bf16 %v6639_v0  ;;  %v2651_v45 = vmul.f32 %v6561_v7, %v10001_v2  ;;  %v10025_v0 = vld [vmem:[#allocation60_spill] sm:$0xff] }
 0x236   : > { %v3536_v42 = vmul.f32 %v6626_v17, %v10023_v15  ;;  %v6576_v7 = vunpack.i.h.bf16 %v8891_v32 }
 0x238   : > { %v3829_v17 = vpack.c.bf16 %v3536_v42, %v3535_v62  ;;  %v10026_v62 = vld [vmem:[#allocation59_spill] sm:$0xff] }
 0x239   : > { %v3538_v15 = vmul.f32 %v6641_v56, %v10026_v62 }
 0x23a   : > { %5910 = vmatmul.mubr.bf16.vlgmr.msra.gmra.mrb[80].mxu1 %v2677_v26  ;;  %v8967_v26 = vpop.permute.xlu0 %6643 }
 0x23b   : > { %5942 = vmatpush3.bf16.msra.mxu1 %v10019_v41  ;;  %5913 = vmatprep.mubr.bf16.mxu1 %v2680_v25  ;;  %v2683_v25 = vpack.c.bf16 %v2647_v5, %v2646_v24  ;;  %v6649_v41 = vpop.permute.xlu1 %6648  ;;  %v2652_v24 = vmul.f32 %v6570_v52, %v10002_v11  ;;  %v2653_v5 = vmul.f32 %v6571_v9, %v10003_v8 }
 0x23c   : > { %4125 = vmatmul.mubr.bf16.gmra.mrb[100].mxu0 %v3826_v63  ;;  %5943 = vmatprep.subr.bf16.mxu1 %v6817_v57  ;;  %v6819_v63 = vld [vmem:[#allocation12 + $0x218] sm:$0xff]   ;;  %v6651_v62 = vunpack.i.h.bf16 %v6649_v41  ;;  %v6650_v8 = vunpack.i.l.bf16 %v6649_v41 }
 0x23d   : > { %4132 = vmatprep.mubr.bf16.mxu0 %v10021_v19  ;;  %v2686_v19 = vpack.c.bf16 %v2649_v60, %v2648_v30  ;;  %v10024_v30 = vld [vmem:[#allocation99_spill] sm:$0xff]  ;;  %v3537_v60 = vmul.f32 %v6640_v40, %v10025_v0  ;;  %v6585_v40 = vunpack.i.l.bf16 %v8898_v10  ;;  %v2692_v0 = vpack.c.bf16 %v2653_v5, %v2652_v24  ;;  %v10033_v41 = vld [vmem:[#allocation100_spill] sm:$0xff] }
 0x23e   : > { %v8977_v58 = vpop.permute.xlu0 %6653 }
 0x23f   : > { %5944 = vmatpush3.bf16.msra.mxu1 %v6817_v57  ;;  %v2650_v57 = vmul.f32 %v6560_v3, %v10000_v4  ;;  %v8982_v42 = vpop.permute.xlu1 %6658 }
 0x240   : > { %5945 = vmatprep.subr.bf16.mxu1 %v6818_v61 }
 0x242   : > { %5914 = vmatmul.mubr.bf16.gmra.mrb[84].mxu1 %v2683_v25  ;;  %v6575_v25 = vunpack.i.l.bf16 %v8891_v32  ;;  %v6664_v39 = vpop.permute.xlu0 %6663  ;;  %v10029_v32 = vld [vmem:[#allocation88_spill] sm:$0xff] }
 0x243   : > { %5917 = vmatprep.mubr.bf16.mxu1 %v2686_v19  ;;  %5946 = vmatpush3.bf16.msra.mxu1 %v6818_v61  ;;  %v2689_v19 = vpack.c.bf16 %v2651_v45, %v2650_v57  ;;  %v10030_v57 = vld [vmem:[#allocation87_spill] sm:$0xff]  ;;  %v8996_v5 = vpop.permute.xlu1 %6668 }
 0x244   : > { %4133 = vmatmul.mubr.bf16.gmra.mrb[104].mxu0 %v3829_v17  ;;  %5947 = vmatprep.subr.bf16.mxu1 %v6819_v63  ;;  %v6821_v17 = vld [vmem:[#allocation12 + $0x228] sm:$0xff]   ;;  %v2655_v45 = vmul.f32 %v6576_v7, %v10030_v57  ;;  %v6591_v7 = vunpack.i.h.bf16 %v8903_v51 }
 0x245   : > { %4140 = vmatprep.mubr.bf16.mxu0 %v10024_v30  ;;  %v6586_v30 = vunpack.i.h.bf16 %v8898_v10 }
 0x246   : > { %v5453_v61 = vpop.f32.mrb[0].mxu0 }
 0x247   : > { %v5454_v3 = vpop.f32.mrb[1].mxu0  ;;  %5948 = vmatpush3.bf16.msra.mxu1 %v6819_v63  ;;  %v3832_v63 = vpack.c.bf16 %v3538_v15, %v3537_v60  ;;  %v2657_v24 = vmul.f32 %v6586_v30, %v10032_v54  ;;  %v3539_v60 = vmul.f32 %v6650_v8, %v9958_v33  ;;  %v10034_v15 = vld [vmem:[#allocation57_spill] sm:$0xff]  ;;  %v6823_v30 = vld [vmem:[#allocation12 + $0x238] sm:$0xff]   ;;  %v9007_v33 = vpop.permute.xlu0 %6673 }
 0x248   : > { %v8986_v52 = vadd.f32 %v5454_v3, %v5453_v61  ;;  %v5456_v9 = vpop.f32.mrb[2].mxu0  ;;  %5949 = vmatprep.subr.bf16.mxu1 %v6820_v36  ;;  %v2654_v61 = vmul.f32 %v6575_v25, %v10029_v32  ;;  %v6822_v3 = vld [vmem:[#allocation12 + $0x230] sm:$0xff]   ;;  %v6590_v25 = vunpack.i.l.bf16 %v8903_v51 }
 0x249   : > { %v5457_v56 = vpop.f32.mrb[3].mxu0 }
 0x24a   : > { %10027 = vst [vmem:[#allocation46_spill] sm:$0xff] %v8986_v52  ;;  %v8990_v11 = vadd.f32 %v5457_v56, %v5456_v9  ;;  %5918 = vmatmul.mubr.bf16.gmra.mrb[88].mxu1 %v2689_v19  ;;  %v10031_v52 = vld [vmem:[#allocation81_spill] sm:$0xff]  ;;  %v3540_v9 = vmul.f32 %v6651_v62, %v10034_v15  ;;  %v6666_v15 = vunpack.i.h.bf16 %v6664_v39 }
 0x24b   : > { %5921 = vmatprep.mubr.bf16.mxu1 %v2692_v0  ;;  %5950 = vmatpush3.bf16.msra.mxu1 %v6820_v36  ;;  %v2656_v10 = vmul.f32 %v6585_v40, %v10031_v52  ;;  %v2695_v0 = vpack.c.bf16 %v2655_v45, %v2654_v61  ;;  %v10037_v61 = vld [vmem:[#allocation86_spill] sm:$0xff]  ;;  %v10040_v52 = vld [vmem:[#allocation84_spill] sm:$0xff] }
 0x24c   : > { %10028 = vst [vmem:[#allocation35_spill] sm:$0xff] %v8990_v11  ;;  %4141 = vmatmul.mubr.bf16.gmra.mrb[108].mxu0 %v3832_v63  ;;  %5951 = vmatprep.subr.bf16.mxu1 %v6821_v17  ;;  %v6601_v63 = vunpack.i.h.bf16 %v8910_v34  ;;  %v3835_v51 = vpack.c.bf16 %v3540_v9, %v3539_v60  ;;  %v2658_v45 = vmul.f32 %v6590_v25, %v10037_v61  ;;  %v9018_v9 = vpop.permute.xlu0 %6683  ;;  %v6606_v25 = vunpack.i.h.bf16 %v8918_v13 }
 0x24d   : > { %4148 = vmatprep.mubr.bf16.mxu0 %v10033_v41  ;;  %v6600_v41 = vunpack.i.l.bf16 %v8910_v34  ;;  %v2698_v62 = vpack.c.bf16 %v2657_v24, %v2656_v10  ;;  %v10039_v34 = vld [vmem:[#allocation83_spill] sm:$0xff]  ;;  %v10041_v10 = vld [vmem:[#allocation101_spill] sm:$0xff]  ;;  %v3542_v24 = vmul.f32 %v6666_v15, %v9962_v53 }
 0x24e   : > { %v5459_v36 = vpop.f32.mrb[4].mxu0  ;;  %v2661_v57 = vmul.f32 %v6601_v63, %v10040_v52  ;;  %v6616_v63 = vunpack.i.h.bf16 %v8933_v31 }
 0x24f   : > { %v5460_v19 = vpop.f32.mrb[5].mxu0  ;;  %5952 = vmatpush3.bf16.msra.mxu1 %v6821_v17  ;;  %v6665_v17 = vunpack.i.l.bf16 %v6664_v39  ;;  %v2660_v54 = vmul.f32 %v6600_v41, %v10039_v34 }
 0x250   : > { %v9003_v56 = vadd.f32 %v5460_v19, %v5459_v36  ;;  %v5462_v40 = vpop.f32.mrb[6].mxu0  ;;  %5953 = vmatprep.subr.bf16.mxu1 %v6822_v3  ;;  %v6679_v36 = vpop.permute.xlu1 %6678  ;;  %v10038_v19 = vld [vmem:[#allocation85_spill] sm:$0xff] }
 0x251   : > { %v5463_v8 = vpop.f32.mrb[7].mxu0  ;;  %v3541_v39 = vmul.f32 %v6665_v17, %v9961_v18  ;;  %v6681_v15 = vunpack.i.h.bf16 %v6679_v36  ;;  %v6680_v17 = vunpack.i.l.bf16 %v6679_v36 }
 0x252   : > { %10035 = vst [vmem:[#allocation34_spill] sm:$0xff] %v9003_v56  ;;  %v9009_v11 = vadd.f32 %v5463_v8, %v5462_v40  ;;  %5922 = vmatmul.mubr.bf16.gmra.mrb[92].mxu1 %v2695_v0  ;;  %v2659_v56 = vmul.f32 %v6591_v7, %v10038_v19  ;;  %v6605_v7 = vunpack.i.l.bf16 %v8918_v13  ;;  %v6615_v8 = vunpack.i.l.bf16 %v8933_v31  ;;  %v10044_v13 = vld [vmem:[#allocation92_spill] sm:$0xff] }
 0x253   : > { %5925 = vmatprep.mubr.bf16.mxu1 %v2698_v62  ;;  %5954 = vmatpush3.bf16.msra.mxu1 %v6822_v3  ;;  %v2704_v62 = vpack.c.bf16 %v2661_v57, %v2660_v54  ;;  %v3543_v54 = vmul.f32 %v6680_v17, %v9964_v27  ;;  %v3544_v57 = vmul.f32 %v6681_v15, %v9965_v1 }
 0x254   : > { %10036 = vst [vmem:[#allocation32_spill] sm:$0xff] %v9009_v11  ;;  %4149 = vmatmul.mubr.bf16.gmra.mrb[112].mxu0 %v3835_v51  ;;  %5955 = vmatprep.subr.bf16.mxu1 %v6823_v30  ;;  %v2701_v41 = vpack.c.bf16 %v2659_v56, %v2658_v45  ;;  %v9026_v18 = vpop.permute.xlu1 %6688  ;;  %v10046_v56 = vld [vmem:[#allocation89_spill] sm:$0xff]  ;;  %v6694_v11 = vpop.permute.xlu0 %6693 }
 0x255   : > { %4156 = vmatprep.mubr.bf16.mxu0 %v10041_v10  ;;  %v2662_v10 = vmul.f32 %v6605_v7, %v10044_v13  ;;  %v2664_v45 = vmul.f32 %v6615_v8, %v10046_v56  ;;  %v6695_v1 = vunpack.i.l.bf16 %v6694_v11  ;;  %v3841_v17 = vpack.c.bf16 %v3544_v57, %v3543_v54 }
 0x256   : > { %v5465_v60 = vpop.f32.mrb[8].mxu0  ;;  %v6636_v57 = vunpack.i.h.bf16 %v8957_v20 }
 0x257   : > { %v5466_v3 = vpop.f32.mrb[9].mxu0  ;;  %5956 = vmatpush3.bf16.msra.mxu1 %v6823_v30  ;;  %v3838_v30 = vpack.c.bf16 %v3542_v24, %v3541_v39  ;;  %v6621_v24 = vunpack.i.h.bf16 %v8938_v37 }
 0x258   : > { %v9022_v40 = vadd.f32 %v5466_v3, %v5465_v60  ;;  %v5468_v0 = vpop.f32.mrb[10].mxu0  ;;  %v10045_v60 = vld [vmem:[#allocation91_spill] sm:$0xff] }
 0x259   : > { %v5469_v53 = vpop.f32.mrb[11].mxu0  ;;  %v2663_v3 = vmul.f32 %v6606_v25, %v10045_v60  ;;  %v6620_v25 = vunpack.i.l.bf16 %v8938_v37  ;;  %v10049_v37 = vld [vmem:[#allocation98_spill] sm:$0xff] }
 0x25a   : > { %10042 = vst [vmem:[#allocation33_spill] sm:$0xff] %v9022_v40  ;;  %v9028_v51 = vadd.f32 %v5469_v53, %v5468_v0  ;;  %5926 = vmatmul.mubr.bf16.gmra.mrb[0].mxu1 %v2701_v41  ;;  %v10047_v40 = vld [vmem:[#allocation90_spill] sm:$0xff]  ;;  %v9037_v0 = vpop.permute.xlu1 %6698 }
 0x25b   : > { %5929 = vmatprep.mubr.bf16.mxu1 %v2704_v62  ;;  %v2665_v31 = vmul.f32 %v6616_v63, %v10047_v40  ;;  %v2707_v8 = vpack.c.bf16 %v2663_v3, %v2662_v10  ;;  %v6631_v63 = vunpack.i.h.bf16 %v8948_v12  ;;  %v6696_v62 = vunpack.i.h.bf16 %v6694_v11  ;;  %v10051_v10 = vld [vmem:[#allocation94_spill] sm:$0xff] }
 0x25c   : > { %10043 = vst [vmem:[#allocation37_spill] sm:$0xff] %v9028_v51  ;;  %4157 = vmatmul.mubr.bf16.gmra.mrb[116].mxu0 %v3838_v30  ;;  %v9047_v30 = vpop.permute.xlu0 %6703  ;;  %v3545_v11 = vmul.f32 %v6695_v1, %v9968_v29 }
 0x25d   : > { %4164 = vmatprep.mubr.bf16.mxu0 %v9963_v21  ;;  %v6630_v21 = vunpack.i.l.bf16 %v8948_v12  ;;  %v2710_v27 = vpack.c.bf16 %v2665_v31, %v2664_v45  ;;  %v3546_v45 = vmul.f32 %v6696_v62, %v9969_v16 }
 0x25e   : > { %v5471_v36 = vpop.f32.mrb[12].mxu0  ;;  %v6709_v40 = vpop.permute.xlu1 %6708 }
 0x25f   : > { %v5472_v39 = vpop.f32.mrb[13].mxu0  ;;  %v2668_v3 = vmul.f32 %v6630_v21, %v10051_v10  ;;  %v6646_v21 = vunpack.i.h.bf16 %v8967_v26  ;;  %v6710_v16 = vunpack.i.l.bf16 %v6709_v40  ;;  %v3844_v1 = vpack.c.bf16 %v3546_v45, %v3545_v11 }
 0x260   : > { %v9041_v7 = vadd.f32 %v5472_v39, %v5471_v36  ;;  %v5474_v41 = vpop.f32.mrb[14].mxu0  ;;  %v2666_v36 = vmul.f32 %v6620_v25, %v10049_v37  ;;  %v10050_v39 = vld [vmem:[#allocation97_spill] sm:$0xff]  ;;  %v6635_v25 = vunpack.i.l.bf16 %v8957_v20  ;;  %v10053_v20 = vld [vmem:[#allocation27_spill] sm:$0xff]  ;;  %v6655_v11 = vunpack.i.l.bf16 %v8977_v58 }
 0x261   : > { %v5475_v53 = vpop.f32.mrb[15].mxu0  ;;  %v2667_v51 = vmul.f32 %v6621_v24, %v10050_v39 }
 0x262   : > { %10048 = vst [vmem:[#allocation38_spill] sm:$0xff] %v9041_v7  ;;  %v9045_v15 = vadd.f32 %v5475_v53, %v5474_v41  ;;  %5930 = vmatmul.mubr.bf16.gmra.mrb[4].mxu1 %v2707_v8  ;;  %v10052_v7 = vld [vmem:[#allocation48_spill] sm:$0xff]  ;;  %v9062_v53 = vpop.permute.xlu0 %6713 }
 0x263   : > { %5933 = vmatprep.mubr.bf16.mxu1 %v2710_v27  ;;  %v2669_v12 = vmul.f32 %v6631_v63, %v10052_v7  ;;  %v2713_v8 = vpack.c.bf16 %v2667_v51, %v2666_v36  ;;  %v6645_v63 = vunpack.i.l.bf16 %v8967_v26  ;;  %v6711_v27 = vunpack.i.h.bf16 %v6709_v40  ;;  %v10054_v51 = vld [vmem:[#allocation28_spill] sm:$0xff] }
 0x264   : > { %4165 = vmatmul.mubr.bf16.gmra.mrb[120].mxu0 %v3841_v17  ;;  %v9066_v17 = vpop.permute.xlu1 %6718  ;;  %v2671_v36 = vmul.f32 %v6636_v57, %v10054_v51  ;;  %v3547_v40 = vmul.f32 %v6710_v16, %v9972_v46  ;;  %v6661_v57 = vunpack.i.h.bf16 %v8982_v42 }
 0x265   : > { %4172 = vmatprep.mubr.bf16.mxu0 %v9967_v50  ;;  %v2716_v29 = vpack.c.bf16 %v2669_v12, %v2668_v3  ;;  %v3779_v26 = vmul.f32 %v6645_v63, %v10014_v59  ;;  %v3548_v3 = vmul.f32 %v6711_v27, %v9973_v47  ;;  %v6656_v12 = vunpack.i.h.bf16 %v8977_v58 }
 0x266   : > { %v5477_v31 = vpop.f32.mrb[16].mxu0  ;;  %v6724_v45 = vpop.permute.xlu0 %6723  ;;  %v6660_v59 = vunpack.i.l.bf16 %v8982_v42  ;;  %v3781_v58 = vmul.f32 %v6655_v11, %v9993_v14 }
 0x267   : > { %v5478_v54 = vpop.f32.mrb[17].mxu0  ;;  %v6725_v47 = vunpack.i.l.bf16 %v6724_v45  ;;  %v3782_v27 = vmul.f32 %v6656_v12, %v9994_v28  ;;  %v6671_v28 = vunpack.i.h.bf16 %v8996_v5  ;;  %v6676_v12 = vunpack.i.h.bf16 %v9007_v33 }
 0x268   : > { %v9058_v41 = vadd.f32 %v5478_v54, %v5477_v31  ;;  %v5480_v24 = vpop.f32.mrb[18].mxu0  ;;  %v2670_v31 = vmul.f32 %v6635_v25, %v10053_v20  ;;  %v3780_v54 = vmul.f32 %v6646_v21, %v10015_v55  ;;  %v9079_v63 = vpop.permute.xlu1 %6728  ;;  %v6726_v21 = vunpack.i.h.bf16 %v6724_v45 }
 0x269   : > { %v5481_v50 = vpop.f32.mrb[19].mxu0  ;;  %v3783_v42 = vmul.f32 %v6660_v59, %v9995_v35  ;;  %v6675_v35 = vunpack.i.l.bf16 %v9007_v33  ;;  %v3788_v33 = vmul.f32 %v6676_v12, %v10001_v2 }
 0x26a   : > { %v9064_v62 = vadd.f32 %v5481_v50, %v5480_v24  ;;  %5934 = vmatmul.mubr.bf16.gmra.mrb[8].mxu1 %v2713_v8  ;;  %v2719_v8 = vpack.c.bf16 %v2671_v36, %v2670_v31  ;;  %v3813_v46 = vpack.c.bf16 %v3780_v54, %v3779_v26  ;;  %v3549_v31 = vmul.f32 %v6725_v47, %v9976_v6  ;;  %v9092_v26 = vpop.permute.xlu0 %6733 }
 0x26b   : > { %5937 = vmatprep.mubr.bf16.mxu1 %v2716_v29  ;;  %v3847_v29 = vpack.c.bf16 %v3548_v3, %v3547_v40  ;;  %v3550_v36 = vmul.f32 %v6726_v21, %v9977_v48  ;;  %v3816_v54 = vpack.c.bf16 %v3782_v27, %v3781_v58  ;;  %v6670_v3 = vunpack.i.l.bf16 %v8996_v5  ;;  %v10055_v21 = vld [vmem:[#allocation109_spill] sm:$0xff]  ;;  %v10057_v58 = vld [vmem:[#allocation40_spill] sm:$0xff] }
 0x26c   : > { %4173 = vmatmul.mubr.bf16.gmra.mrb[124].mxu0 %v3844_v1  ;;  %v3784_v1 = vmul.f32 %v6661_v57, %v10020_v44  ;;  %v6739_v14 = vpop.permute.xlu1 %6738  ;;  %v3786_v5 = vmul.f32 %v6671_v28, %v9999_v22  ;;  %v3787_v59 = vmul.f32 %v6675_v35, %v10000_v4  ;;  %v3585_v47 = vmul.f32 0.0, %v10055_v21  ;;  %v10059_v35 = vld [vmem:[#allocation106_spill] sm:$0xff] }
 0x26d   : > { %4180 = vmatprep.mubr.bf16.mxu0 %v9971_v23  ;;  %v6741_v45 = vunpack.i.h.bf16 %v6739_v14  ;;  %v6740_v48 = vunpack.i.l.bf16 %v6739_v14  ;;  %v3785_v57 = vmul.f32 %v6670_v3, %v9998_v38  ;;  %v10058_v38 = vld [vmem:[#allocation39_spill] sm:$0xff]  ;;  %v6686_v22 = vunpack.i.h.bf16 %v9018_v9 }
 0x26e   : > { %v3819_v6 = vpack.c.bf16 %v3784_v1, %v3783_v42  ;;  %v6685_v4 = vunpack.i.l.bf16 %v9018_v9 }
 0x26f   : > { %v5483_v24 = vpop.f32.mrb[20].mxu0  ;;  %v3551_v27 = vmul.f32 %v6740_v48, %v10057_v58  ;;  %v3552_v42 = vmul.f32 %v6741_v45, %v10058_v38  ;;  %v6706_v58 = vunpack.i.h.bf16 %v9047_v30 }
 0x270   : > { %v5484_v25 = vpop.f32.mrb[21].mxu0 }
 0x271   : > { %v9081_v55 = vadd.f32 %v5484_v25, %v5483_v24  ;;  %v5486_v23 = vpop.f32.mrb[22].mxu0  ;;  %v3850_v25 = vpack.c.bf16 %v3550_v36, %v3549_v31  ;;  %v3822_v31 = vpack.c.bf16 %v3786_v5, %v3785_v57  ;;  %v3825_v36 = vpack.c.bf16 %v3788_v33, %v3787_v59  ;;  %v10062_v57 = vld [vmem:[#allocation25_spill] sm:$0xff] }
 0x272   : > { %v5487_v50 = vpop.f32.mrb[23].mxu0  ;;  %5938 = vmatmul.mubr.bf16.gmra.mrb[12].mxu1 %v2719_v8  ;;  %v3853_v12 = vpack.c.bf16 %v3552_v42, %v3551_v27  ;;  %v10063_v59 = vld [vmem:[#allocation41_spill] sm:$0xff]  ;;  %v6705_v27 = vunpack.i.l.bf16 %v9047_v30 }
 0x273   : > { %v9085_v16 = vadd.f32 %v5487_v50, %v5486_v23  ;;  %5957 = vmatprep.mubr.bf16.mxu1 %v3813_v46  ;;  %v9106_v23 = vpop.permute.xlu1 %6748  ;;  %v9108_v46 = vpop.permute.xlu0 %6743  ;;  %v10056_v50 = vld [vmem:[#allocation63_spill] sm:$0xff] }
 0x274   : > { %4181 = vmatmul.mubr.bf16.gmra.mrb[128].mxu0 %v3847_v29  ;;  %v3586_v29 = vmul.f32 0.0, %v10056_v50  ;;  %v6701_v50 = vunpack.i.h.bf16 %v9037_v0 }
 0x275   : > { %4188 = vmatprep.mubr.bf16.mxu0 %v9975_v43 }
 0x276   : > { %v3857_v28 = vpack.c.bf16 %v3586_v29, %v3585_v47  ;;  %v6700_v29 = vunpack.i.l.bf16 %v9037_v0  ;;  %v3795_v0 = vmul.f32 %v6705_v27, %v10037_v61  ;;  %v6720_v61 = vunpack.i.l.bf16 %v9066_v17 }
 0x277   : > { %v5489_v40 = vpop.f32.mrb[24].mxu0  ;;  %v3521_v9 = vpop.permute.xlu1 %3520 }
 0x278   : > { %v5490_v44 = vpop.f32.mrb[25].mxu0  ;;  %v3516_v45 = vpop.permute.xlu0 %3515  ;;  %v3554_v5 = vmul.f32 %v3521_v9, %v10062_v57 }
 0x279   : > { %v9098_v11 = vadd.f32 %v5490_v44, %v5489_v40  ;;  %v5492_v43 = vpop.f32.mrb[26].mxu0  ;;  %v3789_v44 = vmul.f32 %v6685_v4, %v10059_v35  ;;  %v3553_v33 = vmul.f32 %v3516_v45, %v10063_v59 }
 0x27a   : > { %v5493_v24 = vpop.f32.mrb[27].mxu0  ;;  %5958 = vmatmul.mubr.bf16.vlgmr.msra.gmra.mrb[80].mxu1 %v3816_v54  ;;  %v6691_v54 = vunpack.i.h.bf16 %v9026_v18 }
 0x27b   : > { %v9100_v8 = vadd.f32 %v5493_v24, %v5492_v43  ;;  %5961 = vmatprep.mubr.bf16.mxu1 %v3819_v6  ;;  %v10060_v43 = vld [vmem:[#allocation105_spill] sm:$0xff]  ;;  %v3856_v4 = vpack.c.bf16 %v3554_v5, %v3553_v33 }
 0x27c   : > { %4189 = vmatmul.mubr.bf16.gmra.mrb[132].mxu0 %v3850_v25  ;;  %v3790_v6 = vmul.f32 %v6686_v22, %v10060_v43 }
 0x27d   : > { %4196 = vmatprep.mubr.bf16.mxu0 %v8922_v49  ;;  %v6690_v49 = vunpack.i.l.bf16 %v9026_v18  ;;  %v10061_v18 = vld [vmem:[#allocation87_spill] sm:$0xff] }
 0x27e   : > { %v3792_v25 = vmul.f32 %v6691_v54, %v10061_v18  ;;  %v3828_v47 = vpack.c.bf16 %v3790_v6, %v3789_v44  ;;  %v10065_v54 = vld [vmem:[#allocation82_spill] sm:$0xff]  ;;  %v6721_v18 = vunpack.i.h.bf16 %v9066_v17 }
 0x27f   : > { %v5495_v2 = vpop.f32.mrb[28].mxu0  ;;  %v3791_v24 = vmul.f32 %v6690_v49, %v10029_v32  ;;  %v3794_v49 = vmul.f32 %v6701_v50, %v10065_v54 }
 0x280   : > { %v5496_v1 = vpop.f32.mrb[29].mxu0 }
 0x281   : > { %v9119_v14 = vadd.f32 %v5496_v1, %v5495_v2  ;;  %v5498_v40 = vpop.f32.mrb[30].mxu0  ;;  %v3831_v22 = vpack.c.bf16 %v3792_v25, %v3791_v24 }
 0x282   : > { %v5499_v3 = vpop.f32.mrb[31].mxu0  ;;  %5962 = vmatmul.mubr.bf16.gmra.mrb[84].mxu1 %v3822_v31  ;;  %v10064_v31 = vld [vmem:[#allocation81_spill] sm:$0xff] }
 0x283   : > { %v9123_v48 = vadd.f32 %v5499_v3, %v5498_v40  ;;  %5965 = vmatprep.mubr.bf16.mxu1 %v3825_v36  ;;  %v3793_v36 = vmul.f32 %v6700_v29, %v10064_v31  ;;  %v3796_v40 = vmul.f32 %v6706_v58, %v10038_v19  ;;  %v6716_v3 = vunpack.i.h.bf16 %v9062_v53 }
 0x284   : > { %4197 = vmatmul.mubr.bf16.gmra.mrb[136].mxu0 %v3853_v12  ;;  %v6715_v12 = vunpack.i.l.bf16 %v9062_v53 }
 0x285   : > { %4204 = vmatprep.mubr.bf16.mxu0 %v3857_v28  ;;  %v3834_v45 = vpack.c.bf16 %v3794_v49, %v3793_v36  ;;  %v3837_v24 = vpack.c.bf16 %v3796_v40, %v3795_v0  ;;  %v3798_v59 = vmul.f32 %v6716_v3, %v10040_v52  ;;  %v6736_v52 = vunpack.i.h.bf16 %v9092_v26 }
 0x286   : > { %v3797_v53 = vmul.f32 %v6715_v12, %v10039_v34  ;;  %v6730_v34 = vunpack.i.l.bf16 %v9079_v63 }
 0x287   : > { %v5501_v21 = vpop.f32.mrb[32].mxu0 }
 0x288   : > { %v5502_v38 = vpop.f32.mrb[33].mxu0  ;;  %v3801_v0 = vmul.f32 %v6730_v34, %v10046_v56 }
 0x289   : > { %v9133_v42 = vadd.f32 %v5502_v38, %v5501_v21  ;;  %v5504_v32 = vpop.f32.mrb[34].mxu0  ;;  %v3799_v21 = vmul.f32 %v6720_v61, %v10044_v13  ;;  %v3840_v38 = vpack.c.bf16 %v3798_v59, %v3797_v53  ;;  %v6751_v61 = vunpack.i.h.bf16 %v9106_v23 }
 0x28a   : > { %v5505_v2 = vpop.f32.mrb[35].mxu0  ;;  %5966 = vmatmul.mubr.bf16.gmra.mrb[88].mxu1 %v3828_v47  ;;  %v3800_v47 = vmul.f32 %v6721_v18, %v10045_v60 }
 0x28b   : > { %v9135_v1 = vadd.f32 %v5505_v2, %v5504_v32  ;;  %5969 = vmatprep.mubr.bf16.mxu1 %v3831_v22  ;;  %v6731_v32 = vunpack.i.h.bf16 %v9079_v63  ;;  %v6735_v22 = vunpack.i.l.bf16 %v9092_v26  ;;  %v10066_v63 = vld [vmem:[#allocation90_spill] sm:$0xff]  ;;  %v3804_v26 = vmul.f32 %v6736_v52, %v10050_v39 }
 0x28c   : > { %4205 = vmatmul.mubr.bf16.gmra.mrb[140].mxu0 %v3856_v4  ;;  %v3843_v36 = vpack.c.bf16 %v3800_v47, %v3799_v21 }
 0x28d   : > { %v5589_v30 = vpop.f32.mrb[16].mxu1  ;;  %v3802_v40 = vmul.f32 %v6731_v32, %v10066_v63 }
 0x28e   : > { %v5590_v28 = vpop.f32.mrb[17].mxu1 }
 0x28f   : > { %v5507_v35 = vpop.f32.mrb[36].mxu0  ;;  %v9143_v44 = vadd.f32 %v5590_v28, %v5589_v30  ;;  %v5592_v43 = vpop.f32.mrb[18].mxu1  ;;  %v3803_v30 = vmul.f32 %v6735_v22, %v10049_v37  ;;  %v3846_v18 = vpack.c.bf16 %v3802_v40, %v3801_v0  ;;  %v6750_v37 = vunpack.i.l.bf16 %v9106_v23  ;;  %v10068_v0 = vld [vmem:[#allocation31_spill] sm:$0xff] }
 0x290   : > { %v5508_v6 = vpop.f32.mrb[37].mxu0  ;;  %v5593_v9 = vpop.f32.mrb[19].mxu1 }
 0x291   : > { %v9147_v19 = vadd.f32 %v5508_v6, %v5507_v35  ;;  %v5510_v25 = vpop.f32.mrb[38].mxu0  ;;  %v9149_v57 = vadd.f32 %v5593_v9, %v5592_v43  ;;  %v6746_v6 = vunpack.i.h.bf16 %v9108_v46  ;;  %v6745_v9 = vunpack.i.l.bf16 %v9108_v46  ;;  %v3772_v23 = vpop.permute.xlu0 %3771 }
 0x292   : > { %v5511_v5 = vpop.f32.mrb[39].mxu0  ;;  %5970 = vmatmul.mubr.bf16.gmra.mrb[92].mxu1 %v3834_v45  ;;  %v3849_v56 = vpack.c.bf16 %v3804_v26, %v3803_v30  ;;  %v3807_v47 = vmul.f32 %v6750_v37, %v10053_v20  ;;  %v3809_v63 = vmul.f32 %v3772_v23, %v10068_v0 }
 0x293   : > { %v9153_v33 = vadd.f32 %v5511_v5, %v5510_v25  ;;  %5973 = vmatprep.mubr.bf16.mxu1 %v3837_v24  ;;  %v3805_v46 = vmul.f32 %v6745_v9, %v10051_v10  ;;  %v3806_v21 = vmul.f32 %v6746_v6, %v10052_v7 }
 0x295   : > { %v5595_v50 = vpop.f32.mrb[20].mxu1  ;;  %v3852_v22 = vpack.c.bf16 %v3806_v21, %v3805_v46 }
 0x296   : > { %v5596_v17 = vpop.f32.mrb[21].mxu1 }
 0x297   : > { %v5513_v29 = vpop.f32.mrb[40].mxu0  ;;  %v9157_v58 = vadd.f32 %v5596_v17, %v5595_v50  ;;  %v5598_v27 = vpop.f32.mrb[22].mxu1  ;;  %v3808_v50 = vmul.f32 %v6751_v61, %v10054_v51 }
 0x298   : > { %v5514_v4 = vpop.f32.mrb[41].mxu0  ;;  %v5599_v2 = vpop.f32.mrb[23].mxu1 }
 0x299   : > { %v9163_v13 = vadd.f32 %v5514_v4, %v5513_v29  ;;  %v5516_v60 = vpop.f32.mrb[42].mxu0  ;;  %v9165_v31 = vadd.f32 %v5599_v2, %v5598_v27  ;;  %v3777_v4 = vpop.permute.xlu1 %3776  ;;  %v3855_v7 = vpack.c.bf16 %v3808_v50, %v3807_v47 }
 0x29a   : > { %v5517_v54 = vpop.f32.mrb[43].mxu0  ;;  %5974 = vmatmul.mubr.bf16.gmra.mrb[0].mxu1 %v3840_v38 }
 0x29b   : > { %v9167_v49 = vadd.f32 %v5517_v54, %v5516_v60  ;;  %5977 = vmatprep.mubr.bf16.mxu1 %v3843_v36  ;;  %v10067_v36 = vld [vmem:[#allocation70_spill] sm:$0xff] }
 0x29c   : > { %v3810_v54 = vmul.f32 %v3777_v4, %v10067_v36 }
 0x29d   : > { %v5601_v28 = vpop.f32.mrb[24].mxu1 }
 0x29e   : > { %v5602_v3 = vpop.f32.mrb[25].mxu1 }
 0x29f   : > { %v5519_v12 = vpop.f32.mrb[44].mxu0  ;;  %v9173_v35 = vadd.f32 %v5602_v3, %v5601_v28  ;;  %v5604_v43 = vpop.f32.mrb[26].mxu1 }
 0x2a0   : > { %v5520_v45 = vpop.f32.mrb[45].mxu0  ;;  %v5605_v24 = vpop.f32.mrb[27].mxu1 }
 0x2a1   : > { %v9179_v25 = vadd.f32 %v5520_v45, %v5519_v12  ;;  %v5522_v39 = vpop.f32.mrb[46].mxu0  ;;  %v9181_v5 = vadd.f32 %v5605_v24, %v5604_v43  ;;  %v3858_v12 = vpack.c.bf16 %v3810_v54, %v3809_v63 }
 0x2a2   : > { %v5523_v53 = vpop.f32.mrb[47].mxu0  ;;  %5978 = vmatmul.mubr.bf16.gmra.mrb[4].mxu1 %v3846_v18 }
 0x2a3   : > { %v9183_v59 = vadd.f32 %v5523_v53, %v5522_v39  ;;  %5981 = vmatprep.mubr.bf16.mxu1 %v3849_v56 }
 0x2a5   : > { %v5607_v17 = vpop.f32.mrb[28].mxu1 }
 0x2a6   : > { %v5608_v29 = vpop.f32.mrb[29].mxu1 }
 0x2a7   : > { %v5525_v27 = vpop.f32.mrb[48].mxu0  ;;  %v9189_v38 = vadd.f32 %v5608_v29, %v5607_v17  ;;  %v5610_v32 = vpop.f32.mrb[30].mxu1 }
 0x2a8   : > { %v5526_v34 = vpop.f32.mrb[49].mxu0  ;;  %v5611_v52 = vpop.f32.mrb[31].mxu1 }
 0x2a9   : > { %v9191_v2 = vadd.f32 %v5526_v34, %v5525_v27  ;;  %v5528_v10 = vpop.f32.mrb[50].mxu0  ;;  %v9193_v60 = vadd.f32 %v5611_v52, %v5610_v32 }
 0x2aa   : > { %v5529_v20 = vpop.f32.mrb[51].mxu0  ;;  %5982 = vmatmul.mubr.bf16.gmra.mrb[8].mxu1 %v3852_v22 }
 0x2ab   : > { %v9195_v51 = vadd.f32 %v5529_v20, %v5528_v10  ;;  %5985 = vmatprep.mubr.bf16.mxu1 %v3855_v7 }
 0x2ad   : > { %v5613_v40 = vpop.f32.mrb[32].mxu1 }
 0x2ae   : > { %v5614_v30 = vpop.f32.mrb[33].mxu1 }
 0x2af   : > { %v5531_v26 = vpop.f32.mrb[52].mxu0  ;;  %v9199_v28 = vadd.f32 %v5614_v30, %v5613_v40  ;;  %v5616_v3 = vpop.f32.mrb[34].mxu1 }
 0x2b0   : > { %v5532_v43 = vpop.f32.mrb[53].mxu0  ;;  %v5617_v6 = vpop.f32.mrb[35].mxu1 }
 0x2b1   : > { %v9201_v9 = vadd.f32 %v5532_v43, %v5531_v26  ;;  %v5534_v45 = vpop.f32.mrb[54].mxu0  ;;  %v9203_v24 = vadd.f32 %v5617_v6, %v5616_v3  ;;  %v10069_v43 = vld [vmem:[#allocation34_spill] sm:$0xff] }
 0x2b2   : > { %v5535_v18 = vpop.f32.mrb[55].mxu0  ;;  %5986 = vmatmul.mubr.bf16.gmra.mrb[12].mxu1 %v3858_v12 }
 0x2b3   : > { %v9205_v56 = vadd.f32 %v5535_v18, %v5534_v45 }
 0x2b5   : > { %v5619_v61 = vpop.f32.mrb[36].mxu1 }
 0x2b6   : > { %v5620_v37 = vpop.f32.mrb[37].mxu1 }
 0x2b7   : > { %v5537_v39 = vpop.f32.mrb[56].mxu0  ;;  %v9207_v53 = vadd.f32 %v5620_v37, %v5619_v61  ;;  %v5622_v46 = vpop.f32.mrb[38].mxu1  ;;  %v10070_v61 = vld [vmem:[#allocation46_spill] sm:$0xff] }
 0x2b8   : > { %v5538_v21 = vpop.f32.mrb[57].mxu0  ;;  %v5623_v47 = vpop.f32.mrb[39].mxu1 }
 0x2b9   : > { %v9209_v50 = vadd.f32 %v5538_v21, %v5537_v39  ;;  %v5540_v17 = vpop.f32.mrb[58].mxu0  ;;  %v9211_v23 = vadd.f32 %v5623_v47, %v5622_v46  ;;  %v10071_v47 = vld [vmem:[#allocation32_spill] sm:$0xff] }
 0x2ba   : > { %v5541_v29 = vpop.f32.mrb[59].mxu0 }
 0x2bb   : > { %v9213_v27 = vadd.f32 %v5541_v29, %v5540_v17 }
 0x2bd   : > { %v5625_v32 = vpop.f32.mrb[40].mxu1 }
 0x2be   : > { %v5626_v34 = vpop.f32.mrb[41].mxu1 }
 0x2bf   : > { %v5543_v52 = vpop.f32.mrb[60].mxu0  ;;  %v9215_v22 = vadd.f32 %v5626_v34, %v5625_v32  ;;  %v5628_v4 = vpop.f32.mrb[42].mxu1  ;;  %v10072_v34 = vld [vmem:[#allocation35_spill] sm:$0xff] }
 0x2c0   : > { %v5544_v10 = vpop.f32.mrb[61].mxu0  ;;  %v5629_v7 = vpop.f32.mrb[43].mxu1 }
 0x2c1   : > { %v9217_v20 = vadd.f32 %v5544_v10, %v5543_v52  ;;  %v5546_v36 = vpop.f32.mrb[62].mxu0  ;;  %v9219_v54 = vadd.f32 %v5629_v7, %v5628_v4 }
 0x2c2   : > { %v5547_v0 = vpop.f32.mrb[63].mxu0 }
 0x2c3   : > { %v9221_v63 = vadd.f32 %v5547_v0, %v5546_v36 }
 0x2c5   : > { %v5631_v40 = vpop.f32.mrb[44].mxu1 }
 0x2c6   : > { %v5632_v30 = vpop.f32.mrb[45].mxu1 }
 0x2c7   : > { %v5863_v26 = vpop.f32.mrb[64].mxu0  ;;  %v9223_v3 = vadd.f32 %v5632_v30, %v5631_v40  ;;  %v5634_v12 = vpop.f32.mrb[46].mxu1  ;;  %v10073_v30 = vld [vmem:[#allocation38_spill] sm:$0xff] }
 0x2c8   : > { %v2138_v6 = vadd.f32 %v5863_v26, %v10069_v43  ;;  %v2129_v45 = vpop.f32.mrb[65].mxu0  ;;  %v5635_v18 = vpop.f32.mrb[47].mxu1 }
 0x2c9   : > { %v2130_v37 = vadd.f32 %v10070_v61, %v2129_v45  ;;  %v5864_v39 = vpop.f32.mrb[66].mxu0  ;;  %v9227_v46 = vadd.f32 %v5635_v18, %v5634_v12 }
 0x2ca   : > { %v9230_v21 = vadd.f32 %v9157_v58, %v2138_v6  ;;  %v2141_v17 = vadd.f32 %v5864_v39, %v10071_v47  ;;  %v2132_v29 = vpop.f32.mrb[67].mxu0  ;;  %v10074_v6 = vld [vmem:[#allocation33_spill] sm:$0xff] }
 0x2cb   : > { %v9234_v32 = vadd.f32 %v9143_v44, %v2130_v37  ;;  %v2133_v52 = vadd.f32 %v10072_v34, %v2132_v29 }
 0x2cc   : > { %v9238_v4 = vadd.f32 %v9165_v31, %v2141_v17  ;;  %v10075_v17 = vld [vmem:[#allocation37_spill] sm:$0xff] }
 0x2cd   : > { %v9241_v10 = vadd.f32 %v9149_v57, %v2133_v52  ;;  %v5637_v7 = vpop.f32.mrb[48].mxu1 }
 0x2ce   : > { %v5638_v36 = vpop.f32.mrb[49].mxu1 }
 0x2cf   : > { %v5867_v0 = vpop.f32.mrb[68].mxu0  ;;  %v5639_v40 = vadd.f32 %v5638_v36, %v5637_v7  ;;  %v5640_v58 = vpop.f32.mrb[50].mxu1 }
 0x2d0   : > { %v2154_v26 = vadd.f32 %v5867_v0, %v10073_v30  ;;  %v2145_v12 = vpop.f32.mrb[69].mxu0  ;;  %v5641_v43 = vpop.f32.mrb[51].mxu1 }
 0x2d1   : > { %v9245_v44 = vadd.f32 %v5639_v40, %v9133_v42  ;;  %v2146_v45 = vadd.f32 %v10074_v6, %v2145_v12  ;;  %v5868_v18 = vpop.f32.mrb[70].mxu0  ;;  %v5642_v31 = vadd.f32 %v5641_v43, %v5640_v58 }
 0x2d2   : > { %v9249_v61 = vadd.f32 %v9189_v38, %v2154_v26  ;;  %v2157_v57 = vadd.f32 %v5868_v18, %v9045_v15  ;;  %v2148_v37 = vpop.f32.mrb[71].mxu0 }
 0x2d3   : > { %v9253_v39 = vadd.f32 %v9173_v35, %v2146_v45  ;;  %v9256_v47 = vadd.f32 %v5642_v31, %v9135_v1  ;;  %v2149_v29 = vadd.f32 %v10075_v17, %v2148_v37 }
 0x2d4   : > { %v9260_v42 = vadd.f32 %v9193_v60, %v2157_v57 }
 0x2d5   : > { %v9263_v34 = vadd.f32 %v9181_v5, %v2149_v29  ;;  %v5643_v52 = vpop.f32.mrb[52].mxu1 }
 0x2d6   : > { %v5644_v38 = vpop.f32.mrb[53].mxu1 }
 0x2d7   : > { %v5871_v7 = vpop.f32.mrb[72].mxu0  ;;  %v5645_v36 = vadd.f32 %v5644_v38, %v5643_v52  ;;  %v5646_v15 = vpop.f32.mrb[54].mxu1 }
 0x2d8   : > { %v2170_v0 = vadd.f32 %v5871_v7, %v9081_v55  ;;  %v2161_v35 = vpop.f32.mrb[73].mxu0  ;;  %v5647_v40 = vpop.f32.mrb[55].mxu1 }
 0x2d9   : > { %v9267_v1 = vadd.f32 %v5645_v36, %v9147_v19  ;;  %v2162_v58 = vadd.f32 %v9058_v41, %v2161_v35  ;;  %v5872_v30 = vpop.f32.mrb[74].mxu0  ;;  %v5648_v60 = vadd.f32 %v5647_v40, %v5646_v15 }
 0x2da   : > { %v9271_v26 = vadd.f32 %v9207_v53, %v2170_v0  ;;  %v2173_v5 = vadd.f32 %v5872_v30, %v9085_v16  ;;  %v2164_v12 = vpop.f32.mrb[75].mxu0 }
 0x2db   : > { %v9275_v43 = vadd.f32 %v9199_v28, %v2162_v58  ;;  %v9278_v55 = vadd.f32 %v5648_v60, %v9153_v33  ;;  %v2165_v6 = vadd.f32 %v9064_v62, %v2164_v12 }
 0x2dc   : > { %v9282_v19 = vadd.f32 %v9211_v23, %v2173_v5 }
 0x2dd   : > { %v9285_v41 = vadd.f32 %v9203_v24, %v2165_v6  ;;  %v5649_v45 = vpop.f32.mrb[56].mxu1 }
 0x2de   : > { %v5650_v53 = vpop.f32.mrb[57].mxu1 }
 0x2df   : > { %v5875_v18 = vpop.f32.mrb[76].mxu0  ;;  %v5651_v31 = vadd.f32 %v5650_v53, %v5649_v45  ;;  %v5652_v16 = vpop.f32.mrb[58].mxu1 }
 0x2e0   : > { %v2186_v57 = vadd.f32 %v5875_v18, %v9119_v14  ;;  %v2177_v28 = vpop.f32.mrb[77].mxu0  ;;  %v5653_v37 = vpop.f32.mrb[59].mxu1 }
 0x2e1   : > { %v9289_v33 = vadd.f32 %v5651_v31, %v9163_v13  ;;  %v2178_v62 = vadd.f32 %v9098_v11, %v2177_v28  ;;  %v5876_v17 = vpop.f32.mrb[78].mxu0  ;;  %v5654_v23 = vadd.f32 %v5653_v37, %v5652_v16 }
 0x2e2   : > { %v9293_v29 = vadd.f32 %v9223_v3, %v2186_v57  ;;  %v2189_v24 = vadd.f32 %v5876_v17, %v9123_v48  ;;  %v2180_v52 = vpop.f32.mrb[79].mxu0 }
 0x2e3   : > { %v9297_v38 = vadd.f32 %v9215_v22, %v2178_v62  ;;  %v9300_v14 = vadd.f32 %v5654_v23, %v9167_v49  ;;  %v2181_v7 = vadd.f32 %v9100_v8, %v2180_v52 }
 0x2e4   : > { %v9304_v13 = vadd.f32 %v9227_v46, %v2189_v24 }
 0x2e5   : > { %v9307_v11 = vadd.f32 %v9219_v54, %v2181_v7  ;;  %v5655_v36 = vpop.f32.mrb[60].mxu1 }
 0x2e6   : > { %v5656_v3 = vpop.f32.mrb[61].mxu1 }
 0x2e7   : > { %v5657_v15 = vadd.f32 %v5656_v3, %v5655_v36  ;;  %v5725_v0 = vpop.f32.mrb[80].mxu0  ;;  %v5658_v48 = vpop.f32.mrb[62].mxu1 }
 0x2e8   : > { %v5726_v35 = vpop.f32.mrb[81].mxu0  ;;  %v5659_v40 = vpop.f32.mrb[63].mxu1 }
 0x2e9   : > { %v9310_v22 = vadd.f32 %v5657_v15, %v9179_v25  ;;  %v5727_v49 = vadd.f32 %v5726_v35, %v5725_v0  ;;  %v5660_v58 = vadd.f32 %v5659_v40, %v5658_v48  ;;  %v5728_v30 = vpop.f32.mrb[82].mxu0 }
 0x2ea   : > { %v5729_v8 = vpop.f32.mrb[83].mxu0 }
 0x2eb   : > { %v9313_v46 = vadd.f32 %v5660_v58, %v9183_v59  ;;  %v5730_v60 = vadd.f32 %v5729_v8, %v5728_v30  ;;  %v9316_v54 = vadd.f32 %v9234_v32, %v5727_v49 }
 0x2ed   : > { %v5661_v5 = vpop.f32.mrb[64].mxu1  ;;  %v9319_v12 = vadd.f32 %v9241_v10, %v5730_v60 }
 0x2ee   : > { %v5662_v6 = vpop.f32.mrb[65].mxu1 }
 0x2ef   : > { %v5663_v45 = vadd.f32 %v5662_v6, %v5661_v5  ;;  %v5731_v53 = vpop.f32.mrb[84].mxu0  ;;  %v5664_v25 = vpop.f32.mrb[66].mxu1 }
 0x2f0   : > { %v5732_v18 = vpop.f32.mrb[85].mxu0  ;;  %v5665_v31 = vpop.f32.mrb[67].mxu1 }
 0x2f1   : > { %v9322_v16 = vadd.f32 %v5663_v45, %v9191_v2  ;;  %v5733_v57 = vadd.f32 %v5732_v18, %v5731_v53  ;;  %v5666_v59 = vadd.f32 %v5665_v31, %v5664_v25  ;;  %v5734_v28 = vpop.f32.mrb[86].mxu0 }
 0x2f2   : > { %v5735_v37 = vpop.f32.mrb[87].mxu0 }
 0x2f3   : > { %v9325_v32 = vadd.f32 %v5666_v59, %v9195_v51  ;;  %v5736_v62 = vadd.f32 %v5735_v37, %v5734_v28  ;;  %v9328_v10 = vadd.f32 %v9230_v21, %v5733_v57 }
 0x2f5   : > { %v5667_v17 = vpop.f32.mrb[68].mxu1  ;;  %v9331_v23 = vadd.f32 %v9238_v4, %v5736_v62 }
 0x2f6   : > { %v5668_v24 = vpop.f32.mrb[69].mxu1 }
 0x2f7   : > { %v5669_v52 = vadd.f32 %v5668_v24, %v5667_v17  ;;  %v5737_v7 = vpop.f32.mrb[88].mxu0  ;;  %v5670_v2 = vpop.f32.mrb[70].mxu1 }
 0x2f8   : > { %v5738_v36 = vpop.f32.mrb[89].mxu0  ;;  %v5671_v3 = vpop.f32.mrb[71].mxu1 }
 0x2f9   : > { %v9334_v15 = vadd.f32 %v5669_v52, %v9201_v9  ;;  %v5739_v0 = vadd.f32 %v5738_v36, %v5737_v7  ;;  %v5672_v51 = vadd.f32 %v5671_v3, %v5670_v2  ;;  %v5740_v48 = vpop.f32.mrb[90].mxu0 }
 0x2fa   : > { %v5741_v35 = vpop.f32.mrb[91].mxu0 }
 0x2fb   : > { %v9337_v21 = vadd.f32 %v5672_v51, %v9205_v56  ;;  %v5742_v40 = vadd.f32 %v5741_v35, %v5740_v48  ;;  %v9340_v4 = vadd.f32 %v9253_v39, %v5739_v0 }
 0x2fd   : > { %v5673_v49 = vpop.f32.mrb[72].mxu1  ;;  %v9343_v58 = vadd.f32 %v9263_v34, %v5742_v40 }
 0x2fe   : > { %v5674_v30 = vpop.f32.mrb[73].mxu1 }
 0x2ff   : > { %v5675_v8 = vadd.f32 %v5674_v30, %v5673_v49  ;;  %v5743_v60 = vpop.f32.mrb[92].mxu0  ;;  %v5676_v9 = vpop.f32.mrb[74].mxu1 }
 0x300   : > { %v5744_v5 = vpop.f32.mrb[93].mxu0  ;;  %v5677_v6 = vpop.f32.mrb[75].mxu1 }
 0x301   : > { %v9346_v45 = vadd.f32 %v5675_v8, %v9209_v50  ;;  %v5745_v53 = vadd.f32 %v5744_v5, %v5743_v60  ;;  %v5678_v56 = vadd.f32 %v5677_v6, %v5676_v9  ;;  %v5746_v25 = vpop.f32.mrb[94].mxu0 }
 0x302   : > { %v5747_v18 = vpop.f32.mrb[95].mxu0 }
 0x303   : > { %v9349_v39 = vadd.f32 %v5678_v56, %v9213_v27  ;;  %v5748_v31 = vadd.f32 %v5747_v18, %v5746_v25  ;;  %v9352_v34 = vadd.f32 %v9249_v61, %v5745_v53 }
 0x305   : > { %v5679_v57 = vpop.f32.mrb[76].mxu1  ;;  %v9355_v59 = vadd.f32 %v9260_v42, %v5748_v31 }
 0x306   : > { %v5680_v28 = vpop.f32.mrb[77].mxu1 }
 0x307   : > { %v5681_v37 = vadd.f32 %v5680_v28, %v5679_v57  ;;  %v5749_v62 = vpop.f32.mrb[96].mxu0  ;;  %v5682_v50 = vpop.f32.mrb[78].mxu1 }
 0x308   : > { %v5750_v17 = vpop.f32.mrb[97].mxu0  ;;  %v5683_v24 = vpop.f32.mrb[79].mxu1 }
 0x309   : > { %v9358_v52 = vadd.f32 %v5681_v37, %v9217_v20  ;;  %v5751_v7 = vadd.f32 %v5750_v17, %v5749_v62  ;;  %v5684_v27 = vadd.f32 %v5683_v24, %v5682_v50  ;;  %v5752_v2 = vpop.f32.mrb[98].mxu0 }
 0x30a   : > { %v5753_v36 = vpop.f32.mrb[99].mxu0 }
 0x30b   : > { %v9361_v61 = vadd.f32 %v5684_v27, %v9221_v63  ;;  %v5754_v3 = vadd.f32 %v5753_v36, %v5752_v2  ;;  %v9364_v42 = vadd.f32 %v9275_v43, %v5751_v7 }
 0x30d   : > { %v9367_v0 = vadd.f32 %v9285_v41, %v5754_v3 }
 0x30f   : > { %v5755_v51 = vpop.f32.mrb[100].mxu0 }
 0x310   : > { %v5756_v48 = vpop.f32.mrb[101].mxu0 }
 0x311   : > { %v5757_v35 = vadd.f32 %v5756_v48, %v5755_v51  ;;  %v5758_v40 = vpop.f32.mrb[102].mxu0 }
 0x312   : > { %v5759_v20 = vpop.f32.mrb[103].mxu0 }
 0x313   : > { %v5760_v49 = vadd.f32 %v5759_v20, %v5758_v40  ;;  %v9370_v30 = vadd.f32 %v9271_v26, %v5757_v35 }
 0x315   : > { %v9373_v8 = vadd.f32 %v9282_v19, %v5760_v49 }
 0x317   : > { %v5761_v63 = vpop.f32.mrb[104].mxu0 }
 0x318   : > { %v5762_v60 = vpop.f32.mrb[105].mxu0 }
 0x319   : > { %v5763_v9 = vadd.f32 %v5762_v60, %v5761_v63  ;;  %v5764_v43 = vpop.f32.mrb[106].mxu0 }
 0x31a   : > { %v5765_v5 = vpop.f32.mrb[107].mxu0 }
 0x31b   : > { %v5766_v6 = vadd.f32 %v5765_v5, %v5764_v43  ;;  %v9376_v41 = vadd.f32 %v9297_v38, %v5763_v9 }
 0x31d   : > { %v9379_v53 = vadd.f32 %v9307_v11, %v5766_v6 }
 0x31f   : > { %v5767_v56 = vpop.f32.mrb[108].mxu0 }
 0x320   : > { %v5768_v25 = vpop.f32.mrb[109].mxu0 }
 0x321   : > { %v5769_v18 = vadd.f32 %v5768_v25, %v5767_v56  ;;  %v5770_v26 = vpop.f32.mrb[110].mxu0 }
 0x322   : > { %v5771_v31 = vpop.f32.mrb[111].mxu0 }
 0x323   : > { %v5772_v57 = vadd.f32 %v5771_v31, %v5770_v26  ;;  %v9382_v19 = vadd.f32 %v9293_v29, %v5769_v18 }
 0x325   : > { %v9385_v28 = vadd.f32 %v9304_v13, %v5772_v57 }
 0x327   : > { %v5773_v37 = vpop.f32.mrb[112].mxu0 }
 0x328   : > { %v5774_v62 = vpop.f32.mrb[113].mxu0 }
 0x329   : > { %v5775_v50 = vadd.f32 %v5774_v62, %v5773_v37  ;;  %v5776_v38 = vpop.f32.mrb[114].mxu0 }
 0x32a   : > { %v5777_v17 = vpop.f32.mrb[115].mxu0 }
 0x32b   : > { %v5778_v24 = vadd.f32 %v5777_v17, %v5776_v38  ;;  %v9388_v11 = vadd.f32 %v9245_v44, %v5775_v50 }
 0x32d   : > { %v9391_v7 = vadd.f32 %v9256_v47, %v5778_v24 }
 0x32f   : > { %v5779_v27 = vpop.f32.mrb[116].mxu0 }
 0x330   : > { %v5780_v2 = vpop.f32.mrb[117].mxu0 }
 0x331   : > { %v5781_v36 = vadd.f32 %v5780_v2, %v5779_v27  ;;  %v5782_v29 = vpop.f32.mrb[118].mxu0 }
 0x332   : > { %v5783_v3 = vpop.f32.mrb[119].mxu0 }
 0x333   : > { %v5784_v51 = vadd.f32 %v5783_v3, %v5782_v29  ;;  %v9394_v13 = vadd.f32 %v9267_v1, %v5781_v36 }
 0x335   : > { %v9397_v48 = vadd.f32 %v9278_v55, %v5784_v51 }
 0x337   : > { %v5785_v35 = vpop.f32.mrb[120].mxu0 }
 0x338   : > { %v5786_v40 = vpop.f32.mrb[121].mxu0 }
 0x339   : > { %v5787_v20 = vadd.f32 %v5786_v40, %v5785_v35  ;;  %v5788_v44 = vpop.f32.mrb[122].mxu0 }
 0x33a   : > { %v5789_v49 = vpop.f32.mrb[123].mxu0 }
 0x33b   : > { %v5790_v63 = vadd.f32 %v5789_v49, %v5788_v44  ;;  %v9400_v47 = vadd.f32 %v9289_v33, %v5787_v20 }
 0x33d   : > { %v9403_v60 = vadd.f32 %v9300_v14, %v5790_v63 }
 0x33f   : > { %v5791_v9 = vpop.f32.mrb[124].mxu0 }
 0x340   : > { %v5792_v43 = vpop.f32.mrb[125].mxu0 }
 0x341   : > { %v5793_v5 = vadd.f32 %v5792_v43, %v5791_v9  ;;  %v5794_v1 = vpop.f32.mrb[126].mxu0 }
 0x342   : > { %v5795_v6 = vpop.f32.mrb[127].mxu0 }
 0x343   : > { %v5796_v56 = vadd.f32 %v5795_v6, %v5794_v1  ;;  %v9406_v55 = vadd.f32 %v9310_v22, %v5793_v5 }
 0x345   : > { %v9409_v25 = vadd.f32 %v9313_v46, %v5796_v56 }
 0x347   : > { %v5797_v18 = vpop.f32.mrb[128].mxu0 }
 0x348   : > { %v5798_v26 = vpop.f32.mrb[129].mxu0 }
 0x349   : > { %v5799_v31 = vadd.f32 %v5798_v26, %v5797_v18  ;;  %v5800_v33 = vpop.f32.mrb[130].mxu0 }
 0x34a   : > { %v5801_v57 = vpop.f32.mrb[131].mxu0 }
 0x34b   : > { %v5802_v37 = vadd.f32 %v5801_v57, %v5800_v33  ;;  %v9412_v14 = vadd.f32 %v9322_v16, %v5799_v31 }
 0x34d   : > { %v5959_v62 = vpop.f32.mrb[80].mxu1  ;;  %v9415_v50 = vadd.f32 %v9325_v32, %v5802_v37 }
 0x34e   : > { %v6008_v38 = vadd.f32 %v9328_v10, %v5959_v62  ;;  %v4247_v22 = vpop.f32.mrb[81].mxu1 }
 0x34f   : > { %v5803_v17 = vpop.f32.mrb[132].mxu0  ;;  %v6012_v46 = vadd.f32 %v9316_v54, %v4247_v22  ;;  %v5960_v24 = vpop.f32.mrb[82].mxu1 }
 0x350   : > { %v5804_v27 = vpop.f32.mrb[133].mxu0  ;;  %v6016_v2 = vadd.f32 %v9331_v23, %v5960_v24  ;;  %v4250_v36 = vpop.f32.mrb[83].mxu1 }
 0x351   : > { %v5805_v29 = vadd.f32 %v5804_v27, %v5803_v17  ;;  %v5806_v3 = vpop.f32.mrb[134].mxu0  ;;  %v6020_v16 = vadd.f32 %v9319_v12, %v4250_v36 }
 0x352   : > { %v4503_v51 = vpack.c.bf16 %v6016_v2, %v6008_v38  ;;  %v5807_v35 = vpop.f32.mrb[135].mxu0 }
 0x353   : > { %v4502_v32 = vpack.c.bf16 %v6020_v16, %v6012_v46  ;;  %v5808_v40 = vadd.f32 %v5807_v35, %v5806_v3  ;;  %v9422_v10 = vadd.f32 %v9334_v15, %v5805_v29 }
 0x354   : > { %5422 = vst [vmem:[%s9426_s16 + $0x8] sm:$0xff] %v4503_v51   ;;  %v4664_v54 = vunpack.c.l.bf16 %v4503_v51  ;;  %v4665_v49 = vunpack.c.h.bf16 %v4503_v51 }
 0x355   : > { %5331 = vst [vmem:[%s9426_s16] sm:$0xff] %v4502_v32   ;;  %v4662_v23 = vunpack.c.l.bf16 %v4502_v32  ;;  %v4663_v20 = vunpack.c.h.bf16 %v4502_v32  ;;  %v5963_v44 = vpop.f32.mrb[84].mxu1  ;;  %v9431_v12 = vadd.f32 %v9337_v21, %v5808_v40 }
 0x356   : > { %v6024_v63 = vadd.f32 %v9352_v34, %v5963_v44  ;;  %v4263_v9 = vpop.f32.mrb[85].mxu1  ;;  %v4734_v18 = vmul.f32 %v4664_v54, %v4664_v54  ;;  %v4735_v38 = vmul.f32 %v4665_v49, %v4665_v49 }
 0x357   : > { %v4694_v15 = vadd.f32 %v4663_v20, %v4662_v23  ;;  %v4732_v43 = vmul.f32 %v4662_v23, %v4662_v23  ;;  %v4733_v5 = vmul.f32 %v4663_v20, %v4663_v20  ;;  %v5809_v1 = vpop.f32.mrb[136].mxu0  ;;  %v6028_v6 = vadd.f32 %v9340_v4, %v4263_v9  ;;  %v5964_v56 = vpop.f32.mrb[86].mxu1 }
 0x358   : > { %v5810_v26 = vpop.f32.mrb[137].mxu0  ;;  %v6032_v31 = vadd.f32 %v9355_v59, %v5964_v56  ;;  %v4266_v33 = vpop.f32.mrb[87].mxu1 }
 0x359   : > { %v4695_v21 = vadd.f32 %v4694_v15, %v4664_v54  ;;  %v4764_v57 = vadd.f32 %v4733_v5, %v4732_v43  ;;  %v5811_v37 = vadd.f32 %v5810_v26, %v5809_v1  ;;  %v5812_v62 = vpop.f32.mrb[138].mxu0  ;;  %v6036_v34 = vadd.f32 %v9343_v58, %v4266_v33 }
 0x35a   : > { %v4505_v22 = vpack.c.bf16 %v6032_v31, %v6024_v63  ;;  %v5813_v17 = vpop.f32.mrb[139].mxu0 }
 0x35b   : > { %v4765_v46 = vadd.f32 %v4764_v57, %v4734_v18  ;;  %v4504_v24 = vpack.c.bf16 %v6036_v34, %v6028_v6  ;;  %v4696_v4 = vadd.f32 %v4695_v21, %v4665_v49  ;;  %v5814_v27 = vadd.f32 %v5813_v17, %v5812_v62 }
 0x35c   : > { %5424 = vst [vmem:[%s9426_s16 + $0x18] sm:$0xff] %v4505_v22   ;;  %v9439_v2 = vadd.f32 %v9346_v45, %v5811_v37  ;;  %v4668_v58 = vunpack.c.l.bf16 %v4505_v22  ;;  %v4669_v45 = vunpack.c.h.bf16 %v4505_v22 }
 0x35d   : > { %5423 = vst [vmem:[%s9426_s16 + $0x10] sm:$0xff] %v4504_v24   ;;  %v4666_v59 = vunpack.c.l.bf16 %v4504_v24  ;;  %v4667_v36 = vunpack.c.h.bf16 %v4504_v24  ;;  %v4766_v29 = vadd.f32 %v4765_v46, %v4735_v38  ;;  %v5967_v3 = vpop.f32.mrb[88].mxu1  ;;  %v9443_v16 = vadd.f32 %v9349_v39, %v5814_v27 }
 0x35e   : > { %v6040_v51 = vadd.f32 %v9370_v30, %v5967_v3  ;;  %v4279_v35 = vpop.f32.mrb[89].mxu1  ;;  %v4738_v1 = vmul.f32 %v4668_v58, %v4668_v58  ;;  %v4739_v33 = vmul.f32 %v4669_v45, %v4669_v45 }
 0x35f   : > { %v4697_v32 = vadd.f32 %v4696_v4, %v4666_v59  ;;  %v4736_v40 = vmul.f32 %v4666_v59, %v4666_v59  ;;  %v5815_v54 = vpop.f32.mrb[140].mxu0  ;;  %v6044_v23 = vadd.f32 %v9364_v42, %v4279_v35  ;;  %v5968_v20 = vpop.f32.mrb[90].mxu1  ;;  %v4737_v44 = vmul.f32 %v4667_v36, %v4667_v36 }
 0x360   : > { %v5816_v49 = vpop.f32.mrb[141].mxu0  ;;  %v6048_v63 = vadd.f32 %v9373_v8, %v5968_v20  ;;  %v4282_v9 = vpop.f32.mrb[91].mxu1 }
 0x361   : > { %v4698_v15 = vadd.f32 %v4697_v32, %v4667_v36  ;;  %v4767_v39 = vadd.f32 %v4766_v29, %v4736_v40  ;;  %v5817_v43 = vadd.f32 %v5816_v49, %v5815_v54  ;;  %v5818_v5 = vpop.f32.mrb[142].mxu0  ;;  %v6052_v30 = vadd.f32 %v9367_v0, %v4282_v9 }
 0x362   : > { %v4507_v6 = vpack.c.bf16 %v6048_v63, %v6040_v51  ;;  %v5819_v56 = vpop.f32.mrb[143].mxu0 }
 0x363   : > { %v4699_v18 = vadd.f32 %v4698_v15, %v4668_v58  ;;  %v4768_v42 = vadd.f32 %v4767_v39, %v4737_v44  ;;  %v4506_v26 = vpack.c.bf16 %v6052_v30, %v6044_v23  ;;  %v5820_v31 = vadd.f32 %v5819_v56, %v5818_v5 }
 0x364   : > { %5426 = vst [vmem:[%s9426_s16 + $0x28] sm:$0xff] %v4507_v6   ;;  %v9451_v21 = vadd.f32 %v9358_v52, %v5817_v43  ;;  %v4672_v17 = vunpack.c.l.bf16 %v4507_v6  ;;  %v4673_v52 = vunpack.c.h.bf16 %v4507_v6 }
 0x365   : > { %v4769_v8 = vadd.f32 %v4768_v42, %v4738_v1  ;;  %5425 = vst [vmem:[%s9426_s16 + $0x20] sm:$0xff] %v4506_v26   ;;  %v4670_v57 = vunpack.c.l.bf16 %v4506_v26  ;;  %v4671_v37 = vunpack.c.h.bf16 %v4506_v26  ;;  %v4700_v62 = vadd.f32 %v4699_v18, %v4669_v45  ;;  %v5971_v34 = vpop.f32.mrb[92].mxu1 }
 0x366   : > { %v6056_v0 = vadd.f32 %v9382_v19, %v5971_v34  ;;  %v4295_v38 = vpop.f32.mrb[93].mxu1  ;;  %v9456_v22 = vadd.f32 %v9361_v61, %v5820_v31  ;;  %v4742_v35 = vmul.f32 %v4672_v17, %v4672_v17  ;;  %v4743_v23 = vmul.f32 %v4673_v52, %v4673_v52 }
 0x367   : > { %v4701_v46 = vadd.f32 %v4700_v62, %v4670_v57  ;;  %v4740_v24 = vmul.f32 %v4670_v57, %v4670_v57  ;;  %v4770_v4 = vadd.f32 %v4769_v8, %v4739_v33  ;;  %v5972_v27 = vpop.f32.mrb[94].mxu1  ;;  %v6060_v59 = vadd.f32 %v9376_v41, %v4295_v38 }
 0x368   : > { %v6064_v36 = vadd.f32 %v9385_v28, %v5972_v27  ;;  %v4298_v29 = vpop.f32.mrb[95].mxu1  ;;  %v4741_v58 = vmul.f32 %v4671_v37, %v4671_v37 }
 0x369   : > { %v4702_v3 = vadd.f32 %v4701_v46, %v4671_v37  ;;  %v4771_v19 = vadd.f32 %v4770_v4, %v4740_v24  ;;  %v6068_v51 = vadd.f32 %v9379_v53, %v4298_v29 }
 0x36a   : > { %v4509_v61 = vpack.c.bf16 %v6064_v36, %v6056_v0 }
 0x36b   : > { %v4703_v32 = vadd.f32 %v4702_v3, %v4672_v17  ;;  %v4772_v40 = vadd.f32 %v4771_v19, %v4741_v58  ;;  %v4508_v54 = vpack.c.bf16 %v6068_v51, %v6060_v59 }
 0x36c   : > { %5428 = vst [vmem:[%s9426_s16 + $0x38] sm:$0xff] %v4509_v61   ;;  %v4676_v9 = vunpack.c.l.bf16 %v4509_v61  ;;  %v4677_v5 = vunpack.c.h.bf16 %v4509_v61 }
 0x36d   : > { %v4773_v20 = vadd.f32 %v4772_v40, %v4742_v35  ;;  %5427 = vst [vmem:[%s9426_s16 + $0x30] sm:$0xff] %v4508_v54   ;;  %v4674_v45 = vunpack.c.l.bf16 %v4508_v54  ;;  %v4675_v44 = vunpack.c.h.bf16 %v4508_v54  ;;  %v4704_v41 = vadd.f32 %v4703_v32, %v4673_v52  ;;  %v5975_v49 = vpop.f32.mrb[0].mxu1 }
 0x36e   : > { %v6071_v28 = vadd.f32 %v9394_v13, %v5975_v49  ;;  %v4311_v63 = vpop.f32.mrb[1].mxu1  ;;  %v4746_v31 = vmul.f32 %v4676_v9, %v4676_v9  ;;  %v4747_v37 = vmul.f32 %v4677_v5, %v4677_v5 }
 0x36f   : > { %v4705_v15 = vadd.f32 %v4704_v41, %v4674_v45  ;;  %v4744_v39 = vmul.f32 %v4674_v45, %v4674_v45  ;;  %v4774_v53 = vadd.f32 %v4773_v20, %v4743_v23  ;;  %v5976_v43 = vpop.f32.mrb[2].mxu1  ;;  %v6074_v30 = vadd.f32 %v9388_v11, %v4311_v63 }
 0x370   : > { %v6077_v1 = vadd.f32 %v9397_v48, %v5976_v43  ;;  %v4314_v6 = vpop.f32.mrb[3].mxu1  ;;  %v4745_v18 = vmul.f32 %v4675_v44, %v4675_v44 }
 0x371   : > { %v4706_v56 = vadd.f32 %v4705_v15, %v4675_v44  ;;  %v4775_v42 = vadd.f32 %v4774_v53, %v4744_v39  ;;  %v6080_v26 = vadd.f32 %v9391_v7, %v4314_v6 }
 0x372   : > { %v4511_v13 = vpack.c.bf16 %v6077_v1, %v6071_v28 }
 0x373   : > { %v4707_v33 = vadd.f32 %v4706_v56, %v4676_v9  ;;  %v4776_v8 = vadd.f32 %v4775_v42, %v4745_v18  ;;  %v4510_v57 = vpack.c.bf16 %v6080_v26, %v6074_v30 }
 0x374   : > { %5430 = vst [vmem:[%s9426_s16 + $0x48] sm:$0xff] %v4511_v13   ;;  %v4680_v46 = vunpack.c.l.bf16 %v4511_v13  ;;  %v4681_v52 = vunpack.c.h.bf16 %v4511_v13 }
 0x375   : > { %v4777_v62 = vadd.f32 %v4776_v8, %v4746_v31  ;;  %5429 = vst [vmem:[%s9426_s16 + $0x40] sm:$0xff] %v4510_v57   ;;  %v4678_v34 = vunpack.c.l.bf16 %v4510_v57  ;;  %v4679_v0 = vunpack.c.h.bf16 %v4510_v57  ;;  %v4708_v11 = vadd.f32 %v4707_v33, %v4677_v5  ;;  %v5979_v38 = vpop.f32.mrb[4].mxu1 }
 0x376   : > { %v6083_v48 = vadd.f32 %v9406_v55, %v5979_v38  ;;  %v4327_v17 = vpop.f32.mrb[5].mxu1  ;;  %v4750_v61 = vmul.f32 %v4680_v46, %v4680_v46  ;;  %v4751_v54 = vmul.f32 %v4681_v52, %v4681_v52 }
 0x377   : > { %v4709_v24 = vadd.f32 %v4708_v11, %v4678_v34  ;;  %v4748_v4 = vmul.f32 %v4678_v34, %v4678_v34  ;;  %v4778_v7 = vadd.f32 %v4777_v62, %v4747_v37  ;;  %v5980_v27 = vpop.f32.mrb[6].mxu1  ;;  %v6086_v59 = vadd.f32 %v9400_v47, %v4327_v17 }
 0x378   : > { %v6089_v36 = vadd.f32 %v9409_v25, %v5980_v27  ;;  %v4330_v29 = vpop.f32.mrb[7].mxu1  ;;  %v4749_v58 = vmul.f32 %v4679_v0, %v4679_v0 }
 0x379   : > { %v4710_v3 = vadd.f32 %v4709_v24, %v4679_v0  ;;  %v4779_v19 = vadd.f32 %v4778_v7, %v4748_v4  ;;  %v6092_v51 = vadd.f32 %v9403_v60, %v4330_v29 }
 0x37a   : > { %v4513_v55 = vpack.c.bf16 %v6089_v36, %v6083_v48 }
 0x37b   : > { %v4711_v35 = vadd.f32 %v4710_v3, %v4680_v46  ;;  %v4780_v32 = vadd.f32 %v4779_v19, %v4749_v58  ;;  %v4512_v40 = vpack.c.bf16 %v6092_v51, %v6086_v59 }
 0x37c   : > { %5432 = vst [vmem:[%s9426_s16 + $0x58] sm:$0xff] %v4513_v55   ;;  %v4684_v49 = vunpack.c.l.bf16 %v4513_v55  ;;  %v4685_v15 = vunpack.c.h.bf16 %v4513_v55 }
 0x37d   : > { %v4781_v23 = vadd.f32 %v4780_v32, %v4750_v61  ;;  %5431 = vst [vmem:[%s9426_s16 + $0x50] sm:$0xff] %v4512_v40   ;;  %v4682_v20 = vunpack.c.l.bf16 %v4512_v40  ;;  %v4683_v45 = vunpack.c.h.bf16 %v4512_v40  ;;  %v4712_v47 = vadd.f32 %v4711_v35, %v4681_v52  ;;  %v5983_v44 = vpop.f32.mrb[8].mxu1 }
 0x37e   : > { %v6095_v25 = vadd.f32 %v9422_v10, %v5983_v44  ;;  %v4343_v41 = vpop.f32.mrb[9].mxu1  ;;  %v4754_v56 = vmul.f32 %v4684_v49, %v4684_v49  ;;  %v4755_v13 = vmul.f32 %v4685_v15, %v4685_v15 }
 0x37f   : > { %v4713_v28 = vadd.f32 %v4712_v47, %v4682_v20  ;;  %v4752_v63 = vmul.f32 %v4682_v20, %v4682_v20  ;;  %v4782_v60 = vadd.f32 %v4781_v23, %v4751_v54  ;;  %v5984_v9 = vpop.f32.mrb[10].mxu1  ;;  %v6098_v39 = vadd.f32 %v9412_v14, %v4343_v41 }
 0x380   : > { %v6101_v53 = vadd.f32 %v9431_v12, %v5984_v9  ;;  %v4346_v43 = vpop.f32.mrb[11].mxu1  ;;  %v4753_v30 = vmul.f32 %v4683_v45, %v4683_v45 }
 0x381   : > { %v4714_v5 = vadd.f32 %v4713_v28, %v4683_v45  ;;  %v4783_v1 = vadd.f32 %v4782_v60, %v4752_v63  ;;  %v6104_v6 = vadd.f32 %v9415_v50, %v4346_v43 }
 0x382   : > { %v4515_v10 = vpack.c.bf16 %v6101_v53, %v6095_v25 }
 0x383   : > { %v4715_v18 = vadd.f32 %v4714_v5, %v4684_v49  ;;  %v4784_v42 = vadd.f32 %v4783_v1, %v4753_v30  ;;  %v4514_v26 = vpack.c.bf16 %v6104_v6, %v6098_v39 }
 0x384   : > { %5434 = vst [vmem:[%s9426_s16 + $0x68] sm:$0xff] %v4515_v10   ;;  %v4688_v62 = vunpack.c.l.bf16 %v4515_v10  ;;  %v4689_v38 = vunpack.c.h.bf16 %v4515_v10 }
 0x385   : > { %v4785_v31 = vadd.f32 %v4784_v42, %v4754_v56  ;;  %5433 = vst [vmem:[%s9426_s16 + $0x60] sm:$0xff] %v4514_v26   ;;  %v4686_v14 = vunpack.c.l.bf16 %v4514_v26  ;;  %v4687_v33 = vunpack.c.h.bf16 %v4514_v26  ;;  %v4716_v12 = vadd.f32 %v4715_v18, %v4685_v15  ;;  %v5987_v8 = vpop.f32.mrb[12].mxu1 }
 0x386   : > { %v6107_v57 = vadd.f32 %v9451_v21, %v5987_v8  ;;  %v4359_v37 = vpop.f32.mrb[13].mxu1  ;;  %v4759_v36 = vmul.f32 %v4689_v38, %v4689_v38 }
 0x387   : > { %v4717_v50 = vadd.f32 %v4716_v12, %v4686_v14  ;;  %v4756_v34 = vmul.f32 %v4686_v14, %v4686_v14  ;;  %v4786_v0 = vadd.f32 %v4785_v31, %v4755_v13  ;;  %v5988_v11 = vpop.f32.mrb[14].mxu1  ;;  %v6110_v48 = vadd.f32 %v9439_v2, %v4359_v37 }
 0x388   : > { %v6113_v17 = vadd.f32 %v9456_v22, %v5988_v11  ;;  %v4362_v46 = vpop.f32.mrb[15].mxu1  ;;  %v4757_v4 = vmul.f32 %v4687_v33, %v4687_v33  ;;  %v4758_v2 = vmul.f32 %v4688_v62, %v4688_v62 }
 0x389   : > { %v4718_v24 = vadd.f32 %v4717_v50, %v4687_v33  ;;  %v4787_v7 = vadd.f32 %v4786_v0, %v4756_v34  ;;  %v6116_v21 = vadd.f32 %v9443_v16, %v4362_v46 }
 0x38a   : > { %v4517_v27 = vpack.c.bf16 %v6113_v17, %v6107_v57 }
 0x38b   : > { %v4719_v22 = vadd.f32 %v4718_v24, %v4688_v62  ;;  %v4788_v52 = vadd.f32 %v4787_v7, %v4757_v4  ;;  %v4516_v59 = vpack.c.bf16 %v6116_v21, %v6110_v48 }
 0x38c   : > { %5436 = vst [vmem:[%s9426_s16 + $0x78] sm:$0xff] %v4517_v27  }
 0x38d   : > { %v4789_v29 = vadd.f32 %v4788_v52, %v4758_v2  ;;  %5435 = vst [vmem:[%s9426_s16 + $0x70] sm:$0xff] %v4516_v59   ;;  %v4690_v16 = vunpack.c.l.bf16 %v4516_v59  ;;  %v4691_v3 = vunpack.c.h.bf16 %v4516_v59  ;;  %v4720_v58 = vadd.f32 %v4719_v22, %v4689_v38 }
 0x38e   : > { %7044 = shalt.err (!%p7041_p8)
}
 0x38f   : > { %s7045_s21 = scalar_lea.hbm %s9490_s24, 2048  ;;  %s7049_s16 = scalar_lea.hbm %s9615_s7, 4096 }
 0x390   : > { %p7046_p10 = scmp.ne.s32.totalorder %s9490_s24, %s7045_s21  ;;  %p7050_p0 = scmp.lt.u32.totalorder %s9490_s24, %s9615_s7 }
 0x391   : > { %p7051_p5 = scmp.lt.u32.totalorder %s7049_s16, %s7045_s21  ;;  %p7053_p6 = scmp.lt.u32.totalorder %s7045_s21, %s9490_s24 }
 0x392   : > { %p7047_p11 = pnand %p7046_p10, %p10076_p9 }
 0x393   : > { %p7052_p7 = por %p7051_p5, %p7050_p0 }
 0x394   : > { %p7048_p12 = pneg %p7047_p11 }
 0x395   : > { %p7054_p4 = por %p7053_p6, %p7052_p7 }
 0x397   : > { %p7055_p13 = pnand %p7054_p4, %p7048_p12 }
 0x399   : > { %7058 = shalt.err (!%p7055_p13)
}
 0x39a   : > { %s7185_s22 = smov 64   ;;  %s7186_s25 = smov 4   ;;  %v4692_v19 = vunpack.c.l.bf16 %v4517_v27  ;;  %v4721_v51 = vadd.f32 %v4720_v58, %v4690_v16  ;;  %v4760_v55 = vmul.f32 %v4690_v16, %v4690_v16  ;;  %v4790_v61 = vadd.f32 %v4789_v29, %v4759_v36 }
 0x39b   : > { %6191 = dma.vmem_to_hbm [thread:$0]  (%p10076_p9), %s9492_s17, 2048, %s9490_s24, %s4803_s3, %s7185_s22, %s7185_s22, %s7186_s25   ;;  %v4693_v35 = vunpack.c.h.bf16 %v4517_v27  ;;  %v4761_v40 = vmul.f32 %v4691_v3, %v4691_v3 }
 0x39c   : > { %v4722_v32 = vadd.f32 %v4721_v51, %v4691_v3  ;;  %v4791_v54 = vadd.f32 %v4790_v61, %v4760_v55  ;;  %v4762_v23 = vmul.f32 %v4692_v19, %v4692_v19  ;;  %s4807_s17 = sand.u32 1, %s7260_s15   ;;  %s5225_s24 = sshll.u32 %s7260_s15, 4 }
 0x39d   : > { %v4763_v47 = vmul.f32 %v4693_v35, %v4693_v35  ;;  %s439_s3 = scalar_lea.vmem [#allocation16], %s7504_s18  ;;  %s9765_s26 = scalar_lea.vmem [#allocation18], %s7504_s18 }
 0x39e   : > { %v4723_v20 = vadd.f32 %v4722_v32, %v4692_v19  ;;  %v4792_v45 = vadd.f32 %v4791_v54, %v4761_v40  ;;  %s4840_s13 = sshll.u32 %s439_s3, 4  ;;  %s4853_s27 = sshll.u32 %s9765_s26, 4  ;;  %s9531_s13 = int_to_ptr.vmem [resolvable:$true] %s4840_s13  ;;  %s9538_s27 = int_to_ptr.vmem [resolvable:$true] %s4853_s27 }
 0x39f   : > { %s9529_s9 = scalar_lea.hbm %s9616_s8, %s5225_s24  ;;  %s10077_s14 = sld [smem:[#allocation115_spill]] }
 0x3a0   : > { %v4724_v44 = vadd.f32 %v4723_v20, %v4693_v35  ;;  %v4793_v25 = vadd.f32 %v4792_v45, %v4762_v23  ;;  %s9540_s22 = scalar_lea.sflag [#allocation17], %s4807_s17  ;;  %s7059_s25 = scalar_lea.vmem %s9531_s13, 16 }
 0x3a1   : > { %p7060_p1 = scmp.ne.s32.totalorder %s9531_s13, %s7059_s25  ;;  %s7187_s21 = smov [#allocation16]  }
 0x3a2   : > { %v4725_v41 = vrot.slane %v4724_v44, 4  ;;  %v4794_v49 = vadd.f32 %v4793_v25, %v4763_v47  ;;  %s7063_s20 = sshll.u32 %s7187_s21, 4  ;;  %s7064_s20 = int_to_ptr.vmem [resolvable:$false] %s7063_s20 }
 0x3a3   : > { %p7061_p3 = pnand %p7060_p1, %p10076_p9  ;;  %s7065_s26 = scalar_lea.vmem %s7064_s20, 32 }
 0x3a4   : > { %v4795_v28 = vrot.slane %v4794_v49, 4  ;;  %v4726_v63 = vadd.f32 %v4725_v41, %v4724_v44  ;;  %p7066_p8 = scmp.lt.s32.totalorder %s9531_s13, %s7064_s20  ;;  %p7067_p10 = scmp.lt.s32.totalorder %s7065_s26, %s7059_s25 }
 0x3a5   : > { %s9536_s19 = scalar_lea.hbm %s10077_s14, %s5225_s24  ;;  %p7062_p2 = pneg %p7061_p3 }
 0x3a6   : > { %v4727_v60 = vrot.slane %v4726_v63, 2  ;;  %v4796_v9 = vadd.f32 %v4795_v28, %v4794_v49  ;;  %p7068_p11 = por %p7067_p10, %p7066_p8 }
 0x3a8   : > { %v4728_v15 = vadd.f32 %v4727_v60, %v4726_v63  ;;  %v4797_v39 = vrot.slane %v4796_v9, 2  ;;  %p7069_p12 = pnand %p7068_p11, %p7062_p2 }
 0x3aa   : > { %v4729_v53 = vrot.slane %v4728_v15, 1  ;;  %v4798_v43 = vadd.f32 %v4797_v39, %v4796_v9 }
 0x3ac   : > { %v4730_v5 = vadd.f32 %v4729_v53, %v4728_v15  ;;  %v4799_v30 = vrot.slane %v4798_v43, 1 }
 0x3ae   : > { %4731 = vst [vmem:[%s439_s3] sm:$0x1] %v4730_v5  ;;  %v4800_v1 = vadd.f32 %v4799_v30, %v4798_v43 }
 0x3af   : > { %7072 = shalt.err (!%p7069_p12)
}
 0x3b0   : > { %s7073_s17 = scalar_lea.hbm %s9529_s9, 16  ;;  %s7077_s15 = scalar_lea.hbm %s9616_s8, 32 }
 0x3b1   : > { %p7074_p0 = scmp.ne.s32.totalorder %s9529_s9, %s7073_s17  ;;  %p7078_p6 = scmp.lt.u32.totalorder %s9529_s9, %s9616_s8 }
 0x3b2   : > { %p7079_p4 = scmp.lt.u32.totalorder %s7077_s15, %s7073_s17  ;;  %p7081_p1 = scmp.lt.u32.totalorder %s7073_s17, %s9529_s9 }
 0x3b3   : > { %p7075_p5 = pnand %p7074_p0, %p10076_p9 }
 0x3b4   : > { %p7080_p13 = por %p7079_p4, %p7078_p6 }
 0x3b5   : > { %p7076_p7 = pneg %p7075_p5 }
 0x3b6   : > { %p7082_p3 = por %p7081_p1, %p7080_p13 }
 0x3b8   : > { %p7083_p2 = pnand %p7082_p3, %p7076_p7 }
 0x3ba   : > { %7086 = shalt.err (!%p7083_p2)
}
 0x3bb   : > { %6192 = dma.vmem_to_hbm [thread:$0]  (%p10076_p9), %s9531_s13, 16, %s9529_s9, %s9540_s22  }
 0x3bc   : > { %s10078_s26 = scalar_lea.vmem [#allocation18], %s7504_s18  ;;  %s7087_s25 = scalar_lea.vmem %s9538_s27, 16 }
 0x3bd   : > { %4801 = vst [vmem:[%s10078_s26] sm:$0x1] %v4800_v1  ;;  %p7088_p8 = scmp.ne.s32.totalorder %s9538_s27, %s7087_s25  ;;  %s7188_s20 = smov [#allocation18]  }
 0x3be   : > { %s7091_s17 = sshll.u32 %s7188_s20, 4  ;;  %s7092_s17 = int_to_ptr.vmem [resolvable:$false] %s7091_s17 }
 0x3bf   : > { %p7089_p10 = pnand %p7088_p8, %p10076_p9  ;;  %s7093_s24 = scalar_lea.vmem %s7092_s17, 32 }
 0x3c0   : > { %p7094_p12 = scmp.lt.s32.totalorder %s9538_s27, %s7092_s17  ;;  %p7095_p0 = scmp.lt.s32.totalorder %s7093_s24, %s7087_s25 }
 0x3c1   : > { %p7090_p11 = pneg %p7089_p10 }
 0x3c2   : > { %p7096_p5 = por %p7095_p0, %p7094_p12 }
 0x3c4   : > { %p7097_p7 = pnand %p7096_p5, %p7090_p11 }
 0x3c6   : > { %7100 = shalt.err (!%p7097_p7)
}
 0x3c7   : > { %s7101_s18 = scalar_lea.hbm %s9536_s19, 16  ;;  %s7105_s3 = scalar_lea.hbm %s10077_s14, 32 }
 0x3c8   : > { %p7102_p6 = scmp.ne.s32.totalorder %s9536_s19, %s7101_s18  ;;  %p7106_p1 = scmp.lt.u32.totalorder %s9536_s19, %s10077_s14 }
 0x3c9   : > { %p7107_p3 = scmp.lt.u32.totalorder %s7105_s3, %s7101_s18  ;;  %p7109_p8 = scmp.lt.u32.totalorder %s7101_s18, %s9536_s19 }
 0x3ca   : > { %p7103_p4 = pnand %p7102_p6, %p10076_p9 }
 0x3cb   : > { %p7108_p2 = por %p7107_p3, %p7106_p1 }
 0x3cc   : > { %p7104_p13 = pneg %p7103_p4 }
 0x3cd   : > { %p7110_p10 = por %p7109_p8, %p7108_p2 }
 0x3cf   : > { %p7111_p11 = pnand %p7110_p10, %p7104_p13 }
 0x3d1   : > { %7114 = shalt.err (!%p7111_p11)
}
 0x3d2   : > { %6193 = dma.vmem_to_hbm [thread:$0]  (%p10076_p9), %s9538_s27, 16, %s9536_s19, %s9540_s22  }
 0x3d3 PF: > { %s4865_s21 = sand.u32 1, %s7157_s30   ;;  %p10079_p12 = scmp.ne.s32.totalorder %s9778_s29, 0 }
 0x3d4   : > { %p10080_p0 = scmp.ge.s32.totalorder %s7169_s12, 2  ;;  %s4866_s26 = scalar_lea.sflag [#allocation5], %s4865_s21 }
 0x3d6   : > { %p6221_p5 = pnand %p10080_p0, %p10079_p12 }
 0x3d8   : > { %7148 = dma.done.wait (!%p6221_p5), %s4866_s26, 2048  }
 0x3d9   : > { %7150 = vsyncadd (!%p6221_p5), %s4866_s26, 4294965248  ;;  %s10081_s25 = sadd.s32 4294967294, %s7169_s12  }
 0x3da   : > { %s4874_s20 = sand.u32 1, %s10081_s25  }
 0x3db   : > { %s4875_s17 = scalar_lea.sflag [#allocation17], %s4874_s20 }
 0x3dc   : > { %7152 = dma.done.wait (!%p6221_p5), %s4875_s17, 32  }
 0x3dd   : > { %7154 = vsyncadd (!%p6221_p5), %s4875_s17, 4294967264  ;;  %p29_p9 = scmp.ge.s32.totalorder %s7420_s1, 4   ;;  %s10082_s30 = smov %s7161_s10 }
 0x3de   : > { %s10083_s10 = smov %s7165_s11  ;;  %s10084_s11 = smov %s7431_s23 }
 0x3df   : > { %s10085_s12 = smov %s7420_s1  ;;  %31 = sbr.rel (!%p29_p9) target bundleno = 14 (0xe), region = 151 }
 0x3e6   :  { %4887 = vsyncpa [#allocation4], 1 }
 0x3e7   :  { %4889 = vsyncpa [#allocation4 + $0x1], 1 }
 0x3e8   :  { %4890 = vsyncpa [#allocation7], 1 }
 0x3e9   :  { %4891 = vsyncpa [#allocation10], 1 }
 0x3ea   :  { %4892 = vsyncpa [#allocation13], 1 }
 0x3eb   :  { %4893 = vsyncpa [#allocation5], 1 }
 0x3ec   :  { %4895 = vsyncpa [#allocation5 + $0x1], 1 }
 0x3ed   :  { %4896 = vsyncpa [#allocation17], 1 }
 0x3ee   :  { %4898 = vsyncpa [#allocation17 + $0x1], 1 }

</bundles_post_ra>
